<compile_context>
chip_gen: v7x
topology: tpu7x:2x2x1
jax: 0.10.0
libtpu: 0.0.40
codegen_flags: <defaults>
</compile_context>

<pallas_src>
import jax
import jax.numpy as jnp
from jax import lax
from jax.experimental import pallas as pl
from jax.experimental.pallas import tpu as pltpu


def _round_up(x, m):
    return (x + m - 1) // m * m


# Static architecture config (n_channel=4, hidden_channel=8, input 40x40).
LAYER_CFG = (
    dict(cout=8,  ksz=5, stride=2, pad=1, dil=1),   # conv1
    dict(cout=16, ksz=3, stride=1, pad=1, dil=1),   # conv2
    dict(cout=16, ksz=3, stride=1, pad=1, dil=2),   # conv3
)
FC_OUT = 512
FC_H = FC_W = 17          # spatial size after conv3 implied by fc1 (289 = 17*17)


# ---------------------------------------------------------------------------
# Pallas kernel: fused matmul + bias + leaky_relu (hot path for all 4 layers)
# ---------------------------------------------------------------------------
def _matmul_bias_lrelu_kernel(a_ref, w_ref, b_ref, o_ref):
    acc = jnp.dot(a_ref[...], w_ref[...], preferred_element_type=jnp.float32)
    acc = acc + b_ref[...]                                      # (1, bn) broadcasts
    o_ref[...] = jnp.maximum(acc, 0.01 * acc).astype(o_ref.dtype)   # leaky_relu


def matmul_bias_leaky_relu(a, w_p, b_p, n_out, out_dtype):
    """leaky_relu(a @ W + b) with pre-padded bf16 weight w_p (Kp, Np)."""
    M, K = a.shape
    Kp, Np = w_p.shape
    assert K <= Kp and n_out <= Np
    Mp = _round_up(M, 16)                                       # bf16 sublane tile
    a_p = jnp.zeros((Mp, Kp), jnp.bfloat16).at[:M, :K].set(a.astype(jnp.bfloat16))

    bn = 256 if Np % 256 == 0 else 128                          # fc: 2 blocks -> megacore
    grid = (Np // bn,)
    out = pl.pallas_call(
        _matmul_bias_lrelu_kernel,
        out_shape=jax.ShapeDtypeStruct((Mp, Np), out_dtype),
        grid=grid,
        in_specs=[
            pl.BlockSpec((Mp, Kp), lambda j: (0, 0)),           # A resident across N
            pl.BlockSpec((Kp, bn), lambda j: (0, j)),           # weight column block
            pl.BlockSpec((1, bn), lambda j: (0, j)),            # bias column block
        ],
        out_specs=pl.BlockSpec((Mp, bn), lambda j: (0, j)),
        compiler_params=pltpu.CompilerParams(
            dimension_semantics=("parallel",),
            vmem_limit_bytes=24 * 1024 * 1024,
        ),
    )(a_p, w_p, b_p)
    return out[:M, :n_out]


# ---------------------------------------------------------------------------
# One-time weight preparation: transpose + pad + cast to bf16
# ---------------------------------------------------------------------------
def prepare_params(params, hidden_channel=8):
    hc2 = hidden_channel * 2

    def pack(w_mat, bias):
        K, N = w_mat.shape
        Kp, Np = _round_up(K, 128), _round_up(N, 128)
        w_p = jnp.zeros((Kp, Np), jnp.bfloat16).at[:K, :N].set(w_mat.astype(jnp.bfloat16))
        b_p = jnp.zeros((1, Np), jnp.float32).at[0, :N].set(bias.astype(jnp.float32))
        return w_p, b_p

    prepped = {}
    for i in (1, 2, 3):
        w = params[f"w{i}"]                         # (O, I, KH, KW)
        w_mat = w.reshape(w.shape[0], -1).T         # (I*KH*KW, O), rows ordered (c,kh,kw)
        prepped[f"w{i}"], prepped[f"b{i}"] = pack(w_mat, params[f"b{i}"])

    # torch.flatten(NCHW) gives (c,h,w)-ordered fc columns; activations stay
    # NHWC in our forward, so permute the columns once to (h,w,c).
    wfc = params["wfc"].reshape(FC_OUT, hc2, FC_H, FC_W)
    wfc = jnp.transpose(wfc, (0, 2, 3, 1)).reshape(FC_OUT, hc2 * FC_H * FC_W)
    prepped["wfc"], prepped["bfc"] = pack(wfc.T, params["bfc"])
    return prepped


# ---------------------------------------------------------------------------
# Plain-JAX glue: im2col patch extraction (single fused XLA op per layer)
# ---------------------------------------------------------------------------
def _im2col_nhwc(x_nhwc, ksz, stride, pad, dil):
    patches = lax.conv_general_dilated_patches(
        x_nhwc,
        filter_shape=(ksz, ksz),
        window_strides=(stride, stride),
        padding=[(pad, pad), (pad, pad)],
        rhs_dilation=(dil, dil),
        dimension_numbers=("NHWC", "HWIO", "NHWC"),
    )                                               # (B, HO, WO, C*ksz*ksz), order (c,kh,kw)
    B, HO, WO, F = patches.shape
    return patches.reshape(B * HO * WO, F), HO, WO


# ---------------------------------------------------------------------------
# ConvNet forward: conv1 -> conv2 -> conv3 -> flatten -> fc1 (all leaky_relu)
# ---------------------------------------------------------------------------
@jax.jit
def convnet_forward(prepped, x_nchw):
    x = jnp.transpose(x_nchw, (0, 2, 3, 1)).astype(jnp.bfloat16)     # -> NHWC bf16 once
    B = x.shape[0]
    for i, cfg in enumerate(LAYER_CFG, start=1):
        patches, HO, WO = _im2col_nhwc(x, cfg["ksz"], cfg["stride"], cfg["pad"], cfg["dil"])
        y = matmul_bias_leaky_relu(patches, prepped[f"w{i}"], prepped[f"b{i}"],
                                   cfg["cout"], out_dtype=jnp.bfloat16)
        x = y.reshape(B, HO, WO, cfg["cout"])                        # stays NHWC
    # fc weights were column-permuted to (h,w,c) order, so flatten NHWC directly.
    x = x.reshape(B, -1)                                             # (B, 289*16)
    return matmul_bias_leaky_relu(x, prepped["wfc"], prepped["bfc"], FC_OUT,
                                  out_dtype=jnp.float32)


# ---------------------------------------------------------------------------
# Pure-JAX f32 reference (sanity check only, exact PyTorch semantics)
# ---------------------------------------------------------------------------
def ref_forward(params, x_nchw):
    def conv(x, w, b, stride, pad, dil):
        y = lax.conv_general_dilated(
            x, w, window_strides=(stride, stride),
            padding=[(pad, pad), (pad, pad)],
            rhs_dilation=(dil, dil),
            dimension_numbers=("NCHW", "OIHW", "NCHW"))
        y = y + b[None, :, None, None]
        return jnp.where(y > 0, y, 0.01 * y)

    x = conv(x_nchw, params["w1"], params["b1"], 2, 1, 1)
    x = conv(x, params["w2"], params["b2"], 1, 1, 1)
    x = conv(x, params["w3"], params["b3"], 1, 1, 2)
    x = x.reshape(x.shape[0], -1)                   # NCHW flatten: (c,h,w) order
    y = x @ params["wfc"].T + params["bfc"]
    return jnp.where(y > 0, y, 0.01 * y)


def init_params(key, n_channel=4, hidden_channel=8):
    ks = jax.random.split(key, 8)
    hc2 = hidden_channel * 2

    def kaiming(k, shape, fan_in):
        return jax.random.normal(k, shape, jnp.float32) * jnp.sqrt(2.0 / fan_in)

    def bias(k, n, fan_in):
        bound = 1.0 / jnp.sqrt(fan_in)
        return jax.random.uniform(k, (n,), jnp.float32, -bound, bound)

    return {
        "w1": kaiming(ks[0], (hidden_channel, n_channel, 5, 5), n_channel * 25),
        "b1": bias(ks[1], hidden_channel, n_channel * 25),
        "w2": kaiming(ks[2], (hc2, hidden_channel, 3, 3), hidden_channel * 9),
        "b2": bias(ks[3], hc2, hidden_channel * 9),
        "w3": kaiming(ks[4], (hc2, hc2, 3, 3), hc2 * 9),
        "b3": bias(ks[5], hc2, hc2 * 9),
        "wfc": kaiming(ks[6], (512, 289 * hc2), 289 * hc2),
        "bfc": bias(ks[7], 512, 289 * hc2),
    }


if __name__ == "__main__":
    key = jax.random.PRNGKey(0)
    k_param, k_x = jax.random.split(key)
    params = init_params(k_param)
    prepped = prepare_params(params)        # one-time transpose/permute/pad/bf16 cast

    # Spatial size 40 is implied by fc1's 289*hidden*2 input dim
    # (40 --conv1 s2 k5 p1--> 19 --conv2--> 19 --conv3 d2--> 17, 17*17=289).
    x = jax.random.normal(k_x, (2, 4, 40, 40), jnp.float32)

    out = jax.block_until_ready(convnet_forward(prepped, x))
    assert out.shape == (2, 512), out.shape

    ref = jax.block_until_ready(ref_forward(params, x))
    rel_err = float(jnp.max(jnp.abs(out - ref)) / (jnp.max(jnp.abs(ref)) + 1e-6))
    assert rel_err < 3e-2, f"mismatch vs reference: rel_err={rel_err}"

    print("KERNEL_OK")
</pallas_src>

<mosaic_0001>
module attributes {stable_mosaic.version = 11 : i64} {
  func.func @_matmul_bias_lrelu_kernel(%arg0: i32, %arg1: memref<736x128xbf16, #tpu.memory_space<vmem>>, %arg2: memref<128x128xbf16, #tpu.memory_space<vmem>>, %arg3: memref<1x128xf32, #tpu.memory_space<vmem>>, %arg4: memref<736x128xbf16, #tpu.memory_space<vmem>>) attributes {dimension_semantics = [#tpu.dimension_semantics<parallel>], iteration_bounds = array<i64: 1>, scalar_prefetch = 0 : i64, scratch_operands = 0 : i64, tpu.core_type = #tpu.core_type<tc>, window_params = [{pipeline_mode = #tpu.pipeline_mode<synchronous>, transform_indices = @transform_0, window_bounds = array<i64: 736, 128>}, {transform_indices = @transform_1, window_bounds = array<i64: 128, 128>}, {transform_indices = @transform_2, window_bounds = array<i64: 1, 128>}, {transform_indices = @transform_3, window_bounds = array<i64: 736, 128>}]} {
    %c0 = arith.constant 0 : index
    %c0_0 = arith.constant 0 : index
    %0 = vector.load %arg1[%c0, %c0_0] : memref<736x128xbf16, #tpu.memory_space<vmem>>, vector<736x128xbf16>
    %c0_1 = arith.constant 0 : index
    %c0_2 = arith.constant 0 : index
    %1 = vector.load %arg2[%c0_1, %c0_2] : memref<128x128xbf16, #tpu.memory_space<vmem>>, vector<128x128xbf16>
    %cst = arith.constant dense<0.000000e+00> : vector<736x128xf32>
    %2 = tpu.matmul %0, %1, %cst {dimension_numbers = #tpu.dot_dimension_numbers<[1], [0], [0], [1], [0, 0, 1, 1], [], []>} : vector<736x128xbf16>, vector<128x128xbf16>, vector<736x128xf32> -> vector<736x128xf32>
    %c0_3 = arith.constant 0 : index
    %c0_4 = arith.constant 0 : index
    %3 = vector.load %arg3[%c0_3, %c0_4] : memref<1x128xf32, #tpu.memory_space<vmem>>, vector<1x128xf32>
    %4 = vector.broadcast %3 : vector<1x128xf32> to vector<736x128xf32>
    %5 = arith.addf %2, %4 : vector<736x128xf32>
    %cst_5 = arith.constant 0.00999999977 : f32
    %6 = vector.broadcast %cst_5 : f32 to vector<736x128xf32>
    %7 = arith.mulf %6, %5 : vector<736x128xf32>
    %8 = arith.maximumf %5, %7 : vector<736x128xf32>
    %9 = arith.truncf %8 : vector<736x128xf32> to vector<736x128xbf16>
    %c0_6 = arith.constant 0 : index
    %c0_7 = arith.constant 0 : index
    %10 = vector.load %arg4[%c0_6, %c0_7] : memref<736x128xbf16, #tpu.memory_space<vmem>>, vector<736x128xbf16>
    tpu.vector_store %arg4[%c0_6, %c0_7], %9 {strides = array<i32>} : memref<736x128xbf16, #tpu.memory_space<vmem>>, vector<736x128xbf16>,
    return
  }
  func.func @transform_0(%arg0: i32) -> (i32, i32) {
    %c0_i32 = arith.constant 0 : i32
    %c0_i32_0 = arith.constant 0 : i32
    %c0_i32_1 = arith.constant 0 : i32
    return %c0_i32, %c0_i32_0 : i32, i32
  }
  func.func @transform_1(%arg0: i32) -> (i32, i32) {
    %c0_i32 = arith.constant 0 : i32
    %c0_i32_0 = arith.constant 0 : i32
    return %c0_i32, %arg0 : i32, i32
  }
  func.func @transform_2(%arg0: i32) -> (i32, i32) {
    %c0_i32 = arith.constant 0 : i32
    %c0_i32_0 = arith.constant 0 : i32
    return %c0_i32, %arg0 : i32, i32
  }
  func.func @transform_3(%arg0: i32) -> (i32, i32) {
    %c0_i32 = arith.constant 0 : i32
    %c0_i32_0 = arith.constant 0 : i32
    return %c0_i32, %arg0 : i32, i32
  }
}

module attributes {stable_mosaic.version = 11 : i64} {
  func.func @_matmul_bias_lrelu_kernel(%arg0: i32, %arg1: memref<592x256xbf16, #tpu.memory_space<vmem>>, %arg2: memref<256x128xbf16, #tpu.memory_space<vmem>>, %arg3: memref<1x128xf32, #tpu.memory_space<vmem>>, %arg4: memref<592x128xbf16, #tpu.memory_space<vmem>>) attributes {dimension_semantics = [#tpu.dimension_semantics<parallel>], iteration_bounds = array<i64: 1>, scalar_prefetch = 0 : i64, scratch_operands = 0 : i64, tpu.core_type = #tpu.core_type<tc>, window_params = [{pipeline_mode = #tpu.pipeline_mode<synchronous>, transform_indices = @transform_0, window_bounds = array<i64: 592, 256>}, {transform_indices = @transform_1, window_bounds = array<i64: 256, 128>}, {transform_indices = @transform_2, window_bounds = array<i64: 1, 128>}, {transform_indices = @transform_3, window_bounds = array<i64: 592, 128>}]} {
    %c0 = arith.constant 0 : index
    %c0_0 = arith.constant 0 : index
    %0 = vector.load %arg1[%c0, %c0_0] : memref<592x256xbf16, #tpu.memory_space<vmem>>, vector<592x256xbf16>
    %c0_1 = arith.constant 0 : index
    %c0_2 = arith.constant 0 : index
    %1 = vector.load %arg2[%c0_1, %c0_2] : memref<256x128xbf16, #tpu.memory_space<vmem>>, vector<256x128xbf16>
    %cst = arith.constant dense<0.000000e+00> : vector<592x128xf32>
    %2 = tpu.matmul %0, %1, %cst {dimension_numbers = #tpu.dot_dimension_numbers<[1], [0], [0], [1], [0, 0, 1, 1], [], []>} : vector<592x256xbf16>, vector<256x128xbf16>, vector<592x128xf32> -> vector<592x128xf32>
    %c0_3 = arith.constant 0 : index
    %c0_4 = arith.constant 0 : index
    %3 = vector.load %arg3[%c0_3, %c0_4] : memref<1x128xf32, #tpu.memory_space<vmem>>, vector<1x128xf32>
    %4 = vector.broadcast %3 : vector<1x128xf32> to vector<592x128xf32>
    %5 = arith.addf %2, %4 : vector<592x128xf32>
    %cst_5 = arith.constant 0.00999999977 : f32
    %6 = vector.broadcast %cst_5 : f32 to vector<592x128xf32>
    %7 = arith.mulf %6, %5 : vector<592x128xf32>
    %8 = arith.maximumf %5, %7 : vector<592x128xf32>
    %9 = arith.truncf %8 : vector<592x128xf32> to vector<592x128xbf16>
    %c0_6 = arith.constant 0 : index
    %c0_7 = arith.constant 0 : index
    %10 = vector.load %arg4[%c0_6, %c0_7] : memref<592x128xbf16, #tpu.memory_space<vmem>>, vector<592x128xbf16>
    tpu.vector_store %arg4[%c0_6, %c0_7], %9 {strides = array<i32>} : memref<592x128xbf16, #tpu.memory_space<vmem>>, vector<592x128xbf16>,
    return
  }
  func.func @transform_0(%arg0: i32) -> (i32, i32) {
    %c0_i32 = arith.constant 0 : i32
    %c0_i32_0 = arith.constant 0 : i32
    %c0_i32_1 = arith.constant 0 : i32
    return %c0_i32, %c0_i32_0 : i32, i32
  }
  func.func @transform_1(%arg0: i32) -> (i32, i32) {
    %c0_i32 = arith.constant 0 : i32
    %c0_i32_0 = arith.constant 0 : i32
    return %c0_i32, %arg0 : i32, i32
  }
  func.func @transform_2(%arg0: i32) -> (i32, i32) {
    %c0_i32 = arith.constant 0 : i32
    %c0_i32_0 = arith.constant 0 : i32
    return %c0_i32, %arg0 : i32, i32
  }
  func.func @transform_3(%arg0: i32) -> (i32, i32) {
    %c0_i32 = arith.constant 0 : i32
    %c0_i32_0 = arith.constant 0 : i32
    return %c0_i32, %arg0 : i32, i32
  }
}

module attributes {stable_mosaic.version = 11 : i64} {
  func.func @_matmul_bias_lrelu_kernel(%arg0: i32, %arg1: memref<16x4736xbf16, #tpu.memory_space<vmem>>, %arg2: memref<4736x256xbf16, #tpu.memory_space<vmem>>, %arg3: memref<1x256xf32, #tpu.memory_space<vmem>>, %arg4: memref<16x256xf32, #tpu.memory_space<vmem>>) attributes {dimension_semantics = [#tpu.dimension_semantics<parallel>], iteration_bounds = array<i64: 2>, scalar_prefetch = 0 : i64, scratch_operands = 0 : i64, tpu.core_type = #tpu.core_type<tc>, window_params = [{pipeline_mode = #tpu.pipeline_mode<synchronous>, transform_indices = @transform_0, window_bounds = array<i64: 16, 4736>}, {transform_indices = @transform_1, window_bounds = array<i64: 4736, 256>}, {transform_indices = @transform_2, window_bounds = array<i64: 1, 256>}, {transform_indices = @transform_3, window_bounds = array<i64: 16, 256>}]} {
    %c0 = arith.constant 0 : index
    %c0_0 = arith.constant 0 : index
    %0 = vector.load %arg1[%c0, %c0_0] : memref<16x4736xbf16, #tpu.memory_space<vmem>>, vector<16x4736xbf16>
    %c0_1 = arith.constant 0 : index
    %c0_2 = arith.constant 0 : index
    %1 = vector.load %arg2[%c0_1, %c0_2] : memref<4736x256xbf16, #tpu.memory_space<vmem>>, vector<4736x256xbf16>
    %cst = arith.constant dense<0.000000e+00> : vector<16x256xf32>
    %2 = tpu.matmul %0, %1, %cst {dimension_numbers = #tpu.dot_dimension_numbers<[1], [0], [0], [1], [0, 0, 1, 1], [], []>} : vector<16x4736xbf16>, vector<4736x256xbf16>, vector<16x256xf32> -> vector<16x256xf32>
    %c0_3 = arith.constant 0 : index
    %c0_4 = arith.constant 0 : index
    %3 = vector.load %arg3[%c0_3, %c0_4] : memref<1x256xf32, #tpu.memory_space<vmem>>, vector<1x256xf32>
    %4 = vector.broadcast %3 : vector<1x256xf32> to vector<16x256xf32>
    %5 = arith.addf %2, %4 : vector<16x256xf32>
    %cst_5 = arith.constant 0.00999999977 : f32
    %6 = vector.broadcast %cst_5 : f32 to vector<16x256xf32>
    %7 = arith.mulf %6, %5 : vector<16x256xf32>
    %8 = arith.maximumf %5, %7 : vector<16x256xf32>
    %c0_6 = arith.constant 0 : index
    %c0_7 = arith.constant 0 : index
    %9 = vector.load %arg4[%c0_6, %c0_7] : memref<16x256xf32, #tpu.memory_space<vmem>>, vector<16x256xf32>
    tpu.vector_store %arg4[%c0_6, %c0_7], %8 {strides = array<i32>} : memref<16x256xf32, #tpu.memory_space<vmem>>, vector<16x256xf32>,
    return
  }
  func.func @transform_0(%arg0: i32) -> (i32, i32) {
    %c0_i32 = arith.constant 0 : i32
    %c0_i32_0 = arith.constant 0 : i32
    %c0_i32_1 = arith.constant 0 : i32
    return %c0_i32, %c0_i32_0 : i32, i32
  }
  func.func @transform_1(%arg0: i32) -> (i32, i32) {
    %c0_i32 = arith.constant 0 : i32
    %c0_i32_0 = arith.constant 0 : i32
    return %c0_i32, %arg0 : i32, i32
  }
  func.func @transform_2(%arg0: i32) -> (i32, i32) {
    %c0_i32 = arith.constant 0 : i32
    %c0_i32_0 = arith.constant 0 : i32
    return %c0_i32, %arg0 : i32, i32
  }
  func.func @transform_3(%arg0: i32) -> (i32, i32) {
    %c0_i32 = arith.constant 0 : i32
    %c0_i32_0 = arith.constant 0 : i32
    return %c0_i32, %arg0 : i32, i32
  }
}

</mosaic_0001>

<bundles_post_ra>
// kernel: convnet_forward.4
= control target key start
LH: loop header
LB: loop body
LE: loop exit
PB: predicated region body
PF: predicated region fallthrough
CT: control target
= control target key end

     0   :  { %s2666_s1 = inlined_call_operand.vmem [shape: bf16[128,128], index: 1, kind: input, shape index: {}]   ;;  %s2667_s0 = inlined_call_operand.vmem [shape: bf16[736,128], index: 0, kind: input, shape index: {}]   ;;  %s2668_s2 = inlined_call_operand.vmem [shape: f32[1,128], index: 2, kind: input, shape index: {}]   ;;  %s2669_s3 = inlined_call_operand.vmem [shape: bf16[736,128], index: 3, kind: output, shape index: {}]  }
   0x1   :  { %v2195_v0 = vld [vmem:[%s2666_s1] sm:$0xff]   ;;  %v2196_v1 = vld [vmem:[%s2666_s1 + $0x8] sm:$0xff]   ;;  %v2197_v2 = vld [vmem:[%s2666_s1 + $0x10] sm:$0xff]  }
   0x2   :  { %2071 = vmatprep.subr.bf16.mxu0 %v2195_v0  ;;  %2179 = vmatprep.subr.bf16.mxu1 %v2195_v0  ;;  %v2198_v3 = vld [vmem:[%s2666_s1 + $0x18] sm:$0xff]   ;;  %v2203_v4 = vld [vmem:[%s2667_s0] sm:$0xff]   ;;  %v2200_v7 = vld [vmem:[%s2666_s1 + $0x28] sm:$0xff]  }
   0x3   :  { %2072 = vmatpush3.bf16.msra.mxu0 %v2195_v0  ;;  %2187 = vmatpush3.bf16.msra.mxu1 %v2195_v0  ;;  %v2205_v5 = vld [vmem:[%s2667_s0 + $0xc0] sm:$0xff]   ;;  %v2201_v8 = vld [vmem:[%s2666_s1 + $0x30] sm:$0xff]   ;;  %v2202_v9 = vld [vmem:[%s2666_s1 + $0x38] sm:$0xff]  }
   0x4   :  { %2073 = vmatprep.subr.bf16.mxu0 %v2196_v1  ;;  %2180 = vmatprep.subr.bf16.mxu1 %v2196_v1  ;;  %v2199_v6 = vld [vmem:[%s2666_s1 + $0x20] sm:$0xff]   ;;  %v2204_v10 = vld [vmem:[%s2667_s0 + $0x8] sm:$0xff]   ;;  %v2207_v12 = vld [vmem:[%s2667_s0 + $0x10] sm:$0xff]  }
   0x5   :  { %2087 = vmatprep.mubr.bf16.mxu0 %v2203_v4  ;;  %2135 = vmatprep.mubr.bf16.mxu1 %v2205_v5  ;;  %v2206_v11 = vld [vmem:[%s2667_s0 + $0xc8] sm:$0xff]   ;;  %v2209_v13 = vld [vmem:[%s2667_s0 + $0xd0] sm:$0xff]   ;;  %v2208_v14 = vld [vmem:[%s2667_s0 + $0x18] sm:$0xff]  }
   0x6   :  { %v2210_v15 = vld [vmem:[%s2667_s0 + $0xd8] sm:$0xff]   ;;  %v2211_v16 = vld [vmem:[%s2667_s0 + $0x20] sm:$0xff]   ;;  %v2212_v18 = vld [vmem:[%s2667_s0 + $0x28] sm:$0xff]  }
   0x7   :  { %2074 = vmatpush3.bf16.msra.mxu0 %v2196_v1  ;;  %2188 = vmatpush3.bf16.msra.mxu1 %v2196_v1  ;;  %v2213_v17 = vld [vmem:[%s2667_s0 + $0xe0] sm:$0xff]   ;;  %v2214_v19 = vld [vmem:[%s2667_s0 + $0xe8] sm:$0xff]   ;;  %v2215_v20 = vld [vmem:[%s2667_s0 + $0x30] sm:$0xff]  }
   0x8   :  { %2075 = vmatprep.subr.bf16.mxu0 %v2197_v2  ;;  %2181 = vmatprep.subr.bf16.mxu1 %v2197_v2  ;;  %v2217_v21 = vld [vmem:[%s2667_s0 + $0xf0] sm:$0xff]   ;;  %v2216_v22 = vld [vmem:[%s2667_s0 + $0x38] sm:$0xff]   ;;  %v2219_v24 = vld [vmem:[%s2667_s0 + $0x40] sm:$0xff]  }
   0x9   :  { %v2218_v23 = vld [vmem:[%s2667_s0 + $0xf8] sm:$0xff]   ;;  %v2221_v25 = vld [vmem:[%s2667_s0 + $0x100] sm:$0xff]   ;;  %v2220_v26 = vld [vmem:[%s2667_s0 + $0x48] sm:$0xff]  }
   0xa   :  { %v2222_v27 = vld [vmem:[%s2667_s0 + $0x108] sm:$0xff]   ;;  %v2223_v28 = vld [vmem:[%s2667_s0 + $0x50] sm:$0xff]   ;;  %v2224_v30 = vld [vmem:[%s2667_s0 + $0x58] sm:$0xff]  }
   0xb   :  { %2076 = vmatpush3.bf16.msra.mxu0 %v2197_v2  ;;  %2189 = vmatpush3.bf16.msra.mxu1 %v2197_v2  ;;  %v2225_v29 = vld [vmem:[%s2667_s0 + $0x110] sm:$0xff]   ;;  %v2226_v31 = vld [vmem:[%s2667_s0 + $0x118] sm:$0xff]   ;;  %v2227_v32 = vld [vmem:[%s2667_s0 + $0x60] sm:$0xff]  }
   0xc   :  { %2077 = vmatprep.subr.bf16.mxu0 %v2198_v3  ;;  %2182 = vmatprep.subr.bf16.mxu1 %v2198_v3  ;;  %v2229_v33 = vld [vmem:[%s2667_s0 + $0x120] sm:$0xff]   ;;  %v2228_v34 = vld [vmem:[%s2667_s0 + $0x68] sm:$0xff]   ;;  %v2231_v36 = vld [vmem:[%s2667_s0 + $0x70] sm:$0xff]  }
   0xd   :  { %v2230_v35 = vld [vmem:[%s2667_s0 + $0x128] sm:$0xff]   ;;  %v2233_v37 = vld [vmem:[%s2667_s0 + $0x130] sm:$0xff]   ;;  %v2232_v38 = vld [vmem:[%s2667_s0 + $0x78] sm:$0xff]  }
   0xe   :  { %v2234_v39 = vld [vmem:[%s2667_s0 + $0x138] sm:$0xff]   ;;  %v2235_v40 = vld [vmem:[%s2667_s0 + $0x80] sm:$0xff]   ;;  %v2236_v42 = vld [vmem:[%s2667_s0 + $0x88] sm:$0xff]  }
   0xf   :  { %2078 = vmatpush3.bf16.msra.mxu0 %v2198_v3  ;;  %2190 = vmatpush3.bf16.msra.mxu1 %v2198_v3  ;;  %v2237_v41 = vld [vmem:[%s2667_s0 + $0x140] sm:$0xff]   ;;  %v2238_v43 = vld [vmem:[%s2667_s0 + $0x148] sm:$0xff]   ;;  %v2239_v44 = vld [vmem:[%s2667_s0 + $0x90] sm:$0xff]  }
  0x10   :  { %2079 = vmatprep.subr.bf16.mxu0 %v2199_v6  ;;  %2183 = vmatprep.subr.bf16.mxu1 %v2199_v6  ;;  %v2241_v45 = vld [vmem:[%s2667_s0 + $0x150] sm:$0xff]   ;;  %v2240_v46 = vld [vmem:[%s2667_s0 + $0x98] sm:$0xff]   ;;  %v2243_v48 = vld [vmem:[%s2667_s0 + $0xa0] sm:$0xff]  }
  0x11   :  { %v2242_v47 = vld [vmem:[%s2667_s0 + $0x158] sm:$0xff]   ;;  %v2245_v49 = vld [vmem:[%s2667_s0 + $0x160] sm:$0xff]   ;;  %v2244_v50 = vld [vmem:[%s2667_s0 + $0xa8] sm:$0xff]  }
  0x12   :  { %v2246_v51 = vld [vmem:[%s2667_s0 + $0x168] sm:$0xff]   ;;  %v2247_v52 = vld [vmem:[%s2667_s0 + $0xb0] sm:$0xff]   ;;  %v2248_v53 = vld [vmem:[%s2667_s0 + $0xb8] sm:$0xff]  }
  0x13   :  { %2080 = vmatpush3.bf16.msra.mxu0 %v2199_v6  ;;  %2191 = vmatpush3.bf16.msra.mxu1 %v2199_v6  ;;  %v2434_v54 = vld [vmem:[%s2668_s2] ss:$0 sm:$0xff] }
  0x14   :  { %2081 = vmatprep.subr.bf16.mxu0 %v2200_v7  ;;  %2184 = vmatprep.subr.bf16.mxu1 %v2200_v7 }
  0x17   :  { %2082 = vmatpush3.bf16.msra.mxu0 %v2200_v7  ;;  %2192 = vmatpush3.bf16.msra.mxu1 %v2200_v7 }
  0x18   :  { %2083 = vmatprep.subr.bf16.mxu0 %v2201_v8  ;;  %2185 = vmatprep.subr.bf16.mxu1 %v2201_v8 }
  0x1b   :  { %2084 = vmatpush3.bf16.msra.mxu0 %v2201_v8  ;;  %2193 = vmatpush3.bf16.msra.mxu1 %v2201_v8 }
  0x1c   :  { %2085 = vmatprep.subr.bf16.mxu0 %v2202_v9  ;;  %2186 = vmatprep.subr.bf16.mxu1 %v2202_v9 }
  0x1f   :  { %2086 = vmatpush3.bf16.msra.mxu0 %v2202_v9  ;;  %2194 = vmatpush3.bf16.msra.mxu1 %v2202_v9 }
  0x22   :  { %2088 = vmatmul.mubr.bf16.vlgmr.msra.gmra.mrb[0].mxu0 %v2204_v10  ;;  %2136 = vmatmul.mubr.bf16.vlgmr.msra.gmra.mrb[0].mxu1 %v2206_v11 }
  0x23   :  { %2091 = vmatprep.mubr.bf16.mxu0 %v2207_v12  ;;  %2139 = vmatprep.mubr.bf16.mxu1 %v2209_v13 }
  0x2a   :  { %2092 = vmatmul.mubr.bf16.gmra.mrb[4].mxu0 %v2208_v14  ;;  %2140 = vmatmul.mubr.bf16.gmra.mrb[4].mxu1 %v2210_v15 }
  0x2b   :  { %2095 = vmatprep.mubr.bf16.mxu0 %v2211_v16  ;;  %2143 = vmatprep.mubr.bf16.mxu1 %v2213_v17 }
  0x32   :  { %2096 = vmatmul.mubr.bf16.gmra.mrb[8].mxu0 %v2212_v18  ;;  %2144 = vmatmul.mubr.bf16.gmra.mrb[8].mxu1 %v2214_v19 }
  0x33   :  { %2099 = vmatprep.mubr.bf16.mxu0 %v2215_v20  ;;  %2147 = vmatprep.mubr.bf16.mxu1 %v2217_v21 }
  0x3a   :  { %2100 = vmatmul.mubr.bf16.gmra.mrb[12].mxu0 %v2216_v22  ;;  %2148 = vmatmul.mubr.bf16.gmra.mrb[12].mxu1 %v2218_v23 }
  0x3b   :  { %2103 = vmatprep.mubr.bf16.mxu0 %v2219_v24  ;;  %2151 = vmatprep.mubr.bf16.mxu1 %v2221_v25 }
  0x42   :  { %2104 = vmatmul.mubr.bf16.gmra.mrb[16].mxu0 %v2220_v26  ;;  %2152 = vmatmul.mubr.bf16.gmra.mrb[16].mxu1 %v2222_v27 }
  0x43   :  { %2107 = vmatprep.mubr.bf16.mxu0 %v2223_v28  ;;  %2155 = vmatprep.mubr.bf16.mxu1 %v2225_v29 }
  0x4a   :  { %2108 = vmatmul.mubr.bf16.gmra.mrb[20].mxu0 %v2224_v30  ;;  %2156 = vmatmul.mubr.bf16.gmra.mrb[20].mxu1 %v2226_v31 }
  0x4b   :  { %2111 = vmatprep.mubr.bf16.mxu0 %v2227_v32  ;;  %2159 = vmatprep.mubr.bf16.mxu1 %v2229_v33 }
  0x52   :  { %2112 = vmatmul.mubr.bf16.gmra.mrb[24].mxu0 %v2228_v34  ;;  %2160 = vmatmul.mubr.bf16.gmra.mrb[24].mxu1 %v2230_v35 }
  0x53   :  { %2115 = vmatprep.mubr.bf16.mxu0 %v2231_v36  ;;  %2163 = vmatprep.mubr.bf16.mxu1 %v2233_v37 }
  0x5a   :  { %2116 = vmatmul.mubr.bf16.gmra.mrb[28].mxu0 %v2232_v38  ;;  %2164 = vmatmul.mubr.bf16.gmra.mrb[28].mxu1 %v2234_v39 }
  0x5b   :  { %2119 = vmatprep.mubr.bf16.mxu0 %v2235_v40  ;;  %2167 = vmatprep.mubr.bf16.mxu1 %v2237_v41 }
  0x62   :  { %2120 = vmatmul.mubr.bf16.gmra.mrb[32].mxu0 %v2236_v42  ;;  %2168 = vmatmul.mubr.bf16.gmra.mrb[32].mxu1 %v2238_v43 }
  0x63   :  { %2123 = vmatprep.mubr.bf16.mxu0 %v2239_v44  ;;  %2171 = vmatprep.mubr.bf16.mxu1 %v2241_v45 }
  0x6a   :  { %2124 = vmatmul.mubr.bf16.gmra.mrb[36].mxu0 %v2240_v46  ;;  %2172 = vmatmul.mubr.bf16.gmra.mrb[36].mxu1 %v2242_v47 }
  0x6b   :  { %2127 = vmatprep.mubr.bf16.mxu0 %v2243_v48  ;;  %2175 = vmatprep.mubr.bf16.mxu1 %v2245_v49 }
  0x72   :  { %2128 = vmatmul.mubr.bf16.gmra.mrb[40].mxu0 %v2244_v50  ;;  %2176 = vmatmul.mubr.bf16.gmra.mrb[40].mxu1 %v2246_v51 }
  0x73   :  { %2131 = vmatprep.mubr.bf16.mxu0 %v2247_v52 }
  0x7a   :  { %2132 = vmatmul.mubr.bf16.gmra.mrb[44].mxu0 %v2248_v53 }
  0xf5   :  { %v2089_v55 = vpop.f32.mrb[0].mxu0  ;;  %v2137_v56 = vpop.f32.mrb[0].mxu1 }
  0xf6   :  { %v497_v57 = vadd.f32 %v2089_v55, %v2434_v54  ;;  %v488_v58 = vpop.f32.mrb[1].mxu0  ;;  %v689_v59 = vadd.f32 %v2137_v56, %v2434_v54  ;;  %v680_v60 = vpop.f32.mrb[1].mxu1 }
  0xf7   :  { %v489_v61 = vadd.f32 %v2434_v54, %v488_v58  ;;  %v2090_v62 = vpop.f32.mrb[2].mxu0  ;;  %v681_v63 = vadd.f32 %v2434_v54, %v680_v60  ;;  %v2138_v0 = vpop.f32.mrb[2].mxu1 }
  0xf8   :  { %v857_v1 = vmul.f32 0.01, %v497_v57  ;;  %v500_v2 = vadd.f32 %v2090_v62, %v2434_v54  ;;  %v491_v3 = vpop.f32.mrb[3].mxu0  ;;  %v905_v4 = vmul.f32 0.01, %v689_v59  ;;  %v692_v5 = vadd.f32 %v2138_v0, %v2434_v54  ;;  %v683_v6 = vpop.f32.mrb[3].mxu1 }
  0xf9   :  { %v855_v7 = vmul.f32 0.01, %v489_v61  ;;  %v492_v8 = vadd.f32 %v2434_v54, %v491_v3  ;;  %v903_v9 = vmul.f32 0.01, %v681_v63  ;;  %v684_v10 = vadd.f32 %v2434_v54, %v683_v6 }
  0xfa   :  { %v858_v11 = vmul.f32 0.01, %v500_v2  ;;  %v997_v12 = vmax.f32 %v689_v59, %v905_v4  ;;  %v906_v13 = vmul.f32 0.01, %v692_v5  ;;  %v949_v17 = vmax.f32 %v497_v57, %v857_v1 }
  0xfb   :  { %v856_v14 = vmul.f32 0.01, %v492_v8  ;;  %v995_v15 = vmax.f32 %v681_v63, %v903_v9  ;;  %v904_v16 = vmul.f32 0.01, %v684_v10  ;;  %v947_v20 = vmax.f32 %v489_v61, %v855_v7 }
  0xfc   :  { %v950_v18 = vmax.f32 %v500_v2, %v858_v11  ;;  %v998_v19 = vmax.f32 %v692_v5, %v906_v13 }
  0xfd   :  { %v948_v21 = vmax.f32 %v492_v8, %v856_v14  ;;  %v996_v22 = vmax.f32 %v684_v10, %v904_v16  ;;  %v2093_v23 = vpop.f32.mrb[4].mxu0  ;;  %v2141_v24 = vpop.f32.mrb[4].mxu1 }
  0xfe   :  { %v1750_v25 = vpack.c.bf16 %v950_v18, %v949_v17  ;;  %v1870_v26 = vpack.c.bf16 %v998_v19, %v997_v12  ;;  %v513_v27 = vadd.f32 %v2093_v23, %v2434_v54  ;;  %v504_v28 = vpop.f32.mrb[5].mxu0  ;;  %v705_v29 = vadd.f32 %v2141_v24, %v2434_v54  ;;  %v696_v30 = vpop.f32.mrb[5].mxu1 }
  0xff   :  { %v1745_v31 = vpack.c.bf16 %v948_v21, %v947_v20  ;;  %v1865_v32 = vpack.c.bf16 %v996_v22, %v995_v15  ;;  %v505_v33 = vadd.f32 %v2434_v54, %v504_v28  ;;  %v2094_v34 = vpop.f32.mrb[6].mxu0  ;;  %v697_v35 = vadd.f32 %v2434_v54, %v696_v30  ;;  %v2142_v36 = vpop.f32.mrb[6].mxu1 }
 0x100   :  { %1972 = vst [vmem:[%s2669_s3 + $0x8] sm:$0xff] %v1750_v25   ;;  %1996 = vst [vmem:[%s2669_s3 + $0xc8] sm:$0xff] %v1870_v26   ;;  %v861_v37 = vmul.f32 0.01, %v513_v27  ;;  %v516_v38 = vadd.f32 %v2094_v34, %v2434_v54  ;;  %v507_v39 = vpop.f32.mrb[7].mxu0  ;;  %v708_v41 = vadd.f32 %v2142_v36, %v2434_v54  ;;  %v699_v42 = vpop.f32.mrb[7].mxu1 }
 0x101   :  { %v909_v40 = vmul.f32 0.01, %v705_v29  ;;  %1746 = vst [vmem:[%s2669_s3] sm:$0xff] %v1745_v31   ;;  %1995 = vst [vmem:[%s2669_s3 + $0xc0] sm:$0xff] %v1865_v32   ;;  %v859_v43 = vmul.f32 0.01, %v505_v33  ;;  %v508_v44 = vadd.f32 %v2434_v54, %v507_v39  ;;  %v700_v46 = vadd.f32 %v2434_v54, %v699_v42 }
 0x102   :  { %v907_v45 = vmul.f32 0.01, %v697_v35  ;;  %v862_v47 = vmul.f32 0.01, %v516_v38  ;;  %v910_v49 = vmul.f32 0.01, %v708_v41  ;;  %v953_v53 = vmax.f32 %v513_v27, %v861_v37 }
 0x103   :  { %v1001_v48 = vmax.f32 %v705_v29, %v909_v40  ;;  %v860_v50 = vmul.f32 0.01, %v508_v44  ;;  %v908_v52 = vmul.f32 0.01, %v700_v46  ;;  %v951_v57 = vmax.f32 %v505_v33, %v859_v43 }
 0x104   :  { %v999_v51 = vmax.f32 %v697_v35, %v907_v45  ;;  %v954_v55 = vmax.f32 %v516_v38, %v862_v47  ;;  %v1002_v56 = vmax.f32 %v708_v41, %v910_v49 }
 0x105   :  { %v952_v58 = vmax.f32 %v508_v44, %v860_v50  ;;  %v1000_v59 = vmax.f32 %v700_v46, %v908_v52  ;;  %v2097_v60 = vpop.f32.mrb[8].mxu0  ;;  %v2145_v61 = vpop.f32.mrb[8].mxu1 }
 0x106   :  { %v1760_v62 = vpack.c.bf16 %v954_v55, %v953_v53  ;;  %v1880_v63 = vpack.c.bf16 %v1002_v56, %v1001_v48  ;;  %v529_v0 = vadd.f32 %v2097_v60, %v2434_v54  ;;  %v520_v1 = vpop.f32.mrb[9].mxu0  ;;  %v721_v2 = vadd.f32 %v2145_v61, %v2434_v54  ;;  %v712_v3 = vpop.f32.mrb[9].mxu1 }
 0x107   :  { %v1755_v4 = vpack.c.bf16 %v952_v58, %v951_v57  ;;  %v1875_v5 = vpack.c.bf16 %v1000_v59, %v999_v51  ;;  %v521_v6 = vadd.f32 %v2434_v54, %v520_v1  ;;  %v2098_v7 = vpop.f32.mrb[10].mxu0  ;;  %v713_v8 = vadd.f32 %v2434_v54, %v712_v3  ;;  %v2146_v9 = vpop.f32.mrb[10].mxu1 }
 0x108   :  { %1974 = vst [vmem:[%s2669_s3 + $0x18] sm:$0xff] %v1760_v62   ;;  %1998 = vst [vmem:[%s2669_s3 + $0xd8] sm:$0xff] %v1880_v63   ;;  %v865_v10 = vmul.f32 0.01, %v529_v0  ;;  %v532_v11 = vadd.f32 %v2098_v7, %v2434_v54  ;;  %v523_v12 = vpop.f32.mrb[11].mxu0  ;;  %v724_v14 = vadd.f32 %v2146_v9, %v2434_v54  ;;  %v715_v15 = vpop.f32.mrb[11].mxu1 }
 0x109   :  { %v913_v13 = vmul.f32 0.01, %v721_v2  ;;  %1973 = vst [vmem:[%s2669_s3 + $0x10] sm:$0xff] %v1755_v4   ;;  %1997 = vst [vmem:[%s2669_s3 + $0xd0] sm:$0xff] %v1875_v5   ;;  %v863_v16 = vmul.f32 0.01, %v521_v6  ;;  %v524_v17 = vadd.f32 %v2434_v54, %v523_v12  ;;  %v716_v19 = vadd.f32 %v2434_v54, %v715_v15 }
 0x10a   :  { %v911_v18 = vmul.f32 0.01, %v713_v8  ;;  %v866_v20 = vmul.f32 0.01, %v532_v11  ;;  %v914_v22 = vmul.f32 0.01, %v724_v14  ;;  %v957_v26 = vmax.f32 %v529_v0, %v865_v10 }
 0x10b   :  { %v1005_v21 = vmax.f32 %v721_v2, %v913_v13  ;;  %v864_v23 = vmul.f32 0.01, %v524_v17  ;;  %v912_v25 = vmul.f32 0.01, %v716_v19  ;;  %v955_v29 = vmax.f32 %v521_v6, %v863_v16 }
 0x10c   :  { %v1003_v24 = vmax.f32 %v713_v8, %v911_v18  ;;  %v958_v27 = vmax.f32 %v532_v11, %v866_v20  ;;  %v1006_v28 = vmax.f32 %v724_v14, %v914_v22 }
 0x10d   :  { %v956_v30 = vmax.f32 %v524_v17, %v864_v23  ;;  %v1004_v31 = vmax.f32 %v716_v19, %v912_v25  ;;  %v2101_v32 = vpop.f32.mrb[12].mxu0  ;;  %v2149_v33 = vpop.f32.mrb[12].mxu1 }
 0x10e   :  { %v1770_v34 = vpack.c.bf16 %v958_v27, %v957_v26  ;;  %v1890_v35 = vpack.c.bf16 %v1006_v28, %v1005_v21  ;;  %v545_v36 = vadd.f32 %v2101_v32, %v2434_v54  ;;  %v536_v37 = vpop.f32.mrb[13].mxu0  ;;  %v737_v38 = vadd.f32 %v2149_v33, %v2434_v54  ;;  %v728_v39 = vpop.f32.mrb[13].mxu1 }
 0x10f   :  { %v1765_v40 = vpack.c.bf16 %v956_v30, %v955_v29  ;;  %v1885_v41 = vpack.c.bf16 %v1004_v31, %v1003_v24  ;;  %v537_v42 = vadd.f32 %v2434_v54, %v536_v37  ;;  %v2102_v43 = vpop.f32.mrb[14].mxu0  ;;  %v729_v44 = vadd.f32 %v2434_v54, %v728_v39  ;;  %v2150_v45 = vpop.f32.mrb[14].mxu1 }
 0x110   :  { %1976 = vst [vmem:[%s2669_s3 + $0x28] sm:$0xff] %v1770_v34   ;;  %2000 = vst [vmem:[%s2669_s3 + $0xe8] sm:$0xff] %v1890_v35   ;;  %v869_v46 = vmul.f32 0.01, %v545_v36  ;;  %v548_v47 = vadd.f32 %v2102_v43, %v2434_v54  ;;  %v539_v48 = vpop.f32.mrb[15].mxu0  ;;  %v740_v50 = vadd.f32 %v2150_v45, %v2434_v54  ;;  %v731_v51 = vpop.f32.mrb[15].mxu1 }
 0x111   :  { %v917_v49 = vmul.f32 0.01, %v737_v38  ;;  %1975 = vst [vmem:[%s2669_s3 + $0x20] sm:$0xff] %v1765_v40   ;;  %1999 = vst [vmem:[%s2669_s3 + $0xe0] sm:$0xff] %v1885_v41   ;;  %v867_v52 = vmul.f32 0.01, %v537_v42  ;;  %v540_v53 = vadd.f32 %v2434_v54, %v539_v48  ;;  %v732_v56 = vadd.f32 %v2434_v54, %v731_v51 }
 0x112   :  { %v915_v55 = vmul.f32 0.01, %v729_v44  ;;  %v870_v57 = vmul.f32 0.01, %v548_v47  ;;  %v918_v59 = vmul.f32 0.01, %v740_v50  ;;  %v961_v63 = vmax.f32 %v545_v36, %v869_v46 }
 0x113   :  { %v1009_v58 = vmax.f32 %v737_v38, %v917_v49  ;;  %v868_v60 = vmul.f32 0.01, %v540_v53  ;;  %v916_v62 = vmul.f32 0.01, %v732_v56  ;;  %v959_v2 = vmax.f32 %v537_v42, %v867_v52 }
 0x114   :  { %v1007_v61 = vmax.f32 %v729_v44, %v915_v55  ;;  %v962_v0 = vmax.f32 %v548_v47, %v870_v57  ;;  %v1010_v1 = vmax.f32 %v740_v50, %v918_v59 }
 0x115   :  { %v960_v3 = vmax.f32 %v540_v53, %v868_v60  ;;  %v1008_v4 = vmax.f32 %v732_v56, %v916_v62  ;;  %v2105_v5 = vpop.f32.mrb[16].mxu0  ;;  %v2153_v6 = vpop.f32.mrb[16].mxu1 }
 0x116   :  { %v1780_v7 = vpack.c.bf16 %v962_v0, %v961_v63  ;;  %v1900_v8 = vpack.c.bf16 %v1010_v1, %v1009_v58  ;;  %v561_v9 = vadd.f32 %v2105_v5, %v2434_v54  ;;  %v552_v10 = vpop.f32.mrb[17].mxu0  ;;  %v753_v11 = vadd.f32 %v2153_v6, %v2434_v54  ;;  %v744_v12 = vpop.f32.mrb[17].mxu1 }
 0x117   :  { %v1775_v13 = vpack.c.bf16 %v960_v3, %v959_v2  ;;  %v1895_v14 = vpack.c.bf16 %v1008_v4, %v1007_v61  ;;  %v553_v15 = vadd.f32 %v2434_v54, %v552_v10  ;;  %v2106_v16 = vpop.f32.mrb[18].mxu0  ;;  %v745_v17 = vadd.f32 %v2434_v54, %v744_v12  ;;  %v2154_v18 = vpop.f32.mrb[18].mxu1 }
 0x118   :  { %1978 = vst [vmem:[%s2669_s3 + $0x38] sm:$0xff] %v1780_v7   ;;  %2002 = vst [vmem:[%s2669_s3 + $0xf8] sm:$0xff] %v1900_v8   ;;  %v873_v19 = vmul.f32 0.01, %v561_v9  ;;  %v564_v20 = vadd.f32 %v2106_v16, %v2434_v54  ;;  %v555_v21 = vpop.f32.mrb[19].mxu0  ;;  %v756_v23 = vadd.f32 %v2154_v18, %v2434_v54  ;;  %v747_v24 = vpop.f32.mrb[19].mxu1 }
 0x119   :  { %v921_v22 = vmul.f32 0.01, %v753_v11  ;;  %1977 = vst [vmem:[%s2669_s3 + $0x30] sm:$0xff] %v1775_v13   ;;  %2001 = vst [vmem:[%s2669_s3 + $0xf0] sm:$0xff] %v1895_v14   ;;  %v871_v25 = vmul.f32 0.01, %v553_v15  ;;  %v556_v26 = vadd.f32 %v2434_v54, %v555_v21  ;;  %v748_v28 = vadd.f32 %v2434_v54, %v747_v24 }
 0x11a   :  { %v919_v27 = vmul.f32 0.01, %v745_v17  ;;  %v874_v29 = vmul.f32 0.01, %v564_v20  ;;  %v922_v31 = vmul.f32 0.01, %v756_v23  ;;  %v965_v35 = vmax.f32 %v561_v9, %v873_v19 }
 0x11b   :  { %v1013_v30 = vmax.f32 %v753_v11, %v921_v22  ;;  %v872_v32 = vmul.f32 0.01, %v556_v26  ;;  %v920_v34 = vmul.f32 0.01, %v748_v28  ;;  %v963_v38 = vmax.f32 %v553_v15, %v871_v25 }
 0x11c   :  { %v1011_v33 = vmax.f32 %v745_v17, %v919_v27  ;;  %v966_v36 = vmax.f32 %v564_v20, %v874_v29  ;;  %v1014_v37 = vmax.f32 %v756_v23, %v922_v31 }
 0x11d   :  { %v964_v39 = vmax.f32 %v556_v26, %v872_v32  ;;  %v1012_v40 = vmax.f32 %v748_v28, %v920_v34  ;;  %v2109_v41 = vpop.f32.mrb[20].mxu0  ;;  %v2157_v42 = vpop.f32.mrb[20].mxu1 }
 0x11e   :  { %v1790_v43 = vpack.c.bf16 %v966_v36, %v965_v35  ;;  %v1910_v44 = vpack.c.bf16 %v1014_v37, %v1013_v30  ;;  %v577_v45 = vadd.f32 %v2109_v41, %v2434_v54  ;;  %v568_v46 = vpop.f32.mrb[21].mxu0  ;;  %v769_v47 = vadd.f32 %v2157_v42, %v2434_v54  ;;  %v760_v48 = vpop.f32.mrb[21].mxu1 }
 0x11f   :  { %v1785_v49 = vpack.c.bf16 %v964_v39, %v963_v38  ;;  %v1905_v50 = vpack.c.bf16 %v1012_v40, %v1011_v33  ;;  %v569_v51 = vadd.f32 %v2434_v54, %v568_v46  ;;  %v2110_v52 = vpop.f32.mrb[22].mxu0  ;;  %v761_v53 = vadd.f32 %v2434_v54, %v760_v48  ;;  %v2158_v55 = vpop.f32.mrb[22].mxu1 }
 0x120   :  { %1980 = vst [vmem:[%s2669_s3 + $0x48] sm:$0xff] %v1790_v43   ;;  %2004 = vst [vmem:[%s2669_s3 + $0x108] sm:$0xff] %v1910_v44   ;;  %v877_v56 = vmul.f32 0.01, %v577_v45  ;;  %v580_v57 = vadd.f32 %v2110_v52, %v2434_v54  ;;  %v571_v58 = vpop.f32.mrb[23].mxu0  ;;  %v772_v60 = vadd.f32 %v2158_v55, %v2434_v54  ;;  %v763_v61 = vpop.f32.mrb[23].mxu1 }
 0x121   :  { %v925_v59 = vmul.f32 0.01, %v769_v47  ;;  %1979 = vst [vmem:[%s2669_s3 + $0x40] sm:$0xff] %v1785_v49   ;;  %2003 = vst [vmem:[%s2669_s3 + $0x100] sm:$0xff] %v1905_v50   ;;  %v875_v62 = vmul.f32 0.01, %v569_v51  ;;  %v572_v63 = vadd.f32 %v2434_v54, %v571_v58  ;;  %v764_v1 = vadd.f32 %v2434_v54, %v763_v61 }
 0x122   :  { %v923_v0 = vmul.f32 0.01, %v761_v53  ;;  %v878_v2 = vmul.f32 0.01, %v580_v57  ;;  %v926_v4 = vmul.f32 0.01, %v772_v60  ;;  %v969_v8 = vmax.f32 %v577_v45, %v877_v56 }
 0x123   :  { %v1017_v3 = vmax.f32 %v769_v47, %v925_v59  ;;  %v876_v5 = vmul.f32 0.01, %v572_v63  ;;  %v924_v7 = vmul.f32 0.01, %v764_v1  ;;  %v967_v11 = vmax.f32 %v569_v51, %v875_v62 }
 0x124   :  { %v1015_v6 = vmax.f32 %v761_v53, %v923_v0  ;;  %v970_v9 = vmax.f32 %v580_v57, %v878_v2  ;;  %v1018_v10 = vmax.f32 %v772_v60, %v926_v4 }
 0x125   :  { %v968_v12 = vmax.f32 %v572_v63, %v876_v5  ;;  %v1016_v13 = vmax.f32 %v764_v1, %v924_v7  ;;  %v2113_v14 = vpop.f32.mrb[24].mxu0  ;;  %v2161_v15 = vpop.f32.mrb[24].mxu1 }
 0x126   :  { %v1800_v16 = vpack.c.bf16 %v970_v9, %v969_v8  ;;  %v1920_v17 = vpack.c.bf16 %v1018_v10, %v1017_v3  ;;  %v593_v18 = vadd.f32 %v2113_v14, %v2434_v54  ;;  %v584_v19 = vpop.f32.mrb[25].mxu0  ;;  %v785_v20 = vadd.f32 %v2161_v15, %v2434_v54  ;;  %v776_v21 = vpop.f32.mrb[25].mxu1 }
 0x127   :  { %v1795_v22 = vpack.c.bf16 %v968_v12, %v967_v11  ;;  %v1915_v23 = vpack.c.bf16 %v1016_v13, %v1015_v6  ;;  %v585_v24 = vadd.f32 %v2434_v54, %v584_v19  ;;  %v2114_v25 = vpop.f32.mrb[26].mxu0  ;;  %v777_v26 = vadd.f32 %v2434_v54, %v776_v21  ;;  %v2162_v27 = vpop.f32.mrb[26].mxu1 }
 0x128   :  { %1982 = vst [vmem:[%s2669_s3 + $0x58] sm:$0xff] %v1800_v16   ;;  %2006 = vst [vmem:[%s2669_s3 + $0x118] sm:$0xff] %v1920_v17   ;;  %v881_v28 = vmul.f32 0.01, %v593_v18  ;;  %v596_v29 = vadd.f32 %v2114_v25, %v2434_v54  ;;  %v587_v30 = vpop.f32.mrb[27].mxu0  ;;  %v788_v32 = vadd.f32 %v2162_v27, %v2434_v54  ;;  %v779_v33 = vpop.f32.mrb[27].mxu1 }
 0x129   :  { %v929_v31 = vmul.f32 0.01, %v785_v20  ;;  %1981 = vst [vmem:[%s2669_s3 + $0x50] sm:$0xff] %v1795_v22   ;;  %2005 = vst [vmem:[%s2669_s3 + $0x110] sm:$0xff] %v1915_v23   ;;  %v879_v34 = vmul.f32 0.01, %v585_v24  ;;  %v588_v35 = vadd.f32 %v2434_v54, %v587_v30  ;;  %v780_v37 = vadd.f32 %v2434_v54, %v779_v33 }
 0x12a   :  { %v927_v36 = vmul.f32 0.01, %v777_v26  ;;  %v882_v38 = vmul.f32 0.01, %v596_v29  ;;  %v930_v40 = vmul.f32 0.01, %v788_v32  ;;  %v973_v44 = vmax.f32 %v593_v18, %v881_v28 }
 0x12b   :  { %v1021_v39 = vmax.f32 %v785_v20, %v929_v31  ;;  %v880_v41 = vmul.f32 0.01, %v588_v35  ;;  %v928_v43 = vmul.f32 0.01, %v780_v37  ;;  %v971_v47 = vmax.f32 %v585_v24, %v879_v34 }
 0x12c   :  { %v1019_v42 = vmax.f32 %v777_v26, %v927_v36  ;;  %v974_v45 = vmax.f32 %v596_v29, %v882_v38  ;;  %v1022_v46 = vmax.f32 %v788_v32, %v930_v40 }
 0x12d   :  { %v972_v48 = vmax.f32 %v588_v35, %v880_v41  ;;  %v1020_v49 = vmax.f32 %v780_v37, %v928_v43  ;;  %v2117_v50 = vpop.f32.mrb[28].mxu0  ;;  %v2165_v51 = vpop.f32.mrb[28].mxu1 }
 0x12e   :  { %v1810_v52 = vpack.c.bf16 %v974_v45, %v973_v44  ;;  %v1930_v53 = vpack.c.bf16 %v1022_v46, %v1021_v39  ;;  %v609_v55 = vadd.f32 %v2117_v50, %v2434_v54  ;;  %v600_v56 = vpop.f32.mrb[29].mxu0  ;;  %v801_v57 = vadd.f32 %v2165_v51, %v2434_v54  ;;  %v792_v58 = vpop.f32.mrb[29].mxu1 }
 0x12f   :  { %v1805_v59 = vpack.c.bf16 %v972_v48, %v971_v47  ;;  %v1925_v60 = vpack.c.bf16 %v1020_v49, %v1019_v42  ;;  %v601_v61 = vadd.f32 %v2434_v54, %v600_v56  ;;  %v2118_v62 = vpop.f32.mrb[30].mxu0  ;;  %v793_v63 = vadd.f32 %v2434_v54, %v792_v58  ;;  %v2166_v0 = vpop.f32.mrb[30].mxu1 }
 0x130   :  { %1984 = vst [vmem:[%s2669_s3 + $0x68] sm:$0xff] %v1810_v52   ;;  %2008 = vst [vmem:[%s2669_s3 + $0x128] sm:$0xff] %v1930_v53   ;;  %v885_v1 = vmul.f32 0.01, %v609_v55  ;;  %v612_v2 = vadd.f32 %v2118_v62, %v2434_v54  ;;  %v603_v3 = vpop.f32.mrb[31].mxu0  ;;  %v804_v5 = vadd.f32 %v2166_v0, %v2434_v54  ;;  %v795_v6 = vpop.f32.mrb[31].mxu1 }
 0x131   :  { %v933_v4 = vmul.f32 0.01, %v801_v57  ;;  %1983 = vst [vmem:[%s2669_s3 + $0x60] sm:$0xff] %v1805_v59   ;;  %2007 = vst [vmem:[%s2669_s3 + $0x120] sm:$0xff] %v1925_v60   ;;  %v883_v7 = vmul.f32 0.01, %v601_v61  ;;  %v604_v8 = vadd.f32 %v2434_v54, %v603_v3  ;;  %v796_v10 = vadd.f32 %v2434_v54, %v795_v6 }
 0x132   :  { %v931_v9 = vmul.f32 0.01, %v793_v63  ;;  %v886_v11 = vmul.f32 0.01, %v612_v2  ;;  %v934_v13 = vmul.f32 0.01, %v804_v5  ;;  %v977_v17 = vmax.f32 %v609_v55, %v885_v1 }
 0x133   :  { %v1025_v12 = vmax.f32 %v801_v57, %v933_v4  ;;  %v884_v14 = vmul.f32 0.01, %v604_v8  ;;  %v932_v16 = vmul.f32 0.01, %v796_v10  ;;  %v975_v20 = vmax.f32 %v601_v61, %v883_v7 }
 0x134   :  { %v1023_v15 = vmax.f32 %v793_v63, %v931_v9  ;;  %v978_v18 = vmax.f32 %v612_v2, %v886_v11  ;;  %v1026_v19 = vmax.f32 %v804_v5, %v934_v13 }
 0x135   :  { %v976_v21 = vmax.f32 %v604_v8, %v884_v14  ;;  %v1024_v22 = vmax.f32 %v796_v10, %v932_v16  ;;  %v2121_v23 = vpop.f32.mrb[32].mxu0  ;;  %v2169_v24 = vpop.f32.mrb[32].mxu1 }
 0x136   :  { %v1820_v25 = vpack.c.bf16 %v978_v18, %v977_v17  ;;  %v1940_v26 = vpack.c.bf16 %v1026_v19, %v1025_v12  ;;  %v625_v27 = vadd.f32 %v2121_v23, %v2434_v54  ;;  %v616_v28 = vpop.f32.mrb[33].mxu0  ;;  %v817_v29 = vadd.f32 %v2169_v24, %v2434_v54  ;;  %v808_v30 = vpop.f32.mrb[33].mxu1 }
 0x137   :  { %v1815_v31 = vpack.c.bf16 %v976_v21, %v975_v20  ;;  %v1935_v32 = vpack.c.bf16 %v1024_v22, %v1023_v15  ;;  %v617_v33 = vadd.f32 %v2434_v54, %v616_v28  ;;  %v2122_v34 = vpop.f32.mrb[34].mxu0  ;;  %v809_v35 = vadd.f32 %v2434_v54, %v808_v30  ;;  %v2170_v36 = vpop.f32.mrb[34].mxu1 }
 0x138   :  { %1986 = vst [vmem:[%s2669_s3 + $0x78] sm:$0xff] %v1820_v25   ;;  %2010 = vst [vmem:[%s2669_s3 + $0x138] sm:$0xff] %v1940_v26   ;;  %v889_v37 = vmul.f32 0.01, %v625_v27  ;;  %v628_v38 = vadd.f32 %v2122_v34, %v2434_v54  ;;  %v619_v39 = vpop.f32.mrb[35].mxu0  ;;  %v820_v41 = vadd.f32 %v2170_v36, %v2434_v54  ;;  %v811_v42 = vpop.f32.mrb[35].mxu1 }
 0x139   :  { %v937_v40 = vmul.f32 0.01, %v817_v29  ;;  %1985 = vst [vmem:[%s2669_s3 + $0x70] sm:$0xff] %v1815_v31   ;;  %2009 = vst [vmem:[%s2669_s3 + $0x130] sm:$0xff] %v1935_v32   ;;  %v887_v43 = vmul.f32 0.01, %v617_v33  ;;  %v620_v44 = vadd.f32 %v2434_v54, %v619_v39  ;;  %v812_v46 = vadd.f32 %v2434_v54, %v811_v42 }
 0x13a   :  { %v935_v45 = vmul.f32 0.01, %v809_v35  ;;  %v890_v47 = vmul.f32 0.01, %v628_v38  ;;  %v938_v49 = vmul.f32 0.01, %v820_v41  ;;  %v981_v53 = vmax.f32 %v625_v27, %v889_v37 }
 0x13b   :  { %v1029_v48 = vmax.f32 %v817_v29, %v937_v40  ;;  %v888_v50 = vmul.f32 0.01, %v620_v44  ;;  %v936_v52 = vmul.f32 0.01, %v812_v46  ;;  %v979_v57 = vmax.f32 %v617_v33, %v887_v43 }
 0x13c   :  { %v1027_v51 = vmax.f32 %v809_v35, %v935_v45  ;;  %v982_v55 = vmax.f32 %v628_v38, %v890_v47  ;;  %v1030_v56 = vmax.f32 %v820_v41, %v938_v49 }
 0x13d   :  { %v980_v58 = vmax.f32 %v620_v44, %v888_v50  ;;  %v1028_v59 = vmax.f32 %v812_v46, %v936_v52  ;;  %v2125_v60 = vpop.f32.mrb[36].mxu0  ;;  %v2173_v61 = vpop.f32.mrb[36].mxu1 }
 0x13e   :  { %v1830_v62 = vpack.c.bf16 %v982_v55, %v981_v53  ;;  %v1950_v63 = vpack.c.bf16 %v1030_v56, %v1029_v48  ;;  %v641_v0 = vadd.f32 %v2125_v60, %v2434_v54  ;;  %v632_v1 = vpop.f32.mrb[37].mxu0  ;;  %v833_v2 = vadd.f32 %v2173_v61, %v2434_v54  ;;  %v824_v3 = vpop.f32.mrb[37].mxu1 }
 0x13f   :  { %v1825_v4 = vpack.c.bf16 %v980_v58, %v979_v57  ;;  %v1945_v5 = vpack.c.bf16 %v1028_v59, %v1027_v51  ;;  %v633_v6 = vadd.f32 %v2434_v54, %v632_v1  ;;  %v2126_v7 = vpop.f32.mrb[38].mxu0  ;;  %v825_v8 = vadd.f32 %v2434_v54, %v824_v3  ;;  %v2174_v9 = vpop.f32.mrb[38].mxu1 }
 0x140   :  { %1988 = vst [vmem:[%s2669_s3 + $0x88] sm:$0xff] %v1830_v62   ;;  %2012 = vst [vmem:[%s2669_s3 + $0x148] sm:$0xff] %v1950_v63   ;;  %v893_v10 = vmul.f32 0.01, %v641_v0  ;;  %v644_v11 = vadd.f32 %v2126_v7, %v2434_v54  ;;  %v635_v12 = vpop.f32.mrb[39].mxu0  ;;  %v836_v14 = vadd.f32 %v2174_v9, %v2434_v54  ;;  %v827_v15 = vpop.f32.mrb[39].mxu1 }
 0x141   :  { %v941_v13 = vmul.f32 0.01, %v833_v2  ;;  %1987 = vst [vmem:[%s2669_s3 + $0x80] sm:$0xff] %v1825_v4   ;;  %2011 = vst [vmem:[%s2669_s3 + $0x140] sm:$0xff] %v1945_v5   ;;  %v891_v16 = vmul.f32 0.01, %v633_v6  ;;  %v636_v17 = vadd.f32 %v2434_v54, %v635_v12  ;;  %v828_v19 = vadd.f32 %v2434_v54, %v827_v15 }
 0x142   :  { %v939_v18 = vmul.f32 0.01, %v825_v8  ;;  %v894_v20 = vmul.f32 0.01, %v644_v11  ;;  %v942_v22 = vmul.f32 0.01, %v836_v14  ;;  %v985_v26 = vmax.f32 %v641_v0, %v893_v10 }
 0x143   :  { %v1033_v21 = vmax.f32 %v833_v2, %v941_v13  ;;  %v892_v23 = vmul.f32 0.01, %v636_v17  ;;  %v940_v25 = vmul.f32 0.01, %v828_v19  ;;  %v983_v29 = vmax.f32 %v633_v6, %v891_v16 }
 0x144   :  { %v1031_v24 = vmax.f32 %v825_v8, %v939_v18  ;;  %v986_v27 = vmax.f32 %v644_v11, %v894_v20  ;;  %v1034_v28 = vmax.f32 %v836_v14, %v942_v22 }
 0x145   :  { %v984_v30 = vmax.f32 %v636_v17, %v892_v23  ;;  %v1032_v31 = vmax.f32 %v828_v19, %v940_v25  ;;  %v2129_v32 = vpop.f32.mrb[40].mxu0  ;;  %v2177_v33 = vpop.f32.mrb[40].mxu1 }
 0x146   :  { %v1840_v34 = vpack.c.bf16 %v986_v27, %v985_v26  ;;  %v1960_v35 = vpack.c.bf16 %v1034_v28, %v1033_v21  ;;  %v657_v36 = vadd.f32 %v2129_v32, %v2434_v54  ;;  %v648_v37 = vpop.f32.mrb[41].mxu0  ;;  %v849_v38 = vadd.f32 %v2177_v33, %v2434_v54  ;;  %v840_v39 = vpop.f32.mrb[41].mxu1 }
 0x147   :  { %v1835_v40 = vpack.c.bf16 %v984_v30, %v983_v29  ;;  %v1955_v41 = vpack.c.bf16 %v1032_v31, %v1031_v24  ;;  %v649_v42 = vadd.f32 %v2434_v54, %v648_v37  ;;  %v2130_v43 = vpop.f32.mrb[42].mxu0  ;;  %v841_v44 = vadd.f32 %v2434_v54, %v840_v39  ;;  %v2178_v45 = vpop.f32.mrb[42].mxu1 }
 0x148   :  { %1990 = vst [vmem:[%s2669_s3 + $0x98] sm:$0xff] %v1840_v34   ;;  %2014 = vst [vmem:[%s2669_s3 + $0x158] sm:$0xff] %v1960_v35   ;;  %v897_v46 = vmul.f32 0.01, %v657_v36  ;;  %v660_v47 = vadd.f32 %v2130_v43, %v2434_v54  ;;  %v651_v48 = vpop.f32.mrb[43].mxu0  ;;  %v852_v50 = vadd.f32 %v2178_v45, %v2434_v54  ;;  %v843_v51 = vpop.f32.mrb[43].mxu1 }
 0x149   :  { %v945_v49 = vmul.f32 0.01, %v849_v38  ;;  %1989 = vst [vmem:[%s2669_s3 + $0x90] sm:$0xff] %v1835_v40   ;;  %2013 = vst [vmem:[%s2669_s3 + $0x150] sm:$0xff] %v1955_v41   ;;  %v895_v52 = vmul.f32 0.01, %v649_v42  ;;  %v652_v53 = vadd.f32 %v2434_v54, %v651_v48  ;;  %v844_v56 = vadd.f32 %v2434_v54, %v843_v51 }
 0x14a   :  { %v943_v55 = vmul.f32 0.01, %v841_v44  ;;  %v898_v57 = vmul.f32 0.01, %v660_v47  ;;  %v946_v59 = vmul.f32 0.01, %v852_v50  ;;  %v989_v63 = vmax.f32 %v657_v36, %v897_v46 }
 0x14b   :  { %v1037_v58 = vmax.f32 %v849_v38, %v945_v49  ;;  %v896_v60 = vmul.f32 0.01, %v652_v53  ;;  %v944_v62 = vmul.f32 0.01, %v844_v56  ;;  %v987_v2 = vmax.f32 %v649_v42, %v895_v52 }
 0x14c   :  { %v1035_v61 = vmax.f32 %v841_v44, %v943_v55  ;;  %v990_v0 = vmax.f32 %v660_v47, %v898_v57  ;;  %v1038_v1 = vmax.f32 %v852_v50, %v946_v59 }
 0x14d   :  { %v988_v3 = vmax.f32 %v652_v53, %v896_v60  ;;  %v1036_v4 = vmax.f32 %v844_v56, %v944_v62  ;;  %v2133_v5 = vpop.f32.mrb[44].mxu0 }
 0x14e   :  { %v1850_v6 = vpack.c.bf16 %v990_v0, %v989_v63  ;;  %v1970_v7 = vpack.c.bf16 %v1038_v1, %v1037_v58  ;;  %v673_v8 = vadd.f32 %v2133_v5, %v2434_v54  ;;  %v664_v9 = vpop.f32.mrb[45].mxu0 }
 0x14f   :  { %v1845_v10 = vpack.c.bf16 %v988_v3, %v987_v2  ;;  %v1965_v11 = vpack.c.bf16 %v1036_v4, %v1035_v61  ;;  %v665_v12 = vadd.f32 %v2434_v54, %v664_v9  ;;  %v2134_v13 = vpop.f32.mrb[46].mxu0 }
 0x150   :  { %1992 = vst [vmem:[%s2669_s3 + $0xa8] sm:$0xff] %v1850_v6   ;;  %2016 = vst [vmem:[%s2669_s3 + $0x168] sm:$0xff] %v1970_v7   ;;  %v901_v14 = vmul.f32 0.01, %v673_v8  ;;  %v676_v15 = vadd.f32 %v2134_v13, %v2434_v54  ;;  %v667_v16 = vpop.f32.mrb[47].mxu0 }
 0x151   :  { %1991 = vst [vmem:[%s2669_s3 + $0xa0] sm:$0xff] %v1845_v10   ;;  %2015 = vst [vmem:[%s2669_s3 + $0x160] sm:$0xff] %v1965_v11   ;;  %v899_v17 = vmul.f32 0.01, %v665_v12  ;;  %v668_v18 = vadd.f32 %v2434_v54, %v667_v16 }
 0x152   :  { %v902_v19 = vmul.f32 0.01, %v676_v15  ;;  %v993_v21 = vmax.f32 %v673_v8, %v901_v14 }
 0x153   :  { %v900_v20 = vmul.f32 0.01, %v668_v18  ;;  %v991_v23 = vmax.f32 %v665_v12, %v899_v17 }
 0x154   :  { %v994_v22 = vmax.f32 %v676_v15, %v902_v19 }
 0x155   :  { %v992_v24 = vmax.f32 %v668_v18, %v900_v20 }
 0x156   :  { %v1860_v25 = vpack.c.bf16 %v994_v22, %v993_v21 }
 0x157   :  { %v1855_v26 = vpack.c.bf16 %v992_v24, %v991_v23 }
 0x158   :  { %1994 = vst [vmem:[%s2669_s3 + $0xb8] sm:$0xff] %v1860_v25  }
 0x159   :  { %1993 = vst [vmem:[%s2669_s3 + $0xb0] sm:$0xff] %v1855_v26  }

// kernel: convnet_forward.6
= control target key start
LH: loop header
LB: loop body
LE: loop exit
PB: predicated region body
PF: predicated region fallthrough
CT: control target
= control target key end

     0   :  { %v2065_v0 = vmov 0   ;;  %s2578_s1 = inlined_call_operand.vmem [shape: bf16[256,128], index: 1, kind: input, shape index: {}]   ;;  %s2579_s0 = inlined_call_operand.vmem [shape: bf16[592,256], index: 0, kind: input, shape index: {}]   ;;  %s2580_s2 = inlined_call_operand.vmem [shape: f32[1,128], index: 2, kind: input, shape index: {}]   ;;  %s2581_s3 = inlined_call_operand.vmem [shape: bf16[592,128], index: 3, kind: output, shape index: {}]  }
   0x1   :  { %594 = vmatprep.subr.bf16.mxu0 %v2065_v0  ;;  %v1938_v1 = vld [vmem:[%s2578_s1] sm:$0xff]   ;;  %1905 = vmatprep.subr.bf16.mxu1 %v2065_v0  ;;  %v1939_v2 = vld [vmem:[%s2578_s1 + $0x8] sm:$0xff]   ;;  %v1940_v3 = vld [vmem:[%s2578_s1 + $0x10] sm:$0xff]  }
   0x2   :  { %595 = vmatpush1.bf16.msra.mxu0 %v1938_v1  ;;  %1921 = vmatpush1.bf16.msra.mxu1 %v1938_v1  ;;  %v1941_v4 = vld [vmem:[%s2578_s1 + $0x18] sm:$0xff]   ;;  %v1942_v5 = vld [vmem:[%s2578_s1 + $0x20] sm:$0xff]   ;;  %v1943_v7 = vld [vmem:[%s2578_s1 + $0x28] sm:$0xff]  }
   0x3   :  { %596 = vmatprep.subr.bf16.mxu0 %v2065_v0  ;;  %1906 = vmatprep.subr.bf16.mxu1 %v2065_v0  ;;  %v1956_v6 = vld [vmem:[%s2579_s0 + $0x4] ss:$8 sps:$4 sm:$0xff]   ;;  %v1959_v8 = vld [vmem:[%s2579_s0 + $0x134] ss:$8 sps:$4 sm:$0xff]   ;;  %v1954_v19 = vld [vmem:[%s2579_s0] ss:$8 sps:$4 sm:$0xff]  }
   0x4   :  { %626 = vmatprep.mubr.bf16.mxu0 %v1956_v6  ;;  %778 = vmatprep.mubr.bf16.mxu1 %v1959_v8  ;;  %v1944_v9 = vld [vmem:[%s2578_s1 + $0x30] sm:$0xff]   ;;  %v1945_v10 = vld [vmem:[%s2578_s1 + $0x38] sm:$0xff]   ;;  %v1946_v11 = vld [vmem:[%s2578_s1 + $0x40] sm:$0xff]  }
   0x5   :  { %v1947_v12 = vld [vmem:[%s2578_s1 + $0x48] sm:$0xff]   ;;  %v1948_v13 = vld [vmem:[%s2578_s1 + $0x50] sm:$0xff]   ;;  %v1949_v14 = vld [vmem:[%s2578_s1 + $0x58] sm:$0xff]  }
   0x6   :  { %597 = vmatpush1.bf16.msra.mxu0 %v1939_v2  ;;  %1922 = vmatpush1.bf16.msra.mxu1 %v1939_v2  ;;  %v1950_v15 = vld [vmem:[%s2578_s1 + $0x60] sm:$0xff]   ;;  %v1951_v16 = vld [vmem:[%s2578_s1 + $0x68] sm:$0xff]   ;;  %v1952_v17 = vld [vmem:[%s2578_s1 + $0x70] sm:$0xff]  }
   0x7   :  { %598 = vmatprep.subr.bf16.mxu0 %v2065_v0  ;;  %1907 = vmatprep.subr.bf16.mxu1 %v2065_v0  ;;  %v1953_v18 = vld [vmem:[%s2578_s1 + $0x78] sm:$0xff]   ;;  %v1963_v22 = vld [vmem:[%s2579_s0 + $0x144] ss:$8 sps:$4 sm:$0xff]   ;;  %v1965_v24 = vld [vmem:[%s2579_s0 + $0x140] ss:$8 sps:$4 sm:$0xff]  }
   0x8   :  { %v1957_v20 = vld [vmem:[%s2579_s0 + $0x130] ss:$8 sps:$4 sm:$0xff]   ;;  %v1960_v21 = vld [vmem:[%s2579_s0 + $0x14] ss:$8 sps:$4 sm:$0xff]   ;;  %v1966_v25 = vld [vmem:[%s2579_s0 + $0x24] ss:$8 sps:$4 sm:$0xff]  }
   0x9   :  { %v1962_v23 = vld [vmem:[%s2579_s0 + $0x10] ss:$8 sps:$4 sm:$0xff]   ;;  %v1969_v26 = vld [vmem:[%s2579_s0 + $0x154] ss:$8 sps:$4 sm:$0xff]   ;;  %v1968_v27 = vld [vmem:[%s2579_s0 + $0x20] ss:$8 sps:$4 sm:$0xff]  }
   0xa   :  { %599 = vmatpush1.bf16.msra.mxu0 %v1940_v3  ;;  %1923 = vmatpush1.bf16.msra.mxu1 %v1940_v3  ;;  %v1971_v28 = vld [vmem:[%s2579_s0 + $0x150] ss:$8 sps:$4 sm:$0xff]   ;;  %v1972_v29 = vld [vmem:[%s2579_s0 + $0x34] ss:$8 sps:$4 sm:$0xff]   ;;  %v1975_v30 = vld [vmem:[%s2579_s0 + $0x164] ss:$8 sps:$4 sm:$0xff]  }
   0xb   :  { %600 = vmatprep.subr.bf16.mxu0 %v2065_v0  ;;  %1908 = vmatprep.subr.bf16.mxu1 %v2065_v0  ;;  %v1974_v31 = vld [vmem:[%s2579_s0 + $0x30] ss:$8 sps:$4 sm:$0xff]   ;;  %v1977_v32 = vld [vmem:[%s2579_s0 + $0x160] ss:$8 sps:$4 sm:$0xff]   ;;  %v1978_v33 = vld [vmem:[%s2579_s0 + $0x44] ss:$8 sps:$4 sm:$0xff]  }
   0xc   :  { %v1981_v34 = vld [vmem:[%s2579_s0 + $0x174] ss:$8 sps:$4 sm:$0xff]   ;;  %v1980_v35 = vld [vmem:[%s2579_s0 + $0x40] ss:$8 sps:$4 sm:$0xff]   ;;  %v1983_v36 = vld [vmem:[%s2579_s0 + $0x170] ss:$8 sps:$4 sm:$0xff]  }
   0xd   :  { %v1984_v37 = vld [vmem:[%s2579_s0 + $0x54] ss:$8 sps:$4 sm:$0xff]   ;;  %v1987_v38 = vld [vmem:[%s2579_s0 + $0x184] ss:$8 sps:$4 sm:$0xff]   ;;  %v1986_v39 = vld [vmem:[%s2579_s0 + $0x50] ss:$8 sps:$4 sm:$0xff]  }
   0xe   :  { %601 = vmatpush1.bf16.msra.mxu0 %v1941_v4  ;;  %1924 = vmatpush1.bf16.msra.mxu1 %v1941_v4  ;;  %v1989_v40 = vld [vmem:[%s2579_s0 + $0x180] ss:$8 sps:$4 sm:$0xff]   ;;  %v1990_v41 = vld [vmem:[%s2579_s0 + $0x64] ss:$8 sps:$4 sm:$0xff]   ;;  %v1993_v42 = vld [vmem:[%s2579_s0 + $0x194] ss:$8 sps:$4 sm:$0xff]  }
   0xf   :  { %602 = vmatprep.subr.bf16.mxu0 %v2065_v0  ;;  %1909 = vmatprep.subr.bf16.mxu1 %v2065_v0  ;;  %v1992_v43 = vld [vmem:[%s2579_s0 + $0x60] ss:$8 sps:$4 sm:$0xff]   ;;  %v1995_v44 = vld [vmem:[%s2579_s0 + $0x190] ss:$8 sps:$4 sm:$0xff]   ;;  %v1996_v45 = vld [vmem:[%s2579_s0 + $0x74] ss:$8 sps:$4 sm:$0xff]  }
  0x10   :  { %v1999_v46 = vld [vmem:[%s2579_s0 + $0x1a4] ss:$8 sps:$4 sm:$0xff]   ;;  %v1998_v47 = vld [vmem:[%s2579_s0 + $0x70] ss:$8 sps:$4 sm:$0xff]   ;;  %v2001_v48 = vld [vmem:[%s2579_s0 + $0x1a0] ss:$8 sps:$4 sm:$0xff]  }
  0x11   :  { %v2002_v49 = vld [vmem:[%s2579_s0 + $0x84] ss:$8 sps:$4 sm:$0xff]   ;;  %v2005_v50 = vld [vmem:[%s2579_s0 + $0x1b4] ss:$8 sps:$4 sm:$0xff]   ;;  %v2004_v51 = vld [vmem:[%s2579_s0 + $0x80] ss:$8 sps:$4 sm:$0xff]  }
  0x12   :  { %603 = vmatpush1.bf16.msra.mxu0 %v1942_v5  ;;  %1925 = vmatpush1.bf16.msra.mxu1 %v1942_v5  ;;  %v2007_v52 = vld [vmem:[%s2579_s0 + $0x1b0] ss:$8 sps:$4 sm:$0xff]   ;;  %v2008_v53 = vld [vmem:[%s2579_s0 + $0x94] ss:$8 sps:$4 sm:$0xff]   ;;  %v2011_v54 = vld [vmem:[%s2579_s0 + $0x1c4] ss:$8 sps:$4 sm:$0xff]  }
  0x13   :  { %604 = vmatprep.subr.bf16.mxu0 %v2065_v0  ;;  %1910 = vmatprep.subr.bf16.mxu1 %v2065_v0  ;;  %v2010_v55 = vld [vmem:[%s2579_s0 + $0x90] ss:$8 sps:$4 sm:$0xff]   ;;  %v2013_v56 = vld [vmem:[%s2579_s0 + $0x1c0] ss:$8 sps:$4 sm:$0xff]   ;;  %v2014_v57 = vld [vmem:[%s2579_s0 + $0xa4] ss:$8 sps:$4 sm:$0xff]  }
  0x14   :  { %v2017_v58 = vld [vmem:[%s2579_s0 + $0x1d4] ss:$8 sps:$4 sm:$0xff]   ;;  %v2016_v59 = vld [vmem:[%s2579_s0 + $0xa0] ss:$8 sps:$4 sm:$0xff]   ;;  %v2019_v60 = vld [vmem:[%s2579_s0 + $0x1d0] ss:$8 sps:$4 sm:$0xff]  }
  0x15   :  { %v2020_v61 = vld [vmem:[%s2579_s0 + $0xb4] ss:$8 sps:$4 sm:$0xff]   ;;  %v2023_v62 = vld [vmem:[%s2579_s0 + $0x1e4] ss:$8 sps:$4 sm:$0xff]   ;;  %v2022_v63 = vld [vmem:[%s2579_s0 + $0xb0] ss:$8 sps:$4 sm:$0xff]  }
  0x16   :  { %605 = vmatpush1.bf16.msra.mxu0 %v1943_v7  ;;  %1926 = vmatpush1.bf16.msra.mxu1 %v1943_v7  ;;  %v2026_v1 = vld [vmem:[%s2579_s0 + $0xc4] ss:$8 sps:$4 sm:$0xff]   ;;  %v2029_v2 = vld [vmem:[%s2579_s0 + $0x1f4] ss:$8 sps:$4 sm:$0xff]   ;;  %v2028_v3 = vld [vmem:[%s2579_s0 + $0xc0] ss:$8 sps:$4 sm:$0xff]  }
  0x17   :  { %606 = vmatprep.subr.bf16.mxu0 %v2065_v0  ;;  %1911 = vmatprep.subr.bf16.mxu1 %v2065_v0  ;;  %v2031_v4 = vld [vmem:[%s2579_s0 + $0x1f0] ss:$8 sps:$4 sm:$0xff]   ;;  %v2032_v5 = vld [vmem:[%s2579_s0 + $0xd4] ss:$8 sps:$4 sm:$0xff]   ;;  %v2035_v6 = vld [vmem:[%s2579_s0 + $0x204] ss:$8 sps:$4 sm:$0xff]  }
  0x18   :  { %v2034_v7 = vld [vmem:[%s2579_s0 + $0xd0] ss:$8 sps:$4 sm:$0xff]   ;;  %v2037_v8 = vld [vmem:[%s2579_s0 + $0x200] ss:$8 sps:$4 sm:$0xff]  }
  0x1a   :  { %607 = vmatpush1.bf16.msra.mxu0 %v1944_v9  ;;  %1927 = vmatpush1.bf16.msra.mxu1 %v1944_v9  ;;  %v2038_v9 = vld [vmem:[%s2579_s0 + $0xe4] ss:$8 sps:$4 sm:$0xff]  }
  0x1b   :  { %608 = vmatprep.subr.bf16.mxu0 %v2065_v0  ;;  %1912 = vmatprep.subr.bf16.mxu1 %v2065_v0 }
  0x1e   :  { %609 = vmatpush1.bf16.msra.mxu0 %v1945_v10  ;;  %1928 = vmatpush1.bf16.msra.mxu1 %v1945_v10  ;;  %v2041_v10 = vld [vmem:[%s2579_s0 + $0x214] ss:$8 sps:$4 sm:$0xff]  }
  0x1f   :  { %610 = vmatprep.subr.bf16.mxu0 %v2065_v0  ;;  %1913 = vmatprep.subr.bf16.mxu1 %v2065_v0 }
  0x22   :  { %611 = vmatpush1.bf16.msra.mxu0 %v1946_v11  ;;  %1929 = vmatpush1.bf16.msra.mxu1 %v1946_v11  ;;  %v2040_v11 = vld [vmem:[%s2579_s0 + $0xe0] ss:$8 sps:$4 sm:$0xff]  }
  0x23   :  { %612 = vmatprep.subr.bf16.mxu0 %v2065_v0  ;;  %1914 = vmatprep.subr.bf16.mxu1 %v2065_v0 }
  0x26   :  { %613 = vmatpush1.bf16.msra.mxu0 %v1947_v12  ;;  %1930 = vmatpush1.bf16.msra.mxu1 %v1947_v12  ;;  %v2043_v12 = vld [vmem:[%s2579_s0 + $0x210] ss:$8 sps:$4 sm:$0xff]  }
  0x27   :  { %614 = vmatprep.subr.bf16.mxu0 %v2065_v0  ;;  %1915 = vmatprep.subr.bf16.mxu1 %v2065_v0 }
  0x2a   :  { %615 = vmatpush1.bf16.msra.mxu0 %v1948_v13  ;;  %1931 = vmatpush1.bf16.msra.mxu1 %v1948_v13  ;;  %v2044_v13 = vld [vmem:[%s2579_s0 + $0xf4] ss:$8 sps:$4 sm:$0xff]  }
  0x2b   :  { %616 = vmatprep.subr.bf16.mxu0 %v2065_v0  ;;  %1916 = vmatprep.subr.bf16.mxu1 %v2065_v0 }
  0x2e   :  { %617 = vmatpush1.bf16.msra.mxu0 %v1949_v14  ;;  %1932 = vmatpush1.bf16.msra.mxu1 %v1949_v14  ;;  %v2047_v14 = vld [vmem:[%s2579_s0 + $0x224] ss:$8 sps:$4 sm:$0xff]  }
  0x2f   :  { %618 = vmatprep.subr.bf16.mxu0 %v2065_v0  ;;  %1917 = vmatprep.subr.bf16.mxu1 %v2065_v0 }
  0x32   :  { %619 = vmatpush1.bf16.msra.mxu0 %v1950_v15  ;;  %1933 = vmatpush1.bf16.msra.mxu1 %v1950_v15  ;;  %v2046_v15 = vld [vmem:[%s2579_s0 + $0xf0] ss:$8 sps:$4 sm:$0xff]  }
  0x33   :  { %620 = vmatprep.subr.bf16.mxu0 %v2065_v0  ;;  %1918 = vmatprep.subr.bf16.mxu1 %v2065_v0 }
  0x36   :  { %621 = vmatpush1.bf16.msra.mxu0 %v1951_v16  ;;  %1934 = vmatpush1.bf16.msra.mxu1 %v1951_v16  ;;  %v2049_v16 = vld [vmem:[%s2579_s0 + $0x220] ss:$8 sps:$4 sm:$0xff]  }
  0x37   :  { %622 = vmatprep.subr.bf16.mxu0 %v2065_v0  ;;  %1919 = vmatprep.subr.bf16.mxu1 %v2065_v0 }
  0x3a   :  { %623 = vmatpush1.bf16.msra.mxu0 %v1952_v17  ;;  %1935 = vmatpush1.bf16.msra.mxu1 %v1952_v17  ;;  %v2050_v17 = vld [vmem:[%s2579_s0 + $0x104] ss:$8 sps:$4 sm:$0xff]  }
  0x3b   :  { %624 = vmatprep.subr.bf16.mxu0 %v2065_v0  ;;  %1920 = vmatprep.subr.bf16.mxu1 %v2065_v0  ;;  %v2025_v0 = vld [vmem:[%s2579_s0 + $0x1e0] ss:$8 sps:$4 sm:$0xff]  }
  0x3e   :  { %625 = vmatpush1.bf16.msra.mxu0 %v1953_v18  ;;  %1936 = vmatpush1.bf16.msra.mxu1 %v1953_v18  ;;  %v2053_v18 = vld [vmem:[%s2579_s0 + $0x234] ss:$8 sps:$4 sm:$0xff]  }
  0x41   :  { %627 = vmatmul.mubr.bf16.vlgmr.msra.gmra.mrb[0].mxu0 %v1954_v19  ;;  %779 = vmatmul.mubr.bf16.vlgmr.msra.gmra.mrb[0].mxu1 %v1957_v20  ;;  %v2052_v19 = vld [vmem:[%s2579_s0 + $0x100] ss:$8 sps:$4 sm:$0xff]   ;;  %v2055_v20 = vld [vmem:[%s2579_s0 + $0x230] ss:$8 sps:$4 sm:$0xff]  }
  0x42   :  { %634 = vmatprep.mubr.bf16.mxu0 %v1960_v21  ;;  %786 = vmatprep.mubr.bf16.mxu1 %v1963_v22  ;;  %v2056_v21 = vld [vmem:[%s2579_s0 + $0x114] ss:$8 sps:$4 sm:$0xff]   ;;  %v2059_v22 = vld [vmem:[%s2579_s0 + $0x244] ss:$8 sps:$4 sm:$0xff]  }
  0x49   :  { %635 = vmatmul.mubr.bf16.gmra.mrb[4].mxu0 %v1962_v23  ;;  %787 = vmatmul.mubr.bf16.gmra.mrb[4].mxu1 %v1965_v24  ;;  %v2058_v23 = vld [vmem:[%s2579_s0 + $0x110] ss:$8 sps:$4 sm:$0xff]   ;;  %v2061_v24 = vld [vmem:[%s2579_s0 + $0x240] ss:$8 sps:$4 sm:$0xff]  }
  0x4a   :  { %642 = vmatprep.mubr.bf16.mxu0 %v1966_v25  ;;  %794 = vmatprep.mubr.bf16.mxu1 %v1969_v26  ;;  %v2062_v25 = vld [vmem:[%s2579_s0 + $0x124] ss:$8 sps:$4 sm:$0xff]   ;;  %v2064_v26 = vld [vmem:[%s2579_s0 + $0x120] ss:$8 sps:$4 sm:$0xff]  }
  0x51   :  { %643 = vmatmul.mubr.bf16.gmra.mrb[8].mxu0 %v1968_v27  ;;  %795 = vmatmul.mubr.bf16.gmra.mrb[8].mxu1 %v1971_v28  ;;  %v2391_v27 = vld [vmem:[%s2580_s2] ss:$0 sm:$0xff] }
  0x52   :  { %650 = vmatprep.mubr.bf16.mxu0 %v1972_v29  ;;  %802 = vmatprep.mubr.bf16.mxu1 %v1975_v30 }
  0x59   :  { %651 = vmatmul.mubr.bf16.gmra.mrb[12].mxu0 %v1974_v31  ;;  %803 = vmatmul.mubr.bf16.gmra.mrb[12].mxu1 %v1977_v32 }
  0x5a   :  { %658 = vmatprep.mubr.bf16.mxu0 %v1978_v33  ;;  %810 = vmatprep.mubr.bf16.mxu1 %v1981_v34 }
  0x61   :  { %659 = vmatmul.mubr.bf16.gmra.mrb[16].mxu0 %v1980_v35  ;;  %811 = vmatmul.mubr.bf16.gmra.mrb[16].mxu1 %v1983_v36 }
  0x62   :  { %666 = vmatprep.mubr.bf16.mxu0 %v1984_v37  ;;  %818 = vmatprep.mubr.bf16.mxu1 %v1987_v38 }
  0x69   :  { %667 = vmatmul.mubr.bf16.gmra.mrb[20].mxu0 %v1986_v39  ;;  %819 = vmatmul.mubr.bf16.gmra.mrb[20].mxu1 %v1989_v40 }
  0x6a   :  { %674 = vmatprep.mubr.bf16.mxu0 %v1990_v41  ;;  %826 = vmatprep.mubr.bf16.mxu1 %v1993_v42 }
  0x71   :  { %675 = vmatmul.mubr.bf16.gmra.mrb[24].mxu0 %v1992_v43  ;;  %827 = vmatmul.mubr.bf16.gmra.mrb[24].mxu1 %v1995_v44 }
  0x72   :  { %682 = vmatprep.mubr.bf16.mxu0 %v1996_v45  ;;  %834 = vmatprep.mubr.bf16.mxu1 %v1999_v46 }
  0x79   :  { %683 = vmatmul.mubr.bf16.gmra.mrb[28].mxu0 %v1998_v47  ;;  %835 = vmatmul.mubr.bf16.gmra.mrb[28].mxu1 %v2001_v48 }
  0x7a   :  { %690 = vmatprep.mubr.bf16.mxu0 %v2002_v49  ;;  %842 = vmatprep.mubr.bf16.mxu1 %v2005_v50 }
  0x81   :  { %691 = vmatmul.mubr.bf16.gmra.mrb[32].mxu0 %v2004_v51  ;;  %843 = vmatmul.mubr.bf16.gmra.mrb[32].mxu1 %v2007_v52 }
  0x82   :  { %698 = vmatprep.mubr.bf16.mxu0 %v2008_v53  ;;  %850 = vmatprep.mubr.bf16.mxu1 %v2011_v54 }
  0x89   :  { %699 = vmatmul.mubr.bf16.gmra.mrb[36].mxu0 %v2010_v55  ;;  %851 = vmatmul.mubr.bf16.gmra.mrb[36].mxu1 %v2013_v56 }
  0x8a   :  { %706 = vmatprep.mubr.bf16.mxu0 %v2014_v57  ;;  %858 = vmatprep.mubr.bf16.mxu1 %v2017_v58 }
  0x91   :  { %707 = vmatmul.mubr.bf16.gmra.mrb[40].mxu0 %v2016_v59  ;;  %859 = vmatmul.mubr.bf16.gmra.mrb[40].mxu1 %v2019_v60 }
  0x92   :  { %714 = vmatprep.mubr.bf16.mxu0 %v2020_v61  ;;  %866 = vmatprep.mubr.bf16.mxu1 %v2023_v62 }
  0x99   :  { %715 = vmatmul.mubr.bf16.gmra.mrb[44].mxu0 %v2022_v63  ;;  %867 = vmatmul.mubr.bf16.gmra.mrb[44].mxu1 %v2025_v0 }
  0x9a   :  { %722 = vmatprep.mubr.bf16.mxu0 %v2026_v1  ;;  %874 = vmatprep.mubr.bf16.mxu1 %v2029_v2 }
  0xa1   :  { %723 = vmatmul.mubr.bf16.gmra.mrb[48].mxu0 %v2028_v3  ;;  %875 = vmatmul.mubr.bf16.gmra.mrb[48].mxu1 %v2031_v4 }
  0xa2   :  { %730 = vmatprep.mubr.bf16.mxu0 %v2032_v5  ;;  %882 = vmatprep.mubr.bf16.mxu1 %v2035_v6 }
  0xa9   :  { %731 = vmatmul.mubr.bf16.gmra.mrb[52].mxu0 %v2034_v7  ;;  %883 = vmatmul.mubr.bf16.gmra.mrb[52].mxu1 %v2037_v8 }
  0xaa   :  { %738 = vmatprep.mubr.bf16.mxu0 %v2038_v9  ;;  %890 = vmatprep.mubr.bf16.mxu1 %v2041_v10 }
  0xb1   :  { %739 = vmatmul.mubr.bf16.gmra.mrb[56].mxu0 %v2040_v11  ;;  %891 = vmatmul.mubr.bf16.gmra.mrb[56].mxu1 %v2043_v12 }
  0xb2   :  { %746 = vmatprep.mubr.bf16.mxu0 %v2044_v13  ;;  %898 = vmatprep.mubr.bf16.mxu1 %v2047_v14 }
  0xb9   :  { %747 = vmatmul.mubr.bf16.gmra.mrb[60].mxu0 %v2046_v15  ;;  %899 = vmatmul.mubr.bf16.gmra.mrb[60].mxu1 %v2049_v16 }
  0xba   :  { %754 = vmatprep.mubr.bf16.mxu0 %v2050_v17  ;;  %906 = vmatprep.mubr.bf16.mxu1 %v2053_v18 }
  0xc1   :  { %755 = vmatmul.mubr.bf16.gmra.mrb[64].mxu0 %v2052_v19  ;;  %907 = vmatmul.mubr.bf16.gmra.mrb[64].mxu1 %v2055_v20 }
  0xc2   :  { %762 = vmatprep.mubr.bf16.mxu0 %v2056_v21  ;;  %914 = vmatprep.mubr.bf16.mxu1 %v2059_v22 }
  0xc9   :  { %763 = vmatmul.mubr.bf16.gmra.mrb[68].mxu0 %v2058_v23  ;;  %915 = vmatmul.mubr.bf16.gmra.mrb[68].mxu1 %v2061_v24 }
  0xca   :  { %770 = vmatprep.mubr.bf16.mxu0 %v2062_v25 }
  0xd1   :  { %771 = vmatmul.mubr.bf16.gmra.mrb[72].mxu0 %v2064_v26 }
 0x114   :  { %v628_v28 = vpop.f32.mrb[0].mxu0  ;;  %v780_v29 = vpop.f32.mrb[0].mxu1 }
 0x115   :  { %v629_v30 = vadd.f32 %v2391_v27, %v628_v28  ;;  %v630_v31 = vpop.f32.mrb[1].mxu0  ;;  %v781_v32 = vadd.f32 %v2391_v27, %v780_v29  ;;  %v782_v33 = vpop.f32.mrb[1].mxu1 }
 0x116   :  { %v631_v34 = vpop.f32.mrb[2].mxu0  ;;  %v783_v35 = vpop.f32.mrb[2].mxu1 }
 0x117   :  { %v923_v36 = vmul.f32 0.01, %v629_v30  ;;  %v632_v37 = vadd.f32 %v2391_v27, %v631_v34  ;;  %v633_v38 = vpop.f32.mrb[3].mxu0  ;;  %v961_v39 = vmul.f32 0.01, %v781_v32  ;;  %v784_v40 = vadd.f32 %v2391_v27, %v783_v35  ;;  %v785_v41 = vpop.f32.mrb[3].mxu1 }
 0x119   :  { %v924_v42 = vmul.f32 0.01, %v632_v37  ;;  %v1035_v43 = vmax.f32 %v781_v32, %v961_v39  ;;  %v962_v44 = vmul.f32 0.01, %v784_v40  ;;  %v997_v45 = vmax.f32 %v629_v30, %v923_v36 }
 0x11b   :  { %v998_v46 = vmax.f32 %v632_v37, %v924_v42  ;;  %v1036_v47 = vmax.f32 %v784_v40, %v962_v44 }
 0x11c   :  { %v636_v48 = vpop.f32.mrb[4].mxu0  ;;  %v788_v49 = vpop.f32.mrb[4].mxu1 }
 0x11d   :  { %v1687_v50 = vpack.c.bf16 %v998_v46, %v997_v45  ;;  %v1782_v51 = vpack.c.bf16 %v1036_v47, %v1035_v43  ;;  %v637_v52 = vadd.f32 %v2391_v27, %v636_v48  ;;  %v638_v53 = vpop.f32.mrb[5].mxu0  ;;  %v789_v54 = vadd.f32 %v2391_v27, %v788_v49  ;;  %v790_v55 = vpop.f32.mrb[5].mxu1 }
 0x11e   :  { %v639_v56 = vpop.f32.mrb[6].mxu0  ;;  %v791_v57 = vpop.f32.mrb[6].mxu1 }
 0x11f   :  { %1688 = vst [vmem:[%s2581_s3] sm:$0xff] %v1687_v50   ;;  %1887 = vst [vmem:[%s2581_s3 + $0x98] sm:$0xff] %v1782_v51   ;;  %v925_v58 = vmul.f32 0.01, %v637_v52  ;;  %v640_v59 = vadd.f32 %v2391_v27, %v639_v56  ;;  %v641_v60 = vpop.f32.mrb[7].mxu0  ;;  %v963_v61 = vmul.f32 0.01, %v789_v54  ;;  %v792_v62 = vadd.f32 %v2391_v27, %v791_v57 }
 0x120   :  { %v793_v63 = vpop.f32.mrb[7].mxu1 }
 0x121   :  { %v926_v0 = vmul.f32 0.01, %v640_v59  ;;  %v1037_v1 = vmax.f32 %v789_v54, %v963_v61  ;;  %v964_v2 = vmul.f32 0.01, %v792_v62  ;;  %v999_v3 = vmax.f32 %v637_v52, %v925_v58 }
 0x123   :  { %v1000_v4 = vmax.f32 %v640_v59, %v926_v0  ;;  %v1038_v5 = vmax.f32 %v792_v62, %v964_v2 }
 0x124   :  { %v644_v6 = vpop.f32.mrb[8].mxu0  ;;  %v796_v7 = vpop.f32.mrb[8].mxu1 }
 0x125   :  { %v1692_v8 = vpack.c.bf16 %v1000_v4, %v999_v3  ;;  %v1787_v9 = vpack.c.bf16 %v1038_v5, %v1037_v1  ;;  %v645_v10 = vadd.f32 %v2391_v27, %v644_v6  ;;  %v646_v11 = vpop.f32.mrb[9].mxu0  ;;  %v797_v12 = vadd.f32 %v2391_v27, %v796_v7  ;;  %v798_v13 = vpop.f32.mrb[9].mxu1 }
 0x126   :  { %v647_v14 = vpop.f32.mrb[10].mxu0  ;;  %v799_v15 = vpop.f32.mrb[10].mxu1 }
 0x127   :  { %1869 = vst [vmem:[%s2581_s3 + $0x8] sm:$0xff] %v1692_v8   ;;  %1888 = vst [vmem:[%s2581_s3 + $0xa0] sm:$0xff] %v1787_v9   ;;  %v927_v16 = vmul.f32 0.01, %v645_v10  ;;  %v648_v17 = vadd.f32 %v2391_v27, %v647_v14  ;;  %v649_v18 = vpop.f32.mrb[11].mxu0  ;;  %v800_v20 = vadd.f32 %v2391_v27, %v799_v15  ;;  %v801_v21 = vpop.f32.mrb[11].mxu1 }
 0x128   :  { %v965_v19 = vmul.f32 0.01, %v797_v12 }
 0x129   :  { %v928_v22 = vmul.f32 0.01, %v648_v17  ;;  %v966_v24 = vmul.f32 0.01, %v800_v20  ;;  %v1001_v25 = vmax.f32 %v645_v10, %v927_v16 }
 0x12a   :  { %v1039_v23 = vmax.f32 %v797_v12, %v965_v19 }
 0x12b   :  { %v1002_v26 = vmax.f32 %v648_v17, %v928_v22  ;;  %v1040_v28 = vmax.f32 %v800_v20, %v966_v24 }
 0x12c   :  { %v652_v29 = vpop.f32.mrb[12].mxu0  ;;  %v804_v30 = vpop.f32.mrb[12].mxu1 }
 0x12d   :  { %v1697_v31 = vpack.c.bf16 %v1002_v26, %v1001_v25  ;;  %v1792_v32 = vpack.c.bf16 %v1040_v28, %v1039_v23  ;;  %v653_v33 = vadd.f32 %v2391_v27, %v652_v29  ;;  %v654_v34 = vpop.f32.mrb[13].mxu0  ;;  %v805_v35 = vadd.f32 %v2391_v27, %v804_v30  ;;  %v806_v36 = vpop.f32.mrb[13].mxu1 }
 0x12e   :  { %v655_v37 = vpop.f32.mrb[14].mxu0  ;;  %v807_v38 = vpop.f32.mrb[14].mxu1 }
 0x12f   :  { %1870 = vst [vmem:[%s2581_s3 + $0x10] sm:$0xff] %v1697_v31   ;;  %1889 = vst [vmem:[%s2581_s3 + $0xa8] sm:$0xff] %v1792_v32   ;;  %v929_v39 = vmul.f32 0.01, %v653_v33  ;;  %v656_v40 = vadd.f32 %v2391_v27, %v655_v37  ;;  %v657_v41 = vpop.f32.mrb[15].mxu0  ;;  %v808_v43 = vadd.f32 %v2391_v27, %v807_v38  ;;  %v809_v44 = vpop.f32.mrb[15].mxu1 }
 0x130   :  { %v967_v42 = vmul.f32 0.01, %v805_v35 }
 0x131   :  { %v930_v45 = vmul.f32 0.01, %v656_v40  ;;  %v968_v47 = vmul.f32 0.01, %v808_v43  ;;  %v1003_v48 = vmax.f32 %v653_v33, %v929_v39 }
 0x132   :  { %v1041_v46 = vmax.f32 %v805_v35, %v967_v42 }
 0x133   :  { %v1004_v49 = vmax.f32 %v656_v40, %v930_v45  ;;  %v1042_v50 = vmax.f32 %v808_v43, %v968_v47 }
 0x134   :  { %v660_v51 = vpop.f32.mrb[16].mxu0  ;;  %v812_v52 = vpop.f32.mrb[16].mxu1 }
 0x135   :  { %v1702_v53 = vpack.c.bf16 %v1004_v49, %v1003_v48  ;;  %v1797_v54 = vpack.c.bf16 %v1042_v50, %v1041_v46  ;;  %v661_v55 = vadd.f32 %v2391_v27, %v660_v51  ;;  %v662_v56 = vpop.f32.mrb[17].mxu0  ;;  %v813_v57 = vadd.f32 %v2391_v27, %v812_v52  ;;  %v814_v58 = vpop.f32.mrb[17].mxu1 }
 0x136   :  { %v663_v59 = vpop.f32.mrb[18].mxu0  ;;  %v815_v60 = vpop.f32.mrb[18].mxu1 }
 0x137   :  { %1871 = vst [vmem:[%s2581_s3 + $0x18] sm:$0xff] %v1702_v53   ;;  %1890 = vst [vmem:[%s2581_s3 + $0xb0] sm:$0xff] %v1797_v54   ;;  %v931_v61 = vmul.f32 0.01, %v661_v55  ;;  %v664_v62 = vadd.f32 %v2391_v27, %v663_v59  ;;  %v665_v63 = vpop.f32.mrb[19].mxu0  ;;  %v816_v1 = vadd.f32 %v2391_v27, %v815_v60  ;;  %v817_v2 = vpop.f32.mrb[19].mxu1 }
 0x138   :  { %v969_v0 = vmul.f32 0.01, %v813_v57 }
 0x139   :  { %v932_v3 = vmul.f32 0.01, %v664_v62  ;;  %v970_v5 = vmul.f32 0.01, %v816_v1  ;;  %v1005_v6 = vmax.f32 %v661_v55, %v931_v61 }
 0x13a   :  { %v1043_v4 = vmax.f32 %v813_v57, %v969_v0 }
 0x13b   :  { %v1006_v7 = vmax.f32 %v664_v62, %v932_v3  ;;  %v1044_v8 = vmax.f32 %v816_v1, %v970_v5 }
 0x13c   :  { %v668_v9 = vpop.f32.mrb[20].mxu0  ;;  %v820_v10 = vpop.f32.mrb[20].mxu1 }
 0x13d   :  { %v1707_v11 = vpack.c.bf16 %v1006_v7, %v1005_v6  ;;  %v1802_v12 = vpack.c.bf16 %v1044_v8, %v1043_v4  ;;  %v669_v13 = vadd.f32 %v2391_v27, %v668_v9  ;;  %v670_v14 = vpop.f32.mrb[21].mxu0  ;;  %v821_v15 = vadd.f32 %v2391_v27, %v820_v10  ;;  %v822_v16 = vpop.f32.mrb[21].mxu1 }
 0x13e   :  { %v671_v17 = vpop.f32.mrb[22].mxu0  ;;  %v823_v18 = vpop.f32.mrb[22].mxu1 }
 0x13f   :  { %1872 = vst [vmem:[%s2581_s3 + $0x20] sm:$0xff] %v1707_v11   ;;  %1891 = vst [vmem:[%s2581_s3 + $0xb8] sm:$0xff] %v1802_v12   ;;  %v933_v19 = vmul.f32 0.01, %v669_v13  ;;  %v672_v20 = vadd.f32 %v2391_v27, %v671_v17  ;;  %v673_v21 = vpop.f32.mrb[23].mxu0  ;;  %v824_v23 = vadd.f32 %v2391_v27, %v823_v18  ;;  %v825_v24 = vpop.f32.mrb[23].mxu1 }
 0x140   :  { %v971_v22 = vmul.f32 0.01, %v821_v15 }
 0x141   :  { %v934_v25 = vmul.f32 0.01, %v672_v20  ;;  %v972_v28 = vmul.f32 0.01, %v824_v23  ;;  %v1007_v29 = vmax.f32 %v669_v13, %v933_v19 }
 0x142   :  { %v1045_v26 = vmax.f32 %v821_v15, %v971_v22 }
 0x143   :  { %v1008_v30 = vmax.f32 %v672_v20, %v934_v25  ;;  %v1046_v31 = vmax.f32 %v824_v23, %v972_v28 }
 0x144   :  { %v676_v32 = vpop.f32.mrb[24].mxu0  ;;  %v828_v33 = vpop.f32.mrb[24].mxu1 }
 0x145   :  { %v1712_v34 = vpack.c.bf16 %v1008_v30, %v1007_v29  ;;  %v1807_v35 = vpack.c.bf16 %v1046_v31, %v1045_v26  ;;  %v677_v36 = vadd.f32 %v2391_v27, %v676_v32  ;;  %v678_v37 = vpop.f32.mrb[25].mxu0  ;;  %v829_v38 = vadd.f32 %v2391_v27, %v828_v33  ;;  %v830_v39 = vpop.f32.mrb[25].mxu1 }
 0x146   :  { %v679_v40 = vpop.f32.mrb[26].mxu0  ;;  %v831_v41 = vpop.f32.mrb[26].mxu1 }
 0x147   :  { %1873 = vst [vmem:[%s2581_s3 + $0x28] sm:$0xff] %v1712_v34   ;;  %1892 = vst [vmem:[%s2581_s3 + $0xc0] sm:$0xff] %v1807_v35   ;;  %v935_v42 = vmul.f32 0.01, %v677_v36  ;;  %v680_v43 = vadd.f32 %v2391_v27, %v679_v40  ;;  %v681_v44 = vpop.f32.mrb[27].mxu0  ;;  %v832_v46 = vadd.f32 %v2391_v27, %v831_v41  ;;  %v833_v47 = vpop.f32.mrb[27].mxu1 }
 0x148   :  { %v973_v45 = vmul.f32 0.01, %v829_v38 }
 0x149   :  { %v936_v48 = vmul.f32 0.01, %v680_v43  ;;  %v974_v50 = vmul.f32 0.01, %v832_v46  ;;  %v1009_v51 = vmax.f32 %v677_v36, %v935_v42 }
 0x14a   :  { %v1047_v49 = vmax.f32 %v829_v38, %v973_v45 }
 0x14b   :  { %v1010_v52 = vmax.f32 %v680_v43, %v936_v48  ;;  %v1048_v53 = vmax.f32 %v832_v46, %v974_v50 }
 0x14c   :  { %v684_v54 = vpop.f32.mrb[28].mxu0  ;;  %v836_v55 = vpop.f32.mrb[28].mxu1 }
 0x14d   :  { %v1717_v56 = vpack.c.bf16 %v1010_v52, %v1009_v51  ;;  %v1812_v57 = vpack.c.bf16 %v1048_v53, %v1047_v49  ;;  %v685_v58 = vadd.f32 %v2391_v27, %v684_v54  ;;  %v686_v59 = vpop.f32.mrb[29].mxu0  ;;  %v837_v60 = vadd.f32 %v2391_v27, %v836_v55  ;;  %v838_v61 = vpop.f32.mrb[29].mxu1 }
 0x14e   :  { %v687_v62 = vpop.f32.mrb[30].mxu0  ;;  %v839_v63 = vpop.f32.mrb[30].mxu1 }
 0x14f   :  { %1874 = vst [vmem:[%s2581_s3 + $0x30] sm:$0xff] %v1717_v56   ;;  %1893 = vst [vmem:[%s2581_s3 + $0xc8] sm:$0xff] %v1812_v57   ;;  %v937_v0 = vmul.f32 0.01, %v685_v58  ;;  %v688_v1 = vadd.f32 %v2391_v27, %v687_v62  ;;  %v689_v2 = vpop.f32.mrb[31].mxu0  ;;  %v840_v4 = vadd.f32 %v2391_v27, %v839_v63  ;;  %v841_v5 = vpop.f32.mrb[31].mxu1 }
 0x150   :  { %v975_v3 = vmul.f32 0.01, %v837_v60 }
 0x151   :  { %v938_v6 = vmul.f32 0.01, %v688_v1  ;;  %v976_v8 = vmul.f32 0.01, %v840_v4  ;;  %v1011_v9 = vmax.f32 %v685_v58, %v937_v0 }
 0x152   :  { %v1049_v7 = vmax.f32 %v837_v60, %v975_v3 }
 0x153   :  { %v1012_v10 = vmax.f32 %v688_v1, %v938_v6  ;;  %v1050_v11 = vmax.f32 %v840_v4, %v976_v8 }
 0x154   :  { %v692_v12 = vpop.f32.mrb[32].mxu0  ;;  %v844_v13 = vpop.f32.mrb[32].mxu1 }
 0x155   :  { %v1722_v14 = vpack.c.bf16 %v1012_v10, %v1011_v9  ;;  %v1817_v15 = vpack.c.bf16 %v1050_v11, %v1049_v7  ;;  %v693_v16 = vadd.f32 %v2391_v27, %v692_v12  ;;  %v694_v17 = vpop.f32.mrb[33].mxu0  ;;  %v845_v18 = vadd.f32 %v2391_v27, %v844_v13  ;;  %v846_v19 = vpop.f32.mrb[33].mxu1 }
 0x156   :  { %v695_v20 = vpop.f32.mrb[34].mxu0  ;;  %v847_v21 = vpop.f32.mrb[34].mxu1 }
 0x157   :  { %1875 = vst [vmem:[%s2581_s3 + $0x38] sm:$0xff] %v1722_v14   ;;  %1894 = vst [vmem:[%s2581_s3 + $0xd0] sm:$0xff] %v1817_v15   ;;  %v939_v22 = vmul.f32 0.01, %v693_v16  ;;  %v696_v23 = vadd.f32 %v2391_v27, %v695_v20  ;;  %v697_v24 = vpop.f32.mrb[35].mxu0  ;;  %v848_v26 = vadd.f32 %v2391_v27, %v847_v21  ;;  %v849_v28 = vpop.f32.mrb[35].mxu1 }
 0x158   :  { %v977_v25 = vmul.f32 0.01, %v845_v18 }
 0x159   :  { %v940_v29 = vmul.f32 0.01, %v696_v23  ;;  %v978_v31 = vmul.f32 0.01, %v848_v26  ;;  %v1013_v32 = vmax.f32 %v693_v16, %v939_v22 }
 0x15a   :  { %v1051_v30 = vmax.f32 %v845_v18, %v977_v25 }
 0x15b   :  { %v1014_v33 = vmax.f32 %v696_v23, %v940_v29  ;;  %v1052_v34 = vmax.f32 %v848_v26, %v978_v31 }
 0x15c   :  { %v700_v35 = vpop.f32.mrb[36].mxu0  ;;  %v852_v36 = vpop.f32.mrb[36].mxu1 }
 0x15d   :  { %v1727_v37 = vpack.c.bf16 %v1014_v33, %v1013_v32  ;;  %v1822_v38 = vpack.c.bf16 %v1052_v34, %v1051_v30  ;;  %v701_v39 = vadd.f32 %v2391_v27, %v700_v35  ;;  %v702_v40 = vpop.f32.mrb[37].mxu0  ;;  %v853_v41 = vadd.f32 %v2391_v27, %v852_v36  ;;  %v854_v42 = vpop.f32.mrb[37].mxu1 }
 0x15e   :  { %v703_v43 = vpop.f32.mrb[38].mxu0  ;;  %v855_v44 = vpop.f32.mrb[38].mxu1 }
 0x15f   :  { %1876 = vst [vmem:[%s2581_s3 + $0x40] sm:$0xff] %v1727_v37   ;;  %1895 = vst [vmem:[%s2581_s3 + $0xd8] sm:$0xff] %v1822_v38   ;;  %v941_v45 = vmul.f32 0.01, %v701_v39  ;;  %v704_v46 = vadd.f32 %v2391_v27, %v703_v43  ;;  %v705_v47 = vpop.f32.mrb[39].mxu0  ;;  %v856_v49 = vadd.f32 %v2391_v27, %v855_v44  ;;  %v857_v50 = vpop.f32.mrb[39].mxu1 }
 0x160   :  { %v979_v48 = vmul.f32 0.01, %v853_v41 }
 0x161   :  { %v942_v51 = vmul.f32 0.01, %v704_v46  ;;  %v980_v53 = vmul.f32 0.01, %v856_v49  ;;  %v1015_v54 = vmax.f32 %v701_v39, %v941_v45 }
 0x162   :  { %v1053_v52 = vmax.f32 %v853_v41, %v979_v48 }
 0x163   :  { %v1016_v55 = vmax.f32 %v704_v46, %v942_v51  ;;  %v1054_v56 = vmax.f32 %v856_v49, %v980_v53 }
 0x164   :  { %v708_v57 = vpop.f32.mrb[40].mxu0  ;;  %v860_v58 = vpop.f32.mrb[40].mxu1 }
 0x165   :  { %v1732_v59 = vpack.c.bf16 %v1016_v55, %v1015_v54  ;;  %v1827_v60 = vpack.c.bf16 %v1054_v56, %v1053_v52  ;;  %v709_v61 = vadd.f32 %v2391_v27, %v708_v57  ;;  %v710_v62 = vpop.f32.mrb[41].mxu0  ;;  %v861_v63 = vadd.f32 %v2391_v27, %v860_v58  ;;  %v862_v0 = vpop.f32.mrb[41].mxu1 }
 0x166   :  { %v711_v1 = vpop.f32.mrb[42].mxu0  ;;  %v863_v2 = vpop.f32.mrb[42].mxu1 }
 0x167   :  { %1877 = vst [vmem:[%s2581_s3 + $0x48] sm:$0xff] %v1732_v59   ;;  %1896 = vst [vmem:[%s2581_s3 + $0xe0] sm:$0xff] %v1827_v60   ;;  %v943_v3 = vmul.f32 0.01, %v709_v61  ;;  %v712_v4 = vadd.f32 %v2391_v27, %v711_v1  ;;  %v713_v5 = vpop.f32.mrb[43].mxu0  ;;  %v864_v7 = vadd.f32 %v2391_v27, %v863_v2  ;;  %v865_v8 = vpop.f32.mrb[43].mxu1 }
 0x168   :  { %v981_v6 = vmul.f32 0.01, %v861_v63 }
 0x169   :  { %v944_v9 = vmul.f32 0.01, %v712_v4  ;;  %v982_v11 = vmul.f32 0.01, %v864_v7  ;;  %v1017_v12 = vmax.f32 %v709_v61, %v943_v3 }
 0x16a   :  { %v1055_v10 = vmax.f32 %v861_v63, %v981_v6 }
 0x16b   :  { %v1018_v13 = vmax.f32 %v712_v4, %v944_v9  ;;  %v1056_v14 = vmax.f32 %v864_v7, %v982_v11 }
 0x16c   :  { %v716_v15 = vpop.f32.mrb[44].mxu0  ;;  %v868_v16 = vpop.f32.mrb[44].mxu1 }
 0x16d   :  { %v1737_v17 = vpack.c.bf16 %v1018_v13, %v1017_v12  ;;  %v1832_v18 = vpack.c.bf16 %v1056_v14, %v1055_v10  ;;  %v717_v19 = vadd.f32 %v2391_v27, %v716_v15  ;;  %v718_v20 = vpop.f32.mrb[45].mxu0  ;;  %v869_v21 = vadd.f32 %v2391_v27, %v868_v16  ;;  %v870_v22 = vpop.f32.mrb[45].mxu1 }
 0x16e   :  { %v719_v23 = vpop.f32.mrb[46].mxu0  ;;  %v871_v24 = vpop.f32.mrb[46].mxu1 }
 0x16f   :  { %1878 = vst [vmem:[%s2581_s3 + $0x50] sm:$0xff] %v1737_v17   ;;  %1897 = vst [vmem:[%s2581_s3 + $0xe8] sm:$0xff] %v1832_v18   ;;  %v945_v25 = vmul.f32 0.01, %v717_v19  ;;  %v720_v26 = vadd.f32 %v2391_v27, %v719_v23  ;;  %v721_v28 = vpop.f32.mrb[47].mxu0  ;;  %v872_v30 = vadd.f32 %v2391_v27, %v871_v24  ;;  %v873_v31 = vpop.f32.mrb[47].mxu1 }
 0x170   :  { %v983_v29 = vmul.f32 0.01, %v869_v21 }
 0x171   :  { %v946_v32 = vmul.f32 0.01, %v720_v26  ;;  %v984_v34 = vmul.f32 0.01, %v872_v30  ;;  %v1019_v35 = vmax.f32 %v717_v19, %v945_v25 }
 0x172   :  { %v1057_v33 = vmax.f32 %v869_v21, %v983_v29 }
 0x173   :  { %v1020_v36 = vmax.f32 %v720_v26, %v946_v32  ;;  %v1058_v37 = vmax.f32 %v872_v30, %v984_v34 }
 0x174   :  { %v724_v38 = vpop.f32.mrb[48].mxu0  ;;  %v876_v39 = vpop.f32.mrb[48].mxu1 }
 0x175   :  { %v1742_v40 = vpack.c.bf16 %v1020_v36, %v1019_v35  ;;  %v1837_v41 = vpack.c.bf16 %v1058_v37, %v1057_v33  ;;  %v725_v42 = vadd.f32 %v2391_v27, %v724_v38  ;;  %v726_v43 = vpop.f32.mrb[49].mxu0  ;;  %v877_v44 = vadd.f32 %v2391_v27, %v876_v39  ;;  %v878_v45 = vpop.f32.mrb[49].mxu1 }
 0x176   :  { %v727_v46 = vpop.f32.mrb[50].mxu0  ;;  %v879_v47 = vpop.f32.mrb[50].mxu1 }
 0x177   :  { %1879 = vst [vmem:[%s2581_s3 + $0x58] sm:$0xff] %v1742_v40   ;;  %1898 = vst [vmem:[%s2581_s3 + $0xf0] sm:$0xff] %v1837_v41   ;;  %v947_v48 = vmul.f32 0.01, %v725_v42  ;;  %v728_v49 = vadd.f32 %v2391_v27, %v727_v46  ;;  %v729_v50 = vpop.f32.mrb[51].mxu0  ;;  %v880_v52 = vadd.f32 %v2391_v27, %v879_v47  ;;  %v881_v53 = vpop.f32.mrb[51].mxu1 }
 0x178   :  { %v985_v51 = vmul.f32 0.01, %v877_v44 }
 0x179   :  { %v948_v54 = vmul.f32 0.01, %v728_v49  ;;  %v986_v56 = vmul.f32 0.01, %v880_v52  ;;  %v1021_v57 = vmax.f32 %v725_v42, %v947_v48 }
 0x17a   :  { %v1059_v55 = vmax.f32 %v877_v44, %v985_v51 }
 0x17b   :  { %v1022_v58 = vmax.f32 %v728_v49, %v948_v54  ;;  %v1060_v59 = vmax.f32 %v880_v52, %v986_v56 }
 0x17c   :  { %v732_v60 = vpop.f32.mrb[52].mxu0  ;;  %v884_v61 = vpop.f32.mrb[52].mxu1 }
 0x17d   :  { %v1747_v62 = vpack.c.bf16 %v1022_v58, %v1021_v57  ;;  %v1842_v63 = vpack.c.bf16 %v1060_v59, %v1059_v55  ;;  %v733_v0 = vadd.f32 %v2391_v27, %v732_v60  ;;  %v734_v1 = vpop.f32.mrb[53].mxu0  ;;  %v885_v2 = vadd.f32 %v2391_v27, %v884_v61  ;;  %v886_v3 = vpop.f32.mrb[53].mxu1 }
 0x17e   :  { %v735_v4 = vpop.f32.mrb[54].mxu0  ;;  %v887_v5 = vpop.f32.mrb[54].mxu1 }
 0x17f   :  { %1880 = vst [vmem:[%s2581_s3 + $0x60] sm:$0xff] %v1747_v62   ;;  %1899 = vst [vmem:[%s2581_s3 + $0xf8] sm:$0xff] %v1842_v63   ;;  %v949_v6 = vmul.f32 0.01, %v733_v0  ;;  %v736_v7 = vadd.f32 %v2391_v27, %v735_v4  ;;  %v737_v8 = vpop.f32.mrb[55].mxu0  ;;  %v888_v10 = vadd.f32 %v2391_v27, %v887_v5  ;;  %v889_v11 = vpop.f32.mrb[55].mxu1 }
 0x180   :  { %v987_v9 = vmul.f32 0.01, %v885_v2 }
 0x181   :  { %v950_v12 = vmul.f32 0.01, %v736_v7  ;;  %v988_v14 = vmul.f32 0.01, %v888_v10  ;;  %v1023_v15 = vmax.f32 %v733_v0, %v949_v6 }
 0x182   :  { %v1061_v13 = vmax.f32 %v885_v2, %v987_v9 }
 0x183   :  { %v1024_v16 = vmax.f32 %v736_v7, %v950_v12  ;;  %v1062_v17 = vmax.f32 %v888_v10, %v988_v14 }
 0x184   :  { %v740_v18 = vpop.f32.mrb[56].mxu0  ;;  %v892_v19 = vpop.f32.mrb[56].mxu1 }
 0x185   :  { %v1752_v20 = vpack.c.bf16 %v1024_v16, %v1023_v15  ;;  %v1847_v21 = vpack.c.bf16 %v1062_v17, %v1061_v13  ;;  %v741_v22 = vadd.f32 %v2391_v27, %v740_v18  ;;  %v742_v23 = vpop.f32.mrb[57].mxu0  ;;  %v893_v24 = vadd.f32 %v2391_v27, %v892_v19  ;;  %v894_v25 = vpop.f32.mrb[57].mxu1 }
 0x186   :  { %v743_v26 = vpop.f32.mrb[58].mxu0  ;;  %v895_v28 = vpop.f32.mrb[58].mxu1 }
 0x187   :  { %1881 = vst [vmem:[%s2581_s3 + $0x68] sm:$0xff] %v1752_v20   ;;  %1900 = vst [vmem:[%s2581_s3 + $0x100] sm:$0xff] %v1847_v21   ;;  %v951_v29 = vmul.f32 0.01, %v741_v22  ;;  %v744_v30 = vadd.f32 %v2391_v27, %v743_v26  ;;  %v745_v31 = vpop.f32.mrb[59].mxu0  ;;  %v896_v33 = vadd.f32 %v2391_v27, %v895_v28  ;;  %v897_v34 = vpop.f32.mrb[59].mxu1 }
 0x188   :  { %v989_v32 = vmul.f32 0.01, %v893_v24 }
 0x189   :  { %v952_v35 = vmul.f32 0.01, %v744_v30  ;;  %v990_v37 = vmul.f32 0.01, %v896_v33  ;;  %v1025_v38 = vmax.f32 %v741_v22, %v951_v29 }
 0x18a   :  { %v1063_v36 = vmax.f32 %v893_v24, %v989_v32 }
 0x18b   :  { %v1026_v39 = vmax.f32 %v744_v30, %v952_v35  ;;  %v1064_v40 = vmax.f32 %v896_v33, %v990_v37 }
 0x18c   :  { %v748_v41 = vpop.f32.mrb[60].mxu0  ;;  %v900_v42 = vpop.f32.mrb[60].mxu1 }
 0x18d   :  { %v1757_v43 = vpack.c.bf16 %v1026_v39, %v1025_v38  ;;  %v1852_v44 = vpack.c.bf16 %v1064_v40, %v1063_v36  ;;  %v749_v45 = vadd.f32 %v2391_v27, %v748_v41  ;;  %v750_v46 = vpop.f32.mrb[61].mxu0  ;;  %v901_v47 = vadd.f32 %v2391_v27, %v900_v42  ;;  %v902_v48 = vpop.f32.mrb[61].mxu1 }
 0x18e   :  { %v751_v49 = vpop.f32.mrb[62].mxu0  ;;  %v903_v50 = vpop.f32.mrb[62].mxu1 }
 0x18f   :  { %1882 = vst [vmem:[%s2581_s3 + $0x70] sm:$0xff] %v1757_v43   ;;  %1901 = vst [vmem:[%s2581_s3 + $0x108] sm:$0xff] %v1852_v44   ;;  %v953_v51 = vmul.f32 0.01, %v749_v45  ;;  %v752_v52 = vadd.f32 %v2391_v27, %v751_v49  ;;  %v753_v53 = vpop.f32.mrb[63].mxu0  ;;  %v904_v55 = vadd.f32 %v2391_v27, %v903_v50  ;;  %v905_v56 = vpop.f32.mrb[63].mxu1 }
 0x190   :  { %v991_v54 = vmul.f32 0.01, %v901_v47 }
 0x191   :  { %v954_v57 = vmul.f32 0.01, %v752_v52  ;;  %v992_v59 = vmul.f32 0.01, %v904_v55  ;;  %v1027_v60 = vmax.f32 %v749_v45, %v953_v51 }
 0x192   :  { %v1065_v58 = vmax.f32 %v901_v47, %v991_v54 }
 0x193   :  { %v1028_v61 = vmax.f32 %v752_v52, %v954_v57  ;;  %v1066_v62 = vmax.f32 %v904_v55, %v992_v59 }
 0x194   :  { %v756_v63 = vpop.f32.mrb[64].mxu0  ;;  %v908_v0 = vpop.f32.mrb[64].mxu1 }
 0x195   :  { %v1762_v1 = vpack.c.bf16 %v1028_v61, %v1027_v60  ;;  %v1857_v2 = vpack.c.bf16 %v1066_v62, %v1065_v58  ;;  %v757_v3 = vadd.f32 %v2391_v27, %v756_v63  ;;  %v758_v4 = vpop.f32.mrb[65].mxu0  ;;  %v909_v5 = vadd.f32 %v2391_v27, %v908_v0  ;;  %v910_v6 = vpop.f32.mrb[65].mxu1 }
 0x196   :  { %v759_v7 = vpop.f32.mrb[66].mxu0  ;;  %v911_v8 = vpop.f32.mrb[66].mxu1 }
 0x197   :  { %1883 = vst [vmem:[%s2581_s3 + $0x78] sm:$0xff] %v1762_v1   ;;  %1902 = vst [vmem:[%s2581_s3 + $0x110] sm:$0xff] %v1857_v2   ;;  %v955_v9 = vmul.f32 0.01, %v757_v3  ;;  %v760_v10 = vadd.f32 %v2391_v27, %v759_v7  ;;  %v761_v11 = vpop.f32.mrb[67].mxu0  ;;  %v912_v13 = vadd.f32 %v2391_v27, %v911_v8  ;;  %v913_v14 = vpop.f32.mrb[67].mxu1 }
 0x198   :  { %v993_v12 = vmul.f32 0.01, %v909_v5 }
 0x199   :  { %v956_v15 = vmul.f32 0.01, %v760_v10  ;;  %v994_v17 = vmul.f32 0.01, %v912_v13  ;;  %v1029_v18 = vmax.f32 %v757_v3, %v955_v9 }
 0x19a   :  { %v1067_v16 = vmax.f32 %v909_v5, %v993_v12 }
 0x19b   :  { %v1030_v19 = vmax.f32 %v760_v10, %v956_v15  ;;  %v1068_v20 = vmax.f32 %v912_v13, %v994_v17 }
 0x19c   :  { %v764_v21 = vpop.f32.mrb[68].mxu0  ;;  %v916_v22 = vpop.f32.mrb[68].mxu1 }
 0x19d   :  { %v1767_v23 = vpack.c.bf16 %v1030_v19, %v1029_v18  ;;  %v1862_v24 = vpack.c.bf16 %v1068_v20, %v1067_v16  ;;  %v765_v25 = vadd.f32 %v2391_v27, %v764_v21  ;;  %v766_v26 = vpop.f32.mrb[69].mxu0  ;;  %v917_v28 = vadd.f32 %v2391_v27, %v916_v22  ;;  %v918_v29 = vpop.f32.mrb[69].mxu1 }
 0x19e   :  { %v767_v30 = vpop.f32.mrb[70].mxu0  ;;  %v919_v31 = vpop.f32.mrb[70].mxu1 }
 0x19f   :  { %1884 = vst [vmem:[%s2581_s3 + $0x80] sm:$0xff] %v1767_v23   ;;  %1903 = vst [vmem:[%s2581_s3 + $0x118] sm:$0xff] %v1862_v24   ;;  %v957_v32 = vmul.f32 0.01, %v765_v25  ;;  %v768_v33 = vadd.f32 %v2391_v27, %v767_v30  ;;  %v769_v34 = vpop.f32.mrb[71].mxu0  ;;  %v920_v36 = vadd.f32 %v2391_v27, %v919_v31  ;;  %v921_v37 = vpop.f32.mrb[71].mxu1 }
 0x1a0   :  { %v995_v35 = vmul.f32 0.01, %v917_v28 }
 0x1a1   :  { %v958_v38 = vmul.f32 0.01, %v768_v33  ;;  %v996_v40 = vmul.f32 0.01, %v920_v36  ;;  %v1031_v41 = vmax.f32 %v765_v25, %v957_v32 }
 0x1a2   :  { %v1069_v39 = vmax.f32 %v917_v28, %v995_v35 }
 0x1a3   :  { %v1032_v42 = vmax.f32 %v768_v33, %v958_v38  ;;  %v1070_v43 = vmax.f32 %v920_v36, %v996_v40 }
 0x1a4   :  { %v772_v44 = vpop.f32.mrb[72].mxu0 }
 0x1a5   :  { %v1772_v45 = vpack.c.bf16 %v1032_v42, %v1031_v41  ;;  %v1867_v46 = vpack.c.bf16 %v1070_v43, %v1069_v39  ;;  %v773_v47 = vadd.f32 %v2391_v27, %v772_v44  ;;  %v774_v48 = vpop.f32.mrb[73].mxu0 }
 0x1a6   :  { %v775_v49 = vpop.f32.mrb[74].mxu0 }
 0x1a7   :  { %1885 = vst [vmem:[%s2581_s3 + $0x88] sm:$0xff] %v1772_v45   ;;  %1904 = vst [vmem:[%s2581_s3 + $0x120] sm:$0xff] %v1867_v46   ;;  %v959_v50 = vmul.f32 0.01, %v773_v47  ;;  %v776_v51 = vadd.f32 %v2391_v27, %v775_v49  ;;  %v777_v52 = vpop.f32.mrb[75].mxu0 }
 0x1a9   :  { %v960_v53 = vmul.f32 0.01, %v776_v51  ;;  %v1033_v54 = vmax.f32 %v773_v47, %v959_v50 }
 0x1ab   :  { %v1034_v55 = vmax.f32 %v776_v51, %v960_v53 }
 0x1ad   :  { %v1777_v56 = vpack.c.bf16 %v1034_v55, %v1033_v54 }
 0x1af   :  { %1886 = vst [vmem:[%s2581_s3 + $0x90] sm:$0xff] %v1777_v56  }

// kernel: convnet_forward.7
= control target key start
LH: loop header
LB: loop body
LE: loop exit
PB: predicated region body
PF: predicated region fallthrough
CT: control target
= control target key end

     0   :  { %s11453_s12 = smov 0   ;;  %s11455_s13 = smov 0   ;;  %s13414_s0 = inlined_call_operand.vmem [shape: bf16[16,4736], index: 0, kind: input, shape index: {}]   ;;  %s13415_s1 = inlined_call_operand.vmem [shape: bf16[4736,512], index: 1, kind: input, shape index: {}]   ;;  %s13416_s2 = inlined_call_operand.vmem [shape: f32[1,512], index: 2, kind: input, shape index: {}]   ;;  %s13417_s3 = inlined_call_operand.vmem [shape: f32[16,512], index: 3, kind: output, shape index: {}]  }
   0x1   :  { %s11457_s14 = smov 0  }
   0x2 LB: > { %s11469_s15 = sadd.s32 4294967295, %s11430_s14   ;;  %s11472_s16 = sadd.s32 1, %s11430_s14   ;;  %s11430_s14 = sphi %s11457_s14, %s13421_s14   ;;  %s11426_s13 = sphi %s11455_s13, %s13420_s13   ;;  %s11422_s12 = sphi %s11453_s12, %s13419_s12  }
   0x3   : > { %s38_s17 = ssub.s32 %s11430_s14, %s11472_s16  ;;  %s41_s18 = sadd.s32 1, %s11426_s13 }
   0x4   : > { %p39_p0 = scmp.eq.s32.totalorder %s38_s17, 0  ;;  %p48_p1 = scmp.ne.s32.totalorder %s11426_s13, %s11422_s12 }
   0x5   : > { %p49_p2 = scmp.eq.s32.totalorder %s11430_s14, 0  ;;  %p104_p3 = scmp.eq.s32.totalorder %s11469_s15, 1 }
   0x6   : > { %s11482_s19 = scalar_select %p39_p0, %s11426_s13, %s41_s18  }
   0x7   : > { %p50_p4 = por %p49_p2, %p48_p1  ;;  %p11484_p5 = por %p104_p3, %p48_p1 }
   0x8   : > { %p9720_p6 = scmp.ge.s32.totalorder %s11430_s14, 2 }
   0xa   : > { %129 = sbr.rel (%p9720_p6) target bundleno = 317 (0x13d), region = 20 }
  0x11   : > { %132 = sbr.rel (!%p50_p4) target bundleno = 317 (0x13d), region = 24  ;;  %s134_s21 = sand.u32 (%p50_p4), 1, %s11426_s13  }
  0x12   : > { %s10360_s22 = sshll.u32 (%p50_p4), %s11430_s14, 3  ;;  %s10438_s23 = smul.u32 (%p50_p4), 4736, %s134_s21 }
  0x13   : > { %s11494_s26 = scalar_lea.vmem (%p50_p4), %s13415_s1, %s10360_s22 }
  0x14   : > { %v1352_v0 = vld [vmem:[%s11494_s26] sm:$0xff] (%p50_p4)  ;;  %v1354_v1 = vld [vmem:[%s11494_s26 + $0x10] sm:$0xff] (%p50_p4)  ;;  %s11502_s27 = scalar_lea.vmem (%p50_p4), [#allocation2], %s10438_s23 }
  0x15   : > { %v1356_v2 = vld [vmem:[%s11494_s26 + $0x20] sm:$0xff] (%p50_p4)  ;;  %v1358_v3 = vld [vmem:[%s11494_s26 + $0x30] sm:$0xff] (%p50_p4)  ;;  %1353 = vst [vmem:[%s11502_s27] sm:$0xff] (%p50_p4), %v1352_v0  ;;  %1355 = vst [vmem:[%s11502_s27 + $0x8] sm:$0xff] (%p50_p4), %v1354_v1 }
  0x16   : > { %v1360_v4 = vld [vmem:[%s11494_s26 + $0x40] sm:$0xff] (%p50_p4)  ;;  %v1362_v5 = vld [vmem:[%s11494_s26 + $0x50] sm:$0xff] (%p50_p4)  ;;  %1357 = vst [vmem:[%s11502_s27 + $0x10] sm:$0xff] (%p50_p4), %v1356_v2  ;;  %1359 = vst [vmem:[%s11502_s27 + $0x18] sm:$0xff] (%p50_p4), %v1358_v3 }
  0x17   : > { %1361 = vst [vmem:[%s11502_s27 + $0x20] sm:$0xff] (%p50_p4), %v1360_v4  ;;  %1363 = vst [vmem:[%s11502_s27 + $0x28] sm:$0xff] (%p50_p4), %v1362_v5  ;;  %v1364_v6 = vld [vmem:[%s11494_s26 + $0x60] sm:$0xff] (%p50_p4)  ;;  %v1366_v7 = vld [vmem:[%s11494_s26 + $0x70] sm:$0xff] (%p50_p4) }
  0x18   : > { %v1368_v8 = vld [vmem:[%s11494_s26 + $0x80] sm:$0xff]  ;;  %1365 = vst [vmem:[%s11502_s27 + $0x30] sm:$0xff] %v1364_v6  ;;  %1367 = vst [vmem:[%s11502_s27 + $0x38] sm:$0xff] %v1366_v7  ;;  %v1370_v9 = vld [vmem:[%s11494_s26 + $0x90] sm:$0xff] }
  0x19   : > { %1369 = vst [vmem:[%s11502_s27 + $0x40] sm:$0xff] %v1368_v8  ;;  %v1372_v10 = vld [vmem:[%s11494_s26 + $0xa0] sm:$0xff]  ;;  %v1374_v11 = vld [vmem:[%s11494_s26 + $0xb0] sm:$0xff]  ;;  %1371 = vst [vmem:[%s11502_s27 + $0x48] sm:$0xff] %v1370_v9 }
  0x1a   : > { %1373 = vst [vmem:[%s11502_s27 + $0x50] sm:$0xff] %v1372_v10  ;;  %1375 = vst [vmem:[%s11502_s27 + $0x58] sm:$0xff] %v1374_v11  ;;  %v1376_v12 = vld [vmem:[%s11494_s26 + $0xc0] sm:$0xff]  ;;  %v1378_v13 = vld [vmem:[%s11494_s26 + $0xd0] sm:$0xff] }
  0x1b   : > { %v1380_v14 = vld [vmem:[%s11494_s26 + $0xe0] sm:$0xff]  ;;  %1377 = vst [vmem:[%s11502_s27 + $0x60] sm:$0xff] %v1376_v12  ;;  %1379 = vst [vmem:[%s11502_s27 + $0x68] sm:$0xff] %v1378_v13  ;;  %v1382_v15 = vld [vmem:[%s11494_s26 + $0xf0] sm:$0xff] }
  0x1c   : > { %1381 = vst [vmem:[%s11502_s27 + $0x70] sm:$0xff] %v1380_v14  ;;  %v1384_v16 = vld [vmem:[%s11494_s26 + $0x100] sm:$0xff]  ;;  %v1386_v17 = vld [vmem:[%s11494_s26 + $0x110] sm:$0xff]  ;;  %1383 = vst [vmem:[%s11502_s27 + $0x78] sm:$0xff] %v1382_v15 }
  0x1d   : > { %1385 = vst [vmem:[%s11502_s27 + $0x80] sm:$0xff] %v1384_v16  ;;  %1387 = vst [vmem:[%s11502_s27 + $0x88] sm:$0xff] %v1386_v17  ;;  %v1388_v18 = vld [vmem:[%s11494_s26 + $0x120] sm:$0xff]  ;;  %v1390_v19 = vld [vmem:[%s11494_s26 + $0x130] sm:$0xff] }
  0x1e   : > { %v1392_v20 = vld [vmem:[%s11494_s26 + $0x140] sm:$0xff]  ;;  %1389 = vst [vmem:[%s11502_s27 + $0x90] sm:$0xff] %v1388_v18  ;;  %1391 = vst [vmem:[%s11502_s27 + $0x98] sm:$0xff] %v1390_v19  ;;  %v1394_v21 = vld [vmem:[%s11494_s26 + $0x150] sm:$0xff] }
  0x1f   : > { %1393 = vst [vmem:[%s11502_s27 + $0xa0] sm:$0xff] %v1392_v20  ;;  %v1396_v22 = vld [vmem:[%s11494_s26 + $0x160] sm:$0xff]  ;;  %v1398_v23 = vld [vmem:[%s11494_s26 + $0x170] sm:$0xff]  ;;  %1395 = vst [vmem:[%s11502_s27 + $0xa8] sm:$0xff] %v1394_v21 }
  0x20   : > { %1397 = vst [vmem:[%s11502_s27 + $0xb0] sm:$0xff] %v1396_v22  ;;  %1399 = vst [vmem:[%s11502_s27 + $0xb8] sm:$0xff] %v1398_v23  ;;  %v1400_v24 = vld [vmem:[%s11494_s26 + $0x180] sm:$0xff]  ;;  %v1402_v25 = vld [vmem:[%s11494_s26 + $0x190] sm:$0xff] }
  0x21   : > { %v1404_v26 = vld [vmem:[%s11494_s26 + $0x1a0] sm:$0xff]  ;;  %1401 = vst [vmem:[%s11502_s27 + $0xc0] sm:$0xff] %v1400_v24  ;;  %1403 = vst [vmem:[%s11502_s27 + $0xc8] sm:$0xff] %v1402_v25  ;;  %v1406_v27 = vld [vmem:[%s11494_s26 + $0x1b0] sm:$0xff] }
  0x22   : > { %1405 = vst [vmem:[%s11502_s27 + $0xd0] sm:$0xff] %v1404_v26  ;;  %v1408_v28 = vld [vmem:[%s11494_s26 + $0x1c0] sm:$0xff]  ;;  %v1410_v29 = vld [vmem:[%s11494_s26 + $0x1d0] sm:$0xff]  ;;  %1407 = vst [vmem:[%s11502_s27 + $0xd8] sm:$0xff] %v1406_v27 }
  0x23   : > { %1409 = vst [vmem:[%s11502_s27 + $0xe0] sm:$0xff] %v1408_v28  ;;  %1411 = vst [vmem:[%s11502_s27 + $0xe8] sm:$0xff] %v1410_v29  ;;  %v1412_v30 = vld [vmem:[%s11494_s26 + $0x1e0] sm:$0xff]  ;;  %v1414_v31 = vld [vmem:[%s11494_s26 + $0x1f0] sm:$0xff] }
  0x24   : > { %v1416_v32 = vld [vmem:[%s11494_s26 + $0x200] sm:$0xff]  ;;  %1413 = vst [vmem:[%s11502_s27 + $0xf0] sm:$0xff] %v1412_v30  ;;  %1415 = vst [vmem:[%s11502_s27 + $0xf8] sm:$0xff] %v1414_v31  ;;  %v1418_v33 = vld [vmem:[%s11494_s26 + $0x210] sm:$0xff] }
  0x25   : > { %1417 = vst [vmem:[%s11502_s27 + $0x100] sm:$0xff] %v1416_v32  ;;  %v1420_v34 = vld [vmem:[%s11494_s26 + $0x220] sm:$0xff]  ;;  %v1422_v35 = vld [vmem:[%s11494_s26 + $0x230] sm:$0xff]  ;;  %1419 = vst [vmem:[%s11502_s27 + $0x108] sm:$0xff] %v1418_v33 }
  0x26   : > { %1421 = vst [vmem:[%s11502_s27 + $0x110] sm:$0xff] %v1420_v34  ;;  %1423 = vst [vmem:[%s11502_s27 + $0x118] sm:$0xff] %v1422_v35  ;;  %v1424_v36 = vld [vmem:[%s11494_s26 + $0x240] sm:$0xff]  ;;  %v1426_v37 = vld [vmem:[%s11494_s26 + $0x250] sm:$0xff] }
  0x27   : > { %v1428_v38 = vld [vmem:[%s11494_s26 + $0x260] sm:$0xff]  ;;  %1425 = vst [vmem:[%s11502_s27 + $0x120] sm:$0xff] %v1424_v36  ;;  %1427 = vst [vmem:[%s11502_s27 + $0x128] sm:$0xff] %v1426_v37  ;;  %v1430_v39 = vld [vmem:[%s11494_s26 + $0x270] sm:$0xff] }
  0x28   : > { %1429 = vst [vmem:[%s11502_s27 + $0x130] sm:$0xff] %v1428_v38  ;;  %v1432_v40 = vld [vmem:[%s11494_s26 + $0x280] sm:$0xff]  ;;  %v1434_v41 = vld [vmem:[%s11494_s26 + $0x290] sm:$0xff]  ;;  %1431 = vst [vmem:[%s11502_s27 + $0x138] sm:$0xff] %v1430_v39 }
  0x29   : > { %1433 = vst [vmem:[%s11502_s27 + $0x140] sm:$0xff] %v1432_v40  ;;  %1435 = vst [vmem:[%s11502_s27 + $0x148] sm:$0xff] %v1434_v41  ;;  %v1436_v42 = vld [vmem:[%s11494_s26 + $0x2a0] sm:$0xff]  ;;  %v1438_v43 = vld [vmem:[%s11494_s26 + $0x2b0] sm:$0xff] }
  0x2a   : > { %v1440_v44 = vld [vmem:[%s11494_s26 + $0x2c0] sm:$0xff]  ;;  %1437 = vst [vmem:[%s11502_s27 + $0x150] sm:$0xff] %v1436_v42  ;;  %1439 = vst [vmem:[%s11502_s27 + $0x158] sm:$0xff] %v1438_v43  ;;  %v1442_v45 = vld [vmem:[%s11494_s26 + $0x2d0] sm:$0xff] }
  0x2b   : > { %1441 = vst [vmem:[%s11502_s27 + $0x160] sm:$0xff] %v1440_v44  ;;  %v1444_v46 = vld [vmem:[%s11494_s26 + $0x2e0] sm:$0xff]  ;;  %v1446_v47 = vld [vmem:[%s11494_s26 + $0x2f0] sm:$0xff]  ;;  %1443 = vst [vmem:[%s11502_s27 + $0x168] sm:$0xff] %v1442_v45 }
  0x2c   : > { %1445 = vst [vmem:[%s11502_s27 + $0x170] sm:$0xff] %v1444_v46  ;;  %1447 = vst [vmem:[%s11502_s27 + $0x178] sm:$0xff] %v1446_v47  ;;  %v1448_v48 = vld [vmem:[%s11494_s26 + $0x300] sm:$0xff]  ;;  %v1450_v49 = vld [vmem:[%s11494_s26 + $0x310] sm:$0xff] }
  0x2d   : > { %v1452_v50 = vld [vmem:[%s11494_s26 + $0x320] sm:$0xff]  ;;  %1449 = vst [vmem:[%s11502_s27 + $0x180] sm:$0xff] %v1448_v48  ;;  %1451 = vst [vmem:[%s11502_s27 + $0x188] sm:$0xff] %v1450_v49  ;;  %v1454_v51 = vld [vmem:[%s11494_s26 + $0x330] sm:$0xff] }
  0x2e   : > { %1453 = vst [vmem:[%s11502_s27 + $0x190] sm:$0xff] %v1452_v50  ;;  %v1456_v52 = vld [vmem:[%s11494_s26 + $0x340] sm:$0xff]  ;;  %v1458_v53 = vld [vmem:[%s11494_s26 + $0x350] sm:$0xff]  ;;  %1455 = vst [vmem:[%s11502_s27 + $0x198] sm:$0xff] %v1454_v51 }
  0x2f   : > { %1457 = vst [vmem:[%s11502_s27 + $0x1a0] sm:$0xff] %v1456_v52  ;;  %1459 = vst [vmem:[%s11502_s27 + $0x1a8] sm:$0xff] %v1458_v53  ;;  %v1460_v54 = vld [vmem:[%s11494_s26 + $0x360] sm:$0xff]  ;;  %v1462_v55 = vld [vmem:[%s11494_s26 + $0x370] sm:$0xff] }
  0x30   : > { %v1464_v56 = vld [vmem:[%s11494_s26 + $0x380] sm:$0xff]  ;;  %1461 = vst [vmem:[%s11502_s27 + $0x1b0] sm:$0xff] %v1460_v54  ;;  %1463 = vst [vmem:[%s11502_s27 + $0x1b8] sm:$0xff] %v1462_v55  ;;  %v1466_v57 = vld [vmem:[%s11494_s26 + $0x390] sm:$0xff] }
  0x31   : > { %1465 = vst [vmem:[%s11502_s27 + $0x1c0] sm:$0xff] %v1464_v56  ;;  %v1468_v58 = vld [vmem:[%s11494_s26 + $0x3a0] sm:$0xff]  ;;  %v1470_v59 = vld [vmem:[%s11494_s26 + $0x3b0] sm:$0xff]  ;;  %1467 = vst [vmem:[%s11502_s27 + $0x1c8] sm:$0xff] %v1466_v57 }
  0x32   : > { %1469 = vst [vmem:[%s11502_s27 + $0x1d0] sm:$0xff] %v1468_v58  ;;  %1471 = vst [vmem:[%s11502_s27 + $0x1d8] sm:$0xff] %v1470_v59  ;;  %v1472_v60 = vld [vmem:[%s11494_s26 + $0x3c0] sm:$0xff]  ;;  %v1474_v61 = vld [vmem:[%s11494_s26 + $0x3d0] sm:$0xff] }
  0x33   : > { %v1476_v62 = vld [vmem:[%s11494_s26 + $0x3e0] sm:$0xff]  ;;  %1473 = vst [vmem:[%s11502_s27 + $0x1e0] sm:$0xff] %v1472_v60  ;;  %1475 = vst [vmem:[%s11502_s27 + $0x1e8] sm:$0xff] %v1474_v61  ;;  %v1478_v63 = vld [vmem:[%s11494_s26 + $0x3f0] sm:$0xff] }
  0x34   : > { %1477 = vst [vmem:[%s11502_s27 + $0x1f0] sm:$0xff] %v1476_v62  ;;  %v1480_v0 = vld [vmem:[%s11494_s26 + $0x400] sm:$0xff]  ;;  %v1482_v1 = vld [vmem:[%s11494_s26 + $0x410] sm:$0xff]  ;;  %1479 = vst [vmem:[%s11502_s27 + $0x1f8] sm:$0xff] %v1478_v63 }
  0x35   : > { %1481 = vst [vmem:[%s11502_s27 + $0x200] sm:$0xff] %v1480_v0  ;;  %1483 = vst [vmem:[%s11502_s27 + $0x208] sm:$0xff] %v1482_v1  ;;  %v1484_v2 = vld [vmem:[%s11494_s26 + $0x420] sm:$0xff]  ;;  %v1486_v3 = vld [vmem:[%s11494_s26 + $0x430] sm:$0xff] }
  0x36   : > { %v1488_v4 = vld [vmem:[%s11494_s26 + $0x440] sm:$0xff]  ;;  %1485 = vst [vmem:[%s11502_s27 + $0x210] sm:$0xff] %v1484_v2  ;;  %1487 = vst [vmem:[%s11502_s27 + $0x218] sm:$0xff] %v1486_v3  ;;  %v1490_v5 = vld [vmem:[%s11494_s26 + $0x450] sm:$0xff] }
  0x37   : > { %1489 = vst [vmem:[%s11502_s27 + $0x220] sm:$0xff] %v1488_v4  ;;  %v1492_v6 = vld [vmem:[%s11494_s26 + $0x460] sm:$0xff]  ;;  %v1494_v7 = vld [vmem:[%s11494_s26 + $0x470] sm:$0xff]  ;;  %1491 = vst [vmem:[%s11502_s27 + $0x228] sm:$0xff] %v1490_v5 }
  0x38   : > { %1493 = vst [vmem:[%s11502_s27 + $0x230] sm:$0xff] %v1492_v6  ;;  %1495 = vst [vmem:[%s11502_s27 + $0x238] sm:$0xff] %v1494_v7  ;;  %v1496_v8 = vld [vmem:[%s11494_s26 + $0x480] sm:$0xff]  ;;  %v1498_v9 = vld [vmem:[%s11494_s26 + $0x490] sm:$0xff] }
  0x39   : > { %v1500_v10 = vld [vmem:[%s11494_s26 + $0x4a0] sm:$0xff]  ;;  %1497 = vst [vmem:[%s11502_s27 + $0x240] sm:$0xff] %v1496_v8  ;;  %1499 = vst [vmem:[%s11502_s27 + $0x248] sm:$0xff] %v1498_v9  ;;  %v1502_v11 = vld [vmem:[%s11494_s26 + $0x4b0] sm:$0xff] }
  0x3a   : > { %1501 = vst [vmem:[%s11502_s27 + $0x250] sm:$0xff] %v1500_v10  ;;  %v1504_v12 = vld [vmem:[%s11494_s26 + $0x4c0] sm:$0xff]  ;;  %v1506_v13 = vld [vmem:[%s11494_s26 + $0x4d0] sm:$0xff]  ;;  %1503 = vst [vmem:[%s11502_s27 + $0x258] sm:$0xff] %v1502_v11 }
  0x3b   : > { %1505 = vst [vmem:[%s11502_s27 + $0x260] sm:$0xff] %v1504_v12  ;;  %1507 = vst [vmem:[%s11502_s27 + $0x268] sm:$0xff] %v1506_v13  ;;  %v1508_v14 = vld [vmem:[%s11494_s26 + $0x4e0] sm:$0xff]  ;;  %v1510_v15 = vld [vmem:[%s11494_s26 + $0x4f0] sm:$0xff] }
  0x3c   : > { %v1512_v16 = vld [vmem:[%s11494_s26 + $0x500] sm:$0xff]  ;;  %1509 = vst [vmem:[%s11502_s27 + $0x270] sm:$0xff] %v1508_v14  ;;  %1511 = vst [vmem:[%s11502_s27 + $0x278] sm:$0xff] %v1510_v15  ;;  %v1514_v17 = vld [vmem:[%s11494_s26 + $0x510] sm:$0xff] }
  0x3d   : > { %1513 = vst [vmem:[%s11502_s27 + $0x280] sm:$0xff] %v1512_v16  ;;  %v1516_v18 = vld [vmem:[%s11494_s26 + $0x520] sm:$0xff]  ;;  %v1518_v19 = vld [vmem:[%s11494_s26 + $0x530] sm:$0xff]  ;;  %1515 = vst [vmem:[%s11502_s27 + $0x288] sm:$0xff] %v1514_v17 }
  0x3e   : > { %1517 = vst [vmem:[%s11502_s27 + $0x290] sm:$0xff] %v1516_v18  ;;  %1519 = vst [vmem:[%s11502_s27 + $0x298] sm:$0xff] %v1518_v19  ;;  %v1520_v20 = vld [vmem:[%s11494_s26 + $0x540] sm:$0xff]  ;;  %v1522_v21 = vld [vmem:[%s11494_s26 + $0x550] sm:$0xff] }
  0x3f   : > { %v1524_v22 = vld [vmem:[%s11494_s26 + $0x560] sm:$0xff]  ;;  %1521 = vst [vmem:[%s11502_s27 + $0x2a0] sm:$0xff] %v1520_v20  ;;  %1523 = vst [vmem:[%s11502_s27 + $0x2a8] sm:$0xff] %v1522_v21  ;;  %v1526_v23 = vld [vmem:[%s11494_s26 + $0x570] sm:$0xff] }
  0x40   : > { %1525 = vst [vmem:[%s11502_s27 + $0x2b0] sm:$0xff] %v1524_v22  ;;  %v1528_v24 = vld [vmem:[%s11494_s26 + $0x580] sm:$0xff]  ;;  %v1530_v25 = vld [vmem:[%s11494_s26 + $0x590] sm:$0xff]  ;;  %1527 = vst [vmem:[%s11502_s27 + $0x2b8] sm:$0xff] %v1526_v23 }
  0x41   : > { %1529 = vst [vmem:[%s11502_s27 + $0x2c0] sm:$0xff] %v1528_v24  ;;  %1531 = vst [vmem:[%s11502_s27 + $0x2c8] sm:$0xff] %v1530_v25  ;;  %v1532_v26 = vld [vmem:[%s11494_s26 + $0x5a0] sm:$0xff]  ;;  %v1534_v27 = vld [vmem:[%s11494_s26 + $0x5b0] sm:$0xff] }
  0x42   : > { %v1536_v28 = vld [vmem:[%s11494_s26 + $0x5c0] sm:$0xff]  ;;  %1533 = vst [vmem:[%s11502_s27 + $0x2d0] sm:$0xff] %v1532_v26  ;;  %1535 = vst [vmem:[%s11502_s27 + $0x2d8] sm:$0xff] %v1534_v27  ;;  %v1538_v29 = vld [vmem:[%s11494_s26 + $0x5d0] sm:$0xff] }
  0x43   : > { %1537 = vst [vmem:[%s11502_s27 + $0x2e0] sm:$0xff] %v1536_v28  ;;  %v1540_v30 = vld [vmem:[%s11494_s26 + $0x5e0] sm:$0xff]  ;;  %v1542_v31 = vld [vmem:[%s11494_s26 + $0x5f0] sm:$0xff]  ;;  %1539 = vst [vmem:[%s11502_s27 + $0x2e8] sm:$0xff] %v1538_v29 }
  0x44   : > { %1541 = vst [vmem:[%s11502_s27 + $0x2f0] sm:$0xff] %v1540_v30  ;;  %1543 = vst [vmem:[%s11502_s27 + $0x2f8] sm:$0xff] %v1542_v31  ;;  %v1544_v32 = vld [vmem:[%s11494_s26 + $0x600] sm:$0xff]  ;;  %v1546_v33 = vld [vmem:[%s11494_s26 + $0x610] sm:$0xff] }
  0x45   : > { %v1548_v34 = vld [vmem:[%s11494_s26 + $0x620] sm:$0xff]  ;;  %1545 = vst [vmem:[%s11502_s27 + $0x300] sm:$0xff] %v1544_v32  ;;  %1547 = vst [vmem:[%s11502_s27 + $0x308] sm:$0xff] %v1546_v33  ;;  %v1550_v35 = vld [vmem:[%s11494_s26 + $0x630] sm:$0xff] }
  0x46   : > { %1549 = vst [vmem:[%s11502_s27 + $0x310] sm:$0xff] %v1548_v34  ;;  %v1552_v36 = vld [vmem:[%s11494_s26 + $0x640] sm:$0xff]  ;;  %v1554_v37 = vld [vmem:[%s11494_s26 + $0x650] sm:$0xff]  ;;  %1551 = vst [vmem:[%s11502_s27 + $0x318] sm:$0xff] %v1550_v35 }
  0x47   : > { %1553 = vst [vmem:[%s11502_s27 + $0x320] sm:$0xff] %v1552_v36  ;;  %1555 = vst [vmem:[%s11502_s27 + $0x328] sm:$0xff] %v1554_v37  ;;  %v1556_v38 = vld [vmem:[%s11494_s26 + $0x660] sm:$0xff]  ;;  %v1558_v39 = vld [vmem:[%s11494_s26 + $0x670] sm:$0xff] }
  0x48   : > { %v1560_v40 = vld [vmem:[%s11494_s26 + $0x680] sm:$0xff]  ;;  %1557 = vst [vmem:[%s11502_s27 + $0x330] sm:$0xff] %v1556_v38  ;;  %1559 = vst [vmem:[%s11502_s27 + $0x338] sm:$0xff] %v1558_v39  ;;  %v1562_v41 = vld [vmem:[%s11494_s26 + $0x690] sm:$0xff] }
  0x49   : > { %1561 = vst [vmem:[%s11502_s27 + $0x340] sm:$0xff] %v1560_v40  ;;  %v1564_v42 = vld [vmem:[%s11494_s26 + $0x6a0] sm:$0xff]  ;;  %v1566_v43 = vld [vmem:[%s11494_s26 + $0x6b0] sm:$0xff]  ;;  %1563 = vst [vmem:[%s11502_s27 + $0x348] sm:$0xff] %v1562_v41 }
  0x4a   : > { %1565 = vst [vmem:[%s11502_s27 + $0x350] sm:$0xff] %v1564_v42  ;;  %1567 = vst [vmem:[%s11502_s27 + $0x358] sm:$0xff] %v1566_v43  ;;  %v1568_v44 = vld [vmem:[%s11494_s26 + $0x6c0] sm:$0xff]  ;;  %v1570_v45 = vld [vmem:[%s11494_s26 + $0x6d0] sm:$0xff] }
  0x4b   : > { %v1572_v46 = vld [vmem:[%s11494_s26 + $0x6e0] sm:$0xff]  ;;  %1569 = vst [vmem:[%s11502_s27 + $0x360] sm:$0xff] %v1568_v44  ;;  %1571 = vst [vmem:[%s11502_s27 + $0x368] sm:$0xff] %v1570_v45  ;;  %v1574_v47 = vld [vmem:[%s11494_s26 + $0x6f0] sm:$0xff] }
  0x4c   : > { %1573 = vst [vmem:[%s11502_s27 + $0x370] sm:$0xff] %v1572_v46  ;;  %v1576_v48 = vld [vmem:[%s11494_s26 + $0x700] sm:$0xff]  ;;  %v1578_v49 = vld [vmem:[%s11494_s26 + $0x710] sm:$0xff]  ;;  %1575 = vst [vmem:[%s11502_s27 + $0x378] sm:$0xff] %v1574_v47 }
  0x4d   : > { %1577 = vst [vmem:[%s11502_s27 + $0x380] sm:$0xff] %v1576_v48  ;;  %1579 = vst [vmem:[%s11502_s27 + $0x388] sm:$0xff] %v1578_v49  ;;  %v1580_v50 = vld [vmem:[%s11494_s26 + $0x720] sm:$0xff]  ;;  %v1582_v51 = vld [vmem:[%s11494_s26 + $0x730] sm:$0xff] }
  0x4e   : > { %v1584_v52 = vld [vmem:[%s11494_s26 + $0x740] sm:$0xff]  ;;  %1581 = vst [vmem:[%s11502_s27 + $0x390] sm:$0xff] %v1580_v50  ;;  %1583 = vst [vmem:[%s11502_s27 + $0x398] sm:$0xff] %v1582_v51  ;;  %v1586_v53 = vld [vmem:[%s11494_s26 + $0x750] sm:$0xff] }
  0x4f   : > { %1585 = vst [vmem:[%s11502_s27 + $0x3a0] sm:$0xff] %v1584_v52  ;;  %v1588_v54 = vld [vmem:[%s11494_s26 + $0x760] sm:$0xff]  ;;  %v1590_v55 = vld [vmem:[%s11494_s26 + $0x770] sm:$0xff]  ;;  %1587 = vst [vmem:[%s11502_s27 + $0x3a8] sm:$0xff] %v1586_v53 }
  0x50   : > { %1589 = vst [vmem:[%s11502_s27 + $0x3b0] sm:$0xff] %v1588_v54  ;;  %1591 = vst [vmem:[%s11502_s27 + $0x3b8] sm:$0xff] %v1590_v55  ;;  %v1592_v56 = vld [vmem:[%s11494_s26 + $0x780] sm:$0xff]  ;;  %v1594_v57 = vld [vmem:[%s11494_s26 + $0x790] sm:$0xff] }
  0x51   : > { %v1596_v58 = vld [vmem:[%s11494_s26 + $0x7a0] sm:$0xff]  ;;  %1593 = vst [vmem:[%s11502_s27 + $0x3c0] sm:$0xff] %v1592_v56  ;;  %1595 = vst [vmem:[%s11502_s27 + $0x3c8] sm:$0xff] %v1594_v57  ;;  %v1598_v59 = vld [vmem:[%s11494_s26 + $0x7b0] sm:$0xff] }
  0x52   : > { %1597 = vst [vmem:[%s11502_s27 + $0x3d0] sm:$0xff] %v1596_v58  ;;  %v1600_v60 = vld [vmem:[%s11494_s26 + $0x7c0] sm:$0xff]  ;;  %v1602_v61 = vld [vmem:[%s11494_s26 + $0x7d0] sm:$0xff]  ;;  %1599 = vst [vmem:[%s11502_s27 + $0x3d8] sm:$0xff] %v1598_v59 }
  0x53   : > { %1601 = vst [vmem:[%s11502_s27 + $0x3e0] sm:$0xff] %v1600_v60  ;;  %1603 = vst [vmem:[%s11502_s27 + $0x3e8] sm:$0xff] %v1602_v61  ;;  %v1604_v62 = vld [vmem:[%s11494_s26 + $0x7e0] sm:$0xff]  ;;  %v1606_v63 = vld [vmem:[%s11494_s26 + $0x7f0] sm:$0xff] }
  0x54   : > { %v1608_v0 = vld [vmem:[%s11494_s26 + $0x800] sm:$0xff]  ;;  %1605 = vst [vmem:[%s11502_s27 + $0x3f0] sm:$0xff] %v1604_v62  ;;  %1607 = vst [vmem:[%s11502_s27 + $0x3f8] sm:$0xff] %v1606_v63  ;;  %v1610_v1 = vld [vmem:[%s11494_s26 + $0x810] sm:$0xff] }
  0x55   : > { %1609 = vst [vmem:[%s11502_s27 + $0x400] sm:$0xff] %v1608_v0  ;;  %v1612_v2 = vld [vmem:[%s11494_s26 + $0x820] sm:$0xff]  ;;  %v1614_v3 = vld [vmem:[%s11494_s26 + $0x830] sm:$0xff]  ;;  %1611 = vst [vmem:[%s11502_s27 + $0x408] sm:$0xff] %v1610_v1 }
  0x56   : > { %1613 = vst [vmem:[%s11502_s27 + $0x410] sm:$0xff] %v1612_v2  ;;  %1615 = vst [vmem:[%s11502_s27 + $0x418] sm:$0xff] %v1614_v3  ;;  %v1616_v4 = vld [vmem:[%s11494_s26 + $0x840] sm:$0xff]  ;;  %v1618_v5 = vld [vmem:[%s11494_s26 + $0x850] sm:$0xff] }
  0x57   : > { %v1620_v6 = vld [vmem:[%s11494_s26 + $0x860] sm:$0xff]  ;;  %1617 = vst [vmem:[%s11502_s27 + $0x420] sm:$0xff] %v1616_v4  ;;  %1619 = vst [vmem:[%s11502_s27 + $0x428] sm:$0xff] %v1618_v5  ;;  %v1622_v7 = vld [vmem:[%s11494_s26 + $0x870] sm:$0xff] }
  0x58   : > { %1621 = vst [vmem:[%s11502_s27 + $0x430] sm:$0xff] %v1620_v6  ;;  %v1624_v8 = vld [vmem:[%s11494_s26 + $0x880] sm:$0xff]  ;;  %v1626_v9 = vld [vmem:[%s11494_s26 + $0x890] sm:$0xff]  ;;  %1623 = vst [vmem:[%s11502_s27 + $0x438] sm:$0xff] %v1622_v7 }
  0x59   : > { %1625 = vst [vmem:[%s11502_s27 + $0x440] sm:$0xff] %v1624_v8  ;;  %1627 = vst [vmem:[%s11502_s27 + $0x448] sm:$0xff] %v1626_v9  ;;  %v1628_v10 = vld [vmem:[%s11494_s26 + $0x8a0] sm:$0xff]  ;;  %v1630_v11 = vld [vmem:[%s11494_s26 + $0x8b0] sm:$0xff] }
  0x5a   : > { %v1632_v12 = vld [vmem:[%s11494_s26 + $0x8c0] sm:$0xff]  ;;  %1629 = vst [vmem:[%s11502_s27 + $0x450] sm:$0xff] %v1628_v10  ;;  %1631 = vst [vmem:[%s11502_s27 + $0x458] sm:$0xff] %v1630_v11  ;;  %v1634_v13 = vld [vmem:[%s11494_s26 + $0x8d0] sm:$0xff] }
  0x5b   : > { %1633 = vst [vmem:[%s11502_s27 + $0x460] sm:$0xff] %v1632_v12  ;;  %v1636_v14 = vld [vmem:[%s11494_s26 + $0x8e0] sm:$0xff]  ;;  %v1638_v15 = vld [vmem:[%s11494_s26 + $0x8f0] sm:$0xff]  ;;  %1635 = vst [vmem:[%s11502_s27 + $0x468] sm:$0xff] %v1634_v13 }
  0x5c   : > { %1637 = vst [vmem:[%s11502_s27 + $0x470] sm:$0xff] %v1636_v14  ;;  %1639 = vst [vmem:[%s11502_s27 + $0x478] sm:$0xff] %v1638_v15  ;;  %v1640_v16 = vld [vmem:[%s11494_s26 + $0x900] sm:$0xff]  ;;  %v1642_v17 = vld [vmem:[%s11494_s26 + $0x910] sm:$0xff] }
  0x5d   : > { %v1644_v18 = vld [vmem:[%s11494_s26 + $0x920] sm:$0xff]  ;;  %1641 = vst [vmem:[%s11502_s27 + $0x480] sm:$0xff] %v1640_v16  ;;  %1643 = vst [vmem:[%s11502_s27 + $0x488] sm:$0xff] %v1642_v17  ;;  %v1646_v19 = vld [vmem:[%s11494_s26 + $0x930] sm:$0xff] }
  0x5e   : > { %1645 = vst [vmem:[%s11502_s27 + $0x490] sm:$0xff] %v1644_v18  ;;  %v1648_v20 = vld [vmem:[%s11494_s26 + $0x940] sm:$0xff]  ;;  %v1650_v21 = vld [vmem:[%s11494_s26 + $0x950] sm:$0xff]  ;;  %1647 = vst [vmem:[%s11502_s27 + $0x498] sm:$0xff] %v1646_v19 }
  0x5f   : > { %1649 = vst [vmem:[%s11502_s27 + $0x4a0] sm:$0xff] %v1648_v20  ;;  %1651 = vst [vmem:[%s11502_s27 + $0x4a8] sm:$0xff] %v1650_v21  ;;  %v1652_v22 = vld [vmem:[%s11494_s26 + $0x960] sm:$0xff]  ;;  %v1654_v23 = vld [vmem:[%s11494_s26 + $0x970] sm:$0xff] }
  0x60   : > { %v1656_v24 = vld [vmem:[%s11494_s26 + $0x980] sm:$0xff]  ;;  %1653 = vst [vmem:[%s11502_s27 + $0x4b0] sm:$0xff] %v1652_v22  ;;  %1655 = vst [vmem:[%s11502_s27 + $0x4b8] sm:$0xff] %v1654_v23  ;;  %v1658_v25 = vld [vmem:[%s11494_s26 + $0x990] sm:$0xff] }
  0x61   : > { %1657 = vst [vmem:[%s11502_s27 + $0x4c0] sm:$0xff] %v1656_v24  ;;  %v1660_v26 = vld [vmem:[%s11494_s26 + $0x9a0] sm:$0xff]  ;;  %v1662_v27 = vld [vmem:[%s11494_s26 + $0x9b0] sm:$0xff]  ;;  %1659 = vst [vmem:[%s11502_s27 + $0x4c8] sm:$0xff] %v1658_v25 }
  0x62   : > { %1661 = vst [vmem:[%s11502_s27 + $0x4d0] sm:$0xff] %v1660_v26  ;;  %1663 = vst [vmem:[%s11502_s27 + $0x4d8] sm:$0xff] %v1662_v27  ;;  %v1664_v28 = vld [vmem:[%s11494_s26 + $0x9c0] sm:$0xff]  ;;  %v1666_v29 = vld [vmem:[%s11494_s26 + $0x9d0] sm:$0xff] }
  0x63   : > { %v1668_v30 = vld [vmem:[%s11494_s26 + $0x9e0] sm:$0xff]  ;;  %1665 = vst [vmem:[%s11502_s27 + $0x4e0] sm:$0xff] %v1664_v28  ;;  %1667 = vst [vmem:[%s11502_s27 + $0x4e8] sm:$0xff] %v1666_v29  ;;  %v1670_v31 = vld [vmem:[%s11494_s26 + $0x9f0] sm:$0xff] }
  0x64   : > { %1669 = vst [vmem:[%s11502_s27 + $0x4f0] sm:$0xff] %v1668_v30  ;;  %v1672_v32 = vld [vmem:[%s11494_s26 + $0xa00] sm:$0xff]  ;;  %v1674_v33 = vld [vmem:[%s11494_s26 + $0xa10] sm:$0xff]  ;;  %1671 = vst [vmem:[%s11502_s27 + $0x4f8] sm:$0xff] %v1670_v31 }
  0x65   : > { %1673 = vst [vmem:[%s11502_s27 + $0x500] sm:$0xff] %v1672_v32  ;;  %1675 = vst [vmem:[%s11502_s27 + $0x508] sm:$0xff] %v1674_v33  ;;  %v1676_v34 = vld [vmem:[%s11494_s26 + $0xa20] sm:$0xff]  ;;  %v1678_v35 = vld [vmem:[%s11494_s26 + $0xa30] sm:$0xff] }
  0x66   : > { %v1680_v36 = vld [vmem:[%s11494_s26 + $0xa40] sm:$0xff]  ;;  %1677 = vst [vmem:[%s11502_s27 + $0x510] sm:$0xff] %v1676_v34  ;;  %1679 = vst [vmem:[%s11502_s27 + $0x518] sm:$0xff] %v1678_v35  ;;  %v1682_v37 = vld [vmem:[%s11494_s26 + $0xa50] sm:$0xff] }
  0x67   : > { %1681 = vst [vmem:[%s11502_s27 + $0x520] sm:$0xff] %v1680_v36  ;;  %v1684_v38 = vld [vmem:[%s11494_s26 + $0xa60] sm:$0xff]  ;;  %v1686_v39 = vld [vmem:[%s11494_s26 + $0xa70] sm:$0xff]  ;;  %1683 = vst [vmem:[%s11502_s27 + $0x528] sm:$0xff] %v1682_v37 }
  0x68   : > { %1685 = vst [vmem:[%s11502_s27 + $0x530] sm:$0xff] %v1684_v38  ;;  %1687 = vst [vmem:[%s11502_s27 + $0x538] sm:$0xff] %v1686_v39  ;;  %v1688_v40 = vld [vmem:[%s11494_s26 + $0xa80] sm:$0xff]  ;;  %v1690_v41 = vld [vmem:[%s11494_s26 + $0xa90] sm:$0xff] }
  0x69   : > { %v1692_v42 = vld [vmem:[%s11494_s26 + $0xaa0] sm:$0xff]  ;;  %1689 = vst [vmem:[%s11502_s27 + $0x540] sm:$0xff] %v1688_v40  ;;  %1691 = vst [vmem:[%s11502_s27 + $0x548] sm:$0xff] %v1690_v41  ;;  %v1694_v43 = vld [vmem:[%s11494_s26 + $0xab0] sm:$0xff] }
  0x6a   : > { %1693 = vst [vmem:[%s11502_s27 + $0x550] sm:$0xff] %v1692_v42  ;;  %v1696_v44 = vld [vmem:[%s11494_s26 + $0xac0] sm:$0xff]  ;;  %v1698_v45 = vld [vmem:[%s11494_s26 + $0xad0] sm:$0xff]  ;;  %1695 = vst [vmem:[%s11502_s27 + $0x558] sm:$0xff] %v1694_v43 }
  0x6b   : > { %1697 = vst [vmem:[%s11502_s27 + $0x560] sm:$0xff] %v1696_v44  ;;  %1699 = vst [vmem:[%s11502_s27 + $0x568] sm:$0xff] %v1698_v45  ;;  %v1700_v46 = vld [vmem:[%s11494_s26 + $0xae0] sm:$0xff]  ;;  %v1702_v47 = vld [vmem:[%s11494_s26 + $0xaf0] sm:$0xff] }
  0x6c   : > { %v1704_v48 = vld [vmem:[%s11494_s26 + $0xb00] sm:$0xff]  ;;  %1701 = vst [vmem:[%s11502_s27 + $0x570] sm:$0xff] %v1700_v46  ;;  %1703 = vst [vmem:[%s11502_s27 + $0x578] sm:$0xff] %v1702_v47  ;;  %v1706_v49 = vld [vmem:[%s11494_s26 + $0xb10] sm:$0xff] }
  0x6d   : > { %1705 = vst [vmem:[%s11502_s27 + $0x580] sm:$0xff] %v1704_v48  ;;  %v1708_v50 = vld [vmem:[%s11494_s26 + $0xb20] sm:$0xff]  ;;  %v1710_v51 = vld [vmem:[%s11494_s26 + $0xb30] sm:$0xff]  ;;  %1707 = vst [vmem:[%s11502_s27 + $0x588] sm:$0xff] %v1706_v49 }
  0x6e   : > { %1709 = vst [vmem:[%s11502_s27 + $0x590] sm:$0xff] %v1708_v50  ;;  %1711 = vst [vmem:[%s11502_s27 + $0x598] sm:$0xff] %v1710_v51  ;;  %v1712_v52 = vld [vmem:[%s11494_s26 + $0xb40] sm:$0xff]  ;;  %v1714_v53 = vld [vmem:[%s11494_s26 + $0xb50] sm:$0xff] }
  0x6f   : > { %v1716_v54 = vld [vmem:[%s11494_s26 + $0xb60] sm:$0xff]  ;;  %1713 = vst [vmem:[%s11502_s27 + $0x5a0] sm:$0xff] %v1712_v52  ;;  %1715 = vst [vmem:[%s11502_s27 + $0x5a8] sm:$0xff] %v1714_v53  ;;  %v1718_v55 = vld [vmem:[%s11494_s26 + $0xb70] sm:$0xff] }
  0x70   : > { %1717 = vst [vmem:[%s11502_s27 + $0x5b0] sm:$0xff] %v1716_v54  ;;  %v1720_v56 = vld [vmem:[%s11494_s26 + $0xb80] sm:$0xff]  ;;  %v1722_v57 = vld [vmem:[%s11494_s26 + $0xb90] sm:$0xff]  ;;  %1719 = vst [vmem:[%s11502_s27 + $0x5b8] sm:$0xff] %v1718_v55 }
  0x71   : > { %1721 = vst [vmem:[%s11502_s27 + $0x5c0] sm:$0xff] %v1720_v56  ;;  %1723 = vst [vmem:[%s11502_s27 + $0x5c8] sm:$0xff] %v1722_v57  ;;  %v1724_v58 = vld [vmem:[%s11494_s26 + $0xba0] sm:$0xff]  ;;  %v1726_v59 = vld [vmem:[%s11494_s26 + $0xbb0] sm:$0xff] }
  0x72   : > { %v1728_v60 = vld [vmem:[%s11494_s26 + $0xbc0] sm:$0xff]  ;;  %1725 = vst [vmem:[%s11502_s27 + $0x5d0] sm:$0xff] %v1724_v58  ;;  %1727 = vst [vmem:[%s11502_s27 + $0x5d8] sm:$0xff] %v1726_v59  ;;  %v1730_v61 = vld [vmem:[%s11494_s26 + $0xbd0] sm:$0xff] }
  0x73   : > { %1729 = vst [vmem:[%s11502_s27 + $0x5e0] sm:$0xff] %v1728_v60  ;;  %v1732_v62 = vld [vmem:[%s11494_s26 + $0xbe0] sm:$0xff]  ;;  %v1734_v63 = vld [vmem:[%s11494_s26 + $0xbf0] sm:$0xff]  ;;  %1731 = vst [vmem:[%s11502_s27 + $0x5e8] sm:$0xff] %v1730_v61 }
  0x74   : > { %1733 = vst [vmem:[%s11502_s27 + $0x5f0] sm:$0xff] %v1732_v62  ;;  %1735 = vst [vmem:[%s11502_s27 + $0x5f8] sm:$0xff] %v1734_v63  ;;  %v1736_v0 = vld [vmem:[%s11494_s26 + $0xc00] sm:$0xff]  ;;  %v1738_v1 = vld [vmem:[%s11494_s26 + $0xc10] sm:$0xff] }
  0x75   : > { %v1740_v2 = vld [vmem:[%s11494_s26 + $0xc20] sm:$0xff]  ;;  %1737 = vst [vmem:[%s11502_s27 + $0x600] sm:$0xff] %v1736_v0  ;;  %1739 = vst [vmem:[%s11502_s27 + $0x608] sm:$0xff] %v1738_v1  ;;  %v1742_v3 = vld [vmem:[%s11494_s26 + $0xc30] sm:$0xff] }
  0x76   : > { %1741 = vst [vmem:[%s11502_s27 + $0x610] sm:$0xff] %v1740_v2  ;;  %v1744_v4 = vld [vmem:[%s11494_s26 + $0xc40] sm:$0xff]  ;;  %v1746_v5 = vld [vmem:[%s11494_s26 + $0xc50] sm:$0xff]  ;;  %1743 = vst [vmem:[%s11502_s27 + $0x618] sm:$0xff] %v1742_v3 }
  0x77   : > { %1745 = vst [vmem:[%s11502_s27 + $0x620] sm:$0xff] %v1744_v4  ;;  %1747 = vst [vmem:[%s11502_s27 + $0x628] sm:$0xff] %v1746_v5  ;;  %v1748_v6 = vld [vmem:[%s11494_s26 + $0xc60] sm:$0xff]  ;;  %v1750_v7 = vld [vmem:[%s11494_s26 + $0xc70] sm:$0xff] }
  0x78   : > { %v1752_v8 = vld [vmem:[%s11494_s26 + $0xc80] sm:$0xff]  ;;  %1749 = vst [vmem:[%s11502_s27 + $0x630] sm:$0xff] %v1748_v6  ;;  %1751 = vst [vmem:[%s11502_s27 + $0x638] sm:$0xff] %v1750_v7  ;;  %v1754_v9 = vld [vmem:[%s11494_s26 + $0xc90] sm:$0xff] }
  0x79   : > { %1753 = vst [vmem:[%s11502_s27 + $0x640] sm:$0xff] %v1752_v8  ;;  %v1756_v10 = vld [vmem:[%s11494_s26 + $0xca0] sm:$0xff]  ;;  %v1758_v11 = vld [vmem:[%s11494_s26 + $0xcb0] sm:$0xff]  ;;  %1755 = vst [vmem:[%s11502_s27 + $0x648] sm:$0xff] %v1754_v9 }
  0x7a   : > { %1757 = vst [vmem:[%s11502_s27 + $0x650] sm:$0xff] %v1756_v10  ;;  %1759 = vst [vmem:[%s11502_s27 + $0x658] sm:$0xff] %v1758_v11  ;;  %v1760_v12 = vld [vmem:[%s11494_s26 + $0xcc0] sm:$0xff]  ;;  %v1762_v13 = vld [vmem:[%s11494_s26 + $0xcd0] sm:$0xff] }
  0x7b   : > { %v1764_v14 = vld [vmem:[%s11494_s26 + $0xce0] sm:$0xff]  ;;  %1761 = vst [vmem:[%s11502_s27 + $0x660] sm:$0xff] %v1760_v12  ;;  %1763 = vst [vmem:[%s11502_s27 + $0x668] sm:$0xff] %v1762_v13  ;;  %v1766_v15 = vld [vmem:[%s11494_s26 + $0xcf0] sm:$0xff] }
  0x7c   : > { %1765 = vst [vmem:[%s11502_s27 + $0x670] sm:$0xff] %v1764_v14  ;;  %v1768_v16 = vld [vmem:[%s11494_s26 + $0xd00] sm:$0xff]  ;;  %v1770_v17 = vld [vmem:[%s11494_s26 + $0xd10] sm:$0xff]  ;;  %1767 = vst [vmem:[%s11502_s27 + $0x678] sm:$0xff] %v1766_v15 }
  0x7d   : > { %1769 = vst [vmem:[%s11502_s27 + $0x680] sm:$0xff] %v1768_v16  ;;  %1771 = vst [vmem:[%s11502_s27 + $0x688] sm:$0xff] %v1770_v17  ;;  %v1772_v18 = vld [vmem:[%s11494_s26 + $0xd20] sm:$0xff]  ;;  %v1774_v19 = vld [vmem:[%s11494_s26 + $0xd30] sm:$0xff] }
  0x7e   : > { %v1776_v20 = vld [vmem:[%s11494_s26 + $0xd40] sm:$0xff]  ;;  %1773 = vst [vmem:[%s11502_s27 + $0x690] sm:$0xff] %v1772_v18  ;;  %1775 = vst [vmem:[%s11502_s27 + $0x698] sm:$0xff] %v1774_v19  ;;  %v1778_v21 = vld [vmem:[%s11494_s26 + $0xd50] sm:$0xff] }
  0x7f   : > { %1777 = vst [vmem:[%s11502_s27 + $0x6a0] sm:$0xff] %v1776_v20  ;;  %v1780_v22 = vld [vmem:[%s11494_s26 + $0xd60] sm:$0xff]  ;;  %v1782_v23 = vld [vmem:[%s11494_s26 + $0xd70] sm:$0xff]  ;;  %1779 = vst [vmem:[%s11502_s27 + $0x6a8] sm:$0xff] %v1778_v21 }
  0x80   : > { %1781 = vst [vmem:[%s11502_s27 + $0x6b0] sm:$0xff] %v1780_v22  ;;  %1783 = vst [vmem:[%s11502_s27 + $0x6b8] sm:$0xff] %v1782_v23  ;;  %v1784_v24 = vld [vmem:[%s11494_s26 + $0xd80] sm:$0xff]  ;;  %v1786_v25 = vld [vmem:[%s11494_s26 + $0xd90] sm:$0xff] }
  0x81   : > { %v1788_v26 = vld [vmem:[%s11494_s26 + $0xda0] sm:$0xff]  ;;  %1785 = vst [vmem:[%s11502_s27 + $0x6c0] sm:$0xff] %v1784_v24  ;;  %1787 = vst [vmem:[%s11502_s27 + $0x6c8] sm:$0xff] %v1786_v25  ;;  %v1790_v27 = vld [vmem:[%s11494_s26 + $0xdb0] sm:$0xff] }
  0x82   : > { %1789 = vst [vmem:[%s11502_s27 + $0x6d0] sm:$0xff] %v1788_v26  ;;  %v1792_v28 = vld [vmem:[%s11494_s26 + $0xdc0] sm:$0xff]  ;;  %v1794_v29 = vld [vmem:[%s11494_s26 + $0xdd0] sm:$0xff]  ;;  %1791 = vst [vmem:[%s11502_s27 + $0x6d8] sm:$0xff] %v1790_v27 }
  0x83   : > { %1793 = vst [vmem:[%s11502_s27 + $0x6e0] sm:$0xff] %v1792_v28  ;;  %1795 = vst [vmem:[%s11502_s27 + $0x6e8] sm:$0xff] %v1794_v29  ;;  %v1796_v30 = vld [vmem:[%s11494_s26 + $0xde0] sm:$0xff]  ;;  %v1798_v31 = vld [vmem:[%s11494_s26 + $0xdf0] sm:$0xff] }
  0x84   : > { %v1800_v32 = vld [vmem:[%s11494_s26 + $0xe00] sm:$0xff]  ;;  %1797 = vst [vmem:[%s11502_s27 + $0x6f0] sm:$0xff] %v1796_v30  ;;  %1799 = vst [vmem:[%s11502_s27 + $0x6f8] sm:$0xff] %v1798_v31  ;;  %v1802_v33 = vld [vmem:[%s11494_s26 + $0xe10] sm:$0xff] }
  0x85   : > { %1801 = vst [vmem:[%s11502_s27 + $0x700] sm:$0xff] %v1800_v32  ;;  %v1804_v34 = vld [vmem:[%s11494_s26 + $0xe20] sm:$0xff]  ;;  %v1806_v35 = vld [vmem:[%s11494_s26 + $0xe30] sm:$0xff]  ;;  %1803 = vst [vmem:[%s11502_s27 + $0x708] sm:$0xff] %v1802_v33 }
  0x86   : > { %1805 = vst [vmem:[%s11502_s27 + $0x710] sm:$0xff] %v1804_v34  ;;  %1807 = vst [vmem:[%s11502_s27 + $0x718] sm:$0xff] %v1806_v35  ;;  %v1808_v36 = vld [vmem:[%s11494_s26 + $0xe40] sm:$0xff]  ;;  %v1810_v37 = vld [vmem:[%s11494_s26 + $0xe50] sm:$0xff] }
  0x87   : > { %v1812_v38 = vld [vmem:[%s11494_s26 + $0xe60] sm:$0xff]  ;;  %1809 = vst [vmem:[%s11502_s27 + $0x720] sm:$0xff] %v1808_v36  ;;  %1811 = vst [vmem:[%s11502_s27 + $0x728] sm:$0xff] %v1810_v37  ;;  %v1814_v39 = vld [vmem:[%s11494_s26 + $0xe70] sm:$0xff] }
  0x88   : > { %1813 = vst [vmem:[%s11502_s27 + $0x730] sm:$0xff] %v1812_v38  ;;  %v1816_v40 = vld [vmem:[%s11494_s26 + $0xe80] sm:$0xff]  ;;  %v1818_v41 = vld [vmem:[%s11494_s26 + $0xe90] sm:$0xff]  ;;  %1815 = vst [vmem:[%s11502_s27 + $0x738] sm:$0xff] %v1814_v39 }
  0x89   : > { %1817 = vst [vmem:[%s11502_s27 + $0x740] sm:$0xff] %v1816_v40  ;;  %1819 = vst [vmem:[%s11502_s27 + $0x748] sm:$0xff] %v1818_v41  ;;  %v1820_v42 = vld [vmem:[%s11494_s26 + $0xea0] sm:$0xff]  ;;  %v1822_v43 = vld [vmem:[%s11494_s26 + $0xeb0] sm:$0xff] }
  0x8a   : > { %v1824_v44 = vld [vmem:[%s11494_s26 + $0xec0] sm:$0xff]  ;;  %1821 = vst [vmem:[%s11502_s27 + $0x750] sm:$0xff] %v1820_v42  ;;  %1823 = vst [vmem:[%s11502_s27 + $0x758] sm:$0xff] %v1822_v43  ;;  %v1826_v45 = vld [vmem:[%s11494_s26 + $0xed0] sm:$0xff] }
  0x8b   : > { %1825 = vst [vmem:[%s11502_s27 + $0x760] sm:$0xff] %v1824_v44  ;;  %v1828_v46 = vld [vmem:[%s11494_s26 + $0xee0] sm:$0xff]  ;;  %v1830_v47 = vld [vmem:[%s11494_s26 + $0xef0] sm:$0xff]  ;;  %1827 = vst [vmem:[%s11502_s27 + $0x768] sm:$0xff] %v1826_v45 }
  0x8c   : > { %1829 = vst [vmem:[%s11502_s27 + $0x770] sm:$0xff] %v1828_v46  ;;  %1831 = vst [vmem:[%s11502_s27 + $0x778] sm:$0xff] %v1830_v47  ;;  %v1832_v48 = vld [vmem:[%s11494_s26 + $0xf00] sm:$0xff]  ;;  %v1834_v49 = vld [vmem:[%s11494_s26 + $0xf10] sm:$0xff] }
  0x8d   : > { %v1836_v50 = vld [vmem:[%s11494_s26 + $0xf20] sm:$0xff]  ;;  %1833 = vst [vmem:[%s11502_s27 + $0x780] sm:$0xff] %v1832_v48  ;;  %1835 = vst [vmem:[%s11502_s27 + $0x788] sm:$0xff] %v1834_v49  ;;  %v1838_v51 = vld [vmem:[%s11494_s26 + $0xf30] sm:$0xff] }
  0x8e   : > { %1837 = vst [vmem:[%s11502_s27 + $0x790] sm:$0xff] %v1836_v50  ;;  %v1840_v52 = vld [vmem:[%s11494_s26 + $0xf40] sm:$0xff]  ;;  %v1842_v53 = vld [vmem:[%s11494_s26 + $0xf50] sm:$0xff]  ;;  %1839 = vst [vmem:[%s11502_s27 + $0x798] sm:$0xff] %v1838_v51 }
  0x8f   : > { %1841 = vst [vmem:[%s11502_s27 + $0x7a0] sm:$0xff] %v1840_v52  ;;  %1843 = vst [vmem:[%s11502_s27 + $0x7a8] sm:$0xff] %v1842_v53  ;;  %v1844_v54 = vld [vmem:[%s11494_s26 + $0xf60] sm:$0xff]  ;;  %v1846_v55 = vld [vmem:[%s11494_s26 + $0xf70] sm:$0xff] }
  0x90   : > { %v1848_v56 = vld [vmem:[%s11494_s26 + $0xf80] sm:$0xff]  ;;  %1845 = vst [vmem:[%s11502_s27 + $0x7b0] sm:$0xff] %v1844_v54  ;;  %1847 = vst [vmem:[%s11502_s27 + $0x7b8] sm:$0xff] %v1846_v55  ;;  %v1850_v57 = vld [vmem:[%s11494_s26 + $0xf90] sm:$0xff] }
  0x91   : > { %1849 = vst [vmem:[%s11502_s27 + $0x7c0] sm:$0xff] %v1848_v56  ;;  %v1852_v58 = vld [vmem:[%s11494_s26 + $0xfa0] sm:$0xff]  ;;  %v1854_v59 = vld [vmem:[%s11494_s26 + $0xfb0] sm:$0xff]  ;;  %1851 = vst [vmem:[%s11502_s27 + $0x7c8] sm:$0xff] %v1850_v57 }
  0x92   : > { %1853 = vst [vmem:[%s11502_s27 + $0x7d0] sm:$0xff] %v1852_v58  ;;  %1855 = vst [vmem:[%s11502_s27 + $0x7d8] sm:$0xff] %v1854_v59  ;;  %v1856_v60 = vld [vmem:[%s11494_s26 + $0xfc0] sm:$0xff]  ;;  %v1858_v61 = vld [vmem:[%s11494_s26 + $0xfd0] sm:$0xff] }
  0x93   : > { %v1860_v62 = vld [vmem:[%s11494_s26 + $0xfe0] sm:$0xff]  ;;  %1857 = vst [vmem:[%s11502_s27 + $0x7e0] sm:$0xff] %v1856_v60  ;;  %1859 = vst [vmem:[%s11502_s27 + $0x7e8] sm:$0xff] %v1858_v61  ;;  %v1862_v63 = vld [vmem:[%s11494_s26 + $0xff0] sm:$0xff] }
  0x94   : > { %1861 = vst [vmem:[%s11502_s27 + $0x7f0] sm:$0xff] %v1860_v62  ;;  %v1864_v0 = vld [vmem:[%s11494_s26 + $0x1000] sm:$0xff]  ;;  %v1866_v1 = vld [vmem:[%s11494_s26 + $0x1010] sm:$0xff]  ;;  %1863 = vst [vmem:[%s11502_s27 + $0x7f8] sm:$0xff] %v1862_v63 }
  0x95   : > { %1865 = vst [vmem:[%s11502_s27 + $0x800] sm:$0xff] %v1864_v0  ;;  %1867 = vst [vmem:[%s11502_s27 + $0x808] sm:$0xff] %v1866_v1  ;;  %v1868_v2 = vld [vmem:[%s11494_s26 + $0x1020] sm:$0xff]  ;;  %v1870_v3 = vld [vmem:[%s11494_s26 + $0x1030] sm:$0xff] }
  0x96   : > { %v1872_v4 = vld [vmem:[%s11494_s26 + $0x1040] sm:$0xff]  ;;  %1869 = vst [vmem:[%s11502_s27 + $0x810] sm:$0xff] %v1868_v2  ;;  %1871 = vst [vmem:[%s11502_s27 + $0x818] sm:$0xff] %v1870_v3  ;;  %v1874_v5 = vld [vmem:[%s11494_s26 + $0x1050] sm:$0xff] }
  0x97   : > { %1873 = vst [vmem:[%s11502_s27 + $0x820] sm:$0xff] %v1872_v4  ;;  %v1876_v6 = vld [vmem:[%s11494_s26 + $0x1060] sm:$0xff]  ;;  %v1878_v7 = vld [vmem:[%s11494_s26 + $0x1070] sm:$0xff]  ;;  %1875 = vst [vmem:[%s11502_s27 + $0x828] sm:$0xff] %v1874_v5 }
  0x98   : > { %1877 = vst [vmem:[%s11502_s27 + $0x830] sm:$0xff] %v1876_v6  ;;  %1879 = vst [vmem:[%s11502_s27 + $0x838] sm:$0xff] %v1878_v7  ;;  %v1880_v8 = vld [vmem:[%s11494_s26 + $0x1080] sm:$0xff]  ;;  %v1882_v9 = vld [vmem:[%s11494_s26 + $0x1090] sm:$0xff] }
  0x99   : > { %v1884_v10 = vld [vmem:[%s11494_s26 + $0x10a0] sm:$0xff]  ;;  %1881 = vst [vmem:[%s11502_s27 + $0x840] sm:$0xff] %v1880_v8  ;;  %1883 = vst [vmem:[%s11502_s27 + $0x848] sm:$0xff] %v1882_v9  ;;  %v1886_v11 = vld [vmem:[%s11494_s26 + $0x10b0] sm:$0xff] }
  0x9a   : > { %1885 = vst [vmem:[%s11502_s27 + $0x850] sm:$0xff] %v1884_v10  ;;  %v1888_v12 = vld [vmem:[%s11494_s26 + $0x10c0] sm:$0xff]  ;;  %v1890_v13 = vld [vmem:[%s11494_s26 + $0x10d0] sm:$0xff]  ;;  %1887 = vst [vmem:[%s11502_s27 + $0x858] sm:$0xff] %v1886_v11 }
  0x9b   : > { %1889 = vst [vmem:[%s11502_s27 + $0x860] sm:$0xff] %v1888_v12  ;;  %1891 = vst [vmem:[%s11502_s27 + $0x868] sm:$0xff] %v1890_v13  ;;  %v1892_v14 = vld [vmem:[%s11494_s26 + $0x10e0] sm:$0xff]  ;;  %v1894_v15 = vld [vmem:[%s11494_s26 + $0x10f0] sm:$0xff] }
  0x9c   : > { %v1896_v16 = vld [vmem:[%s11494_s26 + $0x1100] sm:$0xff]  ;;  %1893 = vst [vmem:[%s11502_s27 + $0x870] sm:$0xff] %v1892_v14  ;;  %1895 = vst [vmem:[%s11502_s27 + $0x878] sm:$0xff] %v1894_v15  ;;  %v1898_v17 = vld [vmem:[%s11494_s26 + $0x1110] sm:$0xff] }
  0x9d   : > { %1897 = vst [vmem:[%s11502_s27 + $0x880] sm:$0xff] %v1896_v16  ;;  %v1900_v18 = vld [vmem:[%s11494_s26 + $0x1120] sm:$0xff]  ;;  %v1902_v19 = vld [vmem:[%s11494_s26 + $0x1130] sm:$0xff]  ;;  %1899 = vst [vmem:[%s11502_s27 + $0x888] sm:$0xff] %v1898_v17 }
  0x9e   : > { %1901 = vst [vmem:[%s11502_s27 + $0x890] sm:$0xff] %v1900_v18  ;;  %1903 = vst [vmem:[%s11502_s27 + $0x898] sm:$0xff] %v1902_v19  ;;  %v1904_v20 = vld [vmem:[%s11494_s26 + $0x1140] sm:$0xff]  ;;  %v1906_v21 = vld [vmem:[%s11494_s26 + $0x1150] sm:$0xff] }
  0x9f   : > { %v1908_v22 = vld [vmem:[%s11494_s26 + $0x1160] sm:$0xff]  ;;  %1905 = vst [vmem:[%s11502_s27 + $0x8a0] sm:$0xff] %v1904_v20  ;;  %1907 = vst [vmem:[%s11502_s27 + $0x8a8] sm:$0xff] %v1906_v21  ;;  %v1910_v23 = vld [vmem:[%s11494_s26 + $0x1170] sm:$0xff] }
  0xa0   : > { %1909 = vst [vmem:[%s11502_s27 + $0x8b0] sm:$0xff] %v1908_v22  ;;  %v1912_v24 = vld [vmem:[%s11494_s26 + $0x1180] sm:$0xff]  ;;  %v1914_v25 = vld [vmem:[%s11494_s26 + $0x1190] sm:$0xff]  ;;  %1911 = vst [vmem:[%s11502_s27 + $0x8b8] sm:$0xff] %v1910_v23 }
  0xa1   : > { %1913 = vst [vmem:[%s11502_s27 + $0x8c0] sm:$0xff] %v1912_v24  ;;  %1915 = vst [vmem:[%s11502_s27 + $0x8c8] sm:$0xff] %v1914_v25  ;;  %v1916_v26 = vld [vmem:[%s11494_s26 + $0x11a0] sm:$0xff]  ;;  %v1918_v27 = vld [vmem:[%s11494_s26 + $0x11b0] sm:$0xff] }
  0xa2   : > { %v1920_v28 = vld [vmem:[%s11494_s26 + $0x11c0] sm:$0xff]  ;;  %1917 = vst [vmem:[%s11502_s27 + $0x8d0] sm:$0xff] %v1916_v26  ;;  %1919 = vst [vmem:[%s11502_s27 + $0x8d8] sm:$0xff] %v1918_v27  ;;  %v1922_v29 = vld [vmem:[%s11494_s26 + $0x11d0] sm:$0xff] }
  0xa3   : > { %1921 = vst [vmem:[%s11502_s27 + $0x8e0] sm:$0xff] %v1920_v28  ;;  %v1924_v30 = vld [vmem:[%s11494_s26 + $0x11e0] sm:$0xff]  ;;  %v1926_v31 = vld [vmem:[%s11494_s26 + $0x11f0] sm:$0xff]  ;;  %1923 = vst [vmem:[%s11502_s27 + $0x8e8] sm:$0xff] %v1922_v29 }
  0xa4   : > { %1925 = vst [vmem:[%s11502_s27 + $0x8f0] sm:$0xff] %v1924_v30  ;;  %1927 = vst [vmem:[%s11502_s27 + $0x8f8] sm:$0xff] %v1926_v31  ;;  %v1928_v32 = vld [vmem:[%s11494_s26 + $0x1200] sm:$0xff]  ;;  %v1930_v33 = vld [vmem:[%s11494_s26 + $0x1210] sm:$0xff] }
  0xa5   : > { %v1932_v34 = vld [vmem:[%s11494_s26 + $0x1220] sm:$0xff]  ;;  %1929 = vst [vmem:[%s11502_s27 + $0x900] sm:$0xff] %v1928_v32  ;;  %1931 = vst [vmem:[%s11502_s27 + $0x908] sm:$0xff] %v1930_v33  ;;  %v1934_v35 = vld [vmem:[%s11494_s26 + $0x1230] sm:$0xff] }
  0xa6   : > { %1933 = vst [vmem:[%s11502_s27 + $0x910] sm:$0xff] %v1932_v34  ;;  %v1936_v36 = vld [vmem:[%s11494_s26 + $0x1240] sm:$0xff]  ;;  %v1938_v37 = vld [vmem:[%s11494_s26 + $0x1250] sm:$0xff]  ;;  %1935 = vst [vmem:[%s11502_s27 + $0x918] sm:$0xff] %v1934_v35 }
  0xa7   : > { %1937 = vst [vmem:[%s11502_s27 + $0x920] sm:$0xff] %v1936_v36  ;;  %1939 = vst [vmem:[%s11502_s27 + $0x928] sm:$0xff] %v1938_v37  ;;  %v1940_v38 = vld [vmem:[%s11494_s26 + $0x1260] sm:$0xff]  ;;  %v1942_v39 = vld [vmem:[%s11494_s26 + $0x1270] sm:$0xff] }
  0xa8   : > { %v1944_v40 = vld [vmem:[%s11494_s26 + $0x1280] sm:$0xff]  ;;  %1941 = vst [vmem:[%s11502_s27 + $0x930] sm:$0xff] %v1940_v38  ;;  %1943 = vst [vmem:[%s11502_s27 + $0x938] sm:$0xff] %v1942_v39  ;;  %v1946_v41 = vld [vmem:[%s11494_s26 + $0x1290] sm:$0xff] }
  0xa9   : > { %1945 = vst [vmem:[%s11502_s27 + $0x940] sm:$0xff] %v1944_v40  ;;  %v1948_v42 = vld [vmem:[%s11494_s26 + $0x12a0] sm:$0xff]  ;;  %v1950_v43 = vld [vmem:[%s11494_s26 + $0x12b0] sm:$0xff]  ;;  %1947 = vst [vmem:[%s11502_s27 + $0x948] sm:$0xff] %v1946_v41 }
  0xaa   : > { %1949 = vst [vmem:[%s11502_s27 + $0x950] sm:$0xff] %v1948_v42  ;;  %1951 = vst [vmem:[%s11502_s27 + $0x958] sm:$0xff] %v1950_v43  ;;  %v1952_v44 = vld [vmem:[%s11494_s26 + $0x12c0] sm:$0xff]  ;;  %v1954_v45 = vld [vmem:[%s11494_s26 + $0x12d0] sm:$0xff] }
  0xab   : > { %v1956_v46 = vld [vmem:[%s11494_s26 + $0x12e0] sm:$0xff]  ;;  %1953 = vst [vmem:[%s11502_s27 + $0x960] sm:$0xff] %v1952_v44  ;;  %1955 = vst [vmem:[%s11502_s27 + $0x968] sm:$0xff] %v1954_v45  ;;  %v1958_v47 = vld [vmem:[%s11494_s26 + $0x12f0] sm:$0xff] }
  0xac   : > { %1957 = vst [vmem:[%s11502_s27 + $0x970] sm:$0xff] %v1956_v46  ;;  %v1960_v48 = vld [vmem:[%s11494_s26 + $0x1300] sm:$0xff]  ;;  %v1962_v49 = vld [vmem:[%s11494_s26 + $0x1310] sm:$0xff]  ;;  %1959 = vst [vmem:[%s11502_s27 + $0x978] sm:$0xff] %v1958_v47 }
  0xad   : > { %1961 = vst [vmem:[%s11502_s27 + $0x980] sm:$0xff] %v1960_v48  ;;  %1963 = vst [vmem:[%s11502_s27 + $0x988] sm:$0xff] %v1962_v49  ;;  %v1964_v50 = vld [vmem:[%s11494_s26 + $0x1320] sm:$0xff]  ;;  %v1966_v51 = vld [vmem:[%s11494_s26 + $0x1330] sm:$0xff] }
  0xae   : > { %v1968_v52 = vld [vmem:[%s11494_s26 + $0x1340] sm:$0xff]  ;;  %1965 = vst [vmem:[%s11502_s27 + $0x990] sm:$0xff] %v1964_v50  ;;  %1967 = vst [vmem:[%s11502_s27 + $0x998] sm:$0xff] %v1966_v51  ;;  %v1970_v53 = vld [vmem:[%s11494_s26 + $0x1350] sm:$0xff] }
  0xaf   : > { %1969 = vst [vmem:[%s11502_s27 + $0x9a0] sm:$0xff] %v1968_v52  ;;  %v1972_v54 = vld [vmem:[%s11494_s26 + $0x1360] sm:$0xff]  ;;  %v1974_v55 = vld [vmem:[%s11494_s26 + $0x1370] sm:$0xff]  ;;  %1971 = vst [vmem:[%s11502_s27 + $0x9a8] sm:$0xff] %v1970_v53 }
  0xb0   : > { %1973 = vst [vmem:[%s11502_s27 + $0x9b0] sm:$0xff] %v1972_v54  ;;  %1975 = vst [vmem:[%s11502_s27 + $0x9b8] sm:$0xff] %v1974_v55  ;;  %v1976_v56 = vld [vmem:[%s11494_s26 + $0x1380] sm:$0xff]  ;;  %v1978_v57 = vld [vmem:[%s11494_s26 + $0x1390] sm:$0xff] }
  0xb1   : > { %v1980_v58 = vld [vmem:[%s11494_s26 + $0x13a0] sm:$0xff]  ;;  %1977 = vst [vmem:[%s11502_s27 + $0x9c0] sm:$0xff] %v1976_v56  ;;  %1979 = vst [vmem:[%s11502_s27 + $0x9c8] sm:$0xff] %v1978_v57  ;;  %v1982_v59 = vld [vmem:[%s11494_s26 + $0x13b0] sm:$0xff] }
  0xb2   : > { %1981 = vst [vmem:[%s11502_s27 + $0x9d0] sm:$0xff] %v1980_v58  ;;  %v1984_v60 = vld [vmem:[%s11494_s26 + $0x13c0] sm:$0xff]  ;;  %v1986_v61 = vld [vmem:[%s11494_s26 + $0x13d0] sm:$0xff]  ;;  %1983 = vst [vmem:[%s11502_s27 + $0x9d8] sm:$0xff] %v1982_v59 }
  0xb3   : > { %1985 = vst [vmem:[%s11502_s27 + $0x9e0] sm:$0xff] %v1984_v60  ;;  %1987 = vst [vmem:[%s11502_s27 + $0x9e8] sm:$0xff] %v1986_v61  ;;  %v1988_v62 = vld [vmem:[%s11494_s26 + $0x13e0] sm:$0xff]  ;;  %v1990_v63 = vld [vmem:[%s11494_s26 + $0x13f0] sm:$0xff] }
  0xb4   : > { %v1992_v0 = vld [vmem:[%s11494_s26 + $0x1400] sm:$0xff]  ;;  %1989 = vst [vmem:[%s11502_s27 + $0x9f0] sm:$0xff] %v1988_v62  ;;  %1991 = vst [vmem:[%s11502_s27 + $0x9f8] sm:$0xff] %v1990_v63  ;;  %v1994_v1 = vld [vmem:[%s11494_s26 + $0x1410] sm:$0xff] }
  0xb5   : > { %1993 = vst [vmem:[%s11502_s27 + $0xa00] sm:$0xff] %v1992_v0  ;;  %v1996_v2 = vld [vmem:[%s11494_s26 + $0x1420] sm:$0xff]  ;;  %v1998_v3 = vld [vmem:[%s11494_s26 + $0x1430] sm:$0xff]  ;;  %1995 = vst [vmem:[%s11502_s27 + $0xa08] sm:$0xff] %v1994_v1 }
  0xb6   : > { %1997 = vst [vmem:[%s11502_s27 + $0xa10] sm:$0xff] %v1996_v2  ;;  %1999 = vst [vmem:[%s11502_s27 + $0xa18] sm:$0xff] %v1998_v3  ;;  %v2000_v4 = vld [vmem:[%s11494_s26 + $0x1440] sm:$0xff]  ;;  %v2002_v5 = vld [vmem:[%s11494_s26 + $0x1450] sm:$0xff] }
  0xb7   : > { %v2004_v6 = vld [vmem:[%s11494_s26 + $0x1460] sm:$0xff]  ;;  %2001 = vst [vmem:[%s11502_s27 + $0xa20] sm:$0xff] %v2000_v4  ;;  %2003 = vst [vmem:[%s11502_s27 + $0xa28] sm:$0xff] %v2002_v5  ;;  %v2006_v7 = vld [vmem:[%s11494_s26 + $0x1470] sm:$0xff] }
  0xb8   : > { %2005 = vst [vmem:[%s11502_s27 + $0xa30] sm:$0xff] %v2004_v6  ;;  %v2008_v8 = vld [vmem:[%s11494_s26 + $0x1480] sm:$0xff]  ;;  %v2010_v9 = vld [vmem:[%s11494_s26 + $0x1490] sm:$0xff]  ;;  %2007 = vst [vmem:[%s11502_s27 + $0xa38] sm:$0xff] %v2006_v7 }
  0xb9   : > { %2009 = vst [vmem:[%s11502_s27 + $0xa40] sm:$0xff] %v2008_v8  ;;  %2011 = vst [vmem:[%s11502_s27 + $0xa48] sm:$0xff] %v2010_v9  ;;  %v2012_v10 = vld [vmem:[%s11494_s26 + $0x14a0] sm:$0xff]  ;;  %v2014_v11 = vld [vmem:[%s11494_s26 + $0x14b0] sm:$0xff] }
  0xba   : > { %v2016_v12 = vld [vmem:[%s11494_s26 + $0x14c0] sm:$0xff]  ;;  %2013 = vst [vmem:[%s11502_s27 + $0xa50] sm:$0xff] %v2012_v10  ;;  %2015 = vst [vmem:[%s11502_s27 + $0xa58] sm:$0xff] %v2014_v11  ;;  %v2018_v13 = vld [vmem:[%s11494_s26 + $0x14d0] sm:$0xff] }
  0xbb   : > { %2017 = vst [vmem:[%s11502_s27 + $0xa60] sm:$0xff] %v2016_v12  ;;  %v2020_v14 = vld [vmem:[%s11494_s26 + $0x14e0] sm:$0xff]  ;;  %v2022_v15 = vld [vmem:[%s11494_s26 + $0x14f0] sm:$0xff]  ;;  %2019 = vst [vmem:[%s11502_s27 + $0xa68] sm:$0xff] %v2018_v13 }
  0xbc   : > { %2021 = vst [vmem:[%s11502_s27 + $0xa70] sm:$0xff] %v2020_v14  ;;  %2023 = vst [vmem:[%s11502_s27 + $0xa78] sm:$0xff] %v2022_v15  ;;  %v2024_v16 = vld [vmem:[%s11494_s26 + $0x1500] sm:$0xff]  ;;  %v2026_v17 = vld [vmem:[%s11494_s26 + $0x1510] sm:$0xff] }
  0xbd   : > { %v2028_v18 = vld [vmem:[%s11494_s26 + $0x1520] sm:$0xff]  ;;  %2025 = vst [vmem:[%s11502_s27 + $0xa80] sm:$0xff] %v2024_v16  ;;  %2027 = vst [vmem:[%s11502_s27 + $0xa88] sm:$0xff] %v2026_v17  ;;  %v2030_v19 = vld [vmem:[%s11494_s26 + $0x1530] sm:$0xff] }
  0xbe   : > { %2029 = vst [vmem:[%s11502_s27 + $0xa90] sm:$0xff] %v2028_v18  ;;  %v2032_v20 = vld [vmem:[%s11494_s26 + $0x1540] sm:$0xff]  ;;  %v2034_v21 = vld [vmem:[%s11494_s26 + $0x1550] sm:$0xff]  ;;  %2031 = vst [vmem:[%s11502_s27 + $0xa98] sm:$0xff] %v2030_v19 }
  0xbf   : > { %2033 = vst [vmem:[%s11502_s27 + $0xaa0] sm:$0xff] %v2032_v20  ;;  %2035 = vst [vmem:[%s11502_s27 + $0xaa8] sm:$0xff] %v2034_v21  ;;  %v2036_v22 = vld [vmem:[%s11494_s26 + $0x1560] sm:$0xff]  ;;  %v2038_v23 = vld [vmem:[%s11494_s26 + $0x1570] sm:$0xff] }
  0xc0   : > { %v2040_v24 = vld [vmem:[%s11494_s26 + $0x1580] sm:$0xff]  ;;  %2037 = vst [vmem:[%s11502_s27 + $0xab0] sm:$0xff] %v2036_v22  ;;  %2039 = vst [vmem:[%s11502_s27 + $0xab8] sm:$0xff] %v2038_v23  ;;  %v2042_v25 = vld [vmem:[%s11494_s26 + $0x1590] sm:$0xff] }
  0xc1   : > { %2041 = vst [vmem:[%s11502_s27 + $0xac0] sm:$0xff] %v2040_v24  ;;  %v2044_v26 = vld [vmem:[%s11494_s26 + $0x15a0] sm:$0xff]  ;;  %v2046_v27 = vld [vmem:[%s11494_s26 + $0x15b0] sm:$0xff]  ;;  %2043 = vst [vmem:[%s11502_s27 + $0xac8] sm:$0xff] %v2042_v25 }
  0xc2   : > { %2045 = vst [vmem:[%s11502_s27 + $0xad0] sm:$0xff] %v2044_v26  ;;  %2047 = vst [vmem:[%s11502_s27 + $0xad8] sm:$0xff] %v2046_v27  ;;  %v2048_v28 = vld [vmem:[%s11494_s26 + $0x15c0] sm:$0xff]  ;;  %v2050_v29 = vld [vmem:[%s11494_s26 + $0x15d0] sm:$0xff] }
  0xc3   : > { %v2052_v30 = vld [vmem:[%s11494_s26 + $0x15e0] sm:$0xff]  ;;  %2049 = vst [vmem:[%s11502_s27 + $0xae0] sm:$0xff] %v2048_v28  ;;  %2051 = vst [vmem:[%s11502_s27 + $0xae8] sm:$0xff] %v2050_v29  ;;  %v2054_v31 = vld [vmem:[%s11494_s26 + $0x15f0] sm:$0xff] }
  0xc4   : > { %2053 = vst [vmem:[%s11502_s27 + $0xaf0] sm:$0xff] %v2052_v30  ;;  %v2056_v32 = vld [vmem:[%s11494_s26 + $0x1600] sm:$0xff]  ;;  %v2058_v33 = vld [vmem:[%s11494_s26 + $0x1610] sm:$0xff]  ;;  %2055 = vst [vmem:[%s11502_s27 + $0xaf8] sm:$0xff] %v2054_v31 }
  0xc5   : > { %2057 = vst [vmem:[%s11502_s27 + $0xb00] sm:$0xff] %v2056_v32  ;;  %2059 = vst [vmem:[%s11502_s27 + $0xb08] sm:$0xff] %v2058_v33  ;;  %v2060_v34 = vld [vmem:[%s11494_s26 + $0x1620] sm:$0xff]  ;;  %v2062_v35 = vld [vmem:[%s11494_s26 + $0x1630] sm:$0xff] }
  0xc6   : > { %v2064_v36 = vld [vmem:[%s11494_s26 + $0x1640] sm:$0xff]  ;;  %2061 = vst [vmem:[%s11502_s27 + $0xb10] sm:$0xff] %v2060_v34  ;;  %2063 = vst [vmem:[%s11502_s27 + $0xb18] sm:$0xff] %v2062_v35  ;;  %v2066_v37 = vld [vmem:[%s11494_s26 + $0x1650] sm:$0xff] }
  0xc7   : > { %2065 = vst [vmem:[%s11502_s27 + $0xb20] sm:$0xff] %v2064_v36  ;;  %v2068_v38 = vld [vmem:[%s11494_s26 + $0x1660] sm:$0xff]  ;;  %v2070_v39 = vld [vmem:[%s11494_s26 + $0x1670] sm:$0xff]  ;;  %2067 = vst [vmem:[%s11502_s27 + $0xb28] sm:$0xff] %v2066_v37 }
  0xc8   : > { %2069 = vst [vmem:[%s11502_s27 + $0xb30] sm:$0xff] %v2068_v38  ;;  %2071 = vst [vmem:[%s11502_s27 + $0xb38] sm:$0xff] %v2070_v39  ;;  %v2072_v40 = vld [vmem:[%s11494_s26 + $0x1680] sm:$0xff]  ;;  %v2074_v41 = vld [vmem:[%s11494_s26 + $0x1690] sm:$0xff] }
  0xc9   : > { %v2076_v42 = vld [vmem:[%s11494_s26 + $0x16a0] sm:$0xff]  ;;  %2073 = vst [vmem:[%s11502_s27 + $0xb40] sm:$0xff] %v2072_v40  ;;  %2075 = vst [vmem:[%s11502_s27 + $0xb48] sm:$0xff] %v2074_v41  ;;  %v2078_v43 = vld [vmem:[%s11494_s26 + $0x16b0] sm:$0xff] }
  0xca   : > { %2077 = vst [vmem:[%s11502_s27 + $0xb50] sm:$0xff] %v2076_v42  ;;  %v2080_v44 = vld [vmem:[%s11494_s26 + $0x16c0] sm:$0xff]  ;;  %v2082_v45 = vld [vmem:[%s11494_s26 + $0x16d0] sm:$0xff]  ;;  %2079 = vst [vmem:[%s11502_s27 + $0xb58] sm:$0xff] %v2078_v43 }
  0xcb   : > { %2081 = vst [vmem:[%s11502_s27 + $0xb60] sm:$0xff] %v2080_v44  ;;  %2083 = vst [vmem:[%s11502_s27 + $0xb68] sm:$0xff] %v2082_v45  ;;  %v2084_v46 = vld [vmem:[%s11494_s26 + $0x16e0] sm:$0xff]  ;;  %v2086_v47 = vld [vmem:[%s11494_s26 + $0x16f0] sm:$0xff] }
  0xcc   : > { %v2088_v48 = vld [vmem:[%s11494_s26 + $0x1700] sm:$0xff]  ;;  %2085 = vst [vmem:[%s11502_s27 + $0xb70] sm:$0xff] %v2084_v46  ;;  %2087 = vst [vmem:[%s11502_s27 + $0xb78] sm:$0xff] %v2086_v47  ;;  %v2090_v49 = vld [vmem:[%s11494_s26 + $0x1710] sm:$0xff] }
  0xcd   : > { %2089 = vst [vmem:[%s11502_s27 + $0xb80] sm:$0xff] %v2088_v48  ;;  %v2092_v50 = vld [vmem:[%s11494_s26 + $0x1720] sm:$0xff]  ;;  %v2094_v51 = vld [vmem:[%s11494_s26 + $0x1730] sm:$0xff]  ;;  %2091 = vst [vmem:[%s11502_s27 + $0xb88] sm:$0xff] %v2090_v49 }
  0xce   : > { %2093 = vst [vmem:[%s11502_s27 + $0xb90] sm:$0xff] %v2092_v50  ;;  %2095 = vst [vmem:[%s11502_s27 + $0xb98] sm:$0xff] %v2094_v51  ;;  %v2096_v52 = vld [vmem:[%s11494_s26 + $0x1740] sm:$0xff]  ;;  %v2098_v53 = vld [vmem:[%s11494_s26 + $0x1750] sm:$0xff] }
  0xcf   : > { %v2100_v54 = vld [vmem:[%s11494_s26 + $0x1760] sm:$0xff]  ;;  %2097 = vst [vmem:[%s11502_s27 + $0xba0] sm:$0xff] %v2096_v52  ;;  %2099 = vst [vmem:[%s11502_s27 + $0xba8] sm:$0xff] %v2098_v53  ;;  %v2102_v55 = vld [vmem:[%s11494_s26 + $0x1770] sm:$0xff] }
  0xd0   : > { %2101 = vst [vmem:[%s11502_s27 + $0xbb0] sm:$0xff] %v2100_v54  ;;  %v2104_v56 = vld [vmem:[%s11494_s26 + $0x1780] sm:$0xff]  ;;  %v2106_v57 = vld [vmem:[%s11494_s26 + $0x1790] sm:$0xff]  ;;  %2103 = vst [vmem:[%s11502_s27 + $0xbb8] sm:$0xff] %v2102_v55 }
  0xd1   : > { %2105 = vst [vmem:[%s11502_s27 + $0xbc0] sm:$0xff] %v2104_v56  ;;  %2107 = vst [vmem:[%s11502_s27 + $0xbc8] sm:$0xff] %v2106_v57  ;;  %v2108_v58 = vld [vmem:[%s11494_s26 + $0x17a0] sm:$0xff]  ;;  %v2110_v59 = vld [vmem:[%s11494_s26 + $0x17b0] sm:$0xff] }
  0xd2   : > { %v2112_v60 = vld [vmem:[%s11494_s26 + $0x17c0] sm:$0xff]  ;;  %2109 = vst [vmem:[%s11502_s27 + $0xbd0] sm:$0xff] %v2108_v58  ;;  %2111 = vst [vmem:[%s11502_s27 + $0xbd8] sm:$0xff] %v2110_v59  ;;  %v2114_v61 = vld [vmem:[%s11494_s26 + $0x17d0] sm:$0xff] }
  0xd3   : > { %2113 = vst [vmem:[%s11502_s27 + $0xbe0] sm:$0xff] %v2112_v60  ;;  %v2116_v62 = vld [vmem:[%s11494_s26 + $0x17e0] sm:$0xff]  ;;  %v2118_v63 = vld [vmem:[%s11494_s26 + $0x17f0] sm:$0xff]  ;;  %2115 = vst [vmem:[%s11502_s27 + $0xbe8] sm:$0xff] %v2114_v61 }
  0xd4   : > { %2117 = vst [vmem:[%s11502_s27 + $0xbf0] sm:$0xff] %v2116_v62  ;;  %2119 = vst [vmem:[%s11502_s27 + $0xbf8] sm:$0xff] %v2118_v63  ;;  %v2120_v0 = vld [vmem:[%s11494_s26 + $0x1800] sm:$0xff]  ;;  %v2122_v1 = vld [vmem:[%s11494_s26 + $0x1810] sm:$0xff] }
  0xd5   : > { %v2124_v2 = vld [vmem:[%s11494_s26 + $0x1820] sm:$0xff]  ;;  %2121 = vst [vmem:[%s11502_s27 + $0xc00] sm:$0xff] %v2120_v0  ;;  %2123 = vst [vmem:[%s11502_s27 + $0xc08] sm:$0xff] %v2122_v1  ;;  %v2126_v3 = vld [vmem:[%s11494_s26 + $0x1830] sm:$0xff] }
  0xd6   : > { %2125 = vst [vmem:[%s11502_s27 + $0xc10] sm:$0xff] %v2124_v2  ;;  %v2128_v4 = vld [vmem:[%s11494_s26 + $0x1840] sm:$0xff]  ;;  %v2130_v5 = vld [vmem:[%s11494_s26 + $0x1850] sm:$0xff]  ;;  %2127 = vst [vmem:[%s11502_s27 + $0xc18] sm:$0xff] %v2126_v3 }
  0xd7   : > { %2129 = vst [vmem:[%s11502_s27 + $0xc20] sm:$0xff] %v2128_v4  ;;  %2131 = vst [vmem:[%s11502_s27 + $0xc28] sm:$0xff] %v2130_v5  ;;  %v2132_v6 = vld [vmem:[%s11494_s26 + $0x1860] sm:$0xff]  ;;  %v2134_v7 = vld [vmem:[%s11494_s26 + $0x1870] sm:$0xff] }
  0xd8   : > { %v2136_v8 = vld [vmem:[%s11494_s26 + $0x1880] sm:$0xff]  ;;  %2133 = vst [vmem:[%s11502_s27 + $0xc30] sm:$0xff] %v2132_v6  ;;  %2135 = vst [vmem:[%s11502_s27 + $0xc38] sm:$0xff] %v2134_v7  ;;  %v2138_v9 = vld [vmem:[%s11494_s26 + $0x1890] sm:$0xff] }
  0xd9   : > { %2137 = vst [vmem:[%s11502_s27 + $0xc40] sm:$0xff] %v2136_v8  ;;  %v2140_v10 = vld [vmem:[%s11494_s26 + $0x18a0] sm:$0xff]  ;;  %v2142_v11 = vld [vmem:[%s11494_s26 + $0x18b0] sm:$0xff]  ;;  %2139 = vst [vmem:[%s11502_s27 + $0xc48] sm:$0xff] %v2138_v9 }
  0xda   : > { %2141 = vst [vmem:[%s11502_s27 + $0xc50] sm:$0xff] %v2140_v10  ;;  %2143 = vst [vmem:[%s11502_s27 + $0xc58] sm:$0xff] %v2142_v11  ;;  %v2144_v12 = vld [vmem:[%s11494_s26 + $0x18c0] sm:$0xff]  ;;  %v2146_v13 = vld [vmem:[%s11494_s26 + $0x18d0] sm:$0xff] }
  0xdb   : > { %v2148_v14 = vld [vmem:[%s11494_s26 + $0x18e0] sm:$0xff]  ;;  %2145 = vst [vmem:[%s11502_s27 + $0xc60] sm:$0xff] %v2144_v12  ;;  %2147 = vst [vmem:[%s11502_s27 + $0xc68] sm:$0xff] %v2146_v13  ;;  %v2150_v15 = vld [vmem:[%s11494_s26 + $0x18f0] sm:$0xff] }
  0xdc   : > { %2149 = vst [vmem:[%s11502_s27 + $0xc70] sm:$0xff] %v2148_v14  ;;  %v2152_v16 = vld [vmem:[%s11494_s26 + $0x1900] sm:$0xff]  ;;  %v2154_v17 = vld [vmem:[%s11494_s26 + $0x1910] sm:$0xff]  ;;  %2151 = vst [vmem:[%s11502_s27 + $0xc78] sm:$0xff] %v2150_v15 }
  0xdd   : > { %2153 = vst [vmem:[%s11502_s27 + $0xc80] sm:$0xff] %v2152_v16  ;;  %2155 = vst [vmem:[%s11502_s27 + $0xc88] sm:$0xff] %v2154_v17  ;;  %v2156_v18 = vld [vmem:[%s11494_s26 + $0x1920] sm:$0xff]  ;;  %v2158_v19 = vld [vmem:[%s11494_s26 + $0x1930] sm:$0xff] }
  0xde   : > { %v2160_v20 = vld [vmem:[%s11494_s26 + $0x1940] sm:$0xff]  ;;  %2157 = vst [vmem:[%s11502_s27 + $0xc90] sm:$0xff] %v2156_v18  ;;  %2159 = vst [vmem:[%s11502_s27 + $0xc98] sm:$0xff] %v2158_v19  ;;  %v2162_v21 = vld [vmem:[%s11494_s26 + $0x1950] sm:$0xff] }
  0xdf   : > { %2161 = vst [vmem:[%s11502_s27 + $0xca0] sm:$0xff] %v2160_v20  ;;  %v2164_v22 = vld [vmem:[%s11494_s26 + $0x1960] sm:$0xff]  ;;  %v2166_v23 = vld [vmem:[%s11494_s26 + $0x1970] sm:$0xff]  ;;  %2163 = vst [vmem:[%s11502_s27 + $0xca8] sm:$0xff] %v2162_v21 }
  0xe0   : > { %2165 = vst [vmem:[%s11502_s27 + $0xcb0] sm:$0xff] %v2164_v22  ;;  %2167 = vst [vmem:[%s11502_s27 + $0xcb8] sm:$0xff] %v2166_v23  ;;  %v2168_v24 = vld [vmem:[%s11494_s26 + $0x1980] sm:$0xff]  ;;  %v2170_v25 = vld [vmem:[%s11494_s26 + $0x1990] sm:$0xff] }
  0xe1   : > { %v2172_v26 = vld [vmem:[%s11494_s26 + $0x19a0] sm:$0xff]  ;;  %2169 = vst [vmem:[%s11502_s27 + $0xcc0] sm:$0xff] %v2168_v24  ;;  %2171 = vst [vmem:[%s11502_s27 + $0xcc8] sm:$0xff] %v2170_v25  ;;  %v2174_v27 = vld [vmem:[%s11494_s26 + $0x19b0] sm:$0xff] }
  0xe2   : > { %2173 = vst [vmem:[%s11502_s27 + $0xcd0] sm:$0xff] %v2172_v26  ;;  %v2176_v28 = vld [vmem:[%s11494_s26 + $0x19c0] sm:$0xff]  ;;  %v2178_v29 = vld [vmem:[%s11494_s26 + $0x19d0] sm:$0xff]  ;;  %2175 = vst [vmem:[%s11502_s27 + $0xcd8] sm:$0xff] %v2174_v27 }
  0xe3   : > { %2177 = vst [vmem:[%s11502_s27 + $0xce0] sm:$0xff] %v2176_v28  ;;  %2179 = vst [vmem:[%s11502_s27 + $0xce8] sm:$0xff] %v2178_v29  ;;  %v2180_v30 = vld [vmem:[%s11494_s26 + $0x19e0] sm:$0xff]  ;;  %v2182_v31 = vld [vmem:[%s11494_s26 + $0x19f0] sm:$0xff] }
  0xe4   : > { %v2184_v32 = vld [vmem:[%s11494_s26 + $0x1a00] sm:$0xff]  ;;  %2181 = vst [vmem:[%s11502_s27 + $0xcf0] sm:$0xff] %v2180_v30  ;;  %2183 = vst [vmem:[%s11502_s27 + $0xcf8] sm:$0xff] %v2182_v31  ;;  %v2186_v33 = vld [vmem:[%s11494_s26 + $0x1a10] sm:$0xff] }
  0xe5   : > { %2185 = vst [vmem:[%s11502_s27 + $0xd00] sm:$0xff] %v2184_v32  ;;  %v2188_v34 = vld [vmem:[%s11494_s26 + $0x1a20] sm:$0xff]  ;;  %v2190_v35 = vld [vmem:[%s11494_s26 + $0x1a30] sm:$0xff]  ;;  %2187 = vst [vmem:[%s11502_s27 + $0xd08] sm:$0xff] %v2186_v33 }
  0xe6   : > { %2189 = vst [vmem:[%s11502_s27 + $0xd10] sm:$0xff] %v2188_v34  ;;  %2191 = vst [vmem:[%s11502_s27 + $0xd18] sm:$0xff] %v2190_v35  ;;  %v2192_v36 = vld [vmem:[%s11494_s26 + $0x1a40] sm:$0xff]  ;;  %v2194_v37 = vld [vmem:[%s11494_s26 + $0x1a50] sm:$0xff] }
  0xe7   : > { %v2196_v38 = vld [vmem:[%s11494_s26 + $0x1a60] sm:$0xff]  ;;  %2193 = vst [vmem:[%s11502_s27 + $0xd20] sm:$0xff] %v2192_v36  ;;  %2195 = vst [vmem:[%s11502_s27 + $0xd28] sm:$0xff] %v2194_v37  ;;  %v2198_v39 = vld [vmem:[%s11494_s26 + $0x1a70] sm:$0xff] }
  0xe8   : > { %2197 = vst [vmem:[%s11502_s27 + $0xd30] sm:$0xff] %v2196_v38  ;;  %v2200_v40 = vld [vmem:[%s11494_s26 + $0x1a80] sm:$0xff]  ;;  %v2202_v41 = vld [vmem:[%s11494_s26 + $0x1a90] sm:$0xff]  ;;  %2199 = vst [vmem:[%s11502_s27 + $0xd38] sm:$0xff] %v2198_v39 }
  0xe9   : > { %2201 = vst [vmem:[%s11502_s27 + $0xd40] sm:$0xff] %v2200_v40  ;;  %2203 = vst [vmem:[%s11502_s27 + $0xd48] sm:$0xff] %v2202_v41  ;;  %v2204_v42 = vld [vmem:[%s11494_s26 + $0x1aa0] sm:$0xff]  ;;  %v2206_v43 = vld [vmem:[%s11494_s26 + $0x1ab0] sm:$0xff] }
  0xea   : > { %v2208_v44 = vld [vmem:[%s11494_s26 + $0x1ac0] sm:$0xff]  ;;  %2205 = vst [vmem:[%s11502_s27 + $0xd50] sm:$0xff] %v2204_v42  ;;  %2207 = vst [vmem:[%s11502_s27 + $0xd58] sm:$0xff] %v2206_v43  ;;  %v2210_v45 = vld [vmem:[%s11494_s26 + $0x1ad0] sm:$0xff] }
  0xeb   : > { %2209 = vst [vmem:[%s11502_s27 + $0xd60] sm:$0xff] %v2208_v44  ;;  %v2212_v46 = vld [vmem:[%s11494_s26 + $0x1ae0] sm:$0xff]  ;;  %v2214_v47 = vld [vmem:[%s11494_s26 + $0x1af0] sm:$0xff]  ;;  %2211 = vst [vmem:[%s11502_s27 + $0xd68] sm:$0xff] %v2210_v45 }
  0xec   : > { %2213 = vst [vmem:[%s11502_s27 + $0xd70] sm:$0xff] %v2212_v46  ;;  %2215 = vst [vmem:[%s11502_s27 + $0xd78] sm:$0xff] %v2214_v47  ;;  %v2216_v48 = vld [vmem:[%s11494_s26 + $0x1b00] sm:$0xff]  ;;  %v2218_v49 = vld [vmem:[%s11494_s26 + $0x1b10] sm:$0xff] }
  0xed   : > { %v2220_v50 = vld [vmem:[%s11494_s26 + $0x1b20] sm:$0xff]  ;;  %2217 = vst [vmem:[%s11502_s27 + $0xd80] sm:$0xff] %v2216_v48  ;;  %2219 = vst [vmem:[%s11502_s27 + $0xd88] sm:$0xff] %v2218_v49  ;;  %v2222_v51 = vld [vmem:[%s11494_s26 + $0x1b30] sm:$0xff] }
  0xee   : > { %2221 = vst [vmem:[%s11502_s27 + $0xd90] sm:$0xff] %v2220_v50  ;;  %v2224_v52 = vld [vmem:[%s11494_s26 + $0x1b40] sm:$0xff]  ;;  %v2226_v53 = vld [vmem:[%s11494_s26 + $0x1b50] sm:$0xff]  ;;  %2223 = vst [vmem:[%s11502_s27 + $0xd98] sm:$0xff] %v2222_v51 }
  0xef   : > { %2225 = vst [vmem:[%s11502_s27 + $0xda0] sm:$0xff] %v2224_v52  ;;  %2227 = vst [vmem:[%s11502_s27 + $0xda8] sm:$0xff] %v2226_v53  ;;  %v2228_v54 = vld [vmem:[%s11494_s26 + $0x1b60] sm:$0xff]  ;;  %v2230_v55 = vld [vmem:[%s11494_s26 + $0x1b70] sm:$0xff] }
  0xf0   : > { %v2232_v56 = vld [vmem:[%s11494_s26 + $0x1b80] sm:$0xff]  ;;  %2229 = vst [vmem:[%s11502_s27 + $0xdb0] sm:$0xff] %v2228_v54  ;;  %2231 = vst [vmem:[%s11502_s27 + $0xdb8] sm:$0xff] %v2230_v55  ;;  %v2234_v57 = vld [vmem:[%s11494_s26 + $0x1b90] sm:$0xff] }
  0xf1   : > { %2233 = vst [vmem:[%s11502_s27 + $0xdc0] sm:$0xff] %v2232_v56  ;;  %v2236_v58 = vld [vmem:[%s11494_s26 + $0x1ba0] sm:$0xff]  ;;  %v2238_v59 = vld [vmem:[%s11494_s26 + $0x1bb0] sm:$0xff]  ;;  %2235 = vst [vmem:[%s11502_s27 + $0xdc8] sm:$0xff] %v2234_v57 }
  0xf2   : > { %2237 = vst [vmem:[%s11502_s27 + $0xdd0] sm:$0xff] %v2236_v58  ;;  %2239 = vst [vmem:[%s11502_s27 + $0xdd8] sm:$0xff] %v2238_v59  ;;  %v2240_v60 = vld [vmem:[%s11494_s26 + $0x1bc0] sm:$0xff]  ;;  %v2242_v61 = vld [vmem:[%s11494_s26 + $0x1bd0] sm:$0xff] }
  0xf3   : > { %v2244_v62 = vld [vmem:[%s11494_s26 + $0x1be0] sm:$0xff]  ;;  %2241 = vst [vmem:[%s11502_s27 + $0xde0] sm:$0xff] %v2240_v60  ;;  %2243 = vst [vmem:[%s11502_s27 + $0xde8] sm:$0xff] %v2242_v61  ;;  %v2246_v63 = vld [vmem:[%s11494_s26 + $0x1bf0] sm:$0xff] }
  0xf4   : > { %2245 = vst [vmem:[%s11502_s27 + $0xdf0] sm:$0xff] %v2244_v62  ;;  %v2248_v0 = vld [vmem:[%s11494_s26 + $0x1c00] sm:$0xff]  ;;  %v2250_v1 = vld [vmem:[%s11494_s26 + $0x1c10] sm:$0xff]  ;;  %2247 = vst [vmem:[%s11502_s27 + $0xdf8] sm:$0xff] %v2246_v63 }
  0xf5   : > { %2249 = vst [vmem:[%s11502_s27 + $0xe00] sm:$0xff] %v2248_v0  ;;  %2251 = vst [vmem:[%s11502_s27 + $0xe08] sm:$0xff] %v2250_v1  ;;  %v2252_v2 = vld [vmem:[%s11494_s26 + $0x1c20] sm:$0xff]  ;;  %v2254_v3 = vld [vmem:[%s11494_s26 + $0x1c30] sm:$0xff] }
  0xf6   : > { %v2256_v4 = vld [vmem:[%s11494_s26 + $0x1c40] sm:$0xff]  ;;  %2253 = vst [vmem:[%s11502_s27 + $0xe10] sm:$0xff] %v2252_v2  ;;  %2255 = vst [vmem:[%s11502_s27 + $0xe18] sm:$0xff] %v2254_v3  ;;  %v2258_v5 = vld [vmem:[%s11494_s26 + $0x1c50] sm:$0xff] }
  0xf7   : > { %2257 = vst [vmem:[%s11502_s27 + $0xe20] sm:$0xff] %v2256_v4  ;;  %v2260_v6 = vld [vmem:[%s11494_s26 + $0x1c60] sm:$0xff]  ;;  %v2262_v7 = vld [vmem:[%s11494_s26 + $0x1c70] sm:$0xff]  ;;  %2259 = vst [vmem:[%s11502_s27 + $0xe28] sm:$0xff] %v2258_v5 }
  0xf8   : > { %2261 = vst [vmem:[%s11502_s27 + $0xe30] sm:$0xff] %v2260_v6  ;;  %2263 = vst [vmem:[%s11502_s27 + $0xe38] sm:$0xff] %v2262_v7  ;;  %v2264_v8 = vld [vmem:[%s11494_s26 + $0x1c80] sm:$0xff]  ;;  %v2266_v9 = vld [vmem:[%s11494_s26 + $0x1c90] sm:$0xff] }
  0xf9   : > { %v2268_v10 = vld [vmem:[%s11494_s26 + $0x1ca0] sm:$0xff]  ;;  %2265 = vst [vmem:[%s11502_s27 + $0xe40] sm:$0xff] %v2264_v8  ;;  %2267 = vst [vmem:[%s11502_s27 + $0xe48] sm:$0xff] %v2266_v9  ;;  %v2270_v11 = vld [vmem:[%s11494_s26 + $0x1cb0] sm:$0xff] }
  0xfa   : > { %2269 = vst [vmem:[%s11502_s27 + $0xe50] sm:$0xff] %v2268_v10  ;;  %v2272_v12 = vld [vmem:[%s11494_s26 + $0x1cc0] sm:$0xff]  ;;  %v2274_v13 = vld [vmem:[%s11494_s26 + $0x1cd0] sm:$0xff]  ;;  %2271 = vst [vmem:[%s11502_s27 + $0xe58] sm:$0xff] %v2270_v11 }
  0xfb   : > { %2273 = vst [vmem:[%s11502_s27 + $0xe60] sm:$0xff] %v2272_v12  ;;  %2275 = vst [vmem:[%s11502_s27 + $0xe68] sm:$0xff] %v2274_v13  ;;  %v2276_v14 = vld [vmem:[%s11494_s26 + $0x1ce0] sm:$0xff]  ;;  %v2278_v15 = vld [vmem:[%s11494_s26 + $0x1cf0] sm:$0xff] }
  0xfc   : > { %v2280_v16 = vld [vmem:[%s11494_s26 + $0x1d00] sm:$0xff]  ;;  %2277 = vst [vmem:[%s11502_s27 + $0xe70] sm:$0xff] %v2276_v14  ;;  %2279 = vst [vmem:[%s11502_s27 + $0xe78] sm:$0xff] %v2278_v15  ;;  %v2282_v17 = vld [vmem:[%s11494_s26 + $0x1d10] sm:$0xff] }
  0xfd   : > { %2281 = vst [vmem:[%s11502_s27 + $0xe80] sm:$0xff] %v2280_v16  ;;  %v2284_v18 = vld [vmem:[%s11494_s26 + $0x1d20] sm:$0xff]  ;;  %v2286_v19 = vld [vmem:[%s11494_s26 + $0x1d30] sm:$0xff]  ;;  %2283 = vst [vmem:[%s11502_s27 + $0xe88] sm:$0xff] %v2282_v17 }
  0xfe   : > { %2285 = vst [vmem:[%s11502_s27 + $0xe90] sm:$0xff] %v2284_v18  ;;  %2287 = vst [vmem:[%s11502_s27 + $0xe98] sm:$0xff] %v2286_v19  ;;  %v2288_v20 = vld [vmem:[%s11494_s26 + $0x1d40] sm:$0xff]  ;;  %v2290_v21 = vld [vmem:[%s11494_s26 + $0x1d50] sm:$0xff] }
  0xff   : > { %v2292_v22 = vld [vmem:[%s11494_s26 + $0x1d60] sm:$0xff]  ;;  %2289 = vst [vmem:[%s11502_s27 + $0xea0] sm:$0xff] %v2288_v20  ;;  %2291 = vst [vmem:[%s11502_s27 + $0xea8] sm:$0xff] %v2290_v21  ;;  %v2294_v23 = vld [vmem:[%s11494_s26 + $0x1d70] sm:$0xff] }
 0x100   : > { %2293 = vst [vmem:[%s11502_s27 + $0xeb0] sm:$0xff] %v2292_v22  ;;  %v2296_v24 = vld [vmem:[%s11494_s26 + $0x1d80] sm:$0xff]  ;;  %v2298_v25 = vld [vmem:[%s11494_s26 + $0x1d90] sm:$0xff]  ;;  %2295 = vst [vmem:[%s11502_s27 + $0xeb8] sm:$0xff] %v2294_v23 }
 0x101   : > { %2297 = vst [vmem:[%s11502_s27 + $0xec0] sm:$0xff] %v2296_v24  ;;  %2299 = vst [vmem:[%s11502_s27 + $0xec8] sm:$0xff] %v2298_v25  ;;  %v2300_v26 = vld [vmem:[%s11494_s26 + $0x1da0] sm:$0xff]  ;;  %v2302_v27 = vld [vmem:[%s11494_s26 + $0x1db0] sm:$0xff] }
 0x102   : > { %v2304_v28 = vld [vmem:[%s11494_s26 + $0x1dc0] sm:$0xff]  ;;  %2301 = vst [vmem:[%s11502_s27 + $0xed0] sm:$0xff] %v2300_v26  ;;  %2303 = vst [vmem:[%s11502_s27 + $0xed8] sm:$0xff] %v2302_v27  ;;  %v2306_v29 = vld [vmem:[%s11494_s26 + $0x1dd0] sm:$0xff] }
 0x103   : > { %2305 = vst [vmem:[%s11502_s27 + $0xee0] sm:$0xff] %v2304_v28  ;;  %v2308_v30 = vld [vmem:[%s11494_s26 + $0x1de0] sm:$0xff]  ;;  %v2310_v31 = vld [vmem:[%s11494_s26 + $0x1df0] sm:$0xff]  ;;  %2307 = vst [vmem:[%s11502_s27 + $0xee8] sm:$0xff] %v2306_v29 }
 0x104   : > { %2309 = vst [vmem:[%s11502_s27 + $0xef0] sm:$0xff] %v2308_v30  ;;  %2311 = vst [vmem:[%s11502_s27 + $0xef8] sm:$0xff] %v2310_v31  ;;  %v2312_v32 = vld [vmem:[%s11494_s26 + $0x1e00] sm:$0xff]  ;;  %v2314_v33 = vld [vmem:[%s11494_s26 + $0x1e10] sm:$0xff] }
 0x105   : > { %v2316_v34 = vld [vmem:[%s11494_s26 + $0x1e20] sm:$0xff]  ;;  %2313 = vst [vmem:[%s11502_s27 + $0xf00] sm:$0xff] %v2312_v32  ;;  %2315 = vst [vmem:[%s11502_s27 + $0xf08] sm:$0xff] %v2314_v33  ;;  %v2318_v35 = vld [vmem:[%s11494_s26 + $0x1e30] sm:$0xff] }
 0x106   : > { %2317 = vst [vmem:[%s11502_s27 + $0xf10] sm:$0xff] %v2316_v34  ;;  %v2320_v36 = vld [vmem:[%s11494_s26 + $0x1e40] sm:$0xff]  ;;  %v2322_v37 = vld [vmem:[%s11494_s26 + $0x1e50] sm:$0xff]  ;;  %2319 = vst [vmem:[%s11502_s27 + $0xf18] sm:$0xff] %v2318_v35 }
 0x107   : > { %2321 = vst [vmem:[%s11502_s27 + $0xf20] sm:$0xff] %v2320_v36  ;;  %2323 = vst [vmem:[%s11502_s27 + $0xf28] sm:$0xff] %v2322_v37  ;;  %v2324_v38 = vld [vmem:[%s11494_s26 + $0x1e60] sm:$0xff]  ;;  %v2326_v39 = vld [vmem:[%s11494_s26 + $0x1e70] sm:$0xff] }
 0x108   : > { %v2328_v40 = vld [vmem:[%s11494_s26 + $0x1e80] sm:$0xff]  ;;  %2325 = vst [vmem:[%s11502_s27 + $0xf30] sm:$0xff] %v2324_v38  ;;  %2327 = vst [vmem:[%s11502_s27 + $0xf38] sm:$0xff] %v2326_v39  ;;  %v2330_v41 = vld [vmem:[%s11494_s26 + $0x1e90] sm:$0xff] }
 0x109   : > { %2329 = vst [vmem:[%s11502_s27 + $0xf40] sm:$0xff] %v2328_v40  ;;  %v2332_v42 = vld [vmem:[%s11494_s26 + $0x1ea0] sm:$0xff]  ;;  %v2334_v43 = vld [vmem:[%s11494_s26 + $0x1eb0] sm:$0xff]  ;;  %2331 = vst [vmem:[%s11502_s27 + $0xf48] sm:$0xff] %v2330_v41 }
 0x10a   : > { %2333 = vst [vmem:[%s11502_s27 + $0xf50] sm:$0xff] %v2332_v42  ;;  %2335 = vst [vmem:[%s11502_s27 + $0xf58] sm:$0xff] %v2334_v43  ;;  %v2336_v44 = vld [vmem:[%s11494_s26 + $0x1ec0] sm:$0xff]  ;;  %v2338_v45 = vld [vmem:[%s11494_s26 + $0x1ed0] sm:$0xff] }
 0x10b   : > { %v2340_v46 = vld [vmem:[%s11494_s26 + $0x1ee0] sm:$0xff]  ;;  %2337 = vst [vmem:[%s11502_s27 + $0xf60] sm:$0xff] %v2336_v44  ;;  %2339 = vst [vmem:[%s11502_s27 + $0xf68] sm:$0xff] %v2338_v45  ;;  %v2342_v47 = vld [vmem:[%s11494_s26 + $0x1ef0] sm:$0xff] }
 0x10c   : > { %2341 = vst [vmem:[%s11502_s27 + $0xf70] sm:$0xff] %v2340_v46  ;;  %v2344_v48 = vld [vmem:[%s11494_s26 + $0x1f00] sm:$0xff]  ;;  %v2346_v49 = vld [vmem:[%s11494_s26 + $0x1f10] sm:$0xff]  ;;  %2343 = vst [vmem:[%s11502_s27 + $0xf78] sm:$0xff] %v2342_v47 }
 0x10d   : > { %2345 = vst [vmem:[%s11502_s27 + $0xf80] sm:$0xff] %v2344_v48  ;;  %2347 = vst [vmem:[%s11502_s27 + $0xf88] sm:$0xff] %v2346_v49  ;;  %v2348_v50 = vld [vmem:[%s11494_s26 + $0x1f20] sm:$0xff]  ;;  %v2350_v51 = vld [vmem:[%s11494_s26 + $0x1f30] sm:$0xff] }
 0x10e   : > { %v2352_v52 = vld [vmem:[%s11494_s26 + $0x1f40] sm:$0xff]  ;;  %2349 = vst [vmem:[%s11502_s27 + $0xf90] sm:$0xff] %v2348_v50  ;;  %2351 = vst [vmem:[%s11502_s27 + $0xf98] sm:$0xff] %v2350_v51  ;;  %v2354_v53 = vld [vmem:[%s11494_s26 + $0x1f50] sm:$0xff] }
 0x10f   : > { %2353 = vst [vmem:[%s11502_s27 + $0xfa0] sm:$0xff] %v2352_v52  ;;  %v2356_v54 = vld [vmem:[%s11494_s26 + $0x1f60] sm:$0xff]  ;;  %v2358_v55 = vld [vmem:[%s11494_s26 + $0x1f70] sm:$0xff]  ;;  %2355 = vst [vmem:[%s11502_s27 + $0xfa8] sm:$0xff] %v2354_v53 }
 0x110   : > { %2357 = vst [vmem:[%s11502_s27 + $0xfb0] sm:$0xff] %v2356_v54  ;;  %2359 = vst [vmem:[%s11502_s27 + $0xfb8] sm:$0xff] %v2358_v55  ;;  %v2360_v56 = vld [vmem:[%s11494_s26 + $0x1f80] sm:$0xff]  ;;  %v2362_v57 = vld [vmem:[%s11494_s26 + $0x1f90] sm:$0xff] }
 0x111   : > { %v2364_v58 = vld [vmem:[%s11494_s26 + $0x1fa0] sm:$0xff]  ;;  %2361 = vst [vmem:[%s11502_s27 + $0xfc0] sm:$0xff] %v2360_v56  ;;  %2363 = vst [vmem:[%s11502_s27 + $0xfc8] sm:$0xff] %v2362_v57  ;;  %v2366_v59 = vld [vmem:[%s11494_s26 + $0x1fb0] sm:$0xff] }
 0x112   : > { %2365 = vst [vmem:[%s11502_s27 + $0xfd0] sm:$0xff] %v2364_v58  ;;  %v2368_v60 = vld [vmem:[%s11494_s26 + $0x1fc0] sm:$0xff]  ;;  %v2370_v61 = vld [vmem:[%s11494_s26 + $0x1fd0] sm:$0xff]  ;;  %2367 = vst [vmem:[%s11502_s27 + $0xfd8] sm:$0xff] %v2366_v59 }
 0x113   : > { %2369 = vst [vmem:[%s11502_s27 + $0xfe0] sm:$0xff] %v2368_v60  ;;  %2371 = vst [vmem:[%s11502_s27 + $0xfe8] sm:$0xff] %v2370_v61  ;;  %v2372_v62 = vld [vmem:[%s11494_s26 + $0x1fe0] sm:$0xff]  ;;  %v2374_v63 = vld [vmem:[%s11494_s26 + $0x1ff0] sm:$0xff] }
 0x114   : > { %v2376_v0 = vld [vmem:[%s11494_s26 + $0x2000] sm:$0xff]  ;;  %2373 = vst [vmem:[%s11502_s27 + $0xff0] sm:$0xff] %v2372_v62  ;;  %2375 = vst [vmem:[%s11502_s27 + $0xff8] sm:$0xff] %v2374_v63  ;;  %v2378_v1 = vld [vmem:[%s11494_s26 + $0x2010] sm:$0xff] }
 0x115   : > { %2377 = vst [vmem:[%s11502_s27 + $0x1000] sm:$0xff] %v2376_v0  ;;  %v2380_v2 = vld [vmem:[%s11494_s26 + $0x2020] sm:$0xff]  ;;  %v2382_v3 = vld [vmem:[%s11494_s26 + $0x2030] sm:$0xff]  ;;  %2379 = vst [vmem:[%s11502_s27 + $0x1008] sm:$0xff] %v2378_v1 }
 0x116   : > { %2381 = vst [vmem:[%s11502_s27 + $0x1010] sm:$0xff] %v2380_v2  ;;  %2383 = vst [vmem:[%s11502_s27 + $0x1018] sm:$0xff] %v2382_v3  ;;  %v2384_v4 = vld [vmem:[%s11494_s26 + $0x2040] sm:$0xff]  ;;  %v2386_v5 = vld [vmem:[%s11494_s26 + $0x2050] sm:$0xff] }
 0x117   : > { %v2388_v6 = vld [vmem:[%s11494_s26 + $0x2060] sm:$0xff]  ;;  %2385 = vst [vmem:[%s11502_s27 + $0x1020] sm:$0xff] %v2384_v4  ;;  %2387 = vst [vmem:[%s11502_s27 + $0x1028] sm:$0xff] %v2386_v5  ;;  %v2390_v7 = vld [vmem:[%s11494_s26 + $0x2070] sm:$0xff] }
 0x118   : > { %2389 = vst [vmem:[%s11502_s27 + $0x1030] sm:$0xff] %v2388_v6  ;;  %v2392_v8 = vld [vmem:[%s11494_s26 + $0x2080] sm:$0xff]  ;;  %v2394_v9 = vld [vmem:[%s11494_s26 + $0x2090] sm:$0xff]  ;;  %2391 = vst [vmem:[%s11502_s27 + $0x1038] sm:$0xff] %v2390_v7 }
 0x119   : > { %2393 = vst [vmem:[%s11502_s27 + $0x1040] sm:$0xff] %v2392_v8  ;;  %2395 = vst [vmem:[%s11502_s27 + $0x1048] sm:$0xff] %v2394_v9  ;;  %v2396_v10 = vld [vmem:[%s11494_s26 + $0x20a0] sm:$0xff]  ;;  %v2398_v11 = vld [vmem:[%s11494_s26 + $0x20b0] sm:$0xff] }
 0x11a   : > { %v2400_v12 = vld [vmem:[%s11494_s26 + $0x20c0] sm:$0xff]  ;;  %2397 = vst [vmem:[%s11502_s27 + $0x1050] sm:$0xff] %v2396_v10  ;;  %2399 = vst [vmem:[%s11502_s27 + $0x1058] sm:$0xff] %v2398_v11  ;;  %v2402_v13 = vld [vmem:[%s11494_s26 + $0x20d0] sm:$0xff] }
 0x11b   : > { %2401 = vst [vmem:[%s11502_s27 + $0x1060] sm:$0xff] %v2400_v12  ;;  %v2404_v14 = vld [vmem:[%s11494_s26 + $0x20e0] sm:$0xff]  ;;  %v2406_v15 = vld [vmem:[%s11494_s26 + $0x20f0] sm:$0xff]  ;;  %2403 = vst [vmem:[%s11502_s27 + $0x1068] sm:$0xff] %v2402_v13 }
 0x11c   : > { %2405 = vst [vmem:[%s11502_s27 + $0x1070] sm:$0xff] %v2404_v14  ;;  %2407 = vst [vmem:[%s11502_s27 + $0x1078] sm:$0xff] %v2406_v15  ;;  %v2408_v16 = vld [vmem:[%s11494_s26 + $0x2100] sm:$0xff]  ;;  %v2410_v17 = vld [vmem:[%s11494_s26 + $0x2110] sm:$0xff] }
 0x11d   : > { %v2412_v18 = vld [vmem:[%s11494_s26 + $0x2120] sm:$0xff]  ;;  %2409 = vst [vmem:[%s11502_s27 + $0x1080] sm:$0xff] %v2408_v16  ;;  %2411 = vst [vmem:[%s11502_s27 + $0x1088] sm:$0xff] %v2410_v17  ;;  %v2414_v19 = vld [vmem:[%s11494_s26 + $0x2130] sm:$0xff] }
 0x11e   : > { %2413 = vst [vmem:[%s11502_s27 + $0x1090] sm:$0xff] %v2412_v18  ;;  %v2416_v20 = vld [vmem:[%s11494_s26 + $0x2140] sm:$0xff]  ;;  %v2418_v21 = vld [vmem:[%s11494_s26 + $0x2150] sm:$0xff]  ;;  %2415 = vst [vmem:[%s11502_s27 + $0x1098] sm:$0xff] %v2414_v19 }
 0x11f   : > { %2417 = vst [vmem:[%s11502_s27 + $0x10a0] sm:$0xff] %v2416_v20  ;;  %2419 = vst [vmem:[%s11502_s27 + $0x10a8] sm:$0xff] %v2418_v21  ;;  %v2420_v22 = vld [vmem:[%s11494_s26 + $0x2160] sm:$0xff]  ;;  %v2422_v23 = vld [vmem:[%s11494_s26 + $0x2170] sm:$0xff] }
 0x120   : > { %v2424_v24 = vld [vmem:[%s11494_s26 + $0x2180] sm:$0xff]  ;;  %2421 = vst [vmem:[%s11502_s27 + $0x10b0] sm:$0xff] %v2420_v22  ;;  %2423 = vst [vmem:[%s11502_s27 + $0x10b8] sm:$0xff] %v2422_v23  ;;  %v2426_v25 = vld [vmem:[%s11494_s26 + $0x2190] sm:$0xff] }
 0x121   : > { %2425 = vst [vmem:[%s11502_s27 + $0x10c0] sm:$0xff] %v2424_v24  ;;  %v2428_v26 = vld [vmem:[%s11494_s26 + $0x21a0] sm:$0xff]  ;;  %v2430_v27 = vld [vmem:[%s11494_s26 + $0x21b0] sm:$0xff]  ;;  %2427 = vst [vmem:[%s11502_s27 + $0x10c8] sm:$0xff] %v2426_v25 }
 0x122   : > { %2429 = vst [vmem:[%s11502_s27 + $0x10d0] sm:$0xff] %v2428_v26  ;;  %2431 = vst [vmem:[%s11502_s27 + $0x10d8] sm:$0xff] %v2430_v27  ;;  %v2432_v28 = vld [vmem:[%s11494_s26 + $0x21c0] sm:$0xff]  ;;  %v2434_v29 = vld [vmem:[%s11494_s26 + $0x21d0] sm:$0xff] }
 0x123   : > { %v2436_v30 = vld [vmem:[%s11494_s26 + $0x21e0] sm:$0xff]  ;;  %2433 = vst [vmem:[%s11502_s27 + $0x10e0] sm:$0xff] %v2432_v28  ;;  %2435 = vst [vmem:[%s11502_s27 + $0x10e8] sm:$0xff] %v2434_v29  ;;  %v2438_v31 = vld [vmem:[%s11494_s26 + $0x21f0] sm:$0xff] }
 0x124   : > { %2437 = vst [vmem:[%s11502_s27 + $0x10f0] sm:$0xff] %v2436_v30  ;;  %v2440_v32 = vld [vmem:[%s11494_s26 + $0x2200] sm:$0xff]  ;;  %v2442_v33 = vld [vmem:[%s11494_s26 + $0x2210] sm:$0xff]  ;;  %2439 = vst [vmem:[%s11502_s27 + $0x10f8] sm:$0xff] %v2438_v31 }
 0x125   : > { %2441 = vst [vmem:[%s11502_s27 + $0x1100] sm:$0xff] %v2440_v32  ;;  %2443 = vst [vmem:[%s11502_s27 + $0x1108] sm:$0xff] %v2442_v33  ;;  %v2444_v34 = vld [vmem:[%s11494_s26 + $0x2220] sm:$0xff]  ;;  %v2446_v35 = vld [vmem:[%s11494_s26 + $0x2230] sm:$0xff] }
 0x126   : > { %v2448_v36 = vld [vmem:[%s11494_s26 + $0x2240] sm:$0xff]  ;;  %2445 = vst [vmem:[%s11502_s27 + $0x1110] sm:$0xff] %v2444_v34  ;;  %2447 = vst [vmem:[%s11502_s27 + $0x1118] sm:$0xff] %v2446_v35  ;;  %v2450_v37 = vld [vmem:[%s11494_s26 + $0x2250] sm:$0xff] }
 0x127   : > { %2449 = vst [vmem:[%s11502_s27 + $0x1120] sm:$0xff] %v2448_v36  ;;  %v2452_v38 = vld [vmem:[%s11494_s26 + $0x2260] sm:$0xff]  ;;  %v2454_v39 = vld [vmem:[%s11494_s26 + $0x2270] sm:$0xff]  ;;  %2451 = vst [vmem:[%s11502_s27 + $0x1128] sm:$0xff] %v2450_v37 }
 0x128   : > { %2453 = vst [vmem:[%s11502_s27 + $0x1130] sm:$0xff] %v2452_v38  ;;  %2455 = vst [vmem:[%s11502_s27 + $0x1138] sm:$0xff] %v2454_v39  ;;  %v2456_v40 = vld [vmem:[%s11494_s26 + $0x2280] sm:$0xff]  ;;  %v2458_v41 = vld [vmem:[%s11494_s26 + $0x2290] sm:$0xff] }
 0x129   : > { %v2460_v42 = vld [vmem:[%s11494_s26 + $0x22a0] sm:$0xff]  ;;  %2457 = vst [vmem:[%s11502_s27 + $0x1140] sm:$0xff] %v2456_v40  ;;  %2459 = vst [vmem:[%s11502_s27 + $0x1148] sm:$0xff] %v2458_v41  ;;  %v2462_v43 = vld [vmem:[%s11494_s26 + $0x22b0] sm:$0xff] }
 0x12a   : > { %2461 = vst [vmem:[%s11502_s27 + $0x1150] sm:$0xff] %v2460_v42  ;;  %v2464_v44 = vld [vmem:[%s11494_s26 + $0x22c0] sm:$0xff]  ;;  %v2466_v45 = vld [vmem:[%s11494_s26 + $0x22d0] sm:$0xff]  ;;  %2463 = vst [vmem:[%s11502_s27 + $0x1158] sm:$0xff] %v2462_v43 }
 0x12b   : > { %2465 = vst [vmem:[%s11502_s27 + $0x1160] sm:$0xff] %v2464_v44  ;;  %2467 = vst [vmem:[%s11502_s27 + $0x1168] sm:$0xff] %v2466_v45  ;;  %v2468_v46 = vld [vmem:[%s11494_s26 + $0x22e0] sm:$0xff]  ;;  %v2470_v47 = vld [vmem:[%s11494_s26 + $0x22f0] sm:$0xff] }
 0x12c   : > { %v2472_v48 = vld [vmem:[%s11494_s26 + $0x2300] sm:$0xff]  ;;  %2469 = vst [vmem:[%s11502_s27 + $0x1170] sm:$0xff] %v2468_v46  ;;  %2471 = vst [vmem:[%s11502_s27 + $0x1178] sm:$0xff] %v2470_v47  ;;  %v2474_v49 = vld [vmem:[%s11494_s26 + $0x2310] sm:$0xff] }
 0x12d   : > { %2473 = vst [vmem:[%s11502_s27 + $0x1180] sm:$0xff] %v2472_v48  ;;  %v2476_v50 = vld [vmem:[%s11494_s26 + $0x2320] sm:$0xff]  ;;  %v2478_v51 = vld [vmem:[%s11494_s26 + $0x2330] sm:$0xff]  ;;  %2475 = vst [vmem:[%s11502_s27 + $0x1188] sm:$0xff] %v2474_v49 }
 0x12e   : > { %2477 = vst [vmem:[%s11502_s27 + $0x1190] sm:$0xff] %v2476_v50  ;;  %2479 = vst [vmem:[%s11502_s27 + $0x1198] sm:$0xff] %v2478_v51  ;;  %v2480_v52 = vld [vmem:[%s11494_s26 + $0x2340] sm:$0xff]  ;;  %v2482_v53 = vld [vmem:[%s11494_s26 + $0x2350] sm:$0xff] }
 0x12f   : > { %v2484_v54 = vld [vmem:[%s11494_s26 + $0x2360] sm:$0xff]  ;;  %2481 = vst [vmem:[%s11502_s27 + $0x11a0] sm:$0xff] %v2480_v52  ;;  %2483 = vst [vmem:[%s11502_s27 + $0x11a8] sm:$0xff] %v2482_v53  ;;  %v2486_v55 = vld [vmem:[%s11494_s26 + $0x2370] sm:$0xff] }
 0x130   : > { %2485 = vst [vmem:[%s11502_s27 + $0x11b0] sm:$0xff] %v2484_v54  ;;  %v2488_v56 = vld [vmem:[%s11494_s26 + $0x2380] sm:$0xff]  ;;  %v2490_v57 = vld [vmem:[%s11494_s26 + $0x2390] sm:$0xff]  ;;  %2487 = vst [vmem:[%s11502_s27 + $0x11b8] sm:$0xff] %v2486_v55 }
 0x131   : > { %2489 = vst [vmem:[%s11502_s27 + $0x11c0] sm:$0xff] %v2488_v56  ;;  %2491 = vst [vmem:[%s11502_s27 + $0x11c8] sm:$0xff] %v2490_v57  ;;  %v2492_v58 = vld [vmem:[%s11494_s26 + $0x23a0] sm:$0xff]  ;;  %v2494_v59 = vld [vmem:[%s11494_s26 + $0x23b0] sm:$0xff] }
 0x132   : > { %v2496_v60 = vld [vmem:[%s11494_s26 + $0x23c0] sm:$0xff]  ;;  %2493 = vst [vmem:[%s11502_s27 + $0x11d0] sm:$0xff] %v2492_v58  ;;  %2495 = vst [vmem:[%s11502_s27 + $0x11d8] sm:$0xff] %v2494_v59  ;;  %v2498_v61 = vld [vmem:[%s11494_s26 + $0x23d0] sm:$0xff] }
 0x133   : > { %2497 = vst [vmem:[%s11502_s27 + $0x11e0] sm:$0xff] %v2496_v60  ;;  %v2500_v62 = vld [vmem:[%s11494_s26 + $0x23e0] sm:$0xff]  ;;  %v2502_v63 = vld [vmem:[%s11494_s26 + $0x23f0] sm:$0xff]  ;;  %2499 = vst [vmem:[%s11502_s27 + $0x11e8] sm:$0xff] %v2498_v61 }
 0x134   : > { %2501 = vst [vmem:[%s11502_s27 + $0x11f0] sm:$0xff] %v2500_v62  ;;  %2503 = vst [vmem:[%s11502_s27 + $0x11f8] sm:$0xff] %v2502_v63  ;;  %v2504_v0 = vld [vmem:[%s11494_s26 + $0x2400] sm:$0xff]  ;;  %v2506_v1 = vld [vmem:[%s11494_s26 + $0x2410] sm:$0xff] }
 0x135   : > { %v2508_v2 = vld [vmem:[%s11494_s26 + $0x2420] sm:$0xff]  ;;  %2505 = vst [vmem:[%s11502_s27 + $0x1200] sm:$0xff] %v2504_v0  ;;  %2507 = vst [vmem:[%s11502_s27 + $0x1208] sm:$0xff] %v2506_v1  ;;  %v2510_v3 = vld [vmem:[%s11494_s26 + $0x2430] sm:$0xff] }
 0x136   : > { %2509 = vst [vmem:[%s11502_s27 + $0x1210] sm:$0xff] %v2508_v2  ;;  %v2512_v4 = vld [vmem:[%s11494_s26 + $0x2440] sm:$0xff]  ;;  %v2514_v5 = vld [vmem:[%s11494_s26 + $0x2450] sm:$0xff]  ;;  %2511 = vst [vmem:[%s11502_s27 + $0x1218] sm:$0xff] %v2510_v3 }
 0x137   : > { %2513 = vst [vmem:[%s11502_s27 + $0x1220] sm:$0xff] %v2512_v4  ;;  %2515 = vst [vmem:[%s11502_s27 + $0x1228] sm:$0xff] %v2514_v5  ;;  %v2516_v6 = vld [vmem:[%s11494_s26 + $0x2460] sm:$0xff]  ;;  %v2518_v7 = vld [vmem:[%s11494_s26 + $0x2470] sm:$0xff] }
 0x138   : > { %v2520_v8 = vld [vmem:[%s11494_s26 + $0x2480] sm:$0xff]  ;;  %2517 = vst [vmem:[%s11502_s27 + $0x1230] sm:$0xff] %v2516_v6  ;;  %2519 = vst [vmem:[%s11502_s27 + $0x1238] sm:$0xff] %v2518_v7  ;;  %v2522_v9 = vld [vmem:[%s11494_s26 + $0x2490] sm:$0xff] }
 0x139   : > { %2521 = vst [vmem:[%s11502_s27 + $0x1240] sm:$0xff] %v2520_v8  ;;  %v2524_v10 = vld [vmem:[%s11494_s26 + $0x24a0] sm:$0xff]  ;;  %v2526_v11 = vld [vmem:[%s11494_s26 + $0x24b0] sm:$0xff]  ;;  %2523 = vst [vmem:[%s11502_s27 + $0x1248] sm:$0xff] %v2522_v9 }
 0x13a   : > { %2525 = vst [vmem:[%s11502_s27 + $0x1250] sm:$0xff] %v2524_v10  ;;  %2527 = vst [vmem:[%s11502_s27 + $0x1258] sm:$0xff] %v2526_v11  ;;  %v2528_v12 = vld [vmem:[%s11494_s26 + $0x24c0] sm:$0xff]  ;;  %v2530_v13 = vld [vmem:[%s11494_s26 + $0x24d0] sm:$0xff] }
 0x13b   : > { %v2532_v14 = vld [vmem:[%s11494_s26 + $0x24e0] sm:$0xff]  ;;  %2529 = vst [vmem:[%s11502_s27 + $0x1260] sm:$0xff] %v2528_v12  ;;  %2531 = vst [vmem:[%s11502_s27 + $0x1268] sm:$0xff] %v2530_v13  ;;  %v2534_v15 = vld [vmem:[%s11494_s26 + $0x24f0] sm:$0xff] }
 0x13c   : > { %2533 = vst [vmem:[%s11502_s27 + $0x1270] sm:$0xff] %v2532_v14  ;;  %2535 = vst [vmem:[%s11502_s27 + $0x1278] sm:$0xff] %v2534_v15 }
 0x13d PF: > { %p9723_p7 = scmp.ge.s32.totalorder %s11430_s14, 1  ;;  %p4952_p8 = scmp.lt.s32.totalorder %s11430_s14, 3 }
 0x13f   : > { %p4953_p9 = pnand %p9723_p7, %p4952_p8 }
 0x140   : > { %s4959_s28 = sand.u32 (!%p4953_p9), 1, %s11422_s12   ;;  %v10563_v16 = vld [vmem:[%s13414_s0 + $0x4] ss:$148 sps:$4 sm:$0xff] (!%p4953_p9)   ;;  %v10569_v17 = vld [vmem:[%s13414_s0 + $0x4c] ss:$148 sps:$4 sm:$0xff] (!%p4953_p9)   ;;  %s9725_s27 = sshll.u32 (!%p4953_p9), %s11469_s15, 1 }
 0x141   : > { %4956 = sbr.rel (%p4953_p9) target bundleno = 1165 (0x48d), region = 80  ;;  %8813 = vmatprep.mubr.bf16.mxu1 (!%p4953_p9), %v10563_v16  ;;  %9200 = vmatprep.mubr.bf16.mxu0 (!%p4953_p9), %v10569_v17  ;;  %p4987_p10 = scmp.lt.s32.totalorder (!%p4953_p9), %s9725_s27, 3 }
 0x142   : > { %s10439_s29 = smul.u32 (!%p4953_p9), 4736, %s4959_s28  ;;  %s9724_s4 = sshll.u32 (!%p4953_p9), %s4959_s28, 5 }
 0x143   : > { %s4984_s5 = scalar_lea.vmem (!%p4953_p9), [#allocation3], %s9724_s4 }
 0x144   : > { %s12693_s7 = scalar_lea.vmem (!%p4953_p9), [#allocation2], %s10439_s29 }
 0x145   : > { %v10465_v18 = vld [vmem:[%s12693_s7 + $0x4] ss:$8 sps:$4 sm:$0xff] (!%p4953_p9)   ;;  %v10469_v20 = vld [vmem:[%s12693_s7] ss:$8 sps:$4 sm:$0xff] (!%p4953_p9)   ;;  %v10471_v22 = vld [vmem:[%s12693_s7 + $0x14] ss:$8 sps:$4 sm:$0xff] (!%p4953_p9)  }
 0x146   : > { %v10467_v19 = vld [vmem:[%s12693_s7 + $0x904] ss:$8 sps:$4 sm:$0xff] (!%p4953_p9)   ;;  %8781 = vmatprep.subr.bf16.mxu1 (!%p4953_p9), %v10465_v18  ;;  %v10470_v21 = vld [vmem:[%s12693_s7 + $0x900] ss:$8 sps:$4 sm:$0xff] (!%p4953_p9)   ;;  %v10473_v23 = vld [vmem:[%s12693_s7 + $0x914] ss:$8 sps:$4 sm:$0xff] (!%p4953_p9)  }
 0x147   : > { %9168 = vmatprep.subr.bf16.mxu0 (!%p4953_p9), %v10467_v19  ;;  %8782 = vmatpush1.bf16.msra.mxu1 (!%p4953_p9), %v10469_v20  ;;  %v10475_v24 = vld [vmem:[%s12693_s7 + $0x10] ss:$8 sps:$4 sm:$0xff] (!%p4953_p9)   ;;  %v10477_v26 = vld [vmem:[%s12693_s7 + $0x24] ss:$8 sps:$4 sm:$0xff] (!%p4953_p9)   ;;  %v10481_v28 = vld [vmem:[%s12693_s7 + $0x20] ss:$8 sps:$4 sm:$0xff] (!%p4953_p9)  }
 0x148   : > { %9169 = vmatpush1.bf16.msra.mxu0 %v10470_v21  ;;  %8783 = vmatprep.subr.bf16.mxu1 %v10471_v22  ;;  %v10476_v25 = vld [vmem:[%s12693_s7 + $0x910] ss:$8 sps:$4 sm:$0xff]   ;;  %v10479_v27 = vld [vmem:[%s12693_s7 + $0x924] ss:$8 sps:$4 sm:$0xff]   ;;  %v10482_v29 = vld [vmem:[%s12693_s7 + $0x920] ss:$8 sps:$4 sm:$0xff]  }
 0x149   : > { %9170 = vmatprep.subr.bf16.mxu0 %v10473_v23  ;;  %v10483_v30 = vld [vmem:[%s12693_s7 + $0x34] ss:$8 sps:$4 sm:$0xff]   ;;  %v10487_v32 = vld [vmem:[%s12693_s7 + $0x30] ss:$8 sps:$4 sm:$0xff]   ;;  %v10489_v34 = vld [vmem:[%s12693_s7 + $0x44] ss:$8 sps:$4 sm:$0xff]  }
 0x14a   : > { %v10485_v31 = vld [vmem:[%s12693_s7 + $0x934] ss:$8 sps:$4 sm:$0xff]   ;;  %v10488_v33 = vld [vmem:[%s12693_s7 + $0x930] ss:$8 sps:$4 sm:$0xff]   ;;  %v10491_v35 = vld [vmem:[%s12693_s7 + $0x944] ss:$8 sps:$4 sm:$0xff]  }
 0x14b   : > { %8784 = vmatpush1.bf16.msra.mxu1 %v10475_v24  ;;  %v10493_v36 = vld [vmem:[%s12693_s7 + $0x40] ss:$8 sps:$4 sm:$0xff]   ;;  %v10495_v38 = vld [vmem:[%s12693_s7 + $0x54] ss:$8 sps:$4 sm:$0xff]   ;;  %v10499_v40 = vld [vmem:[%s12693_s7 + $0x50] ss:$8 sps:$4 sm:$0xff]  }
 0x14c   : > { %9171 = vmatpush1.bf16.msra.mxu0 %v10476_v25  ;;  %8785 = vmatprep.subr.bf16.mxu1 %v10477_v26  ;;  %v10494_v37 = vld [vmem:[%s12693_s7 + $0x940] ss:$8 sps:$4 sm:$0xff]   ;;  %v10497_v39 = vld [vmem:[%s12693_s7 + $0x954] ss:$8 sps:$4 sm:$0xff]   ;;  %v10500_v41 = vld [vmem:[%s12693_s7 + $0x950] ss:$8 sps:$4 sm:$0xff]  }
 0x14d   : > { %9172 = vmatprep.subr.bf16.mxu0 %v10479_v27  ;;  %v10501_v42 = vld [vmem:[%s12693_s7 + $0x64] ss:$8 sps:$4 sm:$0xff]   ;;  %v10505_v44 = vld [vmem:[%s12693_s7 + $0x60] ss:$8 sps:$4 sm:$0xff]   ;;  %v10507_v46 = vld [vmem:[%s12693_s7 + $0x74] ss:$8 sps:$4 sm:$0xff]  }
 0x14e   : > { %v10503_v43 = vld [vmem:[%s12693_s7 + $0x964] ss:$8 sps:$4 sm:$0xff]   ;;  %v10506_v45 = vld [vmem:[%s12693_s7 + $0x960] ss:$8 sps:$4 sm:$0xff]   ;;  %v10509_v47 = vld [vmem:[%s12693_s7 + $0x974] ss:$8 sps:$4 sm:$0xff]  }
 0x14f   : > { %8786 = vmatpush1.bf16.msra.mxu1 %v10481_v28  ;;  %v10511_v48 = vld [vmem:[%s12693_s7 + $0x70] ss:$8 sps:$4 sm:$0xff]   ;;  %v10513_v50 = vld [vmem:[%s12693_s7 + $0x84] ss:$8 sps:$4 sm:$0xff]   ;;  %v10517_v52 = vld [vmem:[%s12693_s7 + $0x80] ss:$8 sps:$4 sm:$0xff]  }
 0x150   : > { %9173 = vmatpush1.bf16.msra.mxu0 %v10482_v29  ;;  %8787 = vmatprep.subr.bf16.mxu1 %v10483_v30  ;;  %v10512_v49 = vld [vmem:[%s12693_s7 + $0x970] ss:$8 sps:$4 sm:$0xff]   ;;  %v10515_v51 = vld [vmem:[%s12693_s7 + $0x984] ss:$8 sps:$4 sm:$0xff]   ;;  %v10518_v53 = vld [vmem:[%s12693_s7 + $0x980] ss:$8 sps:$4 sm:$0xff]  }
 0x151   : > { %9174 = vmatprep.subr.bf16.mxu0 %v10485_v31  ;;  %v10519_v54 = vld [vmem:[%s12693_s7 + $0x94] ss:$8 sps:$4 sm:$0xff]   ;;  %v10523_v56 = vld [vmem:[%s12693_s7 + $0x90] ss:$8 sps:$4 sm:$0xff]   ;;  %v10525_v58 = vld [vmem:[%s12693_s7 + $0xa4] ss:$8 sps:$4 sm:$0xff]  }
 0x152   : > { %v10521_v55 = vld [vmem:[%s12693_s7 + $0x994] ss:$8 sps:$4 sm:$0xff]   ;;  %v10524_v57 = vld [vmem:[%s12693_s7 + $0x990] ss:$8 sps:$4 sm:$0xff]   ;;  %v10527_v59 = vld [vmem:[%s12693_s7 + $0x9a4] ss:$8 sps:$4 sm:$0xff]  }
 0x153   : > { %8788 = vmatpush1.bf16.msra.mxu1 %v10487_v32  ;;  %v10529_v60 = vld [vmem:[%s12693_s7 + $0xa0] ss:$8 sps:$4 sm:$0xff]   ;;  %v10531_v62 = vld [vmem:[%s12693_s7 + $0xb4] ss:$8 sps:$4 sm:$0xff]   ;;  %v10535_v0 = vld [vmem:[%s12693_s7 + $0xb0] ss:$8 sps:$4 sm:$0xff]  }
 0x154   : > { %9175 = vmatpush1.bf16.msra.mxu0 %v10488_v33  ;;  %8789 = vmatprep.subr.bf16.mxu1 %v10489_v34  ;;  %v10530_v61 = vld [vmem:[%s12693_s7 + $0x9a0] ss:$8 sps:$4 sm:$0xff]   ;;  %v10533_v63 = vld [vmem:[%s12693_s7 + $0x9b4] ss:$8 sps:$4 sm:$0xff]   ;;  %v10536_v1 = vld [vmem:[%s12693_s7 + $0x9b0] ss:$8 sps:$4 sm:$0xff]  }
 0x155   : > { %9176 = vmatprep.subr.bf16.mxu0 %v10491_v35  ;;  %v10537_v2 = vld [vmem:[%s12693_s7 + $0xc4] ss:$8 sps:$4 sm:$0xff]   ;;  %v10541_v4 = vld [vmem:[%s12693_s7 + $0xc0] ss:$8 sps:$4 sm:$0xff]   ;;  %v10543_v6 = vld [vmem:[%s12693_s7 + $0xd4] ss:$8 sps:$4 sm:$0xff]  }
 0x156   : > { %v10539_v3 = vld [vmem:[%s12693_s7 + $0x9c4] ss:$8 sps:$4 sm:$0xff]   ;;  %v10542_v5 = vld [vmem:[%s12693_s7 + $0x9c0] ss:$8 sps:$4 sm:$0xff]   ;;  %v10545_v7 = vld [vmem:[%s12693_s7 + $0x9d4] ss:$8 sps:$4 sm:$0xff]  }
 0x157   : > { %8790 = vmatpush1.bf16.msra.mxu1 %v10493_v36  ;;  %v10547_v8 = vld [vmem:[%s12693_s7 + $0xd0] ss:$8 sps:$4 sm:$0xff]   ;;  %v10549_v10 = vld [vmem:[%s12693_s7 + $0xe4] ss:$8 sps:$4 sm:$0xff]   ;;  %v10553_v12 = vld [vmem:[%s12693_s7 + $0xe0] ss:$8 sps:$4 sm:$0xff]  }
 0x158   : > { %9177 = vmatpush1.bf16.msra.mxu0 %v10494_v37  ;;  %8791 = vmatprep.subr.bf16.mxu1 %v10495_v38  ;;  %v10548_v9 = vld [vmem:[%s12693_s7 + $0x9d0] ss:$8 sps:$4 sm:$0xff]   ;;  %v10551_v11 = vld [vmem:[%s12693_s7 + $0x9e4] ss:$8 sps:$4 sm:$0xff]   ;;  %v10554_v13 = vld [vmem:[%s12693_s7 + $0x9e0] ss:$8 sps:$4 sm:$0xff]  }
 0x159   : > { %9178 = vmatprep.subr.bf16.mxu0 %v10497_v39  ;;  %v10555_v14 = vld [vmem:[%s12693_s7 + $0xf4] ss:$8 sps:$4 sm:$0xff]   ;;  %v10559_v16 = vld [vmem:[%s12693_s7 + $0xf0] ss:$8 sps:$4 sm:$0xff]   ;;  %v10566_v18 = vld [vmem:[%s12693_s7 + $0x104] ss:$8 sps:$4 sm:$0xff]  }
 0x15a   : > { %v10557_v15 = vld [vmem:[%s12693_s7 + $0x9f4] ss:$8 sps:$4 sm:$0xff]   ;;  %v10560_v17 = vld [vmem:[%s12693_s7 + $0x9f0] ss:$8 sps:$4 sm:$0xff]   ;;  %v10572_v19 = vld [vmem:[%s12693_s7 + $0xa04] ss:$8 sps:$4 sm:$0xff]  }
 0x15b   : > { %8792 = vmatpush1.bf16.msra.mxu1 %v10499_v40  ;;  %v10561_v20 = vld [vmem:[%s13414_s0] ss:$148 sps:$4 sm:$0xff]   ;;  %v10567_v21 = vld [vmem:[%s13414_s0 + $0x48] ss:$148 sps:$4 sm:$0xff]   ;;  %v10573_v26 = vld [vmem:[%s12693_s7 + $0x110] ss:$8 sps:$4 sm:$0xff]  }
 0x15c   : > { %9179 = vmatpush1.bf16.msra.mxu0 %v10500_v41  ;;  %8793 = vmatprep.subr.bf16.mxu1 %v10501_v42  ;;  %v10564_v22 = vld [vmem:[%s12693_s7 + $0x100] ss:$8 sps:$4 sm:$0xff]   ;;  %v10575_v24 = vld [vmem:[%s12693_s7 + $0x114] ss:$8 sps:$4 sm:$0xff]   ;;  %v10576_v27 = vld [vmem:[%s12693_s7 + $0xa10] ss:$8 sps:$4 sm:$0xff]  }
 0x15d   : > { %9180 = vmatprep.subr.bf16.mxu0 %v10503_v43  ;;  %v10570_v23 = vld [vmem:[%s12693_s7 + $0xa00] ss:$8 sps:$4 sm:$0xff]   ;;  %v10578_v25 = vld [vmem:[%s12693_s7 + $0xa14] ss:$8 sps:$4 sm:$0xff]   ;;  %v10581_v28 = vld [vmem:[%s12693_s7 + $0x124] ss:$8 sps:$4 sm:$0xff]  }
 0x15e   : > { %v10584_v29 = vld [vmem:[%s12693_s7 + $0xa24] ss:$8 sps:$4 sm:$0xff]   ;;  %v10579_v30 = vld [vmem:[%s12693_s7 + $0x120] ss:$8 sps:$4 sm:$0xff]   ;;  %v10587_v32 = vld [vmem:[%s12693_s7 + $0x134] ss:$8 sps:$4 sm:$0xff]  }
 0x15f   : > { %8794 = vmatpush1.bf16.msra.mxu1 %v10505_v44  ;;  %v10582_v31 = vld [vmem:[%s12693_s7 + $0xa20] ss:$8 sps:$4 sm:$0xff]   ;;  %v10590_v33 = vld [vmem:[%s12693_s7 + $0xa34] ss:$8 sps:$4 sm:$0xff]   ;;  %v10585_v34 = vld [vmem:[%s12693_s7 + $0x130] ss:$8 sps:$4 sm:$0xff]  }
 0x160   : > { %9181 = vmatpush1.bf16.msra.mxu0 %v10506_v45  ;;  %8795 = vmatprep.subr.bf16.mxu1 %v10507_v46  ;;  %v10588_v35 = vld [vmem:[%s12693_s7 + $0xa30] ss:$8 sps:$4 sm:$0xff]   ;;  %v10593_v36 = vld [vmem:[%s12693_s7 + $0x144] ss:$8 sps:$4 sm:$0xff]   ;;  %v10591_v38 = vld [vmem:[%s12693_s7 + $0x140] ss:$8 sps:$4 sm:$0xff]  }
 0x161   : > { %9182 = vmatprep.subr.bf16.mxu0 %v10509_v47  ;;  %v10596_v37 = vld [vmem:[%s12693_s7 + $0xa44] ss:$8 sps:$4 sm:$0xff]   ;;  %v10594_v39 = vld [vmem:[%s12693_s7 + $0xa40] ss:$8 sps:$4 sm:$0xff]   ;;  %v10599_v40 = vld [vmem:[%s12693_s7 + $0x154] ss:$8 sps:$4 sm:$0xff]  }
 0x162   : > { %v10602_v41 = vld [vmem:[%s12693_s7 + $0xa54] ss:$8 sps:$4 sm:$0xff]   ;;  %v10597_v42 = vld [vmem:[%s12693_s7 + $0x150] ss:$8 sps:$4 sm:$0xff]   ;;  %v10605_v44 = vld [vmem:[%s12693_s7 + $0x164] ss:$8 sps:$4 sm:$0xff]  }
 0x163   : > { %8796 = vmatpush1.bf16.msra.mxu1 %v10511_v48  ;;  %v10600_v43 = vld [vmem:[%s12693_s7 + $0xa50] ss:$8 sps:$4 sm:$0xff]   ;;  %v10608_v45 = vld [vmem:[%s12693_s7 + $0xa64] ss:$8 sps:$4 sm:$0xff]   ;;  %v10603_v47 = vld [vmem:[%s12693_s7 + $0x160] ss:$8 sps:$4 sm:$0xff]  }
 0x164   : > { %9183 = vmatpush1.bf16.msra.mxu0 %v10512_v49  ;;  %8797 = vmatprep.subr.bf16.mxu1 %v10513_v50  ;;  %v10665_v46 = vld [vmem:[%s13414_s0 + $0xc] ss:$148 sps:$4 sm:$0xff]   ;;  %v10671_v49 = vld [vmem:[%s13414_s0 + $0x54] ss:$148 sps:$4 sm:$0xff]   ;;  %s13423_s27 = smov (!%p4987_p10, %s9725_s27), 3  ;;  %s10361_s12 = sshll.u32 (%p11484_p5), %s11469_s15, 4 }
 0x165   : > { %9184 = vmatprep.subr.bf16.mxu0 %v10515_v51  ;;  %v10606_v48 = vld [vmem:[%s12693_s7 + $0xa60] ss:$8 sps:$4 sm:$0xff]   ;;  %v10611_v50 = vld [vmem:[%s12693_s7 + $0x174] ss:$8 sps:$4 sm:$0xff]   ;;  %s9619_s8 = scalar_lea.vmem (%p11484_p5), %s13417_s3, %s10361_s12 }
 0x166   : > { %v10614_v51 = vld [vmem:[%s12693_s7 + $0xa74] ss:$8 sps:$4 sm:$0xff]  }
 0x167   : > { %8798 = vmatpush1.bf16.msra.mxu1 %v10517_v52  ;;  %v10609_v52 = vld [vmem:[%s12693_s7 + $0x170] ss:$8 sps:$4 sm:$0xff]  }
 0x168   : > { %9185 = vmatpush1.bf16.msra.mxu0 %v10518_v53  ;;  %8799 = vmatprep.subr.bf16.mxu1 %v10519_v54  ;;  %v10612_v53 = vld [vmem:[%s12693_s7 + $0xa70] ss:$8 sps:$4 sm:$0xff]   ;;  %v10617_v54 = vld [vmem:[%s12693_s7 + $0x184] ss:$8 sps:$4 sm:$0xff]  }
 0x169   : > { %9186 = vmatprep.subr.bf16.mxu0 %v10521_v55  ;;  %v10620_v55 = vld [vmem:[%s12693_s7 + $0xa84] ss:$8 sps:$4 sm:$0xff]  }
 0x16b   : > { %8800 = vmatpush1.bf16.msra.mxu1 %v10523_v56  ;;  %v10615_v56 = vld [vmem:[%s12693_s7 + $0x180] ss:$8 sps:$4 sm:$0xff]  }
 0x16c   : > { %9187 = vmatpush1.bf16.msra.mxu0 %v10524_v57  ;;  %8801 = vmatprep.subr.bf16.mxu1 %v10525_v58  ;;  %v10618_v57 = vld [vmem:[%s12693_s7 + $0xa80] ss:$8 sps:$4 sm:$0xff]   ;;  %v10623_v58 = vld [vmem:[%s12693_s7 + $0x194] ss:$8 sps:$4 sm:$0xff]  }
 0x16d   : > { %9188 = vmatprep.subr.bf16.mxu0 %v10527_v59  ;;  %v10626_v59 = vld [vmem:[%s12693_s7 + $0xa94] ss:$8 sps:$4 sm:$0xff]  }
 0x16f   : > { %8802 = vmatpush1.bf16.msra.mxu1 %v10529_v60  ;;  %v10621_v60 = vld [vmem:[%s12693_s7 + $0x190] ss:$8 sps:$4 sm:$0xff]  }
 0x170   : > { %9189 = vmatpush1.bf16.msra.mxu0 %v10530_v61  ;;  %8803 = vmatprep.subr.bf16.mxu1 %v10531_v62  ;;  %v10624_v61 = vld [vmem:[%s12693_s7 + $0xa90] ss:$8 sps:$4 sm:$0xff]   ;;  %v10629_v62 = vld [vmem:[%s12693_s7 + $0x1a4] ss:$8 sps:$4 sm:$0xff]  }
 0x171   : > { %9190 = vmatprep.subr.bf16.mxu0 %v10533_v63  ;;  %v10632_v63 = vld [vmem:[%s12693_s7 + $0xaa4] ss:$8 sps:$4 sm:$0xff]  }
 0x173   : > { %8804 = vmatpush1.bf16.msra.mxu1 %v10535_v0  ;;  %v10627_v0 = vld [vmem:[%s12693_s7 + $0x1a0] ss:$8 sps:$4 sm:$0xff]  }
 0x174   : > { %9191 = vmatpush1.bf16.msra.mxu0 %v10536_v1  ;;  %8805 = vmatprep.subr.bf16.mxu1 %v10537_v2  ;;  %v10630_v1 = vld [vmem:[%s12693_s7 + $0xaa0] ss:$8 sps:$4 sm:$0xff]   ;;  %v10635_v2 = vld [vmem:[%s12693_s7 + $0x1b4] ss:$8 sps:$4 sm:$0xff]  }
 0x175   : > { %9192 = vmatprep.subr.bf16.mxu0 %v10539_v3  ;;  %v10638_v3 = vld [vmem:[%s12693_s7 + $0xab4] ss:$8 sps:$4 sm:$0xff]  }
 0x177   : > { %8806 = vmatpush1.bf16.msra.mxu1 %v10541_v4  ;;  %v10633_v4 = vld [vmem:[%s12693_s7 + $0x1b0] ss:$8 sps:$4 sm:$0xff]  }
 0x178   : > { %9193 = vmatpush1.bf16.msra.mxu0 %v10542_v5  ;;  %8807 = vmatprep.subr.bf16.mxu1 %v10543_v6  ;;  %v10636_v5 = vld [vmem:[%s12693_s7 + $0xab0] ss:$8 sps:$4 sm:$0xff]   ;;  %v10641_v6 = vld [vmem:[%s12693_s7 + $0x1c4] ss:$8 sps:$4 sm:$0xff]  }
 0x179   : > { %9194 = vmatprep.subr.bf16.mxu0 %v10545_v7  ;;  %v10644_v7 = vld [vmem:[%s12693_s7 + $0xac4] ss:$8 sps:$4 sm:$0xff]  }
 0x17b   : > { %8808 = vmatpush1.bf16.msra.mxu1 %v10547_v8  ;;  %v10639_v8 = vld [vmem:[%s12693_s7 + $0x1c0] ss:$8 sps:$4 sm:$0xff]  }
 0x17c   : > { %9195 = vmatpush1.bf16.msra.mxu0 %v10548_v9  ;;  %8809 = vmatprep.subr.bf16.mxu1 %v10549_v10  ;;  %v10642_v9 = vld [vmem:[%s12693_s7 + $0xac0] ss:$8 sps:$4 sm:$0xff]   ;;  %v10647_v10 = vld [vmem:[%s12693_s7 + $0x1d4] ss:$8 sps:$4 sm:$0xff]  }
 0x17d   : > { %9196 = vmatprep.subr.bf16.mxu0 %v10551_v11  ;;  %v10650_v11 = vld [vmem:[%s12693_s7 + $0xad4] ss:$8 sps:$4 sm:$0xff]  }
 0x17f   : > { %8810 = vmatpush1.bf16.msra.mxu1 %v10553_v12  ;;  %v10645_v12 = vld [vmem:[%s12693_s7 + $0x1d0] ss:$8 sps:$4 sm:$0xff]  }
 0x180   : > { %9197 = vmatpush1.bf16.msra.mxu0 %v10554_v13  ;;  %8811 = vmatprep.subr.bf16.mxu1 %v10555_v14  ;;  %v10648_v13 = vld [vmem:[%s12693_s7 + $0xad0] ss:$8 sps:$4 sm:$0xff]   ;;  %v10653_v14 = vld [vmem:[%s12693_s7 + $0x1e4] ss:$8 sps:$4 sm:$0xff]  }
 0x181   : > { %9198 = vmatprep.subr.bf16.mxu0 %v10557_v15  ;;  %v10656_v15 = vld [vmem:[%s12693_s7 + $0xae4] ss:$8 sps:$4 sm:$0xff]  }
 0x183   : > { %8812 = vmatpush1.bf16.msra.mxu1 %v10559_v16  ;;  %v10651_v16 = vld [vmem:[%s12693_s7 + $0x1e0] ss:$8 sps:$4 sm:$0xff]  }
 0x184   : > { %9199 = vmatpush1.bf16.msra.mxu0 %v10560_v17  ;;  %8824 = vmatprep.subr.bf16.mxu1 %v10566_v18  ;;  %v10654_v17 = vld [vmem:[%s12693_s7 + $0xae0] ss:$8 sps:$4 sm:$0xff]   ;;  %v10659_v18 = vld [vmem:[%s12693_s7 + $0x1f4] ss:$8 sps:$4 sm:$0xff]  }
 0x185   : > { %9211 = vmatprep.subr.bf16.mxu0 %v10572_v19  ;;  %v10662_v19 = vld [vmem:[%s12693_s7 + $0xaf4] ss:$8 sps:$4 sm:$0xff]  }
 0x186   : > { %8814 = vmatmul.mubr.bf16.vlgmr.msra.gmra.mrb[0].mxu1 %v10561_v20  ;;  %v10657_v20 = vld [vmem:[%s12693_s7 + $0x1f0] ss:$8 sps:$4 sm:$0xff]  }
 0x187   : > { %9201 = vmatmul.mubr.bf16.vlgmr.msra.gmra.mrb[0].mxu0 %v10567_v21  ;;  %8825 = vmatpush1.bf16.msra.mxu1 %v10564_v22  ;;  %v10660_v21 = vld [vmem:[%s12693_s7 + $0xaf0] ss:$8 sps:$4 sm:$0xff]   ;;  %v10668_v22 = vld [vmem:[%s12693_s7 + $0x204] ss:$8 sps:$4 sm:$0xff]  }
 0x188   : > { %9212 = vmatpush1.bf16.msra.mxu0 %v10570_v23  ;;  %8826 = vmatprep.subr.bf16.mxu1 %v10575_v24  ;;  %v10674_v23 = vld [vmem:[%s12693_s7 + $0xb04] ss:$8 sps:$4 sm:$0xff]   ;;  %v10663_v24 = vld [vmem:[%s13414_s0 + $0x8] ss:$148 sps:$4 sm:$0xff]  }
 0x189   : > { %9213 = vmatprep.subr.bf16.mxu0 %v10578_v25  ;;  %8856 = vmatprep.mubr.bf16.mxu1 %v10665_v46  ;;  %v10666_v25 = vld [vmem:[%s12693_s7 + $0x200] ss:$8 sps:$4 sm:$0xff]   ;;  %v10701_v46 = vld [vmem:[%s12693_s7 + $0x254] ss:$8 sps:$4 sm:$0xff]  }
 0x18a   : > { %9243 = vmatprep.mubr.bf16.mxu0 %v10671_v49  ;;  %v10702_v49 = vld [vmem:[%s12693_s7 + $0xb50] ss:$8 sps:$4 sm:$0xff]  }
 0x18b   : > { %8827 = vmatpush1.bf16.msra.mxu1 %v10573_v26  ;;  %v10669_v26 = vld [vmem:[%s13414_s0 + $0x50] ss:$148 sps:$4 sm:$0xff]  }
 0x18c   : > { %9214 = vmatpush1.bf16.msra.mxu0 %v10576_v27  ;;  %8828 = vmatprep.subr.bf16.mxu1 %v10581_v28  ;;  %v10672_v27 = vld [vmem:[%s12693_s7 + $0xb00] ss:$8 sps:$4 sm:$0xff]   ;;  %v10677_v28 = vld [vmem:[%s12693_s7 + $0x214] ss:$8 sps:$4 sm:$0xff]  }
 0x18d   : > { %9215 = vmatprep.subr.bf16.mxu0 %v10584_v29  ;;  %v10680_v29 = vld [vmem:[%s12693_s7 + $0xb14] ss:$8 sps:$4 sm:$0xff]  }
 0x18f   : > { %8829 = vmatpush1.bf16.msra.mxu1 %v10579_v30  ;;  %v10675_v30 = vld [vmem:[%s12693_s7 + $0x210] ss:$8 sps:$4 sm:$0xff]  }
 0x190   : > { %9216 = vmatpush1.bf16.msra.mxu0 %v10582_v31  ;;  %8830 = vmatprep.subr.bf16.mxu1 %v10587_v32  ;;  %v10767_v31 = vld [vmem:[%s13414_s0 + $0x14] ss:$148 sps:$4 sm:$0xff]   ;;  %v10678_v32 = vld [vmem:[%s12693_s7 + $0xb10] ss:$8 sps:$4 sm:$0xff]  }
 0x191   : > { %9217 = vmatprep.subr.bf16.mxu0 %v10590_v33  ;;  %v10683_v33 = vld [vmem:[%s12693_s7 + $0x224] ss:$8 sps:$4 sm:$0xff]  }
 0x193   : > { %8831 = vmatpush1.bf16.msra.mxu1 %v10585_v34  ;;  %v10686_v34 = vld [vmem:[%s12693_s7 + $0xb24] ss:$8 sps:$4 sm:$0xff]  }
 0x194   : > { %9218 = vmatpush1.bf16.msra.mxu0 %v10588_v35  ;;  %8832 = vmatprep.subr.bf16.mxu1 %v10593_v36  ;;  %v10773_v35 = vld [vmem:[%s13414_s0 + $0x5c] ss:$148 sps:$4 sm:$0xff]   ;;  %v10681_v36 = vld [vmem:[%s12693_s7 + $0x220] ss:$8 sps:$4 sm:$0xff]  }
 0x195   : > { %9219 = vmatprep.subr.bf16.mxu0 %v10596_v37  ;;  %v10684_v37 = vld [vmem:[%s12693_s7 + $0xb20] ss:$8 sps:$4 sm:$0xff]  }
 0x197   : > { %8833 = vmatpush1.bf16.msra.mxu1 %v10591_v38  ;;  %v10689_v38 = vld [vmem:[%s12693_s7 + $0x234] ss:$8 sps:$4 sm:$0xff]  }
 0x198   : > { %9220 = vmatpush1.bf16.msra.mxu0 %v10594_v39  ;;  %8834 = vmatprep.subr.bf16.mxu1 %v10599_v40  ;;  %v10692_v39 = vld [vmem:[%s12693_s7 + $0xb34] ss:$8 sps:$4 sm:$0xff]   ;;  %v10687_v40 = vld [vmem:[%s12693_s7 + $0x230] ss:$8 sps:$4 sm:$0xff]  }
 0x199   : > { %9221 = vmatprep.subr.bf16.mxu0 %v10602_v41  ;;  %v10690_v41 = vld [vmem:[%s12693_s7 + $0xb30] ss:$8 sps:$4 sm:$0xff]  }
 0x19b   : > { %8835 = vmatpush1.bf16.msra.mxu1 %v10597_v42  ;;  %v10695_v42 = vld [vmem:[%s12693_s7 + $0x244] ss:$8 sps:$4 sm:$0xff]  }
 0x19c   : > { %9222 = vmatpush1.bf16.msra.mxu0 %v10600_v43  ;;  %8836 = vmatprep.subr.bf16.mxu1 %v10605_v44  ;;  %v10698_v43 = vld [vmem:[%s12693_s7 + $0xb44] ss:$8 sps:$4 sm:$0xff]   ;;  %v10693_v44 = vld [vmem:[%s12693_s7 + $0x240] ss:$8 sps:$4 sm:$0xff]  }
 0x19d   : > { %9223 = vmatprep.subr.bf16.mxu0 %v10608_v45  ;;  %v10696_v45 = vld [vmem:[%s12693_s7 + $0xb40] ss:$8 sps:$4 sm:$0xff]  }
 0x19f   : > { %8837 = vmatpush1.bf16.msra.mxu1 %v10603_v47  ;;  %v10704_v47 = vld [vmem:[%s12693_s7 + $0xb54] ss:$8 sps:$4 sm:$0xff]  }
 0x1a0   : > { %9224 = vmatpush1.bf16.msra.mxu0 %v10606_v48  ;;  %8838 = vmatprep.subr.bf16.mxu1 %v10611_v50  ;;  %v10699_v48 = vld [vmem:[%s12693_s7 + $0x250] ss:$8 sps:$4 sm:$0xff]   ;;  %v10707_v50 = vld [vmem:[%s12693_s7 + $0x264] ss:$8 sps:$4 sm:$0xff]  }
 0x1a1   : > { %9225 = vmatprep.subr.bf16.mxu0 %v10614_v51  ;;  %v10710_v51 = vld [vmem:[%s12693_s7 + $0xb64] ss:$8 sps:$4 sm:$0xff]  }
 0x1a3   : > { %8839 = vmatpush1.bf16.msra.mxu1 %v10609_v52  ;;  %v10705_v52 = vld [vmem:[%s12693_s7 + $0x260] ss:$8 sps:$4 sm:$0xff]  }
 0x1a4   : > { %9226 = vmatpush1.bf16.msra.mxu0 %v10612_v53  ;;  %8840 = vmatprep.subr.bf16.mxu1 %v10617_v54  ;;  %v10708_v53 = vld [vmem:[%s12693_s7 + $0xb60] ss:$8 sps:$4 sm:$0xff]   ;;  %v10713_v54 = vld [vmem:[%s12693_s7 + $0x274] ss:$8 sps:$4 sm:$0xff]  }
 0x1a5   : > { %9227 = vmatprep.subr.bf16.mxu0 %v10620_v55  ;;  %v10716_v55 = vld [vmem:[%s12693_s7 + $0xb74] ss:$8 sps:$4 sm:$0xff]  }
 0x1a7   : > { %8841 = vmatpush1.bf16.msra.mxu1 %v10615_v56  ;;  %v10711_v56 = vld [vmem:[%s12693_s7 + $0x270] ss:$8 sps:$4 sm:$0xff]  }
 0x1a8   : > { %9228 = vmatpush1.bf16.msra.mxu0 %v10618_v57  ;;  %8842 = vmatprep.subr.bf16.mxu1 %v10623_v58  ;;  %v10714_v57 = vld [vmem:[%s12693_s7 + $0xb70] ss:$8 sps:$4 sm:$0xff]   ;;  %v10719_v58 = vld [vmem:[%s12693_s7 + $0x284] ss:$8 sps:$4 sm:$0xff]  }
 0x1a9   : > { %9229 = vmatprep.subr.bf16.mxu0 %v10626_v59  ;;  %v10722_v59 = vld [vmem:[%s12693_s7 + $0xb84] ss:$8 sps:$4 sm:$0xff]  }
 0x1ab   : > { %8843 = vmatpush1.bf16.msra.mxu1 %v10621_v60  ;;  %v10717_v60 = vld [vmem:[%s12693_s7 + $0x280] ss:$8 sps:$4 sm:$0xff]  }
 0x1ac   : > { %9230 = vmatpush1.bf16.msra.mxu0 %v10624_v61  ;;  %8844 = vmatprep.subr.bf16.mxu1 %v10629_v62  ;;  %v10720_v61 = vld [vmem:[%s12693_s7 + $0xb80] ss:$8 sps:$4 sm:$0xff]   ;;  %v10725_v62 = vld [vmem:[%s12693_s7 + $0x294] ss:$8 sps:$4 sm:$0xff]  }
 0x1ad   : > { %9231 = vmatprep.subr.bf16.mxu0 %v10632_v63  ;;  %v10728_v63 = vld [vmem:[%s12693_s7 + $0xb94] ss:$8 sps:$4 sm:$0xff]  }
 0x1af   : > { %8845 = vmatpush1.bf16.msra.mxu1 %v10627_v0  ;;  %v10723_v0 = vld [vmem:[%s12693_s7 + $0x290] ss:$8 sps:$4 sm:$0xff]  }
 0x1b0   : > { %9232 = vmatpush1.bf16.msra.mxu0 %v10630_v1  ;;  %8846 = vmatprep.subr.bf16.mxu1 %v10635_v2  ;;  %v10726_v1 = vld [vmem:[%s12693_s7 + $0xb90] ss:$8 sps:$4 sm:$0xff]   ;;  %v10731_v2 = vld [vmem:[%s12693_s7 + $0x2a4] ss:$8 sps:$4 sm:$0xff]  }
 0x1b1   : > { %9233 = vmatprep.subr.bf16.mxu0 %v10638_v3  ;;  %v10734_v3 = vld [vmem:[%s12693_s7 + $0xba4] ss:$8 sps:$4 sm:$0xff]  }
 0x1b3   : > { %8847 = vmatpush1.bf16.msra.mxu1 %v10633_v4  ;;  %v10729_v4 = vld [vmem:[%s12693_s7 + $0x2a0] ss:$8 sps:$4 sm:$0xff]  }
 0x1b4   : > { %9234 = vmatpush1.bf16.msra.mxu0 %v10636_v5  ;;  %8848 = vmatprep.subr.bf16.mxu1 %v10641_v6  ;;  %v10732_v5 = vld [vmem:[%s12693_s7 + $0xba0] ss:$8 sps:$4 sm:$0xff]   ;;  %v10737_v6 = vld [vmem:[%s12693_s7 + $0x2b4] ss:$8 sps:$4 sm:$0xff]  }
 0x1b5   : > { %9235 = vmatprep.subr.bf16.mxu0 %v10644_v7  ;;  %v10740_v7 = vld [vmem:[%s12693_s7 + $0xbb4] ss:$8 sps:$4 sm:$0xff]  }
 0x1b7   : > { %8849 = vmatpush1.bf16.msra.mxu1 %v10639_v8  ;;  %v10735_v8 = vld [vmem:[%s12693_s7 + $0x2b0] ss:$8 sps:$4 sm:$0xff]  }
 0x1b8   : > { %9236 = vmatpush1.bf16.msra.mxu0 %v10642_v9  ;;  %8850 = vmatprep.subr.bf16.mxu1 %v10647_v10  ;;  %v10738_v9 = vld [vmem:[%s12693_s7 + $0xbb0] ss:$8 sps:$4 sm:$0xff]   ;;  %v10743_v10 = vld [vmem:[%s12693_s7 + $0x2c4] ss:$8 sps:$4 sm:$0xff]  }
 0x1b9   : > { %9237 = vmatprep.subr.bf16.mxu0 %v10650_v11  ;;  %v10746_v11 = vld [vmem:[%s12693_s7 + $0xbc4] ss:$8 sps:$4 sm:$0xff]  }
 0x1bb   : > { %8851 = vmatpush1.bf16.msra.mxu1 %v10645_v12  ;;  %v10741_v12 = vld [vmem:[%s12693_s7 + $0x2c0] ss:$8 sps:$4 sm:$0xff]  }
 0x1bc   : > { %9238 = vmatpush1.bf16.msra.mxu0 %v10648_v13  ;;  %8852 = vmatprep.subr.bf16.mxu1 %v10653_v14  ;;  %v10744_v13 = vld [vmem:[%s12693_s7 + $0xbc0] ss:$8 sps:$4 sm:$0xff]   ;;  %v10749_v14 = vld [vmem:[%s12693_s7 + $0x2d4] ss:$8 sps:$4 sm:$0xff]  }
 0x1bd   : > { %9239 = vmatprep.subr.bf16.mxu0 %v10656_v15  ;;  %v10752_v15 = vld [vmem:[%s12693_s7 + $0xbd4] ss:$8 sps:$4 sm:$0xff]  }
 0x1bf   : > { %8853 = vmatpush1.bf16.msra.mxu1 %v10651_v16  ;;  %v10747_v16 = vld [vmem:[%s12693_s7 + $0x2d0] ss:$8 sps:$4 sm:$0xff]  }
 0x1c0   : > { %9240 = vmatpush1.bf16.msra.mxu0 %v10654_v17  ;;  %8854 = vmatprep.subr.bf16.mxu1 %v10659_v18  ;;  %v10750_v17 = vld [vmem:[%s12693_s7 + $0xbd0] ss:$8 sps:$4 sm:$0xff]   ;;  %v10755_v18 = vld [vmem:[%s12693_s7 + $0x2e4] ss:$8 sps:$4 sm:$0xff]  }
 0x1c1   : > { %9241 = vmatprep.subr.bf16.mxu0 %v10662_v19  ;;  %v10758_v19 = vld [vmem:[%s12693_s7 + $0xbe4] ss:$8 sps:$4 sm:$0xff]  }
 0x1c3   : > { %8855 = vmatpush1.bf16.msra.mxu1 %v10657_v20  ;;  %v10753_v20 = vld [vmem:[%s12693_s7 + $0x2e0] ss:$8 sps:$4 sm:$0xff]  }
 0x1c4   : > { %9242 = vmatpush1.bf16.msra.mxu0 %v10660_v21  ;;  %8867 = vmatprep.subr.bf16.mxu1 %v10668_v22  ;;  %v10756_v21 = vld [vmem:[%s12693_s7 + $0xbe0] ss:$8 sps:$4 sm:$0xff]   ;;  %v10761_v22 = vld [vmem:[%s12693_s7 + $0x2f4] ss:$8 sps:$4 sm:$0xff]  }
 0x1c5   : > { %9254 = vmatprep.subr.bf16.mxu0 %v10674_v23  ;;  %v10764_v23 = vld [vmem:[%s12693_s7 + $0xbf4] ss:$8 sps:$4 sm:$0xff]  }
 0x1c6   : > { %8857 = vmatmul.mubr.bf16.vlgmr.msra.gmra.mrb[0].mxu1 %v10663_v24  ;;  %v10759_v24 = vld [vmem:[%s12693_s7 + $0x2f0] ss:$8 sps:$4 sm:$0xff]  }
 0x1c7   : > { %9244 = vmatmul.mubr.bf16.vlgmr.msra.gmra.mrb[0].mxu0 %v10669_v26  ;;  %8868 = vmatpush1.bf16.msra.mxu1 %v10666_v25  ;;  %v10762_v25 = vld [vmem:[%s12693_s7 + $0xbf0] ss:$8 sps:$4 sm:$0xff]   ;;  %v10770_v26 = vld [vmem:[%s12693_s7 + $0x304] ss:$8 sps:$4 sm:$0xff]  }
 0x1c8   : > { %9255 = vmatpush1.bf16.msra.mxu0 %v10672_v27  ;;  %8869 = vmatprep.subr.bf16.mxu1 %v10677_v28  ;;  %v10776_v27 = vld [vmem:[%s12693_s7 + $0xc04] ss:$8 sps:$4 sm:$0xff]  }
 0x1c9   : > { %9256 = vmatprep.subr.bf16.mxu0 %v10680_v29  ;;  %8899 = vmatprep.mubr.bf16.mxu1 %v10767_v31  ;;  %v10765_v28 = vld [vmem:[%s13414_s0 + $0x10] ss:$148 sps:$4 sm:$0xff]   ;;  %v10768_v29 = vld [vmem:[%s12693_s7 + $0x300] ss:$8 sps:$4 sm:$0xff]  }
 0x1ca   : > { %9286 = vmatprep.mubr.bf16.mxu0 %v10773_v35  ;;  %v10774_v31 = vld [vmem:[%s12693_s7 + $0xc00] ss:$8 sps:$4 sm:$0xff]   ;;  %v10875_v35 = vld [vmem:[%s13414_s0 + $0x64] ss:$148 sps:$4 sm:$0xff]  }
 0x1cb   : > { %8870 = vmatpush1.bf16.msra.mxu1 %v10675_v30  ;;  %v10771_v30 = vld [vmem:[%s13414_s0 + $0x58] ss:$148 sps:$4 sm:$0xff]  }
 0x1cc   : > { %9257 = vmatpush1.bf16.msra.mxu0 %v10678_v32  ;;  %8871 = vmatprep.subr.bf16.mxu1 %v10683_v33  ;;  %v10779_v32 = vld [vmem:[%s12693_s7 + $0x314] ss:$8 sps:$4 sm:$0xff]  }
 0x1cd   : > { %9258 = vmatprep.subr.bf16.mxu0 %v10686_v34  ;;  %v10782_v33 = vld [vmem:[%s12693_s7 + $0xc14] ss:$8 sps:$4 sm:$0xff]  }
 0x1ce   : > { %v10869_v34 = vld [vmem:[%s13414_s0 + $0x1c] ss:$148 sps:$4 sm:$0xff]  }
 0x1cf   : > { %8872 = vmatpush1.bf16.msra.mxu1 %v10681_v36  ;;  %v10777_v36 = vld [vmem:[%s12693_s7 + $0x310] ss:$8 sps:$4 sm:$0xff]  }
 0x1d0   : > { %9259 = vmatpush1.bf16.msra.mxu0 %v10684_v37  ;;  %8873 = vmatprep.subr.bf16.mxu1 %v10689_v38  ;;  %v10780_v37 = vld [vmem:[%s12693_s7 + $0xc10] ss:$8 sps:$4 sm:$0xff]   ;;  %v10785_v38 = vld [vmem:[%s12693_s7 + $0x324] ss:$8 sps:$4 sm:$0xff]  }
 0x1d1   : > { %9260 = vmatprep.subr.bf16.mxu0 %v10692_v39  ;;  %v10788_v39 = vld [vmem:[%s12693_s7 + $0xc24] ss:$8 sps:$4 sm:$0xff]  }
 0x1d3   : > { %8874 = vmatpush1.bf16.msra.mxu1 %v10687_v40  ;;  %v10783_v40 = vld [vmem:[%s12693_s7 + $0x320] ss:$8 sps:$4 sm:$0xff]  }
 0x1d4   : > { %9261 = vmatpush1.bf16.msra.mxu0 %v10690_v41  ;;  %8875 = vmatprep.subr.bf16.mxu1 %v10695_v42  ;;  %v10786_v41 = vld [vmem:[%s12693_s7 + $0xc20] ss:$8 sps:$4 sm:$0xff]   ;;  %v10791_v42 = vld [vmem:[%s12693_s7 + $0x334] ss:$8 sps:$4 sm:$0xff]  }
 0x1d5   : > { %9262 = vmatprep.subr.bf16.mxu0 %v10698_v43  ;;  %v10794_v43 = vld [vmem:[%s12693_s7 + $0xc34] ss:$8 sps:$4 sm:$0xff]  }
 0x1d7   : > { %8876 = vmatpush1.bf16.msra.mxu1 %v10693_v44  ;;  %v10789_v44 = vld [vmem:[%s12693_s7 + $0x330] ss:$8 sps:$4 sm:$0xff]  }
 0x1d8   : > { %9263 = vmatpush1.bf16.msra.mxu0 %v10696_v45  ;;  %8877 = vmatprep.subr.bf16.mxu1 %v10701_v46  ;;  %v10792_v45 = vld [vmem:[%s12693_s7 + $0xc30] ss:$8 sps:$4 sm:$0xff]   ;;  %v10797_v46 = vld [vmem:[%s12693_s7 + $0x344] ss:$8 sps:$4 sm:$0xff]  }
 0x1d9   : > { %9264 = vmatprep.subr.bf16.mxu0 %v10704_v47  ;;  %v10800_v47 = vld [vmem:[%s12693_s7 + $0xc44] ss:$8 sps:$4 sm:$0xff]  }
 0x1db   : > { %8878 = vmatpush1.bf16.msra.mxu1 %v10699_v48  ;;  %v10795_v48 = vld [vmem:[%s12693_s7 + $0x340] ss:$8 sps:$4 sm:$0xff]  }
 0x1dc   : > { %9265 = vmatpush1.bf16.msra.mxu0 %v10702_v49  ;;  %8879 = vmatprep.subr.bf16.mxu1 %v10707_v50  ;;  %v10798_v49 = vld [vmem:[%s12693_s7 + $0xc40] ss:$8 sps:$4 sm:$0xff]   ;;  %v10803_v50 = vld [vmem:[%s12693_s7 + $0x354] ss:$8 sps:$4 sm:$0xff]  }
 0x1dd   : > { %9266 = vmatprep.subr.bf16.mxu0 %v10710_v51  ;;  %v10806_v51 = vld [vmem:[%s12693_s7 + $0xc54] ss:$8 sps:$4 sm:$0xff]  }
 0x1df   : > { %8880 = vmatpush1.bf16.msra.mxu1 %v10705_v52  ;;  %v10801_v52 = vld [vmem:[%s12693_s7 + $0x350] ss:$8 sps:$4 sm:$0xff]  }
 0x1e0   : > { %9267 = vmatpush1.bf16.msra.mxu0 %v10708_v53  ;;  %8881 = vmatprep.subr.bf16.mxu1 %v10713_v54  ;;  %v10804_v53 = vld [vmem:[%s12693_s7 + $0xc50] ss:$8 sps:$4 sm:$0xff]   ;;  %v10809_v54 = vld [vmem:[%s12693_s7 + $0x364] ss:$8 sps:$4 sm:$0xff]  }
 0x1e1   : > { %9268 = vmatprep.subr.bf16.mxu0 %v10716_v55  ;;  %v10812_v55 = vld [vmem:[%s12693_s7 + $0xc64] ss:$8 sps:$4 sm:$0xff]  }
 0x1e3   : > { %8882 = vmatpush1.bf16.msra.mxu1 %v10711_v56  ;;  %v10807_v56 = vld [vmem:[%s12693_s7 + $0x360] ss:$8 sps:$4 sm:$0xff]  }
 0x1e4   : > { %9269 = vmatpush1.bf16.msra.mxu0 %v10714_v57  ;;  %8883 = vmatprep.subr.bf16.mxu1 %v10719_v58  ;;  %v10810_v57 = vld [vmem:[%s12693_s7 + $0xc60] ss:$8 sps:$4 sm:$0xff]   ;;  %v10815_v58 = vld [vmem:[%s12693_s7 + $0x374] ss:$8 sps:$4 sm:$0xff]  }
 0x1e5   : > { %9270 = vmatprep.subr.bf16.mxu0 %v10722_v59  ;;  %v10818_v59 = vld [vmem:[%s12693_s7 + $0xc74] ss:$8 sps:$4 sm:$0xff]  }
 0x1e7   : > { %8884 = vmatpush1.bf16.msra.mxu1 %v10717_v60  ;;  %v10813_v60 = vld [vmem:[%s12693_s7 + $0x370] ss:$8 sps:$4 sm:$0xff]  }
 0x1e8   : > { %9271 = vmatpush1.bf16.msra.mxu0 %v10720_v61  ;;  %8885 = vmatprep.subr.bf16.mxu1 %v10725_v62  ;;  %v10816_v61 = vld [vmem:[%s12693_s7 + $0xc70] ss:$8 sps:$4 sm:$0xff]   ;;  %v10821_v62 = vld [vmem:[%s12693_s7 + $0x384] ss:$8 sps:$4 sm:$0xff]  }
 0x1e9   : > { %9272 = vmatprep.subr.bf16.mxu0 %v10728_v63  ;;  %v10824_v63 = vld [vmem:[%s12693_s7 + $0xc84] ss:$8 sps:$4 sm:$0xff]  }
 0x1eb   : > { %8886 = vmatpush1.bf16.msra.mxu1 %v10723_v0  ;;  %v10819_v0 = vld [vmem:[%s12693_s7 + $0x380] ss:$8 sps:$4 sm:$0xff]  }
 0x1ec   : > { %9273 = vmatpush1.bf16.msra.mxu0 %v10726_v1  ;;  %8887 = vmatprep.subr.bf16.mxu1 %v10731_v2  ;;  %v10822_v1 = vld [vmem:[%s12693_s7 + $0xc80] ss:$8 sps:$4 sm:$0xff]   ;;  %v10827_v2 = vld [vmem:[%s12693_s7 + $0x394] ss:$8 sps:$4 sm:$0xff]  }
 0x1ed   : > { %9274 = vmatprep.subr.bf16.mxu0 %v10734_v3  ;;  %v10830_v3 = vld [vmem:[%s12693_s7 + $0xc94] ss:$8 sps:$4 sm:$0xff]  }
 0x1ef   : > { %8888 = vmatpush1.bf16.msra.mxu1 %v10729_v4  ;;  %v10825_v4 = vld [vmem:[%s12693_s7 + $0x390] ss:$8 sps:$4 sm:$0xff]  }
 0x1f0   : > { %9275 = vmatpush1.bf16.msra.mxu0 %v10732_v5  ;;  %8889 = vmatprep.subr.bf16.mxu1 %v10737_v6  ;;  %v10828_v5 = vld [vmem:[%s12693_s7 + $0xc90] ss:$8 sps:$4 sm:$0xff]   ;;  %v10833_v6 = vld [vmem:[%s12693_s7 + $0x3a4] ss:$8 sps:$4 sm:$0xff]  }
 0x1f1   : > { %9276 = vmatprep.subr.bf16.mxu0 %v10740_v7  ;;  %v10836_v7 = vld [vmem:[%s12693_s7 + $0xca4] ss:$8 sps:$4 sm:$0xff]  }
 0x1f3   : > { %8890 = vmatpush1.bf16.msra.mxu1 %v10735_v8  ;;  %v10831_v8 = vld [vmem:[%s12693_s7 + $0x3a0] ss:$8 sps:$4 sm:$0xff]  }
 0x1f4   : > { %9277 = vmatpush1.bf16.msra.mxu0 %v10738_v9  ;;  %8891 = vmatprep.subr.bf16.mxu1 %v10743_v10  ;;  %v10834_v9 = vld [vmem:[%s12693_s7 + $0xca0] ss:$8 sps:$4 sm:$0xff]   ;;  %v10839_v10 = vld [vmem:[%s12693_s7 + $0x3b4] ss:$8 sps:$4 sm:$0xff]  }
 0x1f5   : > { %9278 = vmatprep.subr.bf16.mxu0 %v10746_v11  ;;  %v10842_v11 = vld [vmem:[%s12693_s7 + $0xcb4] ss:$8 sps:$4 sm:$0xff]  }
 0x1f7   : > { %8892 = vmatpush1.bf16.msra.mxu1 %v10741_v12  ;;  %v10837_v12 = vld [vmem:[%s12693_s7 + $0x3b0] ss:$8 sps:$4 sm:$0xff]  }
 0x1f8   : > { %9279 = vmatpush1.bf16.msra.mxu0 %v10744_v13  ;;  %8893 = vmatprep.subr.bf16.mxu1 %v10749_v14  ;;  %v10840_v13 = vld [vmem:[%s12693_s7 + $0xcb0] ss:$8 sps:$4 sm:$0xff]   ;;  %v10845_v14 = vld [vmem:[%s12693_s7 + $0x3c4] ss:$8 sps:$4 sm:$0xff]  }
 0x1f9   : > { %9280 = vmatprep.subr.bf16.mxu0 %v10752_v15  ;;  %v10848_v15 = vld [vmem:[%s12693_s7 + $0xcc4] ss:$8 sps:$4 sm:$0xff]  }
 0x1fb   : > { %8894 = vmatpush1.bf16.msra.mxu1 %v10747_v16  ;;  %v10843_v16 = vld [vmem:[%s12693_s7 + $0x3c0] ss:$8 sps:$4 sm:$0xff]  }
 0x1fc   : > { %9281 = vmatpush1.bf16.msra.mxu0 %v10750_v17  ;;  %8895 = vmatprep.subr.bf16.mxu1 %v10755_v18  ;;  %v10846_v17 = vld [vmem:[%s12693_s7 + $0xcc0] ss:$8 sps:$4 sm:$0xff]   ;;  %v10851_v18 = vld [vmem:[%s12693_s7 + $0x3d4] ss:$8 sps:$4 sm:$0xff]  }
 0x1fd   : > { %9282 = vmatprep.subr.bf16.mxu0 %v10758_v19  ;;  %v10854_v19 = vld [vmem:[%s12693_s7 + $0xcd4] ss:$8 sps:$4 sm:$0xff]  }
 0x1ff   : > { %8896 = vmatpush1.bf16.msra.mxu1 %v10753_v20  ;;  %v10849_v20 = vld [vmem:[%s12693_s7 + $0x3d0] ss:$8 sps:$4 sm:$0xff]  }
 0x200   : > { %9283 = vmatpush1.bf16.msra.mxu0 %v10756_v21  ;;  %8897 = vmatprep.subr.bf16.mxu1 %v10761_v22  ;;  %v10852_v21 = vld [vmem:[%s12693_s7 + $0xcd0] ss:$8 sps:$4 sm:$0xff]   ;;  %v10857_v22 = vld [vmem:[%s12693_s7 + $0x3e4] ss:$8 sps:$4 sm:$0xff]  }
 0x201   : > { %9284 = vmatprep.subr.bf16.mxu0 %v10764_v23  ;;  %v10860_v23 = vld [vmem:[%s12693_s7 + $0xce4] ss:$8 sps:$4 sm:$0xff]  }
 0x203   : > { %8898 = vmatpush1.bf16.msra.mxu1 %v10759_v24  ;;  %v10855_v24 = vld [vmem:[%s12693_s7 + $0x3e0] ss:$8 sps:$4 sm:$0xff]  }
 0x204   : > { %9285 = vmatpush1.bf16.msra.mxu0 %v10762_v25  ;;  %8910 = vmatprep.subr.bf16.mxu1 %v10770_v26  ;;  %v10858_v25 = vld [vmem:[%s12693_s7 + $0xce0] ss:$8 sps:$4 sm:$0xff]   ;;  %v10863_v26 = vld [vmem:[%s12693_s7 + $0x3f4] ss:$8 sps:$4 sm:$0xff]  }
 0x205   : > { %9297 = vmatprep.subr.bf16.mxu0 %v10776_v27  ;;  %v10866_v27 = vld [vmem:[%s12693_s7 + $0xcf4] ss:$8 sps:$4 sm:$0xff]  }
 0x206   : > { %8900 = vmatmul.mubr.bf16.vlgmr.msra.gmra.mrb[0].mxu1 %v10765_v28  ;;  %v10861_v28 = vld [vmem:[%s12693_s7 + $0x3f0] ss:$8 sps:$4 sm:$0xff]  }
 0x207   : > { %9287 = vmatmul.mubr.bf16.vlgmr.msra.gmra.mrb[0].mxu0 %v10771_v30  ;;  %8911 = vmatpush1.bf16.msra.mxu1 %v10768_v29  ;;  %v10864_v29 = vld [vmem:[%s12693_s7 + $0xcf0] ss:$8 sps:$4 sm:$0xff]   ;;  %v10872_v30 = vld [vmem:[%s12693_s7 + $0x404] ss:$8 sps:$4 sm:$0xff]  }
 0x208   : > { %9298 = vmatpush1.bf16.msra.mxu0 %v10774_v31  ;;  %8912 = vmatprep.subr.bf16.mxu1 %v10779_v32  ;;  %v10878_v31 = vld [vmem:[%s12693_s7 + $0xd04] ss:$8 sps:$4 sm:$0xff]  }
 0x209   : > { %9299 = vmatprep.subr.bf16.mxu0 %v10782_v33  ;;  %8942 = vmatprep.mubr.bf16.mxu1 %v10869_v34  ;;  %v10867_v32 = vld [vmem:[%s13414_s0 + $0x18] ss:$148 sps:$4 sm:$0xff]   ;;  %v10870_v33 = vld [vmem:[%s12693_s7 + $0x400] ss:$8 sps:$4 sm:$0xff]  }
 0x20a   : > { %9329 = vmatprep.mubr.bf16.mxu0 %v10875_v35  ;;  %v10873_v34 = vld [vmem:[%s13414_s0 + $0x60] ss:$148 sps:$4 sm:$0xff]  }
 0x20b   : > { %8913 = vmatpush1.bf16.msra.mxu1 %v10777_v36  ;;  %v10876_v35 = vld [vmem:[%s12693_s7 + $0xd00] ss:$8 sps:$4 sm:$0xff]   ;;  %v10881_v36 = vld [vmem:[%s12693_s7 + $0x414] ss:$8 sps:$4 sm:$0xff]  }
 0x20c   : > { %9300 = vmatpush1.bf16.msra.mxu0 %v10780_v37  ;;  %8914 = vmatprep.subr.bf16.mxu1 %v10785_v38  ;;  %v10884_v37 = vld [vmem:[%s12693_s7 + $0xd14] ss:$8 sps:$4 sm:$0xff]   ;;  %v10971_v38 = vld [vmem:[%s13414_s0 + $0x24] ss:$148 sps:$4 sm:$0xff]  }
 0x20d   : > { %9301 = vmatprep.subr.bf16.mxu0 %v10788_v39  ;;  %v10977_v39 = vld [vmem:[%s13414_s0 + $0x6c] ss:$148 sps:$4 sm:$0xff]  }
 0x20f   : > { %8915 = vmatpush1.bf16.msra.mxu1 %v10783_v40  ;;  %v10879_v40 = vld [vmem:[%s12693_s7 + $0x410] ss:$8 sps:$4 sm:$0xff]  }
 0x210   : > { %9302 = vmatpush1.bf16.msra.mxu0 %v10786_v41  ;;  %8916 = vmatprep.subr.bf16.mxu1 %v10791_v42  ;;  %v10882_v41 = vld [vmem:[%s12693_s7 + $0xd10] ss:$8 sps:$4 sm:$0xff]   ;;  %v10887_v42 = vld [vmem:[%s12693_s7 + $0x424] ss:$8 sps:$4 sm:$0xff]  }
 0x211   : > { %9303 = vmatprep.subr.bf16.mxu0 %v10794_v43  ;;  %v10890_v43 = vld [vmem:[%s12693_s7 + $0xd24] ss:$8 sps:$4 sm:$0xff]  }
 0x213   : > { %8917 = vmatpush1.bf16.msra.mxu1 %v10789_v44  ;;  %v10885_v44 = vld [vmem:[%s12693_s7 + $0x420] ss:$8 sps:$4 sm:$0xff]  }
 0x214   : > { %9304 = vmatpush1.bf16.msra.mxu0 %v10792_v45  ;;  %8918 = vmatprep.subr.bf16.mxu1 %v10797_v46  ;;  %v10888_v45 = vld [vmem:[%s12693_s7 + $0xd20] ss:$8 sps:$4 sm:$0xff]   ;;  %v10893_v46 = vld [vmem:[%s12693_s7 + $0x434] ss:$8 sps:$4 sm:$0xff]  }
 0x215   : > { %9305 = vmatprep.subr.bf16.mxu0 %v10800_v47  ;;  %v10896_v47 = vld [vmem:[%s12693_s7 + $0xd34] ss:$8 sps:$4 sm:$0xff]  }
 0x217   : > { %8919 = vmatpush1.bf16.msra.mxu1 %v10795_v48  ;;  %v10891_v48 = vld [vmem:[%s12693_s7 + $0x430] ss:$8 sps:$4 sm:$0xff]  }
 0x218   : > { %9306 = vmatpush1.bf16.msra.mxu0 %v10798_v49  ;;  %8920 = vmatprep.subr.bf16.mxu1 %v10803_v50  ;;  %v10894_v49 = vld [vmem:[%s12693_s7 + $0xd30] ss:$8 sps:$4 sm:$0xff]   ;;  %v10899_v50 = vld [vmem:[%s12693_s7 + $0x444] ss:$8 sps:$4 sm:$0xff]  }
 0x219   : > { %9307 = vmatprep.subr.bf16.mxu0 %v10806_v51  ;;  %v10902_v51 = vld [vmem:[%s12693_s7 + $0xd44] ss:$8 sps:$4 sm:$0xff]  }
 0x21b   : > { %8921 = vmatpush1.bf16.msra.mxu1 %v10801_v52  ;;  %v10897_v52 = vld [vmem:[%s12693_s7 + $0x440] ss:$8 sps:$4 sm:$0xff]  }
 0x21c   : > { %9308 = vmatpush1.bf16.msra.mxu0 %v10804_v53  ;;  %8922 = vmatprep.subr.bf16.mxu1 %v10809_v54  ;;  %v10900_v53 = vld [vmem:[%s12693_s7 + $0xd40] ss:$8 sps:$4 sm:$0xff]   ;;  %v10905_v54 = vld [vmem:[%s12693_s7 + $0x454] ss:$8 sps:$4 sm:$0xff]  }
 0x21d   : > { %9309 = vmatprep.subr.bf16.mxu0 %v10812_v55  ;;  %v10908_v55 = vld [vmem:[%s12693_s7 + $0xd54] ss:$8 sps:$4 sm:$0xff]  }
 0x21f   : > { %8923 = vmatpush1.bf16.msra.mxu1 %v10807_v56  ;;  %v10903_v56 = vld [vmem:[%s12693_s7 + $0x450] ss:$8 sps:$4 sm:$0xff]  }
 0x220   : > { %9310 = vmatpush1.bf16.msra.mxu0 %v10810_v57  ;;  %8924 = vmatprep.subr.bf16.mxu1 %v10815_v58  ;;  %v10906_v57 = vld [vmem:[%s12693_s7 + $0xd50] ss:$8 sps:$4 sm:$0xff]   ;;  %v10911_v58 = vld [vmem:[%s12693_s7 + $0x464] ss:$8 sps:$4 sm:$0xff]  }
 0x221   : > { %9311 = vmatprep.subr.bf16.mxu0 %v10818_v59  ;;  %v10914_v59 = vld [vmem:[%s12693_s7 + $0xd64] ss:$8 sps:$4 sm:$0xff]  }
 0x223   : > { %8925 = vmatpush1.bf16.msra.mxu1 %v10813_v60  ;;  %v10909_v60 = vld [vmem:[%s12693_s7 + $0x460] ss:$8 sps:$4 sm:$0xff]  }
 0x224   : > { %9312 = vmatpush1.bf16.msra.mxu0 %v10816_v61  ;;  %8926 = vmatprep.subr.bf16.mxu1 %v10821_v62  ;;  %v10912_v61 = vld [vmem:[%s12693_s7 + $0xd60] ss:$8 sps:$4 sm:$0xff]   ;;  %v10917_v62 = vld [vmem:[%s12693_s7 + $0x474] ss:$8 sps:$4 sm:$0xff]  }
 0x225   : > { %9313 = vmatprep.subr.bf16.mxu0 %v10824_v63  ;;  %v10920_v63 = vld [vmem:[%s12693_s7 + $0xd74] ss:$8 sps:$4 sm:$0xff]  }
 0x227   : > { %8927 = vmatpush1.bf16.msra.mxu1 %v10819_v0  ;;  %v10915_v0 = vld [vmem:[%s12693_s7 + $0x470] ss:$8 sps:$4 sm:$0xff]  }
 0x228   : > { %9314 = vmatpush1.bf16.msra.mxu0 %v10822_v1  ;;  %8928 = vmatprep.subr.bf16.mxu1 %v10827_v2  ;;  %v10918_v1 = vld [vmem:[%s12693_s7 + $0xd70] ss:$8 sps:$4 sm:$0xff]   ;;  %v10923_v2 = vld [vmem:[%s12693_s7 + $0x484] ss:$8 sps:$4 sm:$0xff]  }
 0x229   : > { %9315 = vmatprep.subr.bf16.mxu0 %v10830_v3  ;;  %v10926_v3 = vld [vmem:[%s12693_s7 + $0xd84] ss:$8 sps:$4 sm:$0xff]  }
 0x22b   : > { %8929 = vmatpush1.bf16.msra.mxu1 %v10825_v4  ;;  %v10921_v4 = vld [vmem:[%s12693_s7 + $0x480] ss:$8 sps:$4 sm:$0xff]  }
 0x22c   : > { %9316 = vmatpush1.bf16.msra.mxu0 %v10828_v5  ;;  %8930 = vmatprep.subr.bf16.mxu1 %v10833_v6  ;;  %v10924_v5 = vld [vmem:[%s12693_s7 + $0xd80] ss:$8 sps:$4 sm:$0xff]   ;;  %v10929_v6 = vld [vmem:[%s12693_s7 + $0x494] ss:$8 sps:$4 sm:$0xff]  }
 0x22d   : > { %9317 = vmatprep.subr.bf16.mxu0 %v10836_v7  ;;  %v10932_v7 = vld [vmem:[%s12693_s7 + $0xd94] ss:$8 sps:$4 sm:$0xff]  }
 0x22f   : > { %8931 = vmatpush1.bf16.msra.mxu1 %v10831_v8  ;;  %v10927_v8 = vld [vmem:[%s12693_s7 + $0x490] ss:$8 sps:$4 sm:$0xff]  }
 0x230   : > { %9318 = vmatpush1.bf16.msra.mxu0 %v10834_v9  ;;  %8932 = vmatprep.subr.bf16.mxu1 %v10839_v10  ;;  %v10930_v9 = vld [vmem:[%s12693_s7 + $0xd90] ss:$8 sps:$4 sm:$0xff]   ;;  %v10935_v10 = vld [vmem:[%s12693_s7 + $0x4a4] ss:$8 sps:$4 sm:$0xff]  }
 0x231   : > { %9319 = vmatprep.subr.bf16.mxu0 %v10842_v11  ;;  %v10938_v11 = vld [vmem:[%s12693_s7 + $0xda4] ss:$8 sps:$4 sm:$0xff]  }
 0x233   : > { %8933 = vmatpush1.bf16.msra.mxu1 %v10837_v12  ;;  %v10933_v12 = vld [vmem:[%s12693_s7 + $0x4a0] ss:$8 sps:$4 sm:$0xff]  }
 0x234   : > { %9320 = vmatpush1.bf16.msra.mxu0 %v10840_v13  ;;  %8934 = vmatprep.subr.bf16.mxu1 %v10845_v14  ;;  %v10936_v13 = vld [vmem:[%s12693_s7 + $0xda0] ss:$8 sps:$4 sm:$0xff]   ;;  %v10941_v14 = vld [vmem:[%s12693_s7 + $0x4b4] ss:$8 sps:$4 sm:$0xff]  }
 0x235   : > { %9321 = vmatprep.subr.bf16.mxu0 %v10848_v15  ;;  %v10944_v15 = vld [vmem:[%s12693_s7 + $0xdb4] ss:$8 sps:$4 sm:$0xff]  }
 0x237   : > { %8935 = vmatpush1.bf16.msra.mxu1 %v10843_v16  ;;  %v10939_v16 = vld [vmem:[%s12693_s7 + $0x4b0] ss:$8 sps:$4 sm:$0xff]  }
 0x238   : > { %9322 = vmatpush1.bf16.msra.mxu0 %v10846_v17  ;;  %8936 = vmatprep.subr.bf16.mxu1 %v10851_v18  ;;  %v10942_v17 = vld [vmem:[%s12693_s7 + $0xdb0] ss:$8 sps:$4 sm:$0xff]   ;;  %v10947_v18 = vld [vmem:[%s12693_s7 + $0x4c4] ss:$8 sps:$4 sm:$0xff]  }
 0x239   : > { %9323 = vmatprep.subr.bf16.mxu0 %v10854_v19  ;;  %v10950_v19 = vld [vmem:[%s12693_s7 + $0xdc4] ss:$8 sps:$4 sm:$0xff]  }
 0x23b   : > { %8937 = vmatpush1.bf16.msra.mxu1 %v10849_v20  ;;  %v10945_v20 = vld [vmem:[%s12693_s7 + $0x4c0] ss:$8 sps:$4 sm:$0xff]  }
 0x23c   : > { %9324 = vmatpush1.bf16.msra.mxu0 %v10852_v21  ;;  %8938 = vmatprep.subr.bf16.mxu1 %v10857_v22  ;;  %v10948_v21 = vld [vmem:[%s12693_s7 + $0xdc0] ss:$8 sps:$4 sm:$0xff]   ;;  %v10953_v22 = vld [vmem:[%s12693_s7 + $0x4d4] ss:$8 sps:$4 sm:$0xff]  }
 0x23d   : > { %9325 = vmatprep.subr.bf16.mxu0 %v10860_v23  ;;  %v10956_v23 = vld [vmem:[%s12693_s7 + $0xdd4] ss:$8 sps:$4 sm:$0xff]  }
 0x23f   : > { %8939 = vmatpush1.bf16.msra.mxu1 %v10855_v24  ;;  %v10951_v24 = vld [vmem:[%s12693_s7 + $0x4d0] ss:$8 sps:$4 sm:$0xff]  }
 0x240   : > { %9326 = vmatpush1.bf16.msra.mxu0 %v10858_v25  ;;  %8940 = vmatprep.subr.bf16.mxu1 %v10863_v26  ;;  %v10954_v25 = vld [vmem:[%s12693_s7 + $0xdd0] ss:$8 sps:$4 sm:$0xff]   ;;  %v10959_v26 = vld [vmem:[%s12693_s7 + $0x4e4] ss:$8 sps:$4 sm:$0xff]  }
 0x241   : > { %9327 = vmatprep.subr.bf16.mxu0 %v10866_v27  ;;  %v10962_v27 = vld [vmem:[%s12693_s7 + $0xde4] ss:$8 sps:$4 sm:$0xff]  }
 0x243   : > { %8941 = vmatpush1.bf16.msra.mxu1 %v10861_v28  ;;  %v10957_v28 = vld [vmem:[%s12693_s7 + $0x4e0] ss:$8 sps:$4 sm:$0xff]  }
 0x244   : > { %9328 = vmatpush1.bf16.msra.mxu0 %v10864_v29  ;;  %8953 = vmatprep.subr.bf16.mxu1 %v10872_v30  ;;  %v10960_v29 = vld [vmem:[%s12693_s7 + $0xde0] ss:$8 sps:$4 sm:$0xff]   ;;  %v10965_v30 = vld [vmem:[%s12693_s7 + $0x4f4] ss:$8 sps:$4 sm:$0xff]  }
 0x245   : > { %9340 = vmatprep.subr.bf16.mxu0 %v10878_v31  ;;  %v10968_v31 = vld [vmem:[%s12693_s7 + $0xdf4] ss:$8 sps:$4 sm:$0xff]  }
 0x246   : > { %8943 = vmatmul.mubr.bf16.vlgmr.msra.gmra.mrb[0].mxu1 %v10867_v32  ;;  %v10963_v32 = vld [vmem:[%s12693_s7 + $0x4f0] ss:$8 sps:$4 sm:$0xff]  }
 0x247   : > { %9330 = vmatmul.mubr.bf16.vlgmr.msra.gmra.mrb[0].mxu0 %v10873_v34  ;;  %8954 = vmatpush1.bf16.msra.mxu1 %v10870_v33  ;;  %v10966_v33 = vld [vmem:[%s12693_s7 + $0xdf0] ss:$8 sps:$4 sm:$0xff]   ;;  %v10974_v34 = vld [vmem:[%s12693_s7 + $0x504] ss:$8 sps:$4 sm:$0xff]  }
 0x248   : > { %9341 = vmatpush1.bf16.msra.mxu0 %v10876_v35  ;;  %8955 = vmatprep.subr.bf16.mxu1 %v10881_v36  ;;  %v10969_v35 = vld [vmem:[%s13414_s0 + $0x20] ss:$148 sps:$4 sm:$0xff]   ;;  %v10975_v36 = vld [vmem:[%s13414_s0 + $0x68] ss:$148 sps:$4 sm:$0xff]  }
 0x249   : > { %9342 = vmatprep.subr.bf16.mxu0 %v10884_v37  ;;  %8985 = vmatprep.mubr.bf16.mxu1 %v10971_v38  ;;  %v10980_v37 = vld [vmem:[%s12693_s7 + $0xe04] ss:$8 sps:$4 sm:$0xff]   ;;  %v10972_v38 = vld [vmem:[%s12693_s7 + $0x500] ss:$8 sps:$4 sm:$0xff]  }
 0x24a   : > { %9372 = vmatprep.mubr.bf16.mxu0 %v10977_v39  ;;  %v10978_v39 = vld [vmem:[%s12693_s7 + $0xe00] ss:$8 sps:$4 sm:$0xff]  }
 0x24b   : > { %8956 = vmatpush1.bf16.msra.mxu1 %v10879_v40  ;;  %v10983_v40 = vld [vmem:[%s12693_s7 + $0x514] ss:$8 sps:$4 sm:$0xff]  }
 0x24c   : > { %9343 = vmatpush1.bf16.msra.mxu0 %v10882_v41  ;;  %8957 = vmatprep.subr.bf16.mxu1 %v10887_v42  ;;  %v10986_v41 = vld [vmem:[%s12693_s7 + $0xe14] ss:$8 sps:$4 sm:$0xff]   ;;  %v11073_v42 = vld [vmem:[%s13414_s0 + $0x2c] ss:$148 sps:$4 sm:$0xff]  }
 0x24d   : > { %9344 = vmatprep.subr.bf16.mxu0 %v10890_v43  ;;  %v11079_v43 = vld [vmem:[%s13414_s0 + $0x74] ss:$148 sps:$4 sm:$0xff]  }
 0x24f   : > { %8958 = vmatpush1.bf16.msra.mxu1 %v10885_v44  ;;  %v10981_v44 = vld [vmem:[%s12693_s7 + $0x510] ss:$8 sps:$4 sm:$0xff]  }
 0x250   : > { %9345 = vmatpush1.bf16.msra.mxu0 %v10888_v45  ;;  %8959 = vmatprep.subr.bf16.mxu1 %v10893_v46  ;;  %v10984_v45 = vld [vmem:[%s12693_s7 + $0xe10] ss:$8 sps:$4 sm:$0xff]   ;;  %v10989_v46 = vld [vmem:[%s12693_s7 + $0x524] ss:$8 sps:$4 sm:$0xff]  }
 0x251   : > { %9346 = vmatprep.subr.bf16.mxu0 %v10896_v47  ;;  %v10992_v47 = vld [vmem:[%s12693_s7 + $0xe24] ss:$8 sps:$4 sm:$0xff]  }
 0x253   : > { %8960 = vmatpush1.bf16.msra.mxu1 %v10891_v48  ;;  %v10987_v48 = vld [vmem:[%s12693_s7 + $0x520] ss:$8 sps:$4 sm:$0xff]  }
 0x254   : > { %9347 = vmatpush1.bf16.msra.mxu0 %v10894_v49  ;;  %8961 = vmatprep.subr.bf16.mxu1 %v10899_v50  ;;  %v10990_v49 = vld [vmem:[%s12693_s7 + $0xe20] ss:$8 sps:$4 sm:$0xff]   ;;  %v10995_v50 = vld [vmem:[%s12693_s7 + $0x534] ss:$8 sps:$4 sm:$0xff]  }
 0x255   : > { %9348 = vmatprep.subr.bf16.mxu0 %v10902_v51  ;;  %v10998_v51 = vld [vmem:[%s12693_s7 + $0xe34] ss:$8 sps:$4 sm:$0xff]  }
 0x257   : > { %8962 = vmatpush1.bf16.msra.mxu1 %v10897_v52  ;;  %v10993_v52 = vld [vmem:[%s12693_s7 + $0x530] ss:$8 sps:$4 sm:$0xff]  }
 0x258   : > { %9349 = vmatpush1.bf16.msra.mxu0 %v10900_v53  ;;  %8963 = vmatprep.subr.bf16.mxu1 %v10905_v54  ;;  %v10996_v53 = vld [vmem:[%s12693_s7 + $0xe30] ss:$8 sps:$4 sm:$0xff]   ;;  %v11001_v54 = vld [vmem:[%s12693_s7 + $0x544] ss:$8 sps:$4 sm:$0xff]  }
 0x259   : > { %9350 = vmatprep.subr.bf16.mxu0 %v10908_v55  ;;  %v11004_v55 = vld [vmem:[%s12693_s7 + $0xe44] ss:$8 sps:$4 sm:$0xff]  }
 0x25b   : > { %8964 = vmatpush1.bf16.msra.mxu1 %v10903_v56  ;;  %v10999_v56 = vld [vmem:[%s12693_s7 + $0x540] ss:$8 sps:$4 sm:$0xff]  }
 0x25c   : > { %9351 = vmatpush1.bf16.msra.mxu0 %v10906_v57  ;;  %8965 = vmatprep.subr.bf16.mxu1 %v10911_v58  ;;  %v11002_v57 = vld [vmem:[%s12693_s7 + $0xe40] ss:$8 sps:$4 sm:$0xff]   ;;  %v11007_v58 = vld [vmem:[%s12693_s7 + $0x554] ss:$8 sps:$4 sm:$0xff]  }
 0x25d   : > { %9352 = vmatprep.subr.bf16.mxu0 %v10914_v59  ;;  %v11010_v59 = vld [vmem:[%s12693_s7 + $0xe54] ss:$8 sps:$4 sm:$0xff]  }
 0x25f   : > { %8966 = vmatpush1.bf16.msra.mxu1 %v10909_v60  ;;  %v11005_v60 = vld [vmem:[%s12693_s7 + $0x550] ss:$8 sps:$4 sm:$0xff]  }
 0x260   : > { %9353 = vmatpush1.bf16.msra.mxu0 %v10912_v61  ;;  %8967 = vmatprep.subr.bf16.mxu1 %v10917_v62  ;;  %v11008_v61 = vld [vmem:[%s12693_s7 + $0xe50] ss:$8 sps:$4 sm:$0xff]   ;;  %v11013_v62 = vld [vmem:[%s12693_s7 + $0x564] ss:$8 sps:$4 sm:$0xff]  }
 0x261   : > { %9354 = vmatprep.subr.bf16.mxu0 %v10920_v63  ;;  %v11016_v63 = vld [vmem:[%s12693_s7 + $0xe64] ss:$8 sps:$4 sm:$0xff]  }
 0x263   : > { %8968 = vmatpush1.bf16.msra.mxu1 %v10915_v0  ;;  %v11011_v0 = vld [vmem:[%s12693_s7 + $0x560] ss:$8 sps:$4 sm:$0xff]  }
 0x264   : > { %9355 = vmatpush1.bf16.msra.mxu0 %v10918_v1  ;;  %8969 = vmatprep.subr.bf16.mxu1 %v10923_v2  ;;  %v11014_v1 = vld [vmem:[%s12693_s7 + $0xe60] ss:$8 sps:$4 sm:$0xff]   ;;  %v11019_v2 = vld [vmem:[%s12693_s7 + $0x574] ss:$8 sps:$4 sm:$0xff]  }
 0x265   : > { %9356 = vmatprep.subr.bf16.mxu0 %v10926_v3  ;;  %v11022_v3 = vld [vmem:[%s12693_s7 + $0xe74] ss:$8 sps:$4 sm:$0xff]  }
 0x267   : > { %8970 = vmatpush1.bf16.msra.mxu1 %v10921_v4  ;;  %v11017_v4 = vld [vmem:[%s12693_s7 + $0x570] ss:$8 sps:$4 sm:$0xff]  }
 0x268   : > { %9357 = vmatpush1.bf16.msra.mxu0 %v10924_v5  ;;  %8971 = vmatprep.subr.bf16.mxu1 %v10929_v6  ;;  %v11020_v5 = vld [vmem:[%s12693_s7 + $0xe70] ss:$8 sps:$4 sm:$0xff]   ;;  %v11025_v6 = vld [vmem:[%s12693_s7 + $0x584] ss:$8 sps:$4 sm:$0xff]  }
 0x269   : > { %9358 = vmatprep.subr.bf16.mxu0 %v10932_v7  ;;  %v11028_v7 = vld [vmem:[%s12693_s7 + $0xe84] ss:$8 sps:$4 sm:$0xff]  }
 0x26b   : > { %8972 = vmatpush1.bf16.msra.mxu1 %v10927_v8  ;;  %v11023_v8 = vld [vmem:[%s12693_s7 + $0x580] ss:$8 sps:$4 sm:$0xff]  }
 0x26c   : > { %9359 = vmatpush1.bf16.msra.mxu0 %v10930_v9  ;;  %8973 = vmatprep.subr.bf16.mxu1 %v10935_v10  ;;  %v11026_v9 = vld [vmem:[%s12693_s7 + $0xe80] ss:$8 sps:$4 sm:$0xff]   ;;  %v11031_v10 = vld [vmem:[%s12693_s7 + $0x594] ss:$8 sps:$4 sm:$0xff]  }
 0x26d   : > { %9360 = vmatprep.subr.bf16.mxu0 %v10938_v11  ;;  %v11034_v11 = vld [vmem:[%s12693_s7 + $0xe94] ss:$8 sps:$4 sm:$0xff]  }
 0x26f   : > { %8974 = vmatpush1.bf16.msra.mxu1 %v10933_v12  ;;  %v11029_v12 = vld [vmem:[%s12693_s7 + $0x590] ss:$8 sps:$4 sm:$0xff]  }
 0x270   : > { %9361 = vmatpush1.bf16.msra.mxu0 %v10936_v13  ;;  %8975 = vmatprep.subr.bf16.mxu1 %v10941_v14  ;;  %v11032_v13 = vld [vmem:[%s12693_s7 + $0xe90] ss:$8 sps:$4 sm:$0xff]   ;;  %v11037_v14 = vld [vmem:[%s12693_s7 + $0x5a4] ss:$8 sps:$4 sm:$0xff]  }
 0x271   : > { %9362 = vmatprep.subr.bf16.mxu0 %v10944_v15  ;;  %v11040_v15 = vld [vmem:[%s12693_s7 + $0xea4] ss:$8 sps:$4 sm:$0xff]  }
 0x273   : > { %8976 = vmatpush1.bf16.msra.mxu1 %v10939_v16  ;;  %v11035_v16 = vld [vmem:[%s12693_s7 + $0x5a0] ss:$8 sps:$4 sm:$0xff]  }
 0x274   : > { %9363 = vmatpush1.bf16.msra.mxu0 %v10942_v17  ;;  %8977 = vmatprep.subr.bf16.mxu1 %v10947_v18  ;;  %v11038_v17 = vld [vmem:[%s12693_s7 + $0xea0] ss:$8 sps:$4 sm:$0xff]   ;;  %v11043_v18 = vld [vmem:[%s12693_s7 + $0x5b4] ss:$8 sps:$4 sm:$0xff]  }
 0x275   : > { %9364 = vmatprep.subr.bf16.mxu0 %v10950_v19  ;;  %v11046_v19 = vld [vmem:[%s12693_s7 + $0xeb4] ss:$8 sps:$4 sm:$0xff]  }
 0x277   : > { %8978 = vmatpush1.bf16.msra.mxu1 %v10945_v20  ;;  %v11041_v20 = vld [vmem:[%s12693_s7 + $0x5b0] ss:$8 sps:$4 sm:$0xff]  }
 0x278   : > { %9365 = vmatpush1.bf16.msra.mxu0 %v10948_v21  ;;  %8979 = vmatprep.subr.bf16.mxu1 %v10953_v22  ;;  %v11044_v21 = vld [vmem:[%s12693_s7 + $0xeb0] ss:$8 sps:$4 sm:$0xff]   ;;  %v11049_v22 = vld [vmem:[%s12693_s7 + $0x5c4] ss:$8 sps:$4 sm:$0xff]  }
 0x279   : > { %9366 = vmatprep.subr.bf16.mxu0 %v10956_v23  ;;  %v11052_v23 = vld [vmem:[%s12693_s7 + $0xec4] ss:$8 sps:$4 sm:$0xff]  }
 0x27b   : > { %8980 = vmatpush1.bf16.msra.mxu1 %v10951_v24  ;;  %v11047_v24 = vld [vmem:[%s12693_s7 + $0x5c0] ss:$8 sps:$4 sm:$0xff]  }
 0x27c   : > { %9367 = vmatpush1.bf16.msra.mxu0 %v10954_v25  ;;  %8981 = vmatprep.subr.bf16.mxu1 %v10959_v26  ;;  %v11050_v25 = vld [vmem:[%s12693_s7 + $0xec0] ss:$8 sps:$4 sm:$0xff]   ;;  %v11055_v26 = vld [vmem:[%s12693_s7 + $0x5d4] ss:$8 sps:$4 sm:$0xff]  }
 0x27d   : > { %9368 = vmatprep.subr.bf16.mxu0 %v10962_v27  ;;  %v11058_v27 = vld [vmem:[%s12693_s7 + $0xed4] ss:$8 sps:$4 sm:$0xff]  }
 0x27f   : > { %8982 = vmatpush1.bf16.msra.mxu1 %v10957_v28  ;;  %v11053_v28 = vld [vmem:[%s12693_s7 + $0x5d0] ss:$8 sps:$4 sm:$0xff]  }
 0x280   : > { %9369 = vmatpush1.bf16.msra.mxu0 %v10960_v29  ;;  %8983 = vmatprep.subr.bf16.mxu1 %v10965_v30  ;;  %v11056_v29 = vld [vmem:[%s12693_s7 + $0xed0] ss:$8 sps:$4 sm:$0xff]   ;;  %v11061_v30 = vld [vmem:[%s12693_s7 + $0x5e4] ss:$8 sps:$4 sm:$0xff]  }
 0x281   : > { %9370 = vmatprep.subr.bf16.mxu0 %v10968_v31  ;;  %v11064_v31 = vld [vmem:[%s12693_s7 + $0xee4] ss:$8 sps:$4 sm:$0xff]  }
 0x283   : > { %8984 = vmatpush1.bf16.msra.mxu1 %v10963_v32  ;;  %v11059_v32 = vld [vmem:[%s12693_s7 + $0x5e0] ss:$8 sps:$4 sm:$0xff]  }
 0x284   : > { %9371 = vmatpush1.bf16.msra.mxu0 %v10966_v33  ;;  %8996 = vmatprep.subr.bf16.mxu1 %v10974_v34  ;;  %v11062_v33 = vld [vmem:[%s12693_s7 + $0xee0] ss:$8 sps:$4 sm:$0xff]   ;;  %v11067_v34 = vld [vmem:[%s12693_s7 + $0x5f4] ss:$8 sps:$4 sm:$0xff]  }
 0x285   : > { %9383 = vmatprep.subr.bf16.mxu0 %v10980_v37  ;;  %v11068_v37 = vld [vmem:[%s12693_s7 + $0xef0] ss:$8 sps:$4 sm:$0xff]  }
 0x286   : > { %8986 = vmatmul.mubr.bf16.vlgmr.msra.gmra.mrb[0].mxu1 %v10969_v35  ;;  %v11070_v35 = vld [vmem:[%s12693_s7 + $0xef4] ss:$8 sps:$4 sm:$0xff]  }
 0x287   : > { %9373 = vmatmul.mubr.bf16.vlgmr.msra.gmra.mrb[0].mxu0 %v10975_v36  ;;  %8997 = vmatpush1.bf16.msra.mxu1 %v10972_v38  ;;  %v11065_v36 = vld [vmem:[%s12693_s7 + $0x5f0] ss:$8 sps:$4 sm:$0xff]   ;;  %v11076_v38 = vld [vmem:[%s12693_s7 + $0x604] ss:$8 sps:$4 sm:$0xff]  }
 0x288   : > { %9384 = vmatpush1.bf16.msra.mxu0 %v10978_v39  ;;  %8998 = vmatprep.subr.bf16.mxu1 %v10983_v40  ;;  %v11071_v39 = vld [vmem:[%s13414_s0 + $0x28] ss:$148 sps:$4 sm:$0xff]   ;;  %v11077_v40 = vld [vmem:[%s13414_s0 + $0x70] ss:$148 sps:$4 sm:$0xff]  }
 0x289   : > { %9385 = vmatprep.subr.bf16.mxu0 %v10986_v41  ;;  %9028 = vmatprep.mubr.bf16.mxu1 %v11073_v42  ;;  %v11082_v41 = vld [vmem:[%s12693_s7 + $0xf04] ss:$8 sps:$4 sm:$0xff]   ;;  %v11074_v42 = vld [vmem:[%s12693_s7 + $0x600] ss:$8 sps:$4 sm:$0xff]  }
 0x28a   : > { %9415 = vmatprep.mubr.bf16.mxu0 %v11079_v43  ;;  %v11080_v43 = vld [vmem:[%s12693_s7 + $0xf00] ss:$8 sps:$4 sm:$0xff]  }
 0x28b   : > { %8999 = vmatpush1.bf16.msra.mxu1 %v10981_v44  ;;  %v11085_v44 = vld [vmem:[%s12693_s7 + $0x614] ss:$8 sps:$4 sm:$0xff]  }
 0x28c   : > { %9386 = vmatpush1.bf16.msra.mxu0 %v10984_v45  ;;  %9000 = vmatprep.subr.bf16.mxu1 %v10989_v46  ;;  %v11088_v45 = vld [vmem:[%s12693_s7 + $0xf14] ss:$8 sps:$4 sm:$0xff]  }
 0x28d   : > { %9387 = vmatprep.subr.bf16.mxu0 %v10992_v47  ;;  %v11175_v46 = vld [vmem:[%s13414_s0 + $0x34] ss:$148 sps:$4 sm:$0xff]   ;;  %v11181_v47 = vld [vmem:[%s13414_s0 + $0x7c] ss:$148 sps:$4 sm:$0xff]  }
 0x28f   : > { %9001 = vmatpush1.bf16.msra.mxu1 %v10987_v48  ;;  %v11083_v48 = vld [vmem:[%s12693_s7 + $0x610] ss:$8 sps:$4 sm:$0xff]  }
 0x290   : > { %9388 = vmatpush1.bf16.msra.mxu0 %v10990_v49  ;;  %9002 = vmatprep.subr.bf16.mxu1 %v10995_v50  ;;  %v11086_v49 = vld [vmem:[%s12693_s7 + $0xf10] ss:$8 sps:$4 sm:$0xff]   ;;  %v11091_v50 = vld [vmem:[%s12693_s7 + $0x624] ss:$8 sps:$4 sm:$0xff]  }
 0x291   : > { %9389 = vmatprep.subr.bf16.mxu0 %v10998_v51  ;;  %v11094_v51 = vld [vmem:[%s12693_s7 + $0xf24] ss:$8 sps:$4 sm:$0xff]  }
 0x293   : > { %9003 = vmatpush1.bf16.msra.mxu1 %v10993_v52  ;;  %v11089_v52 = vld [vmem:[%s12693_s7 + $0x620] ss:$8 sps:$4 sm:$0xff]  }
 0x294   : > { %9390 = vmatpush1.bf16.msra.mxu0 %v10996_v53  ;;  %9004 = vmatprep.subr.bf16.mxu1 %v11001_v54  ;;  %v11092_v53 = vld [vmem:[%s12693_s7 + $0xf20] ss:$8 sps:$4 sm:$0xff]   ;;  %v11097_v54 = vld [vmem:[%s12693_s7 + $0x634] ss:$8 sps:$4 sm:$0xff]  }
 0x295   : > { %9391 = vmatprep.subr.bf16.mxu0 %v11004_v55  ;;  %v11100_v55 = vld [vmem:[%s12693_s7 + $0xf34] ss:$8 sps:$4 sm:$0xff]  }
 0x297   : > { %9005 = vmatpush1.bf16.msra.mxu1 %v10999_v56  ;;  %v11095_v56 = vld [vmem:[%s12693_s7 + $0x630] ss:$8 sps:$4 sm:$0xff]  }
 0x298   : > { %9392 = vmatpush1.bf16.msra.mxu0 %v11002_v57  ;;  %9006 = vmatprep.subr.bf16.mxu1 %v11007_v58  ;;  %v11098_v57 = vld [vmem:[%s12693_s7 + $0xf30] ss:$8 sps:$4 sm:$0xff]   ;;  %v11103_v58 = vld [vmem:[%s12693_s7 + $0x644] ss:$8 sps:$4 sm:$0xff]  }
 0x299   : > { %9393 = vmatprep.subr.bf16.mxu0 %v11010_v59  ;;  %v11106_v59 = vld [vmem:[%s12693_s7 + $0xf44] ss:$8 sps:$4 sm:$0xff]  }
 0x29b   : > { %9007 = vmatpush1.bf16.msra.mxu1 %v11005_v60  ;;  %v11101_v60 = vld [vmem:[%s12693_s7 + $0x640] ss:$8 sps:$4 sm:$0xff]  }
 0x29c   : > { %9394 = vmatpush1.bf16.msra.mxu0 %v11008_v61  ;;  %9008 = vmatprep.subr.bf16.mxu1 %v11013_v62  ;;  %v11104_v61 = vld [vmem:[%s12693_s7 + $0xf40] ss:$8 sps:$4 sm:$0xff]   ;;  %v11109_v62 = vld [vmem:[%s12693_s7 + $0x654] ss:$8 sps:$4 sm:$0xff]  }
 0x29d   : > { %9395 = vmatprep.subr.bf16.mxu0 %v11016_v63  ;;  %v11112_v63 = vld [vmem:[%s12693_s7 + $0xf54] ss:$8 sps:$4 sm:$0xff]  }
 0x29f   : > { %9009 = vmatpush1.bf16.msra.mxu1 %v11011_v0  ;;  %v11107_v0 = vld [vmem:[%s12693_s7 + $0x650] ss:$8 sps:$4 sm:$0xff]  }
 0x2a0   : > { %9396 = vmatpush1.bf16.msra.mxu0 %v11014_v1  ;;  %9010 = vmatprep.subr.bf16.mxu1 %v11019_v2  ;;  %v11110_v1 = vld [vmem:[%s12693_s7 + $0xf50] ss:$8 sps:$4 sm:$0xff]   ;;  %v11115_v2 = vld [vmem:[%s12693_s7 + $0x664] ss:$8 sps:$4 sm:$0xff]  }
 0x2a1   : > { %9397 = vmatprep.subr.bf16.mxu0 %v11022_v3  ;;  %v11118_v3 = vld [vmem:[%s12693_s7 + $0xf64] ss:$8 sps:$4 sm:$0xff]  }
 0x2a3   : > { %9011 = vmatpush1.bf16.msra.mxu1 %v11017_v4  ;;  %v11113_v4 = vld [vmem:[%s12693_s7 + $0x660] ss:$8 sps:$4 sm:$0xff]  }
 0x2a4   : > { %9398 = vmatpush1.bf16.msra.mxu0 %v11020_v5  ;;  %9012 = vmatprep.subr.bf16.mxu1 %v11025_v6  ;;  %v11116_v5 = vld [vmem:[%s12693_s7 + $0xf60] ss:$8 sps:$4 sm:$0xff]   ;;  %v11121_v6 = vld [vmem:[%s12693_s7 + $0x674] ss:$8 sps:$4 sm:$0xff]  }
 0x2a5   : > { %9399 = vmatprep.subr.bf16.mxu0 %v11028_v7  ;;  %v11124_v7 = vld [vmem:[%s12693_s7 + $0xf74] ss:$8 sps:$4 sm:$0xff]  }
 0x2a7   : > { %9013 = vmatpush1.bf16.msra.mxu1 %v11023_v8  ;;  %v11119_v8 = vld [vmem:[%s12693_s7 + $0x670] ss:$8 sps:$4 sm:$0xff]  }
 0x2a8   : > { %9400 = vmatpush1.bf16.msra.mxu0 %v11026_v9  ;;  %9014 = vmatprep.subr.bf16.mxu1 %v11031_v10  ;;  %v11122_v9 = vld [vmem:[%s12693_s7 + $0xf70] ss:$8 sps:$4 sm:$0xff]   ;;  %v11127_v10 = vld [vmem:[%s12693_s7 + $0x684] ss:$8 sps:$4 sm:$0xff]  }
 0x2a9   : > { %9401 = vmatprep.subr.bf16.mxu0 %v11034_v11  ;;  %v11130_v11 = vld [vmem:[%s12693_s7 + $0xf84] ss:$8 sps:$4 sm:$0xff]  }
 0x2ab   : > { %9015 = vmatpush1.bf16.msra.mxu1 %v11029_v12  ;;  %v11125_v12 = vld [vmem:[%s12693_s7 + $0x680] ss:$8 sps:$4 sm:$0xff]  }
 0x2ac   : > { %9402 = vmatpush1.bf16.msra.mxu0 %v11032_v13  ;;  %9016 = vmatprep.subr.bf16.mxu1 %v11037_v14  ;;  %v11128_v13 = vld [vmem:[%s12693_s7 + $0xf80] ss:$8 sps:$4 sm:$0xff]   ;;  %v11133_v14 = vld [vmem:[%s12693_s7 + $0x694] ss:$8 sps:$4 sm:$0xff]  }
 0x2ad   : > { %9403 = vmatprep.subr.bf16.mxu0 %v11040_v15  ;;  %v11136_v15 = vld [vmem:[%s12693_s7 + $0xf94] ss:$8 sps:$4 sm:$0xff]  }
 0x2af   : > { %9017 = vmatpush1.bf16.msra.mxu1 %v11035_v16  ;;  %v11131_v16 = vld [vmem:[%s12693_s7 + $0x690] ss:$8 sps:$4 sm:$0xff]  }
 0x2b0   : > { %9404 = vmatpush1.bf16.msra.mxu0 %v11038_v17  ;;  %9018 = vmatprep.subr.bf16.mxu1 %v11043_v18  ;;  %v11134_v17 = vld [vmem:[%s12693_s7 + $0xf90] ss:$8 sps:$4 sm:$0xff]   ;;  %v11139_v18 = vld [vmem:[%s12693_s7 + $0x6a4] ss:$8 sps:$4 sm:$0xff]  }
 0x2b1   : > { %9405 = vmatprep.subr.bf16.mxu0 %v11046_v19  ;;  %v11142_v19 = vld [vmem:[%s12693_s7 + $0xfa4] ss:$8 sps:$4 sm:$0xff]  }
 0x2b3   : > { %9019 = vmatpush1.bf16.msra.mxu1 %v11041_v20  ;;  %v11137_v20 = vld [vmem:[%s12693_s7 + $0x6a0] ss:$8 sps:$4 sm:$0xff]  }
 0x2b4   : > { %9406 = vmatpush1.bf16.msra.mxu0 %v11044_v21  ;;  %9020 = vmatprep.subr.bf16.mxu1 %v11049_v22  ;;  %v11140_v21 = vld [vmem:[%s12693_s7 + $0xfa0] ss:$8 sps:$4 sm:$0xff]   ;;  %v11145_v22 = vld [vmem:[%s12693_s7 + $0x6b4] ss:$8 sps:$4 sm:$0xff]  }
 0x2b5   : > { %9407 = vmatprep.subr.bf16.mxu0 %v11052_v23  ;;  %v11148_v23 = vld [vmem:[%s12693_s7 + $0xfb4] ss:$8 sps:$4 sm:$0xff]  }
 0x2b7   : > { %9021 = vmatpush1.bf16.msra.mxu1 %v11047_v24  ;;  %v11143_v24 = vld [vmem:[%s12693_s7 + $0x6b0] ss:$8 sps:$4 sm:$0xff]  }
 0x2b8   : > { %9408 = vmatpush1.bf16.msra.mxu0 %v11050_v25  ;;  %9022 = vmatprep.subr.bf16.mxu1 %v11055_v26  ;;  %v11146_v25 = vld [vmem:[%s12693_s7 + $0xfb0] ss:$8 sps:$4 sm:$0xff]   ;;  %v11151_v26 = vld [vmem:[%s12693_s7 + $0x6c4] ss:$8 sps:$4 sm:$0xff]  }
 0x2b9   : > { %9409 = vmatprep.subr.bf16.mxu0 %v11058_v27  ;;  %v11154_v27 = vld [vmem:[%s12693_s7 + $0xfc4] ss:$8 sps:$4 sm:$0xff]  }
 0x2bb   : > { %9023 = vmatpush1.bf16.msra.mxu1 %v11053_v28  ;;  %v11149_v28 = vld [vmem:[%s12693_s7 + $0x6c0] ss:$8 sps:$4 sm:$0xff]  }
 0x2bc   : > { %9410 = vmatpush1.bf16.msra.mxu0 %v11056_v29  ;;  %9024 = vmatprep.subr.bf16.mxu1 %v11061_v30  ;;  %v11152_v29 = vld [vmem:[%s12693_s7 + $0xfc0] ss:$8 sps:$4 sm:$0xff]   ;;  %v11157_v30 = vld [vmem:[%s12693_s7 + $0x6d4] ss:$8 sps:$4 sm:$0xff]  }
 0x2bd   : > { %9411 = vmatprep.subr.bf16.mxu0 %v11064_v31  ;;  %v11160_v31 = vld [vmem:[%s12693_s7 + $0xfd4] ss:$8 sps:$4 sm:$0xff]  }
 0x2bf   : > { %9025 = vmatpush1.bf16.msra.mxu1 %v11059_v32  ;;  %v11155_v32 = vld [vmem:[%s12693_s7 + $0x6d0] ss:$8 sps:$4 sm:$0xff]  }
 0x2c0   : > { %9412 = vmatpush1.bf16.msra.mxu0 %v11062_v33  ;;  %9026 = vmatprep.subr.bf16.mxu1 %v11067_v34  ;;  %v11158_v33 = vld [vmem:[%s12693_s7 + $0xfd0] ss:$8 sps:$4 sm:$0xff]   ;;  %v11163_v34 = vld [vmem:[%s12693_s7 + $0x6e4] ss:$8 sps:$4 sm:$0xff]  }
 0x2c1   : > { %9413 = vmatprep.subr.bf16.mxu0 %v11070_v35  ;;  %v11166_v35 = vld [vmem:[%s12693_s7 + $0xfe4] ss:$8 sps:$4 sm:$0xff]  }
 0x2c3   : > { %9027 = vmatpush1.bf16.msra.mxu1 %v11065_v36  ;;  %v11161_v36 = vld [vmem:[%s12693_s7 + $0x6e0] ss:$8 sps:$4 sm:$0xff]  }
 0x2c4   : > { %9414 = vmatpush1.bf16.msra.mxu0 %v11068_v37  ;;  %9039 = vmatprep.subr.bf16.mxu1 %v11076_v38  ;;  %v11164_v37 = vld [vmem:[%s12693_s7 + $0xfe0] ss:$8 sps:$4 sm:$0xff]   ;;  %v11169_v38 = vld [vmem:[%s12693_s7 + $0x6f4] ss:$8 sps:$4 sm:$0xff]  }
 0x2c5   : > { %9426 = vmatprep.subr.bf16.mxu0 %v11082_v41  ;;  %v11170_v41 = vld [vmem:[%s12693_s7 + $0xff0] ss:$8 sps:$4 sm:$0xff]  }
 0x2c6   : > { %9029 = vmatmul.mubr.bf16.vlgmr.msra.gmra.mrb[0].mxu1 %v11071_v39  ;;  %v11172_v39 = vld [vmem:[%s12693_s7 + $0xff4] ss:$8 sps:$4 sm:$0xff]  }
 0x2c7   : > { %9416 = vmatmul.mubr.bf16.vlgmr.msra.gmra.mrb[0].mxu0 %v11077_v40  ;;  %9040 = vmatpush1.bf16.msra.mxu1 %v11074_v42  ;;  %v11167_v40 = vld [vmem:[%s12693_s7 + $0x6f0] ss:$8 sps:$4 sm:$0xff]   ;;  %v11178_v42 = vld [vmem:[%s12693_s7 + $0x704] ss:$8 sps:$4 sm:$0xff]  }
 0x2c8   : > { %9427 = vmatpush1.bf16.msra.mxu0 %v11080_v43  ;;  %9041 = vmatprep.subr.bf16.mxu1 %v11085_v44  ;;  %v11184_v43 = vld [vmem:[%s12693_s7 + $0x1004] ss:$8 sps:$4 sm:$0xff]  }
 0x2c9   : > { %9428 = vmatprep.subr.bf16.mxu0 %v11088_v45  ;;  %9071 = vmatprep.mubr.bf16.mxu1 %v11175_v46  ;;  %v11173_v44 = vld [vmem:[%s13414_s0 + $0x30] ss:$148 sps:$4 sm:$0xff]   ;;  %v11179_v45 = vld [vmem:[%s13414_s0 + $0x78] ss:$148 sps:$4 sm:$0xff]   ;;  %v11176_v46 = vld [vmem:[%s12693_s7 + $0x700] ss:$8 sps:$4 sm:$0xff]  }
 0x2ca   : > { %9458 = vmatprep.mubr.bf16.mxu0 %v11181_v47  ;;  %v11182_v47 = vld [vmem:[%s12693_s7 + $0x1000] ss:$8 sps:$4 sm:$0xff]  }
 0x2cb   : > { %9042 = vmatpush1.bf16.msra.mxu1 %v11083_v48  ;;  %v11187_v48 = vld [vmem:[%s12693_s7 + $0x714] ss:$8 sps:$4 sm:$0xff]  }
 0x2cc   : > { %9429 = vmatpush1.bf16.msra.mxu0 %v11086_v49  ;;  %9043 = vmatprep.subr.bf16.mxu1 %v11091_v50  ;;  %v11190_v49 = vld [vmem:[%s12693_s7 + $0x1014] ss:$8 sps:$4 sm:$0xff]  }
 0x2cd   : > { %9430 = vmatprep.subr.bf16.mxu0 %v11094_v51  ;;  %v11277_v50 = vld [vmem:[%s13414_s0 + $0x3c] ss:$148 sps:$4 sm:$0xff]   ;;  %v11283_v51 = vld [vmem:[%s13414_s0 + $0x84] ss:$148 sps:$4 sm:$0xff]  }
 0x2cf   : > { %9044 = vmatpush1.bf16.msra.mxu1 %v11089_v52  ;;  %v11185_v52 = vld [vmem:[%s12693_s7 + $0x710] ss:$8 sps:$4 sm:$0xff]  }
 0x2d0   : > { %9431 = vmatpush1.bf16.msra.mxu0 %v11092_v53  ;;  %9045 = vmatprep.subr.bf16.mxu1 %v11097_v54  ;;  %v11188_v53 = vld [vmem:[%s12693_s7 + $0x1010] ss:$8 sps:$4 sm:$0xff]   ;;  %v11193_v54 = vld [vmem:[%s12693_s7 + $0x724] ss:$8 sps:$4 sm:$0xff]  }
 0x2d1   : > { %9432 = vmatprep.subr.bf16.mxu0 %v11100_v55  ;;  %v11196_v55 = vld [vmem:[%s12693_s7 + $0x1024] ss:$8 sps:$4 sm:$0xff]  }
 0x2d3   : > { %9046 = vmatpush1.bf16.msra.mxu1 %v11095_v56  ;;  %v11191_v56 = vld [vmem:[%s12693_s7 + $0x720] ss:$8 sps:$4 sm:$0xff]  }
 0x2d4   : > { %9433 = vmatpush1.bf16.msra.mxu0 %v11098_v57  ;;  %9047 = vmatprep.subr.bf16.mxu1 %v11103_v58  ;;  %v11194_v57 = vld [vmem:[%s12693_s7 + $0x1020] ss:$8 sps:$4 sm:$0xff]   ;;  %v11199_v58 = vld [vmem:[%s12693_s7 + $0x734] ss:$8 sps:$4 sm:$0xff]  }
 0x2d5   : > { %9434 = vmatprep.subr.bf16.mxu0 %v11106_v59  ;;  %v11202_v59 = vld [vmem:[%s12693_s7 + $0x1034] ss:$8 sps:$4 sm:$0xff]  }
 0x2d7   : > { %9048 = vmatpush1.bf16.msra.mxu1 %v11101_v60  ;;  %v11197_v60 = vld [vmem:[%s12693_s7 + $0x730] ss:$8 sps:$4 sm:$0xff]  }
 0x2d8   : > { %9435 = vmatpush1.bf16.msra.mxu0 %v11104_v61  ;;  %9049 = vmatprep.subr.bf16.mxu1 %v11109_v62  ;;  %v11200_v61 = vld [vmem:[%s12693_s7 + $0x1030] ss:$8 sps:$4 sm:$0xff]   ;;  %v11205_v62 = vld [vmem:[%s12693_s7 + $0x744] ss:$8 sps:$4 sm:$0xff]  }
 0x2d9   : > { %9436 = vmatprep.subr.bf16.mxu0 %v11112_v63  ;;  %v11208_v63 = vld [vmem:[%s12693_s7 + $0x1044] ss:$8 sps:$4 sm:$0xff]  }
 0x2db   : > { %9050 = vmatpush1.bf16.msra.mxu1 %v11107_v0  ;;  %v11203_v0 = vld [vmem:[%s12693_s7 + $0x740] ss:$8 sps:$4 sm:$0xff]  }
 0x2dc   : > { %9437 = vmatpush1.bf16.msra.mxu0 %v11110_v1  ;;  %9051 = vmatprep.subr.bf16.mxu1 %v11115_v2  ;;  %v11206_v1 = vld [vmem:[%s12693_s7 + $0x1040] ss:$8 sps:$4 sm:$0xff]   ;;  %v11211_v2 = vld [vmem:[%s12693_s7 + $0x754] ss:$8 sps:$4 sm:$0xff]  }
 0x2dd   : > { %9438 = vmatprep.subr.bf16.mxu0 %v11118_v3  ;;  %v11214_v3 = vld [vmem:[%s12693_s7 + $0x1054] ss:$8 sps:$4 sm:$0xff]  }
 0x2df   : > { %9052 = vmatpush1.bf16.msra.mxu1 %v11113_v4  ;;  %v11209_v4 = vld [vmem:[%s12693_s7 + $0x750] ss:$8 sps:$4 sm:$0xff]  }
 0x2e0   : > { %9439 = vmatpush1.bf16.msra.mxu0 %v11116_v5  ;;  %9053 = vmatprep.subr.bf16.mxu1 %v11121_v6  ;;  %v11212_v5 = vld [vmem:[%s12693_s7 + $0x1050] ss:$8 sps:$4 sm:$0xff]   ;;  %v11217_v6 = vld [vmem:[%s12693_s7 + $0x764] ss:$8 sps:$4 sm:$0xff]  }
 0x2e1   : > { %9440 = vmatprep.subr.bf16.mxu0 %v11124_v7  ;;  %v11220_v7 = vld [vmem:[%s12693_s7 + $0x1064] ss:$8 sps:$4 sm:$0xff]  }
 0x2e3   : > { %9054 = vmatpush1.bf16.msra.mxu1 %v11119_v8  ;;  %v11215_v8 = vld [vmem:[%s12693_s7 + $0x760] ss:$8 sps:$4 sm:$0xff]  }
 0x2e4   : > { %9441 = vmatpush1.bf16.msra.mxu0 %v11122_v9  ;;  %9055 = vmatprep.subr.bf16.mxu1 %v11127_v10  ;;  %v11218_v9 = vld [vmem:[%s12693_s7 + $0x1060] ss:$8 sps:$4 sm:$0xff]   ;;  %v11223_v10 = vld [vmem:[%s12693_s7 + $0x774] ss:$8 sps:$4 sm:$0xff]  }
 0x2e5   : > { %9442 = vmatprep.subr.bf16.mxu0 %v11130_v11  ;;  %v11226_v11 = vld [vmem:[%s12693_s7 + $0x1074] ss:$8 sps:$4 sm:$0xff]  }
 0x2e7   : > { %9056 = vmatpush1.bf16.msra.mxu1 %v11125_v12  ;;  %v11221_v12 = vld [vmem:[%s12693_s7 + $0x770] ss:$8 sps:$4 sm:$0xff]  }
 0x2e8   : > { %9443 = vmatpush1.bf16.msra.mxu0 %v11128_v13  ;;  %9057 = vmatprep.subr.bf16.mxu1 %v11133_v14  ;;  %v11224_v13 = vld [vmem:[%s12693_s7 + $0x1070] ss:$8 sps:$4 sm:$0xff]   ;;  %v11229_v14 = vld [vmem:[%s12693_s7 + $0x784] ss:$8 sps:$4 sm:$0xff]  }
 0x2e9   : > { %9444 = vmatprep.subr.bf16.mxu0 %v11136_v15  ;;  %v11232_v15 = vld [vmem:[%s12693_s7 + $0x1084] ss:$8 sps:$4 sm:$0xff]  }
 0x2eb   : > { %9058 = vmatpush1.bf16.msra.mxu1 %v11131_v16  ;;  %v11227_v16 = vld [vmem:[%s12693_s7 + $0x780] ss:$8 sps:$4 sm:$0xff]  }
 0x2ec   : > { %9445 = vmatpush1.bf16.msra.mxu0 %v11134_v17  ;;  %9059 = vmatprep.subr.bf16.mxu1 %v11139_v18  ;;  %v11230_v17 = vld [vmem:[%s12693_s7 + $0x1080] ss:$8 sps:$4 sm:$0xff]   ;;  %v11235_v18 = vld [vmem:[%s12693_s7 + $0x794] ss:$8 sps:$4 sm:$0xff]  }
 0x2ed   : > { %9446 = vmatprep.subr.bf16.mxu0 %v11142_v19  ;;  %v11238_v19 = vld [vmem:[%s12693_s7 + $0x1094] ss:$8 sps:$4 sm:$0xff]  }
 0x2ef   : > { %9060 = vmatpush1.bf16.msra.mxu1 %v11137_v20  ;;  %v11233_v20 = vld [vmem:[%s12693_s7 + $0x790] ss:$8 sps:$4 sm:$0xff]  }
 0x2f0   : > { %9447 = vmatpush1.bf16.msra.mxu0 %v11140_v21  ;;  %9061 = vmatprep.subr.bf16.mxu1 %v11145_v22  ;;  %v11236_v21 = vld [vmem:[%s12693_s7 + $0x1090] ss:$8 sps:$4 sm:$0xff]   ;;  %v11241_v22 = vld [vmem:[%s12693_s7 + $0x7a4] ss:$8 sps:$4 sm:$0xff]  }
 0x2f1   : > { %9448 = vmatprep.subr.bf16.mxu0 %v11148_v23  ;;  %v11244_v23 = vld [vmem:[%s12693_s7 + $0x10a4] ss:$8 sps:$4 sm:$0xff]  }
 0x2f3   : > { %9062 = vmatpush1.bf16.msra.mxu1 %v11143_v24  ;;  %v11239_v24 = vld [vmem:[%s12693_s7 + $0x7a0] ss:$8 sps:$4 sm:$0xff]  }
 0x2f4   : > { %9449 = vmatpush1.bf16.msra.mxu0 %v11146_v25  ;;  %9063 = vmatprep.subr.bf16.mxu1 %v11151_v26  ;;  %v11242_v25 = vld [vmem:[%s12693_s7 + $0x10a0] ss:$8 sps:$4 sm:$0xff]   ;;  %v11247_v26 = vld [vmem:[%s12693_s7 + $0x7b4] ss:$8 sps:$4 sm:$0xff]  }
 0x2f5   : > { %9450 = vmatprep.subr.bf16.mxu0 %v11154_v27  ;;  %v11250_v27 = vld [vmem:[%s12693_s7 + $0x10b4] ss:$8 sps:$4 sm:$0xff]  }
 0x2f7   : > { %9064 = vmatpush1.bf16.msra.mxu1 %v11149_v28  ;;  %v11245_v28 = vld [vmem:[%s12693_s7 + $0x7b0] ss:$8 sps:$4 sm:$0xff]  }
 0x2f8   : > { %9451 = vmatpush1.bf16.msra.mxu0 %v11152_v29  ;;  %9065 = vmatprep.subr.bf16.mxu1 %v11157_v30  ;;  %v11248_v29 = vld [vmem:[%s12693_s7 + $0x10b0] ss:$8 sps:$4 sm:$0xff]   ;;  %v11253_v30 = vld [vmem:[%s12693_s7 + $0x7c4] ss:$8 sps:$4 sm:$0xff]  }
 0x2f9   : > { %9452 = vmatprep.subr.bf16.mxu0 %v11160_v31  ;;  %v11256_v31 = vld [vmem:[%s12693_s7 + $0x10c4] ss:$8 sps:$4 sm:$0xff]  }
 0x2fb   : > { %9066 = vmatpush1.bf16.msra.mxu1 %v11155_v32  ;;  %v11251_v32 = vld [vmem:[%s12693_s7 + $0x7c0] ss:$8 sps:$4 sm:$0xff]  }
 0x2fc   : > { %9453 = vmatpush1.bf16.msra.mxu0 %v11158_v33  ;;  %9067 = vmatprep.subr.bf16.mxu1 %v11163_v34  ;;  %v11254_v33 = vld [vmem:[%s12693_s7 + $0x10c0] ss:$8 sps:$4 sm:$0xff]   ;;  %v11259_v34 = vld [vmem:[%s12693_s7 + $0x7d4] ss:$8 sps:$4 sm:$0xff]  }
 0x2fd   : > { %9454 = vmatprep.subr.bf16.mxu0 %v11166_v35  ;;  %v11262_v35 = vld [vmem:[%s12693_s7 + $0x10d4] ss:$8 sps:$4 sm:$0xff]  }
 0x2ff   : > { %9068 = vmatpush1.bf16.msra.mxu1 %v11161_v36  ;;  %v11257_v36 = vld [vmem:[%s12693_s7 + $0x7d0] ss:$8 sps:$4 sm:$0xff]  }
 0x300   : > { %9455 = vmatpush1.bf16.msra.mxu0 %v11164_v37  ;;  %9069 = vmatprep.subr.bf16.mxu1 %v11169_v38  ;;  %v11260_v37 = vld [vmem:[%s12693_s7 + $0x10d0] ss:$8 sps:$4 sm:$0xff]   ;;  %v11265_v38 = vld [vmem:[%s12693_s7 + $0x7e4] ss:$8 sps:$4 sm:$0xff]  }
 0x301   : > { %9456 = vmatprep.subr.bf16.mxu0 %v11172_v39  ;;  %v11268_v39 = vld [vmem:[%s12693_s7 + $0x10e4] ss:$8 sps:$4 sm:$0xff]  }
 0x303   : > { %9070 = vmatpush1.bf16.msra.mxu1 %v11167_v40  ;;  %v11263_v40 = vld [vmem:[%s12693_s7 + $0x7e0] ss:$8 sps:$4 sm:$0xff]  }
 0x304   : > { %9457 = vmatpush1.bf16.msra.mxu0 %v11170_v41  ;;  %9082 = vmatprep.subr.bf16.mxu1 %v11178_v42  ;;  %v11266_v41 = vld [vmem:[%s12693_s7 + $0x10e0] ss:$8 sps:$4 sm:$0xff]   ;;  %v11271_v42 = vld [vmem:[%s12693_s7 + $0x7f4] ss:$8 sps:$4 sm:$0xff]  }
 0x305   : > { %9469 = vmatprep.subr.bf16.mxu0 %v11184_v43  ;;  %v11274_v43 = vld [vmem:[%s12693_s7 + $0x10f4] ss:$8 sps:$4 sm:$0xff]  }
 0x306   : > { %9072 = vmatmul.mubr.bf16.vlgmr.msra.gmra.mrb[0].mxu1 %v11173_v44  ;;  %v11269_v44 = vld [vmem:[%s12693_s7 + $0x7f0] ss:$8 sps:$4 sm:$0xff]  }
 0x307   : > { %9459 = vmatmul.mubr.bf16.vlgmr.msra.gmra.mrb[0].mxu0 %v11179_v45  ;;  %9083 = vmatpush1.bf16.msra.mxu1 %v11176_v46  ;;  %v11272_v45 = vld [vmem:[%s12693_s7 + $0x10f0] ss:$8 sps:$4 sm:$0xff]   ;;  %v11280_v46 = vld [vmem:[%s12693_s7 + $0x804] ss:$8 sps:$4 sm:$0xff]  }
 0x308   : > { %9470 = vmatpush1.bf16.msra.mxu0 %v11182_v47  ;;  %9084 = vmatprep.subr.bf16.mxu1 %v11187_v48  ;;  %v11286_v47 = vld [vmem:[%s12693_s7 + $0x1104] ss:$8 sps:$4 sm:$0xff]  }
 0x309   : > { %9471 = vmatprep.subr.bf16.mxu0 %v11190_v49  ;;  %9114 = vmatprep.mubr.bf16.mxu1 %v11277_v50  ;;  %v11275_v48 = vld [vmem:[%s13414_s0 + $0x38] ss:$148 sps:$4 sm:$0xff]   ;;  %v11281_v49 = vld [vmem:[%s13414_s0 + $0x80] ss:$148 sps:$4 sm:$0xff]  }
 0x30a   : > { %9501 = vmatprep.mubr.bf16.mxu0 %v11283_v51  ;;  %v11278_v50 = vld [vmem:[%s12693_s7 + $0x800] ss:$8 sps:$4 sm:$0xff]  }
 0x30b   : > { %9085 = vmatpush1.bf16.msra.mxu1 %v11185_v52  ;;  %v11284_v51 = vld [vmem:[%s12693_s7 + $0x1100] ss:$8 sps:$4 sm:$0xff]   ;;  %v11289_v52 = vld [vmem:[%s12693_s7 + $0x814] ss:$8 sps:$4 sm:$0xff]  }
 0x30c   : > { %9472 = vmatpush1.bf16.msra.mxu0 %v11188_v53  ;;  %9086 = vmatprep.subr.bf16.mxu1 %v11193_v54  ;;  %v11292_v53 = vld [vmem:[%s12693_s7 + $0x1114] ss:$8 sps:$4 sm:$0xff]   ;;  %v11379_v54 = vld [vmem:[%s13414_s0 + $0x44] ss:$148 sps:$4 sm:$0xff]  }
 0x30d   : > { %9473 = vmatprep.subr.bf16.mxu0 %v11196_v55  ;;  %v11382_v55 = vld [vmem:[%s13414_s0 + $0x8c] ss:$148 sps:$4 sm:$0xff]  }
 0x30f   : > { %9087 = vmatpush1.bf16.msra.mxu1 %v11191_v56  ;;  %v11287_v56 = vld [vmem:[%s12693_s7 + $0x810] ss:$8 sps:$4 sm:$0xff]  }
 0x310   : > { %9474 = vmatpush1.bf16.msra.mxu0 %v11194_v57  ;;  %9088 = vmatprep.subr.bf16.mxu1 %v11199_v58  ;;  %v11290_v57 = vld [vmem:[%s12693_s7 + $0x1110] ss:$8 sps:$4 sm:$0xff]   ;;  %v11295_v58 = vld [vmem:[%s12693_s7 + $0x824] ss:$8 sps:$4 sm:$0xff]  }
 0x311   : > { %9475 = vmatprep.subr.bf16.mxu0 %v11202_v59  ;;  %v11298_v59 = vld [vmem:[%s12693_s7 + $0x1124] ss:$8 sps:$4 sm:$0xff]  }
 0x313   : > { %9089 = vmatpush1.bf16.msra.mxu1 %v11197_v60  ;;  %v11293_v60 = vld [vmem:[%s12693_s7 + $0x820] ss:$8 sps:$4 sm:$0xff]  }
 0x314   : > { %9476 = vmatpush1.bf16.msra.mxu0 %v11200_v61  ;;  %9090 = vmatprep.subr.bf16.mxu1 %v11205_v62  ;;  %v11296_v61 = vld [vmem:[%s12693_s7 + $0x1120] ss:$8 sps:$4 sm:$0xff]   ;;  %v11301_v62 = vld [vmem:[%s12693_s7 + $0x834] ss:$8 sps:$4 sm:$0xff]  }
 0x315   : > { %9477 = vmatprep.subr.bf16.mxu0 %v11208_v63  ;;  %v11304_v63 = vld [vmem:[%s12693_s7 + $0x1134] ss:$8 sps:$4 sm:$0xff]  }
 0x317   : > { %9091 = vmatpush1.bf16.msra.mxu1 %v11203_v0  ;;  %v11299_v0 = vld [vmem:[%s12693_s7 + $0x830] ss:$8 sps:$4 sm:$0xff]  }
 0x318   : > { %9478 = vmatpush1.bf16.msra.mxu0 %v11206_v1  ;;  %9092 = vmatprep.subr.bf16.mxu1 %v11211_v2  ;;  %v11302_v1 = vld [vmem:[%s12693_s7 + $0x1130] ss:$8 sps:$4 sm:$0xff]   ;;  %v11307_v2 = vld [vmem:[%s12693_s7 + $0x844] ss:$8 sps:$4 sm:$0xff]  }
 0x319   : > { %9479 = vmatprep.subr.bf16.mxu0 %v11214_v3  ;;  %v11310_v3 = vld [vmem:[%s12693_s7 + $0x1144] ss:$8 sps:$4 sm:$0xff]  }
 0x31b   : > { %9093 = vmatpush1.bf16.msra.mxu1 %v11209_v4  ;;  %v11305_v4 = vld [vmem:[%s12693_s7 + $0x840] ss:$8 sps:$4 sm:$0xff]  }
 0x31c   : > { %9480 = vmatpush1.bf16.msra.mxu0 %v11212_v5  ;;  %9094 = vmatprep.subr.bf16.mxu1 %v11217_v6  ;;  %v11308_v5 = vld [vmem:[%s12693_s7 + $0x1140] ss:$8 sps:$4 sm:$0xff]   ;;  %v11313_v6 = vld [vmem:[%s12693_s7 + $0x854] ss:$8 sps:$4 sm:$0xff]  }
 0x31d   : > { %9481 = vmatprep.subr.bf16.mxu0 %v11220_v7  ;;  %v11316_v7 = vld [vmem:[%s12693_s7 + $0x1154] ss:$8 sps:$4 sm:$0xff]  }
 0x31f   : > { %9095 = vmatpush1.bf16.msra.mxu1 %v11215_v8  ;;  %v11311_v8 = vld [vmem:[%s12693_s7 + $0x850] ss:$8 sps:$4 sm:$0xff]  }
 0x320   : > { %9482 = vmatpush1.bf16.msra.mxu0 %v11218_v9  ;;  %9096 = vmatprep.subr.bf16.mxu1 %v11223_v10  ;;  %v11314_v9 = vld [vmem:[%s12693_s7 + $0x1150] ss:$8 sps:$4 sm:$0xff]   ;;  %v11319_v10 = vld [vmem:[%s12693_s7 + $0x864] ss:$8 sps:$4 sm:$0xff]  }
 0x321   : > { %9483 = vmatprep.subr.bf16.mxu0 %v11226_v11  ;;  %v11322_v11 = vld [vmem:[%s12693_s7 + $0x1164] ss:$8 sps:$4 sm:$0xff]  }
 0x323   : > { %9097 = vmatpush1.bf16.msra.mxu1 %v11221_v12  ;;  %v11317_v12 = vld [vmem:[%s12693_s7 + $0x860] ss:$8 sps:$4 sm:$0xff]  }
 0x324   : > { %9484 = vmatpush1.bf16.msra.mxu0 %v11224_v13  ;;  %9098 = vmatprep.subr.bf16.mxu1 %v11229_v14  ;;  %v11320_v13 = vld [vmem:[%s12693_s7 + $0x1160] ss:$8 sps:$4 sm:$0xff]   ;;  %v11325_v14 = vld [vmem:[%s12693_s7 + $0x874] ss:$8 sps:$4 sm:$0xff]  }
 0x325   : > { %9485 = vmatprep.subr.bf16.mxu0 %v11232_v15  ;;  %v11328_v15 = vld [vmem:[%s12693_s7 + $0x1174] ss:$8 sps:$4 sm:$0xff]  }
 0x327   : > { %9099 = vmatpush1.bf16.msra.mxu1 %v11227_v16  ;;  %v11323_v16 = vld [vmem:[%s12693_s7 + $0x870] ss:$8 sps:$4 sm:$0xff]  }
 0x328   : > { %9486 = vmatpush1.bf16.msra.mxu0 %v11230_v17  ;;  %9100 = vmatprep.subr.bf16.mxu1 %v11235_v18  ;;  %v11326_v17 = vld [vmem:[%s12693_s7 + $0x1170] ss:$8 sps:$4 sm:$0xff]   ;;  %v11331_v18 = vld [vmem:[%s12693_s7 + $0x884] ss:$8 sps:$4 sm:$0xff]  }
 0x329   : > { %9487 = vmatprep.subr.bf16.mxu0 %v11238_v19  ;;  %v11334_v19 = vld [vmem:[%s12693_s7 + $0x1184] ss:$8 sps:$4 sm:$0xff]  }
 0x32b   : > { %9101 = vmatpush1.bf16.msra.mxu1 %v11233_v20  ;;  %v11329_v20 = vld [vmem:[%s12693_s7 + $0x880] ss:$8 sps:$4 sm:$0xff]  }
 0x32c   : > { %9488 = vmatpush1.bf16.msra.mxu0 %v11236_v21  ;;  %9102 = vmatprep.subr.bf16.mxu1 %v11241_v22  ;;  %v11332_v21 = vld [vmem:[%s12693_s7 + $0x1180] ss:$8 sps:$4 sm:$0xff]   ;;  %v11337_v22 = vld [vmem:[%s12693_s7 + $0x894] ss:$8 sps:$4 sm:$0xff]  }
 0x32d   : > { %9489 = vmatprep.subr.bf16.mxu0 %v11244_v23  ;;  %v11340_v23 = vld [vmem:[%s12693_s7 + $0x1194] ss:$8 sps:$4 sm:$0xff]  }
 0x32f   : > { %9103 = vmatpush1.bf16.msra.mxu1 %v11239_v24  ;;  %v11335_v24 = vld [vmem:[%s12693_s7 + $0x890] ss:$8 sps:$4 sm:$0xff]  }
 0x330   : > { %9490 = vmatpush1.bf16.msra.mxu0 %v11242_v25  ;;  %9104 = vmatprep.subr.bf16.mxu1 %v11247_v26  ;;  %v11338_v25 = vld [vmem:[%s12693_s7 + $0x1190] ss:$8 sps:$4 sm:$0xff]   ;;  %v11343_v26 = vld [vmem:[%s12693_s7 + $0x8a4] ss:$8 sps:$4 sm:$0xff]  }
 0x331   : > { %9491 = vmatprep.subr.bf16.mxu0 %v11250_v27  ;;  %v11346_v27 = vld [vmem:[%s12693_s7 + $0x11a4] ss:$8 sps:$4 sm:$0xff]  }
 0x333   : > { %9105 = vmatpush1.bf16.msra.mxu1 %v11245_v28  ;;  %v11341_v28 = vld [vmem:[%s12693_s7 + $0x8a0] ss:$8 sps:$4 sm:$0xff]  }
 0x334   : > { %9492 = vmatpush1.bf16.msra.mxu0 %v11248_v29  ;;  %9106 = vmatprep.subr.bf16.mxu1 %v11253_v30  ;;  %v11344_v29 = vld [vmem:[%s12693_s7 + $0x11a0] ss:$8 sps:$4 sm:$0xff]   ;;  %v11349_v30 = vld [vmem:[%s12693_s7 + $0x8b4] ss:$8 sps:$4 sm:$0xff]  }
 0x335   : > { %9493 = vmatprep.subr.bf16.mxu0 %v11256_v31  ;;  %v11352_v31 = vld [vmem:[%s12693_s7 + $0x11b4] ss:$8 sps:$4 sm:$0xff]  }
 0x337   : > { %9107 = vmatpush1.bf16.msra.mxu1 %v11251_v32  ;;  %v11347_v32 = vld [vmem:[%s12693_s7 + $0x8b0] ss:$8 sps:$4 sm:$0xff]  }
 0x338   : > { %9494 = vmatpush1.bf16.msra.mxu0 %v11254_v33  ;;  %9108 = vmatprep.subr.bf16.mxu1 %v11259_v34  ;;  %v11350_v33 = vld [vmem:[%s12693_s7 + $0x11b0] ss:$8 sps:$4 sm:$0xff]   ;;  %v11355_v34 = vld [vmem:[%s12693_s7 + $0x8c4] ss:$8 sps:$4 sm:$0xff]  }
 0x339   : > { %9495 = vmatprep.subr.bf16.mxu0 %v11262_v35  ;;  %v11358_v35 = vld [vmem:[%s12693_s7 + $0x11c4] ss:$8 sps:$4 sm:$0xff]  }
 0x33b   : > { %9109 = vmatpush1.bf16.msra.mxu1 %v11257_v36  ;;  %v11353_v36 = vld [vmem:[%s12693_s7 + $0x8c0] ss:$8 sps:$4 sm:$0xff]  }
 0x33c   : > { %9496 = vmatpush1.bf16.msra.mxu0 %v11260_v37  ;;  %9110 = vmatprep.subr.bf16.mxu1 %v11265_v38  ;;  %v11356_v37 = vld [vmem:[%s12693_s7 + $0x11c0] ss:$8 sps:$4 sm:$0xff]   ;;  %v11361_v38 = vld [vmem:[%s12693_s7 + $0x8d4] ss:$8 sps:$4 sm:$0xff]  }
 0x33d   : > { %9497 = vmatprep.subr.bf16.mxu0 %v11268_v39  ;;  %v11364_v39 = vld [vmem:[%s12693_s7 + $0x11d4] ss:$8 sps:$4 sm:$0xff]  }
 0x33f   : > { %9111 = vmatpush1.bf16.msra.mxu1 %v11263_v40  ;;  %v11359_v40 = vld [vmem:[%s12693_s7 + $0x8d0] ss:$8 sps:$4 sm:$0xff]  }
 0x340   : > { %9498 = vmatpush1.bf16.msra.mxu0 %v11266_v41  ;;  %9112 = vmatprep.subr.bf16.mxu1 %v11271_v42  ;;  %v11362_v41 = vld [vmem:[%s12693_s7 + $0x11d0] ss:$8 sps:$4 sm:$0xff]   ;;  %v11367_v42 = vld [vmem:[%s12693_s7 + $0x8e4] ss:$8 sps:$4 sm:$0xff]  }
 0x341   : > { %9499 = vmatprep.subr.bf16.mxu0 %v11274_v43  ;;  %v11370_v43 = vld [vmem:[%s12693_s7 + $0x11e4] ss:$8 sps:$4 sm:$0xff]  }
 0x343   : > { %9113 = vmatpush1.bf16.msra.mxu1 %v11269_v44  ;;  %v11365_v44 = vld [vmem:[%s12693_s7 + $0x8e0] ss:$8 sps:$4 sm:$0xff]  }
 0x344   : > { %9500 = vmatpush1.bf16.msra.mxu0 %v11272_v45  ;;  %9125 = vmatprep.subr.bf16.mxu1 %v11280_v46  ;;  %v11368_v45 = vld [vmem:[%s12693_s7 + $0x11e0] ss:$8 sps:$4 sm:$0xff]   ;;  %v11373_v46 = vld [vmem:[%s12693_s7 + $0x8f4] ss:$8 sps:$4 sm:$0xff]  }
 0x345   : > { %9512 = vmatprep.subr.bf16.mxu0 %v11286_v47  ;;  %v11376_v47 = vld [vmem:[%s12693_s7 + $0x11f4] ss:$8 sps:$4 sm:$0xff]  }
 0x346   : > { %9115 = vmatmul.mubr.bf16.vlgmr.msra.gmra.mrb[0].mxu1 %v11275_v48  ;;  %v11371_v48 = vld [vmem:[%s12693_s7 + $0x8f0] ss:$8 sps:$4 sm:$0xff]  }
 0x347   : > { %9502 = vmatmul.mubr.bf16.vlgmr.msra.gmra.mrb[0].mxu0 %v11281_v49  ;;  %9126 = vmatpush1.bf16.msra.mxu1 %v11278_v50  ;;  %v11374_v49 = vld [vmem:[%s12693_s7 + $0x11f0] ss:$8 sps:$4 sm:$0xff]   ;;  %v11385_v50 = vld [vmem:[%s12693_s7 + $0x1204] ss:$8 sps:$4 sm:$0xff]  }
 0x348   : > { %9513 = vmatpush1.bf16.msra.mxu0 %v11284_v51  ;;  %9127 = vmatprep.subr.bf16.mxu1 %v11289_v52  ;;  %v11377_v51 = vld [vmem:[%s13414_s0 + $0x40] ss:$148 sps:$4 sm:$0xff]   ;;  %v11380_v52 = vld [vmem:[%s13414_s0 + $0x88] ss:$148 sps:$4 sm:$0xff]  }
 0x349   : > { %9514 = vmatprep.subr.bf16.mxu0 %v11292_v53  ;;  %9157 = vmatprep.mubr.bf16.mxu1 %v11379_v54  ;;  %v11383_v53 = vld [vmem:[%s12693_s7 + $0x1200] ss:$8 sps:$4 sm:$0xff]   ;;  %v11388_v54 = vld [vmem:[%s12693_s7 + $0x1214] ss:$8 sps:$4 sm:$0xff]  }
 0x34a   : > { %9544 = vmatprep.mubr.bf16.mxu0 %v11382_v55  ;;  %v11386_v55 = vld [vmem:[%s12693_s7 + $0x1210] ss:$8 sps:$4 sm:$0xff]  }
 0x34b   : > { %9128 = vmatpush1.bf16.msra.mxu1 %v11287_v56  ;;  %v11432_v56 = vmov 0  }
 0x34c   : > { %9515 = vmatpush1.bf16.msra.mxu0 %v11290_v57  ;;  %9129 = vmatprep.subr.bf16.mxu1 %v11295_v58  ;;  %v11391_v57 = vld [vmem:[%s12693_s7 + $0x1224] ss:$8 sps:$4 sm:$0xff]   ;;  %v11389_v58 = vld [vmem:[%s12693_s7 + $0x1220] ss:$8 sps:$4 sm:$0xff]  }
 0x34d   : > { %9516 = vmatprep.subr.bf16.mxu0 %v11298_v59  ;;  %v11394_v59 = vld [vmem:[%s12693_s7 + $0x1234] ss:$8 sps:$4 sm:$0xff]  }
 0x34f   : > { %9130 = vmatpush1.bf16.msra.mxu1 %v11293_v60  ;;  %v11392_v60 = vld [vmem:[%s12693_s7 + $0x1230] ss:$8 sps:$4 sm:$0xff]  }
 0x350   : > { %9517 = vmatpush1.bf16.msra.mxu0 %v11296_v61  ;;  %9131 = vmatprep.subr.bf16.mxu1 %v11301_v62  ;;  %v11397_v61 = vld [vmem:[%s12693_s7 + $0x1244] ss:$8 sps:$4 sm:$0xff]   ;;  %v11395_v62 = vld [vmem:[%s12693_s7 + $0x1240] ss:$8 sps:$4 sm:$0xff]  }
 0x351   : > { %9518 = vmatprep.subr.bf16.mxu0 %v11304_v63  ;;  %v11400_v63 = vld [vmem:[%s12693_s7 + $0x1254] ss:$8 sps:$4 sm:$0xff]  }
 0x353   : > { %9132 = vmatpush1.bf16.msra.mxu1 %v11299_v0  ;;  %v11398_v0 = vld [vmem:[%s12693_s7 + $0x1250] ss:$8 sps:$4 sm:$0xff]  }
 0x354   : > { %9519 = vmatpush1.bf16.msra.mxu0 %v11302_v1  ;;  %9133 = vmatprep.subr.bf16.mxu1 %v11307_v2  ;;  %v11403_v1 = vld [vmem:[%s12693_s7 + $0x1264] ss:$8 sps:$4 sm:$0xff]   ;;  %v11401_v2 = vld [vmem:[%s12693_s7 + $0x1260] ss:$8 sps:$4 sm:$0xff]  }
 0x355   : > { %9520 = vmatprep.subr.bf16.mxu0 %v11310_v3  ;;  %v11406_v3 = vld [vmem:[%s12693_s7 + $0x1274] ss:$8 sps:$4 sm:$0xff]  }
 0x357   : > { %9134 = vmatpush1.bf16.msra.mxu1 %v11305_v4  ;;  %v11404_v4 = vld [vmem:[%s12693_s7 + $0x1270] ss:$8 sps:$4 sm:$0xff]   ;;  %s4989_s7 = scalar_lea.vmem %s13416_s2, %s13423_s27 }
 0x358   : > { %9521 = vmatpush1.bf16.msra.mxu0 %v11308_v5  ;;  %9135 = vmatprep.subr.bf16.mxu1 %v11313_v6  ;;  %v11407_v5 = vld [vmem:[%s13414_s0 + $0x90] ss:$148 sps:$4 sm:$0xff]  }
 0x359   : > { %9522 = vmatprep.subr.bf16.mxu0 %v11316_v7 }
 0x35b   : > { %9136 = vmatpush1.bf16.msra.mxu1 %v11311_v8 }
 0x35c   : > { %9523 = vmatpush1.bf16.msra.mxu0 %v11314_v9  ;;  %9137 = vmatprep.subr.bf16.mxu1 %v11319_v10  ;;  %v5625_v10 = vlaneseq }
 0x35d   : > { %9524 = vmatprep.subr.bf16.mxu0 %v11322_v11 }
 0x35e   : > { %v5626_v11 = vshrl.u32 %v5625_v10, 7 }
 0x35f   : > { %9138 = vmatpush1.bf16.msra.mxu1 %v11317_v12 }
 0x360   : > { %9525 = vmatpush1.bf16.msra.mxu0 %v11320_v13  ;;  %9139 = vmatprep.subr.bf16.mxu1 %v11325_v14  ;;  %v5627_v12 = vsub.s32 0, %v5626_v11  ;;  %v5623_v13 = vld [vmem:[%s4989_s7] sm:$0x3]  ;;  %v5631_v14 = vsub.s32 1, %v5626_v11 }
 0x361   : > { %9526 = vmatprep.subr.bf16.mxu0 %v11328_v15 }
 0x362   : > { %v5628_v15 = vrot.slane %v5623_v13, %v5627_v12 }
 0x363   : > { %9140 = vmatpush1.bf16.msra.mxu1 %v11323_v16  ;;  %v5632_v16 = vrot.slane %v5623_v13, %v5631_v14 }
 0x364   : > { %9527 = vmatpush1.bf16.msra.mxu0 %v11326_v17  ;;  %9141 = vmatprep.subr.bf16.mxu1 %v11331_v18 }
 0x365   : > { %9528 = vmatprep.subr.bf16.mxu0 %v11334_v19 }
 0x367   : > { %9142 = vmatpush1.bf16.msra.mxu1 %v11329_v20 }
 0x368   : > { %9529 = vmatpush1.bf16.msra.mxu0 %v11332_v21  ;;  %9143 = vmatprep.subr.bf16.mxu1 %v11337_v22 }
 0x369   : > { %9530 = vmatprep.subr.bf16.mxu0 %v11340_v23 }
 0x36b   : > { %9144 = vmatpush1.bf16.msra.mxu1 %v11335_v24 }
 0x36c   : > { %9531 = vmatpush1.bf16.msra.mxu0 %v11338_v25  ;;  %9145 = vmatprep.subr.bf16.mxu1 %v11343_v26 }
 0x36d   : > { %9532 = vmatprep.subr.bf16.mxu0 %v11346_v27 }
 0x36f   : > { %9146 = vmatpush1.bf16.msra.mxu1 %v11341_v28 }
 0x370   : > { %9533 = vmatpush1.bf16.msra.mxu0 %v11344_v29  ;;  %9147 = vmatprep.subr.bf16.mxu1 %v11349_v30 }
 0x371   : > { %9534 = vmatprep.subr.bf16.mxu0 %v11352_v31 }
 0x373   : > { %9148 = vmatpush1.bf16.msra.mxu1 %v11347_v32 }
 0x374   : > { %9535 = vmatpush1.bf16.msra.mxu0 %v11350_v33  ;;  %9149 = vmatprep.subr.bf16.mxu1 %v11355_v34 }
 0x375   : > { %9536 = vmatprep.subr.bf16.mxu0 %v11358_v35 }
 0x377   : > { %9150 = vmatpush1.bf16.msra.mxu1 %v11353_v36 }
 0x378   : > { %9537 = vmatpush1.bf16.msra.mxu0 %v11356_v37  ;;  %9151 = vmatprep.subr.bf16.mxu1 %v11361_v38 }
 0x379   : > { %9538 = vmatprep.subr.bf16.mxu0 %v11364_v39 }
 0x37b   : > { %9152 = vmatpush1.bf16.msra.mxu1 %v11359_v40 }
 0x37c   : > { %9539 = vmatpush1.bf16.msra.mxu0 %v11362_v41  ;;  %9153 = vmatprep.subr.bf16.mxu1 %v11367_v42 }
 0x37d   : > { %9540 = vmatprep.subr.bf16.mxu0 %v11370_v43 }
 0x37f   : > { %9154 = vmatpush1.bf16.msra.mxu1 %v11365_v44 }
 0x380   : > { %9541 = vmatpush1.bf16.msra.mxu0 %v11368_v45  ;;  %9155 = vmatprep.subr.bf16.mxu1 %v11373_v46 }
 0x381   : > { %9542 = vmatprep.subr.bf16.mxu0 %v11376_v47 }
 0x383   : > { %9156 = vmatpush1.bf16.msra.mxu1 %v11371_v48 }
 0x384   : > { %9543 = vmatpush1.bf16.msra.mxu0 %v11374_v49 }
 0x385   : > { %9555 = vmatprep.subr.bf16.mxu0 %v11385_v50 }
 0x386   : > { %9158 = vmatmul.mubr.bf16.vlgmr.msra.gmra.mrb[0].mxu1 %v11377_v51 }
 0x387   : > { %9545 = vmatmul.mubr.bf16.vlgmr.msra.gmra.mrb[0].mxu0 %v11380_v52 }
 0x388   : > { %9556 = vmatpush1.bf16.msra.mxu0 %v11383_v53  ;;  %9587 = vmatprep.mubr.bf16.mxu0 %v11432_v56 }
 0x389   : > { %9557 = vmatprep.subr.bf16.mxu0 %v11388_v54 }
 0x38c   : > { %9558 = vmatpush1.bf16.msra.mxu0 %v11386_v55 }
 0x38d   : > { %9559 = vmatprep.subr.bf16.mxu0 %v11391_v57 }
 0x390   : > { %9560 = vmatpush1.bf16.msra.mxu0 %v11389_v58 }
 0x391   : > { %9561 = vmatprep.subr.bf16.mxu0 %v11394_v59 }
 0x394   : > { %9562 = vmatpush1.bf16.msra.mxu0 %v11392_v60 }
 0x395   : > { %9563 = vmatprep.subr.bf16.mxu0 %v11397_v61 }
 0x398   : > { %9564 = vmatpush1.bf16.msra.mxu0 %v11395_v62 }
 0x399   : > { %9565 = vmatprep.subr.bf16.mxu0 %v11400_v63 }
 0x39c   : > { %9566 = vmatpush1.bf16.msra.mxu0 %v11398_v0 }
 0x39d   : > { %9567 = vmatprep.subr.bf16.mxu0 %v11403_v1 }
 0x3a0   : > { %9568 = vmatpush1.bf16.msra.mxu0 %v11401_v2 }
 0x3a1   : > { %9569 = vmatprep.subr.bf16.mxu0 %v11406_v3 }
 0x3a4   : > { %9570 = vmatpush1.bf16.msra.mxu0 %v11404_v4 }
 0x3a7   : > { %9588 = vmatmul.mubr.bf16.vlgmr.msra.gmra.mrb[0].mxu0 %v11407_v5 }
 0x459   : > { %v9159_v6 = vpop.f32.mrb[0].mxu1 }
 0x45a   : > { %v9161_v7 = vpop.f32.mrb[1].mxu1  ;;  %v10362_v17 = vadd.f32 %v9159_v6, %v5628_v15 }
 0x45b   : > { %v9163_v8 = vpop.f32.mrb[2].mxu1  ;;  %v10364_v18 = vadd.f32 %v9161_v7, %v5632_v16 }
 0x45c   : > { %v9165_v9 = vpop.f32.mrb[3].mxu1  ;;  %v10366_v20 = vadd.f32 %v9163_v8, %v5628_v15 }
 0x45d   : > { %v10368_v23 = vadd.f32 %v9165_v9, %v5632_v16 }
 0x47a   : > { %v9589_v19 = vpop.f32.mrb[0].mxu0 }
 0x47b   : > { %v10363_v21 = vadd.f32 %v10362_v17, %v9589_v19  ;;  %v9591_v22 = vpop.f32.mrb[1].mxu0 }
 0x47c   : > { %v10365_v24 = vadd.f32 %v10364_v18, %v9591_v22  ;;  %v9593_v25 = vpop.f32.mrb[2].mxu0 }
 0x47d   : > { %v9598_v26 = vmul.f32 0.01, %v10363_v21  ;;  %v10367_v27 = vadd.f32 %v10366_v20, %v9593_v25  ;;  %v9595_v28 = vpop.f32.mrb[3].mxu0 }
 0x47e   : > { %v9599_v29 = vmul.f32 0.01, %v10365_v24  ;;  %v10369_v30 = vadd.f32 %v10368_v23, %v9595_v28  ;;  %9616 = sbr.rel (!%p11484_p5) target bundleno = 1165 (0x48d), region = 88 }
 0x47f   : > { %v9602_v31 = vmax.f32 %v10363_v21, %v9598_v26  ;;  %v9600_v32 = vmul.f32 0.01, %v10367_v27 }
 0x480   : > { %v9603_v33 = vmax.f32 %v10365_v24, %v9599_v29  ;;  %v9601_v34 = vmul.f32 0.01, %v10369_v30 }
 0x481   : > { %9606 = vst [vmem:[%s4984_s5] sm:$0xff] %v9602_v31  ;;  %v9604_v35 = vmax.f32 %v10367_v27, %v9600_v32 }
 0x482   : > { %9607 = vst [vmem:[%s4984_s5 + $0x8] sm:$0xff] %v9603_v33  ;;  %v9605_v36 = vmax.f32 %v10369_v30, %v9601_v34 }
 0x483   : > { %9608 = vst [vmem:[%s4984_s5 + $0x10] sm:$0xff] %v9604_v35 }
 0x484   : > { %9609 = vst [vmem:[%s4984_s5 + $0x18] sm:$0xff] %v9605_v36 }
 0x488   : > { %v9632_v37 = vld [vmem:[%s4984_s5] sm:$0xff] }
 0x489   : > { %v9634_v38 = vld [vmem:[%s4984_s5 + $0x8] sm:$0xff]  ;;  %9633 = vst [vmem:[%s9619_s8] sm:$0xff] %v9632_v37 }
 0x48a   : > { %v9636_v39 = vld [vmem:[%s4984_s5 + $0x10] sm:$0xff]  ;;  %9635 = vst [vmem:[%s9619_s8 + $0x8] sm:$0xff] %v9634_v38 }
 0x48b   : > { %v9638_v40 = vld [vmem:[%s4984_s5 + $0x18] sm:$0xff]  ;;  %9637 = vst [vmem:[%s9619_s8 + $0x20] sm:$0xff] %v9636_v39 }
 0x48c   : > { %9639 = vst [vmem:[%s9619_s8 + $0x28] sm:$0xff] %v9638_v40 }
 0x48d PF: > { %p10_p11 = scmp.ge.s32.totalorder %s11472_s16, 4   ;;  %s13419_s12 = smov %s11426_s13 }
 0x48e   : > { %s13420_s13 = smov %s11482_s19  ;;  %s13421_s14 = smov %s11472_s16 }
 0x48f   :  { %12 = sbr.rel (!%p10_p11) target bundleno = 2 (0x2), region = 151 }

</bundles_post_ra>
